<compile_context>
chip_gen: v6e
topology: v6e:2x2x1
jax: 0.10.0
libtpu: 0.0.40
codegen_flags: <defaults>
</compile_context>

<pallas_src>
import functools

import jax
import jax.numpy as jnp
from jax import lax
from jax.experimental import pallas as pl
from jax.experimental.pallas import tpu as pltpu


# ------------------------------ Pallas kernel ------------------------------ #
def _basic_block_kernel(*refs, tap_map, Ho, Wo, Cin, planes, has_proj, sc_tap):
    """Fused BasicBlock forward for one batch block (grid axis = batch blocks)."""
    if has_proj:
        (x1_ref, w1_ref, b1_ref, w2_ref, b2_ref,
         wsc_ref, bsc_ref, out_ref, pbuf) = refs
    else:
        x1_ref, w1_ref, b1_ref, w2_ref, b2_ref, out_ref, pbuf = refs

    cdt = w1_ref.dtype                       # matmul (compute) dtype, bf16
    Bblk = x1_ref.shape[0]
    M = Bblk * Ho * Wo                       # batch folded into matmul M dim

    # ---- conv1 (bn1 scale folded into w1) as ONE matmul over K = 9*Cin ----
    taps1 = [x1_ref[:, p, pl.ds(r0, Ho), pl.ds(c0, Wo), :].reshape(M, Cin)
             for (p, r0, c0) in tap_map]
    col1 = jnp.concatenate(taps1, axis=-1)                       # (M, 9*Cin) bf16
    out1 = jnp.dot(col1, w1_ref[...], preferred_element_type=jnp.float32)
    out1 = jnp.maximum(out1 + b1_ref[...], 0.0)                  # bias + ReLU, f32

    # ---- stage out1 in a bf16 VMEM halo buffer for conv2 (pad = 1) --------
    # Zero only the 1-pixel halo ring; the interior is overwritten every step.
    zrow = jnp.zeros((Bblk, 1, Wo + 2, planes), cdt)
    zcol = jnp.zeros((Bblk, Ho + 2, 1, planes), cdt)
    pbuf[:, 0:1, :, :] = zrow
    pbuf[:, Ho + 1:Ho + 2, :, :] = zrow
    pbuf[:, :, 0:1, :] = zcol
    pbuf[:, :, Wo + 1:Wo + 2, :] = zcol
    pbuf[:, pl.ds(1, Ho), pl.ds(1, Wo), :] = (
        out1.reshape(Bblk, Ho, Wo, planes).astype(cdt))          # single cast

    # ---- conv2 (bn2 scale folded into w2) as ONE matmul over K = 9*planes -
    taps2 = [pbuf[:, pl.ds(dy, Ho), pl.ds(dx, Wo), :].reshape(M, planes)
             for dy in range(3) for dx in range(3)]
    col2 = jnp.concatenate(taps2, axis=-1)                       # (M, 9*planes) bf16
    y = jnp.dot(col2, w2_ref[...],
                preferred_element_type=jnp.float32) + b2_ref[...]

    # ---- shortcut (1x1 projection conv or identity) + residual + ReLU -----
    sp, sr, sc = sc_tap
    xs = x1_ref[:, sp, pl.ds(sr, Ho), pl.ds(sc, Wo), :].reshape(M, Cin)
    if has_proj:
        y = y + (jnp.dot(xs, wsc_ref[...], preferred_element_type=jnp.float32)
                 + bsc_ref[...])
    else:
        y = y + xs.astype(jnp.float32)

    out_ref[...] = (jnp.maximum(y, 0.0)
                    .reshape(Bblk, Ho, Wo, planes).astype(out_ref.dtype))


# -------------------------------- JAX glue --------------------------------- #
def fold_bn(gamma, beta, mean, var, eps=1e-5):
    scale = gamma / jnp.sqrt(var + eps)
    return scale, beta - mean * scale


def to_taps(w_oihw):
    """(Cout, Cin, kh, kw) torch weight -> (kh*kw, Cin, Cout) tap weight."""
    co, ci, kh, kw = w_oihw.shape
    return jnp.transpose(w_oihw, (2, 3, 1, 0)).reshape(kh * kw, ci, co)


def _phase_split(x_nhwc, stride):
    """Pad by 1 and (for stride 2) split into spatial phases so that every
    3x3 tap is a contiguous static slice inside the kernel.

    Returns x1 of shape (B, P, Hs, Ws, C), a static tap map
    [(phase, row_off, col_off)] of length 9, and (Ho, Wo)."""
    B, H, W, C = x_nhwc.shape
    xp = jnp.pad(x_nhwc, ((0, 0), (1, 1), (1, 1), (0, 0)))
    if stride == 1:
        taps = [(0, dy, dx) for dy in range(3) for dx in range(3)]
        return xp[:, None], taps, H, W
    assert stride == 2 and H % 2 == 0 and W % 2 == 0, (stride, H, W)
    phases = [xp[:, py::2, px::2, :] for py in range(2) for px in range(2)]
    taps = [(2 * (dy % 2) + (dx % 2), dy // 2, dx // 2)
            for dy in range(3) for dx in range(3)]
    return jnp.stack(phases, axis=1), taps, H // 2, W // 2


def _pick_batch_block(B, max_block=8):
    """Largest divisor of B that is <= max_block while keeping >= 2 grid
    steps when B >= 2 (so both TensorCores get work on v7x)."""
    target = min(max_block, max(1, B // 2))
    bb = target
    while B % bb:
        bb -= 1
    return bb


def basic_block_forward(x_nchw, params, *, stride,
                        compute_dtype=jnp.bfloat16, max_batch_block=8):
    """Pallas implementation of BasicBlock.forward (moe=False, eval-mode BN)."""
    x = jnp.transpose(x_nchw, (0, 2, 3, 1)).astype(jnp.float32)      # NHWC
    B, H, W, Cin = x.shape
    planes = params["w1"].shape[0]
    has_proj = (stride != 1) or (Cin != planes)

    # Fold BN scales into weights; keep only biases for the kernel epilogue.
    s1, b1 = fold_bn(*params["bn1"])
    s2, b2 = fold_bn(*params["bn2"])
    w1 = (to_taps(params["w1"]) * s1).astype(compute_dtype)          # (9, Cin, P)
    w2 = (to_taps(params["w2"]) * s2).astype(compute_dtype)          # (9, P, P)
    w1 = w1.reshape(9 * Cin, planes)                                 # K-fused RHS
    w2 = w2.reshape(9 * planes, planes)
    b1 = b1.reshape(1, planes).astype(jnp.float32)
    b2 = b2.reshape(1, planes).astype(jnp.float32)

    x1, tap_map, Ho, Wo = _phase_split(x, stride)
    x1 = x1.astype(compute_dtype)                                    # (B,P,Hs,Ws,Cin)
    _, P, Hs, Ws, _ = x1.shape

    Bblk = _pick_batch_block(B, max_batch_block)
    grid = (B // Bblk,)

    args = [x1, w1, b1, w2, b2]
    in_specs = [
        pl.BlockSpec((Bblk, P, Hs, Ws, Cin), lambda b: (b, 0, 0, 0, 0)),
        pl.BlockSpec((9 * Cin, planes), lambda b: (0, 0)),
        pl.BlockSpec((1, planes), lambda b: (0, 0)),
        pl.BlockSpec((9 * planes, planes), lambda b: (0, 0)),
        pl.BlockSpec((1, planes), lambda b: (0, 0)),
    ]
    if has_proj:
        ssc, bsc = fold_bn(*params["bn_sc"])
        wsc = (to_taps(params["wsc"])[0] * ssc).astype(compute_dtype)  # (Cin, P)
        bsc = bsc.reshape(1, planes).astype(jnp.float32)
        args += [wsc, bsc]
        in_specs += [
            pl.BlockSpec((Cin, planes), lambda b: (0, 0)),
            pl.BlockSpec((1, planes), lambda b: (0, 0)),
        ]
        # x[:, ::2, ::2, :] == phase (py=1, px=1) of the padded/phase-split
        # input, so the shortcut reads the already-resident activation block.
        sc_tap = (3, 0, 0) if stride == 2 else (0, 1, 1)
    else:
        sc_tap = (0, 1, 1)      # identity: centre of the padded conv1 input

    kern = functools.partial(_basic_block_kernel, tap_map=tuple(tap_map),
                             Ho=Ho, Wo=Wo, Cin=Cin, planes=planes,
                             has_proj=has_proj, sc_tap=sc_tap)
    out = pl.pallas_call(
        kern,
        out_shape=jax.ShapeDtypeStruct((B, Ho, Wo, planes), jnp.float32),
        grid_spec=pltpu.PrefetchScalarGridSpec(
            num_scalar_prefetch=0,
            grid=grid,
            in_specs=in_specs,
            out_specs=pl.BlockSpec((Bblk, Ho, Wo, planes),
                                   lambda b: (b, 0, 0, 0)),
            scratch_shapes=[
                pltpu.VMEM((Bblk, Ho + 2, Wo + 2, planes), compute_dtype)],
        ),
        compiler_params=pltpu.CompilerParams(
            dimension_semantics=("parallel",)),
    )(*args)
    return jnp.transpose(out, (0, 3, 1, 2))                          # NCHW


# --------------------------- pure-JAX reference ----------------------------- #
def ref_forward(x, p, stride, eps=1e-5):
    def conv(x, w, s, pad):
        return lax.conv_general_dilated(
            x, w, (s, s), ((pad, pad), (pad, pad)),
            dimension_numbers=("NCHW", "OIHW", "NCHW"))

    def bn(x, g, b, m, v):
        sh = (1, -1, 1, 1)
        return ((x - m.reshape(sh)) / jnp.sqrt(v.reshape(sh) + eps)
                * g.reshape(sh) + b.reshape(sh))

    out = jax.nn.relu(bn(conv(x, p["w1"], stride, 1), *p["bn1"]))
    out = bn(conv(out, p["w2"], 1, 1), *p["bn2"])
    if stride != 1 or x.shape[1] != p["w1"].shape[0]:
        sc = bn(conv(x, p["wsc"], stride, 0), *p["bn_sc"])
    else:
        sc = x
    return jax.nn.relu(out + sc)


# ----------------------------------- main ----------------------------------- #
def _run_case(key, in_planes, planes, stride, B, H, W):
    ks = jax.random.split(key, 8)

    def bn_params(k):
        a, b, c, d = jax.random.split(k, 4)
        return (jax.random.normal(a, (planes,), jnp.float32) * 0.2 + 1.0,
                jax.random.normal(b, (planes,), jnp.float32) * 0.1,
                jax.random.normal(c, (planes,), jnp.float32) * 0.1,
                jax.random.uniform(d, (planes,), jnp.float32, 0.5, 1.5))

    params = {
        "w1": jax.random.normal(ks[0], (planes, in_planes, 3, 3),
                                jnp.float32) * 0.1,
        "w2": jax.random.normal(ks[1], (planes, planes, 3, 3),
                                jnp.float32) * 0.1,
        "wsc": jax.random.normal(ks[2], (planes, in_planes, 1, 1),
                                 jnp.float32) * 0.1,
        "bn1": bn_params(ks[3]),
        "bn2": bn_params(ks[4]),
        "bn_sc": bn_params(ks[5]),
    }
    x = jax.random.normal(ks[6], (B, in_planes, H, W), jnp.float32)

    fwd = jax.jit(functools.partial(basic_block_forward, stride=stride))
    out = jax.block_until_ready(fwd(x, params))
    ref = jax.block_until_ready(ref_forward(x, params, stride))

    assert out.shape == ref.shape == (B, planes, H // stride, W // stride), (
        out.shape, ref.shape)
    rel = float(jnp.linalg.norm(out - ref) / (jnp.linalg.norm(ref) + 1e-6))
    max_abs = float(jnp.max(jnp.abs(out - ref)))
    # bf16 matmul operands with f32 accumulation -> a few-percent tolerance.
    assert rel < 2e-2, (rel, max_abs)
    assert max_abs < 0.25, (rel, max_abs)
    return rel, max_abs


if __name__ == "__main__":
    key = jax.random.PRNGKey(0)
    k1, k2 = jax.random.split(key)
    # Projection-shortcut block (stride 2, channel change) — downsampling case.
    _run_case(k1, in_planes=16, planes=32, stride=2, B=8, H=16, W=16)
    # Identity-shortcut block (stride 1, same channels).
    _run_case(k2, in_planes=32, planes=32, stride=1, B=8, H=16, W=16)
    print("KERNEL_OK")
</pallas_src>

<mosaic_0001>
module attributes {stable_mosaic.version = 11 : i64} {
  func.func @_basic_block_kernel(%arg0: i32, %arg1: memref<4x4x9x9x16xbf16, #tpu.memory_space<vmem>>, %arg2: memref<144x32xbf16, #tpu.memory_space<vmem>>, %arg3: memref<1x32xf32, #tpu.memory_space<vmem>>, %arg4: memref<288x32xbf16, #tpu.memory_space<vmem>>, %arg5: memref<1x32xf32, #tpu.memory_space<vmem>>, %arg6: memref<16x32xbf16, #tpu.memory_space<vmem>>, %arg7: memref<1x32xf32, #tpu.memory_space<vmem>>, %arg8: memref<4x8x8x32xf32, #tpu.memory_space<vmem>>, %arg9: memref<4x10x10x32xbf16, #tpu.memory_space<vmem>>) attributes {dimension_semantics = [#tpu.dimension_semantics<parallel>], iteration_bounds = array<i64: 2>, scalar_prefetch = 0 : i64, scratch_operands = 1 : i64, tpu.core_type = #tpu.core_type<tc>, window_params = [{transform_indices = @transform_0, window_bounds = array<i64: 4, 4, 9, 9, 16>}, {pipeline_mode = #tpu.pipeline_mode<synchronous>, transform_indices = @transform_1, window_bounds = array<i64: 144, 32>}, {pipeline_mode = #tpu.pipeline_mode<synchronous>, transform_indices = @transform_2, window_bounds = array<i64: 1, 32>}, {pipeline_mode = #tpu.pipeline_mode<synchronous>, transform_indices = @transform_3, window_bounds = array<i64: 288, 32>}, {pipeline_mode = #tpu.pipeline_mode<synchronous>, transform_indices = @transform_4, window_bounds = array<i64: 1, 32>}, {pipeline_mode = #tpu.pipeline_mode<synchronous>, transform_indices = @transform_5, window_bounds = array<i64: 16, 32>}, {pipeline_mode = #tpu.pipeline_mode<synchronous>, transform_indices = @transform_6, window_bounds = array<i64: 1, 32>}, {transform_indices = @transform_7, window_bounds = array<i64: 4, 8, 8, 32>}]} {
    %c0 = arith.constant 0 : index
    %c0_0 = arith.constant 0 : index
    %c0_1 = arith.constant 0 : index
    %c0_2 = arith.constant 0 : index
    %c0_3 = arith.constant 0 : index
    %0 = vector.load %arg1[%c0, %c0_0, %c0_1, %c0_2, %c0_3] : memref<4x4x9x9x16xbf16, #tpu.memory_space<vmem>>, vector<4x1x8x8x16xbf16>
    %1 = vector.shape_cast %0 : vector<4x1x8x8x16xbf16> to vector<4x8x8x16xbf16>
    %2 = vector.shape_cast %1 : vector<4x8x8x16xbf16> to vector<256x16xbf16>
    %c0_4 = arith.constant 0 : index
    %c1 = arith.constant 1 : index
    %c0_5 = arith.constant 0 : index
    %c0_6 = arith.constant 0 : index
    %c0_7 = arith.constant 0 : index
    %3 = vector.load %arg1[%c0_4, %c1, %c0_5, %c0_6, %c0_7] : memref<4x4x9x9x16xbf16, #tpu.memory_space<vmem>>, vector<4x1x8x8x16xbf16>
    %4 = vector.shape_cast %3 : vector<4x1x8x8x16xbf16> to vector<4x8x8x16xbf16>
    %5 = vector.shape_cast %4 : vector<4x8x8x16xbf16> to vector<256x16xbf16>
    %c0_8 = arith.constant 0 : index
    %c0_9 = arith.constant 0 : index
    %c0_10 = arith.constant 0 : index
    %c1_11 = arith.constant 1 : index
    %c0_12 = arith.constant 0 : index
    %6 = vector.load %arg1[%c0_8, %c0_9, %c0_10, %c1_11, %c0_12] : memref<4x4x9x9x16xbf16, #tpu.memory_space<vmem>>, vector<4x1x8x8x16xbf16>
    %7 = vector.shape_cast %6 : vector<4x1x8x8x16xbf16> to vector<4x8x8x16xbf16>
    %8 = vector.shape_cast %7 : vector<4x8x8x16xbf16> to vector<256x16xbf16>
    %c0_13 = arith.constant 0 : index
    %c2 = arith.constant 2 : index
    %c0_14 = arith.constant 0 : index
    %c0_15 = arith.constant 0 : index
    %c0_16 = arith.constant 0 : index
    %9 = vector.load %arg1[%c0_13, %c2, %c0_14, %c0_15, %c0_16] : memref<4x4x9x9x16xbf16, #tpu.memory_space<vmem>>, vector<4x1x8x8x16xbf16>
    %10 = vector.shape_cast %9 : vector<4x1x8x8x16xbf16> to vector<4x8x8x16xbf16>
    %11 = vector.shape_cast %10 : vector<4x8x8x16xbf16> to vector<256x16xbf16>
    %c0_17 = arith.constant 0 : index
    %c3 = arith.constant 3 : index
    %c0_18 = arith.constant 0 : index
    %c0_19 = arith.constant 0 : index
    %c0_20 = arith.constant 0 : index
    %12 = vector.load %arg1[%c0_17, %c3, %c0_18, %c0_19, %c0_20] : memref<4x4x9x9x16xbf16, #tpu.memory_space<vmem>>, vector<4x1x8x8x16xbf16>
    %13 = vector.shape_cast %12 : vector<4x1x8x8x16xbf16> to vector<4x8x8x16xbf16>
    %14 = vector.shape_cast %13 : vector<4x8x8x16xbf16> to vector<256x16xbf16>
    %c0_21 = arith.constant 0 : index
    %c2_22 = arith.constant 2 : index
    %c0_23 = arith.constant 0 : index
    %c1_24 = arith.constant 1 : index
    %c0_25 = arith.constant 0 : index
    %15 = vector.load %arg1[%c0_21, %c2_22, %c0_23, %c1_24, %c0_25] : memref<4x4x9x9x16xbf16, #tpu.memory_space<vmem>>, vector<4x1x8x8x16xbf16>
    %16 = vector.shape_cast %15 : vector<4x1x8x8x16xbf16> to vector<4x8x8x16xbf16>
    %17 = vector.shape_cast %16 : vector<4x8x8x16xbf16> to vector<256x16xbf16>
    %c0_26 = arith.constant 0 : index
    %c0_27 = arith.constant 0 : index
    %c1_28 = arith.constant 1 : index
    %c0_29 = arith.constant 0 : index
    %c0_30 = arith.constant 0 : index
    %18 = vector.load %arg1[%c0_26, %c0_27, %c1_28, %c0_29, %c0_30] : memref<4x4x9x9x16xbf16, #tpu.memory_space<vmem>>, vector<4x1x8x8x16xbf16>
    %19 = vector.shape_cast %18 : vector<4x1x8x8x16xbf16> to vector<4x8x8x16xbf16>
    %20 = vector.shape_cast %19 : vector<4x8x8x16xbf16> to vector<256x16xbf16>
    %c0_31 = arith.constant 0 : index
    %c1_32 = arith.constant 1 : index
    %c1_33 = arith.constant 1 : index
    %c0_34 = arith.constant 0 : index
    %c0_35 = arith.constant 0 : index
    %21 = vector.load %arg1[%c0_31, %c1_32, %c1_33, %c0_34, %c0_35] : memref<4x4x9x9x16xbf16, #tpu.memory_space<vmem>>, vector<4x1x8x8x16xbf16>
    %22 = vector.shape_cast %21 : vector<4x1x8x8x16xbf16> to vector<4x8x8x16xbf16>
    %23 = vector.shape_cast %22 : vector<4x8x8x16xbf16> to vector<256x16xbf16>
    %c0_36 = arith.constant 0 : index
    %c0_37 = arith.constant 0 : index
    %c1_38 = arith.constant 1 : index
    %c1_39 = arith.constant 1 : index
    %c0_40 = arith.constant 0 : index
    %24 = vector.load %arg1[%c0_36, %c0_37, %c1_38, %c1_39, %c0_40] : memref<4x4x9x9x16xbf16, #tpu.memory_space<vmem>>, vector<4x1x8x8x16xbf16>
    %25 = vector.shape_cast %24 : vector<4x1x8x8x16xbf16> to vector<4x8x8x16xbf16>
    %26 = vector.shape_cast %25 : vector<4x8x8x16xbf16> to vector<256x16xbf16>
    %27 = tpu.concatenate %2, %5, %8, %11, %14, %17, %20, %23, %26 in 1 : vector<256x16xbf16>, vector<256x16xbf16>, vector<256x16xbf16>, vector<256x16xbf16>, vector<256x16xbf16>, vector<256x16xbf16>, vector<256x16xbf16>, vector<256x16xbf16>, vector<256x16xbf16> -> vector<256x144xbf16>
    %c0_41 = arith.constant 0 : index
    %c0_42 = arith.constant 0 : index
    %28 = vector.load %arg2[%c0_41, %c0_42] : memref<144x32xbf16, #tpu.memory_space<vmem>>, vector<144x32xbf16>
    %cst = arith.constant dense<0.000000e+00> : vector<256x32xf32>
    %29 = tpu.matmul %27, %28, %cst {dimension_numbers = #tpu.dot_dimension_numbers<[1], [0], [0], [1], [0, 0, 1, 1], [], []>} : vector<256x144xbf16>, vector<144x32xbf16>, vector<256x32xf32> -> vector<256x32xf32>
    %c0_43 = arith.constant 0 : index
    %c0_44 = arith.constant 0 : index
    %30 = vector.load %arg3[%c0_43, %c0_44] : memref<1x32xf32, #tpu.memory_space<vmem>>, vector<1x32xf32>
    %31 = vector.broadcast %30 : vector<1x32xf32> to vector<256x32xf32>
    %32 = arith.addf %29, %31 : vector<256x32xf32>
    %cst_45 = arith.constant 0.000000e+00 : f32
    %33 = vector.broadcast %cst_45 : f32 to vector<256x32xf32>
    %34 = arith.maximumf %32, %33 : vector<256x32xf32>
    %cst_46 = arith.constant 0.000000e+00 : bf16
    %35 = vector.broadcast %cst_46 : bf16 to vector<4x1x10x32xbf16>
    %cst_47 = arith.constant 0.000000e+00 : bf16
    %36 = vector.broadcast %cst_47 : bf16 to vector<4x10x1x32xbf16>
    %c0_48 = arith.constant 0 : index
    %c0_49 = arith.constant 0 : index
    %c0_50 = arith.constant 0 : index
    %c0_51 = arith.constant 0 : index
    %37 = vector.load %arg9[%c0_48, %c0_49, %c0_50, %c0_51] : memref<4x10x10x32xbf16, #tpu.memory_space<vmem>>, vector<4x1x10x32xbf16>
    tpu.vector_store %arg9[%c0_48, %c0_49, %c0_50, %c0_51], %35 {strides = array<i32>} : memref<4x10x10x32xbf16, #tpu.memory_space<vmem>>, vector<4x1x10x32xbf16>,
    %c0_52 = arith.constant 0 : index
    %c9 = arith.constant 9 : index
    %c0_53 = arith.constant 0 : index
    %c0_54 = arith.constant 0 : index
    %38 = vector.load %arg9[%c0_52, %c9, %c0_53, %c0_54] : memref<4x10x10x32xbf16, #tpu.memory_space<vmem>>, vector<4x1x10x32xbf16>
    tpu.vector_store %arg9[%c0_52, %c9, %c0_53, %c0_54], %35 {strides = array<i32>} : memref<4x10x10x32xbf16, #tpu.memory_space<vmem>>, vector<4x1x10x32xbf16>,
    %c0_55 = arith.constant 0 : index
    %c0_56 = arith.constant 0 : index
    %c0_57 = arith.constant 0 : index
    %c0_58 = arith.constant 0 : index
    %39 = vector.load %arg9[%c0_55, %c0_56, %c0_57, %c0_58] : memref<4x10x10x32xbf16, #tpu.memory_space<vmem>>, vector<4x10x1x32xbf16>
    tpu.vector_store %arg9[%c0_55, %c0_56, %c0_57, %c0_58], %36 {strides = array<i32>} : memref<4x10x10x32xbf16, #tpu.memory_space<vmem>>, vector<4x10x1x32xbf16>,
    %c0_59 = arith.constant 0 : index
    %c0_60 = arith.constant 0 : index
    %c9_61 = arith.constant 9 : index
    %c0_62 = arith.constant 0 : index
    %40 = vector.load %arg9[%c0_59, %c0_60, %c9_61, %c0_62] : memref<4x10x10x32xbf16, #tpu.memory_space<vmem>>, vector<4x10x1x32xbf16>
    tpu.vector_store %arg9[%c0_59, %c0_60, %c9_61, %c0_62], %36 {strides = array<i32>} : memref<4x10x10x32xbf16, #tpu.memory_space<vmem>>, vector<4x10x1x32xbf16>,
    %41 = vector.shape_cast %34 : vector<256x32xf32> to vector<4x8x8x32xf32>
    %42 = arith.truncf %41 : vector<4x8x8x32xf32> to vector<4x8x8x32xbf16>
    %c0_63 = arith.constant 0 : index
    %c1_64 = arith.constant 1 : index
    %c1_65 = arith.constant 1 : index
    %c0_66 = arith.constant 0 : index
    %43 = vector.load %arg9[%c0_63, %c1_64, %c1_65, %c0_66] : memref<4x10x10x32xbf16, #tpu.memory_space<vmem>>, vector<4x8x8x32xbf16>
    tpu.vector_store %arg9[%c0_63, %c1_64, %c1_65, %c0_66], %42 {strides = array<i32>} : memref<4x10x10x32xbf16, #tpu.memory_space<vmem>>, vector<4x8x8x32xbf16>,
    %c0_67 = arith.constant 0 : index
    %c0_68 = arith.constant 0 : index
    %c0_69 = arith.constant 0 : index
    %c0_70 = arith.constant 0 : index
    %44 = vector.load %arg9[%c0_67, %c0_68, %c0_69, %c0_70] : memref<4x10x10x32xbf16, #tpu.memory_space<vmem>>, vector<4x8x8x32xbf16>
    %45 = vector.shape_cast %44 : vector<4x8x8x32xbf16> to vector<256x32xbf16>
    %c0_71 = arith.constant 0 : index
    %c0_72 = arith.constant 0 : index
    %c1_73 = arith.constant 1 : index
    %c0_74 = arith.constant 0 : index
    %46 = vector.load %arg9[%c0_71, %c0_72, %c1_73, %c0_74] : memref<4x10x10x32xbf16, #tpu.memory_space<vmem>>, vector<4x8x8x32xbf16>
    %47 = vector.shape_cast %46 : vector<4x8x8x32xbf16> to vector<256x32xbf16>
    %c0_75 = arith.constant 0 : index
    %c0_76 = arith.constant 0 : index
    %c2_77 = arith.constant 2 : index
    %c0_78 = arith.constant 0 : index
    %48 = vector.load %arg9[%c0_75, %c0_76, %c2_77, %c0_78] : memref<4x10x10x32xbf16, #tpu.memory_space<vmem>>, vector<4x8x8x32xbf16>
    %49 = vector.shape_cast %48 : vector<4x8x8x32xbf16> to vector<256x32xbf16>
    %c0_79 = arith.constant 0 : index
    %c1_80 = arith.constant 1 : index
    %c0_81 = arith.constant 0 : index
    %c0_82 = arith.constant 0 : index
    %50 = vector.load %arg9[%c0_79, %c1_80, %c0_81, %c0_82] : memref<4x10x10x32xbf16, #tpu.memory_space<vmem>>, vector<4x8x8x32xbf16>
    %51 = vector.shape_cast %50 : vector<4x8x8x32xbf16> to vector<256x32xbf16>
    %c0_83 = arith.constant 0 : index
    %c1_84 = arith.constant 1 : index
    %c1_85 = arith.constant 1 : index
    %c0_86 = arith.constant 0 : index
    %52 = vector.load %arg9[%c0_83, %c1_84, %c1_85, %c0_86] : memref<4x10x10x32xbf16, #tpu.memory_space<vmem>>, vector<4x8x8x32xbf16>
    %53 = vector.shape_cast %52 : vector<4x8x8x32xbf16> to vector<256x32xbf16>
    %c0_87 = arith.constant 0 : index
    %c1_88 = arith.constant 1 : index
    %c2_89 = arith.constant 2 : index
    %c0_90 = arith.constant 0 : index
    %54 = vector.load %arg9[%c0_87, %c1_88, %c2_89, %c0_90] : memref<4x10x10x32xbf16, #tpu.memory_space<vmem>>, vector<4x8x8x32xbf16>
    %55 = vector.shape_cast %54 : vector<4x8x8x32xbf16> to vector<256x32xbf16>
    %c0_91 = arith.constant 0 : index
    %c2_92 = arith.constant 2 : index
    %c0_93 = arith.constant 0 : index
    %c0_94 = arith.constant 0 : index
    %56 = vector.load %arg9[%c0_91, %c2_92, %c0_93, %c0_94] : memref<4x10x10x32xbf16, #tpu.memory_space<vmem>>, vector<4x8x8x32xbf16>
    %57 = vector.shape_cast %56 : vector<4x8x8x32xbf16> to vector<256x32xbf16>
    %c0_95 = arith.constant 0 : index
    %c2_96 = arith.constant 2 : index
    %c1_97 = arith.constant 1 : index
    %c0_98 = arith.constant 0 : index
    %58 = vector.load %arg9[%c0_95, %c2_96, %c1_97, %c0_98] : memref<4x10x10x32xbf16, #tpu.memory_space<vmem>>, vector<4x8x8x32xbf16>
    %59 = vector.shape_cast %58 : vector<4x8x8x32xbf16> to vector<256x32xbf16>
    %c0_99 = arith.constant 0 : index
    %c2_100 = arith.constant 2 : index
    %c2_101 = arith.constant 2 : index
    %c0_102 = arith.constant 0 : index
    %60 = vector.load %arg9[%c0_99, %c2_100, %c2_101, %c0_102] : memref<4x10x10x32xbf16, #tpu.memory_space<vmem>>, vector<4x8x8x32xbf16>
    %61 = vector.shape_cast %60 : vector<4x8x8x32xbf16> to vector<256x32xbf16>
    %62 = tpu.concatenate %45, %47, %49, %51, %53, %55, %57, %59, %61 in 1 : vector<256x32xbf16>, vector<256x32xbf16>, vector<256x32xbf16>, vector<256x32xbf16>, vector<256x32xbf16>, vector<256x32xbf16>, vector<256x32xbf16>, vector<256x32xbf16>, vector<256x32xbf16> -> vector<256x288xbf16>
    %c0_103 = arith.constant 0 : index
    %c0_104 = arith.constant 0 : index
    %63 = vector.load %arg4[%c0_103, %c0_104] : memref<288x32xbf16, #tpu.memory_space<vmem>>, vector<288x32xbf16>
    %cst_105 = arith.constant dense<0.000000e+00> : vector<256x32xf32>
    %64 = tpu.matmul %62, %63, %cst_105 {dimension_numbers = #tpu.dot_dimension_numbers<[1], [0], [0], [1], [0, 0, 1, 1], [], []>} : vector<256x288xbf16>, vector<288x32xbf16>, vector<256x32xf32> -> vector<256x32xf32>
    %c0_106 = arith.constant 0 : index
    %c0_107 = arith.constant 0 : index
    %65 = vector.load %arg5[%c0_106, %c0_107] : memref<1x32xf32, #tpu.memory_space<vmem>>, vector<1x32xf32>
    %66 = vector.broadcast %65 : vector<1x32xf32> to vector<256x32xf32>
    %67 = arith.addf %64, %66 : vector<256x32xf32>
    %c0_108 = arith.constant 0 : index
    %c3_109 = arith.constant 3 : index
    %c0_110 = arith.constant 0 : index
    %c0_111 = arith.constant 0 : index
    %c0_112 = arith.constant 0 : index
    %68 = vector.load %arg1[%c0_108, %c3_109, %c0_110, %c0_111, %c0_112] : memref<4x4x9x9x16xbf16, #tpu.memory_space<vmem>>, vector<4x1x8x8x16xbf16>
    %69 = vector.shape_cast %68 : vector<4x1x8x8x16xbf16> to vector<4x8x8x16xbf16>
    %70 = vector.shape_cast %69 : vector<4x8x8x16xbf16> to vector<256x16xbf16>
    %c0_113 = arith.constant 0 : index
    %c0_114 = arith.constant 0 : index
    %71 = vector.load %arg6[%c0_113, %c0_114] : memref<16x32xbf16, #tpu.memory_space<vmem>>, vector<16x32xbf16>
    %cst_115 = arith.constant dense<0.000000e+00> : vector<256x32xf32>
    %72 = tpu.matmul %70, %71, %cst_115 {dimension_numbers = #tpu.dot_dimension_numbers<[1], [0], [0], [1], [0, 0, 1, 1], [], []>} : vector<256x16xbf16>, vector<16x32xbf16>, vector<256x32xf32> -> vector<256x32xf32>
    %c0_116 = arith.constant 0 : index
    %c0_117 = arith.constant 0 : index
    %73 = vector.load %arg7[%c0_116, %c0_117] : memref<1x32xf32, #tpu.memory_space<vmem>>, vector<1x32xf32>
    %74 = vector.broadcast %73 : vector<1x32xf32> to vector<256x32xf32>
    %75 = arith.addf %72, %74 : vector<256x32xf32>
    %76 = arith.addf %67, %75 : vector<256x32xf32>
    %cst_118 = arith.constant 0.000000e+00 : f32
    %77 = vector.broadcast %cst_118 : f32 to vector<256x32xf32>
    %78 = arith.maximumf %76, %77 : vector<256x32xf32>
    %79 = vector.shape_cast %78 : vector<256x32xf32> to vector<4x8x8x32xf32>
    %c0_119 = arith.constant 0 : index
    %c0_120 = arith.constant 0 : index
    %c0_121 = arith.constant 0 : index
    %c0_122 = arith.constant 0 : index
    %80 = vector.load %arg8[%c0_119, %c0_120, %c0_121, %c0_122] : memref<4x8x8x32xf32, #tpu.memory_space<vmem>>, vector<4x8x8x32xf32>
    tpu.vector_store %arg8[%c0_119, %c0_120, %c0_121, %c0_122], %79 {strides = array<i32>} : memref<4x8x8x32xf32, #tpu.memory_space<vmem>>, vector<4x8x8x32xf32>,
    return
  }
  func.func @transform_0(%arg0: i32) -> (i32, i32, i32, i32, i32) {
    %c0_i32 = arith.constant 0 : i32
    %c0_i32_0 = arith.constant 0 : i32
    %c0_i32_1 = arith.constant 0 : i32
    %c0_i32_2 = arith.constant 0 : i32
    %c0_i32_3 = arith.constant 0 : i32
    return %arg0, %c0_i32, %c0_i32_0, %c0_i32_1, %c0_i32_2 : i32, i32, i32, i32, i32
  }
  func.func @transform_1(%arg0: i32) -> (i32, i32) {
    %c0_i32 = arith.constant 0 : i32
    %c0_i32_0 = arith.constant 0 : i32
    %c0_i32_1 = arith.constant 0 : i32
    return %c0_i32, %c0_i32_0 : i32, i32
  }
  func.func @transform_2(%arg0: i32) -> (i32, i32) {
    %c0_i32 = arith.constant 0 : i32
    %c0_i32_0 = arith.constant 0 : i32
    %c0_i32_1 = arith.constant 0 : i32
    return %c0_i32, %c0_i32_0 : i32, i32
  }
  func.func @transform_3(%arg0: i32) -> (i32, i32) {
    %c0_i32 = arith.constant 0 : i32
    %c0_i32_0 = arith.constant 0 : i32
    %c0_i32_1 = arith.constant 0 : i32
    return %c0_i32, %c0_i32_0 : i32, i32
  }
  func.func @transform_4(%arg0: i32) -> (i32, i32) {
    %c0_i32 = arith.constant 0 : i32
    %c0_i32_0 = arith.constant 0 : i32
    %c0_i32_1 = arith.constant 0 : i32
    return %c0_i32, %c0_i32_0 : i32, i32
  }
  func.func @transform_5(%arg0: i32) -> (i32, i32) {
    %c0_i32 = arith.constant 0 : i32
    %c0_i32_0 = arith.constant 0 : i32
    %c0_i32_1 = arith.constant 0 : i32
    return %c0_i32, %c0_i32_0 : i32, i32
  }
  func.func @transform_6(%arg0: i32) -> (i32, i32) {
    %c0_i32 = arith.constant 0 : i32
    %c0_i32_0 = arith.constant 0 : i32
    %c0_i32_1 = arith.constant 0 : i32
    return %c0_i32, %c0_i32_0 : i32, i32
  }
  func.func @transform_7(%arg0: i32) -> (i32, i32, i32, i32) {
    %c0_i32 = arith.constant 0 : i32
    %c0_i32_0 = arith.constant 0 : i32
    %c0_i32_1 = arith.constant 0 : i32
    %c0_i32_2 = arith.constant 0 : i32
    return %arg0, %c0_i32, %c0_i32_0, %c0_i32_1 : i32, i32, i32, i32
  }
}

</mosaic_0001>

<bundles_post_ra>
// kernel: basic_block_forward.1
= control target key start
LH: loop header
LB: loop body
LE: loop exit
PB: predicated region body
PF: predicated region fallthrough
CT: control target
= control target key end

     0   :  { %12 = vsyncpa [#allocation4], 0  ;;  %s14094_s0 = inlined_call_operand.vmem [shape: bf16[8,4,9,9,16], index: 0, kind: input, shape index: {}]   ;;  %s14095_s1 = inlined_call_operand.vmem [shape: bf16[144,32], index: 1, kind: input, shape index: {}]   ;;  %s14096_s2 = inlined_call_operand.vmem [shape: f32[1,32], index: 2, kind: input, shape index: {}]   ;;  %s14097_s3 = inlined_call_operand.vmem [shape: bf16[288,32], index: 3, kind: input, shape index: {}]   ;;  %s14098_s4 = inlined_call_operand.vmem [shape: f32[1,32], index: 4, kind: input, shape index: {}]   ;;  %s14099_s5 = inlined_call_operand.vmem [shape: bf16[16,32], index: 5, kind: input, shape index: {}]   ;;  %s14100_s6 = inlined_call_operand.vmem [shape: f32[1,32], index: 6, kind: input, shape index: {}]   ;;  %s14101_s7 = inlined_call_operand.hbm [shape: f32[8,8,8,32], index: 7, kind: output, shape index: {}]  }
   0x1   :  { %14 = vsyncpa [#allocation4 + $0x1], 0  ;;  %s9953_s24 = smov 0   ;;  %s9955_s25 = smov 0  }
   0x2   :  { %s9957_s26 = smov 0   ;;  %s9959_s27 = smov 0  }
   0x3 LB: > { %s9974_s28 = sadd.s32 4294967295, %s9900_s27   ;;  %s8480_s29 = sadd.s32 4294967294, %s9900_s27   ;;  %s9900_s27 = sphi %s9959_s27, %s14275_s27   ;;  %s9896_s26 = sphi %s9957_s26, %s14274_s26   ;;  %s9892_s25 = sphi %s9955_s25, %s14273_s25   ;;  %s9888_s24 = sphi %s9953_s24, %s14272_s24  }
   0x4   : > { %s9978_s30 = sadd.s32 1, %s9900_s27   ;;  %s179_s8 = sadd.s32 1, %s9896_s26 }
   0x5   : > { %s176_s9 = ssub.s32 %s9900_s27, %s9978_s30  ;;  %p189_p0 = scmp.ne.s32.totalorder %s9896_s26, %s9892_s25 }
   0x6   : > { %p177_p1 = scmp.eq.s32.totalorder %s176_s9, 0  ;;  %p190_p2 = scmp.eq.s32.totalorder %s9974_s28, 1 }
   0x7   : > { %p195_p3 = scmp.ne.s32.totalorder %s9892_s25, %s9888_s24  ;;  %p196_p4 = scmp.eq.s32.totalorder %s8480_s29, 1 }
   0x8   : > { %s9989_s10 = scalar_select %p177_p1, %s9896_s26, %s179_s8  }
   0x9   : > { %p9991_p5 = por %p190_p2, %p189_p0  ;;  %p9995_p6 = por %p196_p4, %p195_p3 }
   0xa   : > { %p8483_p7 = scmp.ge.s32.totalorder %s9900_s27, 1  ;;  %p242_p8 = scmp.lt.s32.totalorder %s9900_s27, 3 }
   0xc   : > { %p243_p9 = pnand %p8483_p7, %p242_p8 }
   0xe   : > { %246 = sbr.rel (%p243_p9) target bundleno = 1159 (0x487), region = 48 }
  0x13   : > { %s8485_s13 = sshll.u32 %s9974_s28, 2  ;;  %v9597_v0 = vld [vmem:[%s14095_s1 + $0x38] sm:$0xff]   ;;  %v14102_v1 = vmov 0   ;;  %v9599_v2 = vld [vmem:[%s14095_s1 + $0x30] sm:$0xff]   ;;  %v9601_v3 = vld [vmem:[%s14095_s1 + $0x28] sm:$0xff]   ;;  %s9903_s29 = smov 16  }
  0x14   : > { %p276_p10 = scmp.lt.s32.totalorder %s8485_s13, 7  ;;  %3162 = vmatprep.subr.bf16.mxu0 %v14102_v1  ;;  %v9604_v13 = vld [vmem:[%s14095_s1 + $0x20] sm:$0xff]   ;;  %vm381_vm0 = vsmask.f32 3328  ;;  %s9905_s14 = smov 112   ;;  %v9607_v24 = vld [vmem:[%s14095_s1 + $0x18] sm:$0xff]  }
  0x15   : > { %3163 = vmatpush1.bf16.msra.mxu0 %v9597_v0  ;;  %s9906_s17 = smov 64   ;;  %vm382_vm1 = vsmask.f32 7440  ;;  %v9610_v32 = vld [vmem:[%s14095_s1 + $0x10] sm:$0xff]   ;;  %s9907_s20 = smov 96   ;;  %v9612_v62 = vld [vmem:[%s14095_s1 + $0x8] sm:$0xff]  }
  0x16   : > { %s14277_s13 = smov (!%p276_p10, %s8485_s13), 7  ;;  %3164 = vmatprep.subr.bf16.mxu0 %v14102_v1  ;;  %vm10077_vm2 = vmor %vm381_vm0, %vm382_vm1  ;;  %s9908_s15 = smov 32   ;;  %vm2772_vm3 = vcmask 130048   ;;  %vm2821_vm4 = vcmask 261120   ;;  %vm2854_vm5 = vcmask 392192   ;;  %vm2887_vm6 = vcmask 523264  }
  0x17   : > { %s9511_s18 = smul.u32 288, %s14277_s13  ;;  %s9904_s13 = smov 48   ;;  %vm2920_vm7 = vcmask 654336   ;;  %vm2953_vm8 = vcmask 785408   ;;  %vm2986_vm9 = vcmask 916480   ;;  %vm3355_vm10 = vcmask 257024  }
  0x18   : > { %s9909_s19 = smov 80   ;;  %vm3357_vm11 = vcmask 253952   ;;  %vm3375_vm12 = vsmask.f32 256  ;;  %vm3497_vm13 = vsmask.f32 7938 }
  0x19   : > { %s10016_s23 = scalar_lea.vmem %s14094_s0, %s9511_s18  ;;  %3165 = vmatpush1.bf16.msra.mxu0 %v9599_v2  ;;  %vm11347_vm14 = vmand %vm3357_vm11, %vm3375_vm12  ;;  %vm4870_vm1 = vcmask 1042432   ;;  %s9910_s8 = smov [#allocation3]  }
  0x1a   : > { %v9561_v4 = vld [vmem:[%s10016_s23 + $0x48] ss:$8 sps:$4 sm:$0xff]   ;;  %3166 = vmatprep.subr.bf16.mxu0 %v14102_v1  ;;  %v8520_v6 = vld [vmem:[%s10016_s23 + $0x98] sm:$0xf]  ;;  %v10039_v23 = vld [vmem:[%s10016_s23] sm:$0xf] }
  0x1b   : > { %v8519_v5 = vld [vmem:[%s10016_s23 + $0x90] sm:$0xf]  ;;  %2084 = vrot.lane.b32.xlu0 %v9561_v4, %s9903_s29  ;;  %v945_v7 = vshrl.u32 %v8520_v6, 16  ;;  %v948_v8 = vshll.u32 %v8520_v6, 16  ;;  %v9564_v18 = vld [vmem:[%s10016_s23 + $0xd8] ss:$8 sps:$4 sm:$0xff]   ;;  %vm11362_vm15 = vmand %vm3357_vm11, %vm3497_vm13 }
  0x1c   : > { %v8759_v9 = vcombine.low %v8519_v5, %v8520_v6  ;;  %v931_v10 = vshrl.u32 %v8519_v5, 16  ;;  %v934_v11 = vshll.u32 %v8519_v5, 16  ;;  %v9563_v12 = vld [vmem:[%s10016_s23 + $0x50] ss:$8 sps:$4 sm:$0xff]   ;;  %v10033_v21 = vld [vmem:[%s10016_s23 + $0x8] sm:$0xf]  ;;  %vm11374_vm0 = vmand %vm3355_vm10, %vm3497_vm13 }
  0x1d   : > { %3167 = vmatpush1.bf16.msra.mxu0 %v9601_v3  ;;  %v947_v14 = vrot.slane %v945_v7, 4  ;;  %v950_v15 = vrot.slane %v948_v8, 5  ;;  %v9565_v20 = vld [vmem:[%s10016_s23 + $0xe8] ss:$8 sps:$4 sm:$0xff]   ;;  %v1477_v28 = vshrl.u32 %v10033_v21, 16  ;;  %v1480_v29 = vshll.u32 %v10033_v21, 16 }
  0x1e   : > { %2276 = vrot.lane.b32.xlu1 %v8759_v9, %s9904_s13  ;;  %3168 = vmatprep.subr.bf16.mxu0 %v14102_v1  ;;  %v933_v16 = vrot.slane %v931_v10, 4  ;;  %v936_v17 = vrot.slane %v934_v11, 5  ;;  %v10036_v22 = vld [vmem:[%s10016_s23 + $0x10] sm:$0xf]  ;;  %v10048_v26 = vld [vmem:[%s10016_s23 + $0x8] sm:$0xf] }
  0x1f   : > { %v951_v19 = vor.u32 %v950_v15, %v947_v14  ;;  %2692 = vrot.lane.b32.xlu0 %v9563_v12, %s9905_s14  ;;  %v8807_v25 = vcombine.low %v10033_v21, %v10036_v22  ;;  %v349_v30 = vld [vmem:[%s10016_s23 + $0x4] sm:$0x1]  ;;  %v385_v31 = vshrl.u32 %v10039_v23, 16  ;;  %v1491_v34 = vshrl.u32 %v10036_v22, 16  ;;  %v350_v35 = vld [vmem:[%s10016_s23 + $0xc] sm:$0x1] }
  0x20   : > { %v937_v27 = vor.u32 %v936_v17, %v933_v16  ;;  %v388_v36 = vshll.u32 %v10039_v23, 16  ;;  %v394_v37 = vshll.u32 %v349_v30, 16  ;;  %v399_v39 = vshrl.u32 %v10048_v26, 16  ;;  %v9567_v44 = vld [vmem:[%s10016_s23 + $0x58] ss:$8 sps:$4 sm:$0xff]  }
  0x21   : > { %3169 = vmatpush1.bf16.msra.mxu0 %v9604_v13  ;;  %v10058_v33 = vrot.slane %v951_v19, 4  ;;  %v387_v38 = vrot.slane %v385_v31, 4  ;;  %v402_v40 = vshll.u32 %v10048_v26, 16  ;;  %v408_v41 = vshll.u32 %v350_v35, 16  ;;  %v8583_v50 = vld [vmem:[%s10016_s23 + $0x94] sm:$0x1] }
  0x22   : > { %2388 = vrot.lane.b32.xlu1 %v9564_v18, %s9906_s17  ;;  %3170 = vmatprep.subr.bf16.mxu0 %v14102_v1  ;;  %v1494_v42 = vshll.u32 %v10036_v22, 16  ;;  %v390_v43 = vrot.slane %v388_v36, 5  ;;  %v938_v46 = vrot.slane %v937_v27, 4  ;;  %v396_v47 = vrot.slane %v394_v37, 5  ;;  %v8584_v53 = vld [vmem:[%s10016_s23 + $0x9c] sm:$0x1] }
  0x23   : > { %2390 = vrot.lane.b32.xlu0 %v9565_v20, %s9906_s17  ;;  %v401_v48 = vrot.slane %v399_v39, 4  ;;  %v404_v49 = vrot.slane %v402_v40, 5  ;;  %v410_v52 = vrot.slane %v408_v41, 5  ;;  %v940_v54 = vshll.u32 %v8583_v50, 16  ;;  %v8521_v55 = vld [vmem:[%s10016_s23 + $0xa0] sm:$0xf] }
  0x24   : > { %v391_v51 = vor.u32 %v390_v43, %v387_v38  ;;  %v954_v58 = vshll.u32 %v8584_v53, 16  ;;  %v8522_v59 = vld [vmem:[%s10016_s23 + $0xa8] sm:$0xf]  ;;  %v959_v60 = vshrl.u32 %v8521_v55, 16  ;;  %v962_v61 = vshll.u32 %v8521_v55, 16 }
  0x25   : > { %3171 = vmatpush1.bf16.msra.mxu0 %v9607_v24  ;;  %v405_v57 = vor.u32 %v404_v49, %v401_v48  ;;  %v942_v0 = vrot.slane %v940_v54, 5  ;;  %v973_v2 = vshrl.u32 %v8522_v59, 16  ;;  %v976_v3 = vshll.u32 %v8522_v59, 16  ;;  %v10087_v4 = vld [vmem:[%s10016_s23 + $0x10] sm:$0xf]  ;;  %v9615_v24 = vld [vmem:[%s14095_s1] sm:$0xff]  }
  0x26   : > { %2580 = vrot.lane.b32.xlu1 %v8807_v25, %s9907_s20  ;;  %3172 = vmatprep.subr.bf16.mxu0 %v14102_v1  ;;  %v392_v63 = vrot.slane %v391_v51, 4  ;;  %v956_v6 = vrot.slane %v954_v58, 5  ;;  %v961_v7 = vrot.slane %v959_v60, 4  ;;  %v964_v8 = vrot.slane %v962_v61, 5  ;;  %v10091_v9 = vld [vmem:[%s10016_s23 + $0x18] sm:$0xf] }
  0x27   : > { %v406_v5 = vrot.slane %v405_v57, 4  ;;  %v943_v11 = vsel %vm10077_vm2, %v938_v46, %v942_v0  ;;  %v975_v12 = vrot.slane %v973_v2, 4  ;;  %v978_v13 = vrot.slane %v976_v3, 5  ;;  %v351_v14 = vld [vmem:[%s10016_s23 + $0x14] sm:$0x1]  ;;  %v9618_v48 = vld [vmem:[%s14095_s1 + $0x40] sm:$0xff]  }
  0x28   : > { %v397_v10 = vsel %vm10077_vm2, %v392_v63, %v396_v47  ;;  %v352_v15 = vld [vmem:[%s10016_s23 + $0x1c] sm:$0x1]  ;;  %v957_v17 = vsel %vm10077_vm2, %v10058_v33, %v956_v6  ;;  %v8760_v18 = vcombine.low %v8521_v55, %v8522_v59  ;;  %v413_v19 = vshrl.u32 %v10087_v4, 16  ;;  %v8585_v20 = vld [vmem:[%s10016_s23 + $0xa4] sm:$0x1] }
  0x29   : > { %3173 = vmatpush1.bf16.msra.mxu0 %v9610_v32  ;;  %v411_v16 = vsel %vm10077_vm2, %v406_v5, %v410_v52  ;;  %v10111_v25 = vrot.slane %v1477_v28, 4  ;;  %v416_v30 = vshll.u32 %v10087_v4, 16  ;;  %v422_v31 = vshll.u32 %v351_v14, 16  ;;  %v8586_v32 = vld [vmem:[%s10016_s23 + $0xac] sm:$0x1] }
  0x2a   : > { %2086 = vrot.lane.b32.xlu1 %v9567_v44, %s9903_s29  ;;  %3174 = vmatprep.subr.bf16.mxu0 %v14102_v1  ;;  %v8743_v27 = vcombine.low %v397_v10, %v411_v16  ;;  %v415_v33 = vrot.slane %v413_v19, 4  ;;  %v427_v35 = vshrl.u32 %v10091_v9, 16  ;;  %v430_v36 = vshll.u32 %v10091_v9, 16  ;;  %v10121_v47 = vld [vmem:[%s10016_s23 + $0x18] sm:$0xf] }
  0x2b   : > { %v436_v37 = vshll.u32 %v352_v15, 16  ;;  %v8791_v28 = vcombine.low %v943_v11, %v957_v17  ;;  %v418_v38 = vrot.slane %v416_v30, 5  ;;  %v965_v39 = vor.u32 %v964_v8, %v961_v7  ;;  %v10140_v21 = vld [vmem:[%s10016_s23 + $0x20] sm:$0xf]  ;;  %v10155_v5 = vld [vmem:[%s10016_s23 + $0x28] sm:$0xf] }
  0x2c   : > { %2164 = vrot.lane.b32.xlu0 %v8743_v27, %s9908_s15  ;;  %v968_v40 = vshll.u32 %v8585_v20, 16  ;;  %v424_v41 = vrot.slane %v422_v31, 5  ;;  %v429_v43 = vrot.slane %v427_v35, 4  ;;  %v432_v44 = vrot.slane %v430_v36, 5  ;;  %v353_v6 = vld [vmem:[%s10016_s23 + $0x24] sm:$0x1] }
  0x2d   : > { %3175 = vmatpush1.bf16.msra.mxu0 %v9612_v62  ;;  %v979_v46 = vor.u32 %v978_v13, %v975_v12  ;;  %v419_v49 = vor.u32 %v418_v38, %v415_v33  ;;  %v966_v50 = vrot.slane %v965_v39, 4  ;;  %v982_v52 = vshll.u32 %v8586_v32, 16  ;;  %v9570_v10 = vld [vmem:[%s10016_s23 + $0x60] ss:$8 sps:$4 sm:$0xff]   ;;  %v354_v11 = vld [vmem:[%s10016_s23 + $0x2c] sm:$0x1] }
  0x2e   : > { %3176 = vmatprep.subr.bf16.mxu0 %v14102_v1  ;;  %2278 = vrot.lane.b32.xlu1 %v8760_v18, %s9904_s13  ;;  %v970_v51 = vrot.slane %v968_v40, 5  ;;  %v433_v53 = vor.u32 %v432_v44, %v429_v43  ;;  %v438_v54 = vrot.slane %v436_v37, 5  ;;  %v1505_v57 = vshrl.u32 %v10121_v47, 16  ;;  %v10168_v16 = vld [vmem:[%s10016_s23 + $0xb0] sm:$0xf] }
  0x2f   : > { %v980_v55 = vrot.slane %v979_v46, 4  ;;  %v10130_v58 = vrot.slane %v1480_v29, 5  ;;  %v420_v59 = vrot.slane %v419_v49, 4  ;;  %v984_v61 = vrot.slane %v982_v52, 5  ;;  %v10143_v29 = vld [vmem:[%s10016_s23 + $0x20] sm:$0xf] }
  0x30   : > { %2468 = vrot.lane.b32.xlu0 %v8791_v28, %s9909_s19  ;;  %v971_v60 = vsel %vm10077_vm2, %v966_v50, %v970_v51  ;;  %v10137_v62 = vrot.slane %v1491_v34, 4  ;;  %v434_v63 = vrot.slane %v433_v53, 4  ;;  %v10147_v0 = vrot.slane %v1494_v42, 5  ;;  %v10174_v19 = vld [vmem:[%s10016_s23 + $0xb8] sm:$0xf] }
  0x31   : > { %3177 = vmatpush1.bf16.msra.mxu0 %v9615_v24  ;;  %v425_v2 = vsel %vm10077_vm2, %v420_v59, %v424_v41  ;;  %v985_v3 = vsel %vm10077_vm2, %v980_v55, %v984_v61  ;;  %v1508_v34 = vshll.u32 %v10121_v47, 16  ;;  %v10160_v22 = vrot.slane %v1505_v57, 4  ;;  %v9571_v36 = vld [vmem:[%s10016_s23 + $0x68] ss:$8 sps:$4 sm:$0xff]   ;;  %v8587_v40 = vld [vmem:[%s10016_s23 + $0xb4] sm:$0x1] }
  0x32   : > { %3192 = vmatprep.subr.bf16.mxu0 %v14102_v1  ;;  %v439_v7 = vsel %vm10077_vm2, %v434_v63, %v438_v54  ;;  %v8792_v8 = vcombine.low %v971_v60, %v985_v3  ;;  %v1519_v42 = vshrl.u32 %v10140_v21, 16  ;;  %v441_v13 = vshrl.u32 %v10143_v29, 16  ;;  %v10190_v52 = vld [vmem:[%s10016_s23 + $0x28] sm:$0xf]  ;;  %v10413_v1 = vld [vmem:[%s10016_s23 + $0x138] sm:$0xf] }
  0x33   : > { %v8744_v12 = vcombine.low %v425_v2, %v439_v7  ;;  %v444_v14 = vshll.u32 %v10143_v29, 16  ;;  %v450_v15 = vshll.u32 %v353_v6, 16  ;;  %v455_v17 = vshrl.u32 %v10155_v5, 16  ;;  %v10647_v45 = vld [vmem:[%s10016_s23 + $0x250] sm:$0xf] }
  0x34   : > { %2470 = vrot.lane.b32.xlu1 %v8792_v8, %s9909_s19  ;;  %v458_v18 = vshll.u32 %v10155_v5, 16  ;;  %v8808_v20 = vcombine.low %v10121_v47, %v10140_v21  ;;  %v443_v24 = vrot.slane %v441_v13, 4  ;;  %v464_v30 = vshll.u32 %v354_v11, 16  ;;  %v8588_v47 = vld [vmem:[%s10016_s23 + $0xbc] sm:$0x1] }
  0x35   : > { %3193 = vmatpush2.bf16.msra.mxu0 %v9618_v48  ;;  %2166 = vrot.lane.b32.xlu0 %v8744_v12, %s9908_s15  ;;  %v446_v27 = vrot.slane %v444_v14, 5  ;;  %v1522_v31 = vshll.u32 %v10140_v21, 16  ;;  %v457_v32 = vrot.slane %v455_v17, 4  ;;  %v987_v35 = vshrl.u32 %v10168_v16, 16  ;;  %v9573_v11 = vld [vmem:[%s10016_s23 + $0xf8] ss:$8 sps:$4 sm:$0xff]  }
  0x36   : > { %v460_v33 = vrot.slane %v458_v18, 5  ;;  %v452_v28 = vrot.slane %v450_v15, 5  ;;  %v990_v38 = vshll.u32 %v10168_v16, 16  ;;  %v1001_v39 = vshrl.u32 %v10174_v19, 16  ;;  %v8620_v13 = vld [vmem:[%s10016_s23 + $0x30] sm:$0xf] }
  0x37   : > { %v447_v37 = vor.u32 %v446_v27, %v443_v24  ;;  %v466_v43 = vrot.slane %v464_v30, 5  ;;  %v989_v44 = vrot.slane %v987_v35, 4  ;;  %v1004_v46 = vshll.u32 %v10174_v19, 16  ;;  %v10210_v15 = vld [vmem:[%s10016_s23 + $0x30] sm:$0xf] }
  0x38   : > { %2694 = vrot.lane.b32.xlu1 %v9570_v10, %s9905_s14  ;;  %v461_v41 = vor.u32 %v460_v33, %v457_v32  ;;  %v992_v49 = vrot.slane %v990_v38, 5  ;;  %v1003_v50 = vrot.slane %v1001_v39, 4  ;;  %v996_v51 = vshll.u32 %v8587_v40, 16  ;;  %v10213_v17 = vld [vmem:[%s10016_s23 + $0x38] sm:$0xf] }
  0x39   : > { %2582 = vrot.lane.b32.xlu0 %v8808_v20, %s9907_s20  ;;  %v448_v48 = vrot.slane %v447_v37, 4  ;;  %v1006_v54 = vrot.slane %v1004_v46, 5  ;;  %v1010_v55 = vshll.u32 %v8588_v47, 16  ;;  %v1533_v57 = vshrl.u32 %v10190_v52, 16  ;;  %v355_v20 = vld [vmem:[%s10016_s23 + $0x34] sm:$0x1] }
  0x3a   : > { %v462_v53 = vrot.slane %v461_v41, 4  ;;  %v993_v60 = vor.u32 %v992_v49, %v989_v44  ;;  %v998_v61 = vrot.slane %v996_v51, 5  ;;  %v1536_v63 = vshll.u32 %v10190_v52, 16  ;;  %v10233_v35 = vld [vmem:[%s10016_s23 + $0xc0] sm:$0xf] }
  0x3b   : > { %v453_v59 = vsel %vm10077_vm2, %v448_v48, %v452_v28  ;;  %v10196_v21 = vrot.slane %v1508_v34, 5  ;;  %v1007_v3 = vor.u32 %v1006_v54, %v1003_v50  ;;  %v1012_v6 = vrot.slane %v1010_v55, 5  ;;  %v10238_v39 = vld [vmem:[%s10016_s23 + $0xc8] sm:$0xf]  ;;  %v9575_v49 = vld [vmem:[%s10016_s23 + $0x70] ss:$8 sps:$4 sm:$0xff]  }
  0x3c   : > { %v467_v2 = vsel %vm10077_vm2, %v462_v53, %v466_v43  ;;  %v10200_v7 = vrot.slane %v1519_v42, 4  ;;  %v8761_v10 = vcombine.low %v10168_v16, %v10174_v19  ;;  %v994_v12 = vrot.slane %v993_v60, 4  ;;  %v9576_v55 = vld [vmem:[%s10016_s23 + $0x78] ss:$8 sps:$4 sm:$0xff]  }
  0x3d   : > { %2088 = vrot.lane.b32.xlu0 %v9571_v36, %s9903_s29  ;;  %v8745_v8 = vcombine.low %v453_v59, %v467_v2  ;;  %v10207_v34 = vrot.slane %v1522_v31, 5  ;;  %v1008_v14 = vrot.slane %v1007_v3, 4  ;;  %v10220_v18 = vrot.slane %v1533_v57, 4  ;;  %v356_v31 = vld [vmem:[%s10016_s23 + $0x3c] sm:$0x1] }
  0x3e   : > { %v999_v16 = vsel %vm10077_vm2, %v994_v12, %v998_v61  ;;  %v10222_v19 = vrot.slane %v1536_v63, 5  ;;  %v469_v24 = vshrl.u32 %v10210_v15, 16  ;;  %v1511_v27 = vor.u32 %v10196_v21, %v10160_v22  ;;  %v8589_v61 = vld [vmem:[%s10016_s23 + $0xc4] sm:$0x1] }
  0x3f   : > { %2168 = vrot.lane.b32.xlu1 %v8745_v8, %s9908_s15  ;;  %v1013_v30 = vsel %vm10077_vm2, %v1008_v14, %v1012_v6  ;;  %v472_v32 = vshll.u32 %v10210_v15, 16  ;;  %v478_v33 = vshll.u32 %v355_v20, 16  ;;  %v1547_v37 = vshrl.u32 %v8620_v13, 16  ;;  %v8590_v6 = vld [vmem:[%s10016_s23 + $0xcc] sm:$0x1] }
  0x40   : > { %v8793_v36 = vcombine.low %v999_v16, %v1013_v30  ;;  %v471_v28 = vrot.slane %v469_v24, 4  ;;  %v483_v38 = vshrl.u32 %v10213_v17, 16  ;;  %v1550_v22 = vshll.u32 %v8620_v13, 16 }
  0x41   : > { %2280 = vrot.lane.b32.xlu0 %v8761_v10, %s9904_s13  ;;  %v8809_v40 = vcombine.low %v10190_v52, %v8620_v13  ;;  %v474_v41 = vrot.slane %v472_v32, 5  ;;  %v486_v43 = vshll.u32 %v10213_v17, 16  ;;  %v492_v46 = vshll.u32 %v356_v31, 16  ;;  %v10256_v13 = vld [vmem:[%s10016_s23 + $0x38] sm:$0xf] }
  0x42   : > { %v485_v44 = vrot.slane %v483_v38, 4  ;;  %v1015_v47 = vshrl.u32 %v10233_v35, 16  ;;  %v1018_v48 = vshll.u32 %v10233_v35, 16  ;;  %v480_v51 = vrot.slane %v478_v33, 5 }
  0x43   : > { %2392 = vrot.lane.b32.xlu1 %v9573_v11, %s9906_s17  ;;  %v475_v50 = vor.u32 %v474_v41, %v471_v28  ;;  %v488_v53 = vrot.slane %v486_v43, 5  ;;  %v1029_v54 = vshrl.u32 %v10238_v39, 16  ;;  %v10248_v52 = vrot.slane %v1547_v37, 4  ;;  %v8622_v28 = vld [vmem:[%s10016_s23 + $0x40] sm:$0xf] }
  0x44   : > { %v1017_v57 = vrot.slane %v1015_v47, 4  ;;  %v1020_v59 = vrot.slane %v1018_v48, 5  ;;  %v1032_v60 = vshll.u32 %v10238_v39, 16  ;;  %v494_v2 = vrot.slane %v492_v46, 5  ;;  %v9578_v47 = vld [vmem:[%s10016_s23 + $0x108] ss:$8 sps:$4 sm:$0xff]  }
  0x45   : > { %2472 = vrot.lane.b32.xlu0 %v8793_v36, %s9909_s19  ;;  %v476_v63 = vrot.slane %v475_v50, 4  ;;  %v489_v21 = vor.u32 %v488_v53, %v485_v44  ;;  %v1031_v3 = vrot.slane %v1029_v54, 4  ;;  %v1024_v11 = vshll.u32 %v8589_v61, 16  ;;  %v10285_v50 = vld [vmem:[%s10016_s23 + $0x120] sm:$0xf] }
  0x46   : > { %v1034_v8 = vrot.slane %v1032_v60, 5  ;;  %v1021_v10 = vor.u32 %v1020_v59, %v1017_v57  ;;  %v1038_v12 = vshll.u32 %v8590_v6, 16  ;;  %v10258_v14 = vrot.slane %v1550_v22, 5  ;;  %v357_v53 = vld [vmem:[%s10016_s23 + $0x124] sm:$0x1] }
  0x47   : > { %2584 = vrot.lane.b32.xlu1 %v8809_v40, %s9907_s20  ;;  %v481_v16 = vsel %vm10077_vm2, %v476_v63, %v480_v51  ;;  %v490_v20 = vrot.slane %v489_v21, 4  ;;  %v1561_v24 = vshrl.u32 %v10256_v13, 16  ;;  %v1026_v31 = vrot.slane %v1024_v11, 5  ;;  %v10293_v51 = vld [vmem:[%s10016_s23 + $0x128] sm:$0xf] }
  0x48   : > { %v1022_v30 = vrot.slane %v1021_v10, 4  ;;  %v1035_v32 = vor.u32 %v1034_v8, %v1031_v3  ;;  %v1040_v33 = vrot.slane %v1038_v12, 5  ;;  %v10264_v36 = vrot.slane %v1511_v27, 4  ;;  %v358_v60 = vld [vmem:[%s10016_s23 + $0x12c] sm:$0x1] }
  0x49   : > { %2696 = vrot.lane.b32.xlu0 %v9575_v49, %s9905_s14  ;;  %v495_v37 = vsel %vm10077_vm2, %v490_v20, %v494_v2  ;;  %v1564_v38 = vshll.u32 %v10256_v13, 16  ;;  %v1483_v22 = vor.u32 %v10130_v58, %v10111_v25  ;;  %v1525_v40 = vor.u32 %v10207_v34, %v10200_v7  ;;  %v10307_v8 = vld [vmem:[%s10016_s23 + $0x1b0] sm:$0xf] }
  0x4a   : > { %v8746_v41 = vcombine.low %v481_v16, %v495_v37  ;;  %v8762_v27 = vcombine.low %v10233_v35, %v10238_v39  ;;  %v1036_v43 = vrot.slane %v1035_v32, 4  ;;  %v1539_v44 = vor.u32 %v10222_v19, %v10220_v18  ;;  %v10312_v16 = vld [vmem:[%s10016_s23 + $0x1b8] sm:$0xf] }
  0x4b   : > { %2090 = vrot.lane.b32.xlu1 %v9576_v55, %s9903_s29  ;;  %v1553_v46 = vor.u32 %v10258_v14, %v10248_v52  ;;  %v1027_v48 = vsel %vm10077_vm2, %v1022_v30, %v1026_v31  ;;  %v1575_v49 = vshrl.u32 %v8622_v28, 16  ;;  %v10290_v39 = vrot.slane %v1561_v24, 4  ;;  %v9580_v30 = vld [vmem:[%s10016_s23 + $0x80] ss:$8 sps:$4 sm:$0xff]  }
  0x4c   : > { %v1041_v35 = vsel %vm10077_vm2, %v1036_v43, %v1040_v33  ;;  %v497_v54 = vshrl.u32 %v10285_v50, 16  ;;  %v10299_v57 = vrot.slane %v1564_v38, 5  ;;  %v1578_v59 = vshll.u32 %v8622_v28, 16  ;;  %v9581_v43 = vld [vmem:[%s10016_s23 + $0x168] ss:$8 sps:$4 sm:$0xff]  }
  0x4d   : > { %2170 = vrot.lane.b32.xlu0 %v8746_v41, %s9908_s15  ;;  %v500_v61 = vshll.u32 %v10285_v50, 16  ;;  %v506_v63 = vshll.u32 %v357_v53, 16  ;;  %v8794_v21 = vcombine.low %v1027_v48, %v1041_v35  ;;  %v511_v3 = vshrl.u32 %v10293_v51, 16  ;;  %v9583_v19 = vld [vmem:[%s10016_s23 + $0x1f8] ss:$8 sps:$4 sm:$0xff]  }
  0x4e   : > { %v499_v2 = vrot.slane %v497_v54, 4  ;;  %v514_v6 = vshll.u32 %v10293_v51, 16  ;;  %v10309_v10 = vrot.slane %v1575_v49, 4  ;;  %v520_v12 = vshll.u32 %v358_v60, 16  ;;  %v8592_v60 = vld [vmem:[%s10016_s23 + $0x1bc] sm:$0x1] }
  0x4f   : > { %2282 = vrot.lane.b32.xlu1 %v8762_v27, %s9904_s13  ;;  %v502_v11 = vrot.slane %v500_v61, 5  ;;  %v1043_v20 = vshrl.u32 %v10307_v8, 16  ;;  %v8810_v24 = vcombine.low %v10256_v13, %v8622_v28  ;;  %v513_v31 = vrot.slane %v511_v3, 4  ;;  %v8591_v28 = vld [vmem:[%s10016_s23 + $0x1b4] sm:$0x1] }
  0x50   : > { %v516_v32 = vrot.slane %v514_v6, 5  ;;  %v1046_v33 = vshll.u32 %v10307_v8, 16  ;;  %v508_v38 = vrot.slane %v506_v63, 5  ;;  %v1057_v27 = vshrl.u32 %v10312_v16, 16  ;;  %v10329_v6 = vld [vmem:[%s10016_s23 + $0x128] sm:$0xf] }
  0x51   : > { %2394 = vrot.lane.b32.xlu0 %v9578_v47, %s9906_s17  ;;  %v503_v37 = vor.u32 %v502_v11, %v499_v2  ;;  %v1045_v41 = vrot.slane %v1043_v20, 4  ;;  %v522_v47 = vrot.slane %v520_v12, 5  ;;  %v1060_v13 = vshll.u32 %v10312_v16, 16 }
  0x52   : > { %v517_v48 = vor.u32 %v516_v32, %v513_v31  ;;  %v1048_v49 = vrot.slane %v1046_v33, 5  ;;  %v10324_v35 = vrot.slane %v1578_v59, 5  ;;  %v1059_v54 = vrot.slane %v1057_v27, 4  ;;  %v8624_v27 = vld [vmem:[%s10016_s23 + $0x130] sm:$0xf] }
  0x53   : > { %2474 = vrot.lane.b32.xlu1 %v8794_v21, %s9909_s19  ;;  %v504_v53 = vrot.slane %v503_v37, 4  ;;  %v1052_v61 = vshll.u32 %v8591_v28, 16  ;;  %v1062_v2 = vrot.slane %v1060_v13, 5  ;;  %v1066_v21 = vshll.u32 %v8592_v60, 16  ;;  %v9605_v13 = vld [vmem:[%s10016_s23 + $0x288] ss:$8 sps:$4 sm:$0xff]  }
  0x54   : > { %v518_v63 = vrot.slane %v517_v48, 4  ;;  %v1049_v3 = vor.u32 %v1048_v49, %v1045_v41  ;;  %v1589_v59 = vshrl.u32 %v10329_v6, 16  ;;  %v1592_v20 = vshll.u32 %v10329_v6, 16 }
  0x55   : > { %2586 = vrot.lane.b32.xlu0 %v8810_v24, %s9907_s20  ;;  %v509_v11 = vsel %vm10077_vm2, %v504_v53, %v508_v38  ;;  %v1054_v12 = vrot.slane %v1052_v61, 5  ;;  %v1063_v32 = vor.u32 %v1062_v2, %v1059_v54  ;;  %v1068_v33 = vrot.slane %v1066_v21, 5  ;;  %v360_v54 = vld [vmem:[%s10016_s23 + $0x13c] sm:$0x1] }
  0x56   : > { %v523_v24 = vsel %vm10077_vm2, %v518_v63, %v522_v47  ;;  %v1050_v31 = vrot.slane %v1049_v3, 4  ;;  %v10341_v37 = vrot.slane %v1525_v40, 4  ;;  %v10346_v38 = vrot.slane %v1539_v44, 4  ;;  %v10369_v44 = vld [vmem:[%s10016_s23 + $0x130] sm:$0xf] }
  0x57   : > { %2698 = vrot.lane.b32.xlu1 %v9580_v30, %s9905_s14  ;;  %v10351_v30 = vrot.slane %v1553_v46, 4  ;;  %v8747_v41 = vcombine.low %v509_v11, %v523_v24  ;;  %v1567_v48 = vor.u32 %v10299_v57, %v10290_v39  ;;  %v1581_v7 = vor.u32 %v10324_v35, %v10309_v10  ;;  %v359_v47 = vld [vmem:[%s10016_s23 + $0x134] sm:$0x1]  ;;  %v10390_v11 = vld [vmem:[%s10016_s23 + $0x1c0] sm:$0xf] }
  0x58   : > { %v8763_v34 = vcombine.low %v10307_v8, %v10312_v16  ;;  %v1064_v18 = vrot.slane %v1063_v32, 4  ;;  %v1055_v52 = vsel %vm10077_vm2, %v1050_v31, %v1054_v12  ;;  %v10364_v14 = vrot.slane %v1589_v59, 4  ;;  %v9585_v32 = vld [vmem:[%s10016_s23 + $0x170] ss:$8 sps:$4 sm:$0xff]  }
  0x59   : > { %2092 = vrot.lane.b32.xlu0 %v9581_v43, %s9903_s29  ;;  %v10366_v40 = vrot.slane %v1592_v20, 5  ;;  %v1603_v16 = vshrl.u32 %v8624_v27, 16  ;;  %v10377_v43 = vld [vmem:[%s10016_s23 + $0x138] sm:$0xf]  ;;  %v525_v49 = vshrl.u32 %v10369_v44, 16  ;;  %v1606_v28 = vshll.u32 %v8624_v27, 16 }
  0x5a   : > { %v1069_v8 = vsel %vm10077_vm2, %v1064_v18, %v1068_v33  ;;  %v8811_v53 = vcombine.low %v10329_v6, %v8624_v27  ;;  %v528_v60 = vshll.u32 %v10369_v44, 16  ;;  %v534_v61 = vshll.u32 %v359_v47, 16  ;;  %v10395_v20 = vld [vmem:[%s10016_s23 + $0x1c8] sm:$0xf] }
  0x5b   : > { %2172 = vrot.lane.b32.xlu1 %v8747_v41, %s9908_s15  ;;  %v8795_v63 = vcombine.low %v1055_v52, %v1069_v8  ;;  %v527_v2 = vrot.slane %v525_v49, 4  ;;  %v539_v3 = vshrl.u32 %v10377_v43, 16  ;;  %v542_v21 = vshll.u32 %v10377_v43, 16  ;;  %v8593_v49 = vld [vmem:[%s10016_s23 + $0x1c4] sm:$0x1] }
  0x5c   : > { %v1595_v12 = vor.u32 %v10366_v40, %v10364_v14  ;;  %v530_v6 = vrot.slane %v528_v60, 5  ;;  %v548_v59 = vshll.u32 %v360_v54, 16  ;;  %v1071_v24 = vshrl.u32 %v10390_v11, 16  ;;  %v9586_v40 = vld [vmem:[%s10016_s23 + $0x178] ss:$8 sps:$4 sm:$0xff]  }
  0x5d   : > { %2284 = vrot.lane.b32.xlu0 %v8763_v34, %s9904_s13  ;;  %v10399_v31 = vrot.slane %v1603_v16, 4  ;;  %v541_v33 = vrot.slane %v539_v3, 4  ;;  %v544_v41 = vrot.slane %v542_v21, 5  ;;  %v1074_v27 = vshll.u32 %v10390_v11, 16  ;;  %v8594_v21 = vld [vmem:[%s10016_s23 + $0x1cc] sm:$0x1] }
  0x5e   : > { %v531_v34 = vor.u32 %v530_v6, %v527_v2  ;;  %v536_v18 = vrot.slane %v534_v61, 5  ;;  %v1073_v52 = vrot.slane %v1071_v24, 4  ;;  %v1085_v14 = vshrl.u32 %v10395_v20, 16  ;;  %v9588_v35 = vld [vmem:[%s10016_s23 + $0x208] ss:$8 sps:$4 sm:$0xff]  }
  0x5f   : > { %2396 = vrot.lane.b32.xlu1 %v9583_v19, %s9906_s17  ;;  %v545_v8 = vor.u32 %v544_v41, %v541_v33  ;;  %v550_v19 = vrot.slane %v548_v59, 5  ;;  %v1076_v47 = vrot.slane %v1074_v27, 5  ;;  %v1088_v16 = vshll.u32 %v10395_v20, 16 }
  0x60   : > { %v10408_v54 = vrot.slane %v1606_v28, 5  ;;  %v532_v60 = vrot.slane %v531_v34, 4  ;;  %v1087_v3 = vrot.slane %v1085_v14, 4  ;;  %v1080_v2 = vshll.u32 %v8593_v49, 16 }
  0x61   : > { %2476 = vrot.lane.b32.xlu0 %v8795_v63, %s9909_s19  ;;  %v546_v61 = vrot.slane %v545_v8, 4  ;;  %v1090_v6 = vrot.slane %v1088_v16, 5  ;;  %v1077_v63 = vor.u32 %v1076_v47, %v1073_v52  ;;  %v1094_v24 = vshll.u32 %v8594_v21, 16  ;;  %v8626_v47 = vld [vmem:[%s10016_s23 + $0x140] sm:$0xf] }
  0x62   : > { %v537_v59 = vsel %vm10077_vm2, %v532_v60, %v536_v18  ;;  %v1082_v33 = vrot.slane %v1080_v2, 5  ;;  %v1617_v28 = vshrl.u32 %v10413_v1, 16  ;;  %v1620_v41 = vshll.u32 %v10413_v1, 16  ;;  %v361_v16 = vld [vmem:[%s10016_s23 + $0x144] sm:$0x1] }
  0x63   : > { %2588 = vrot.lane.b32.xlu1 %v8811_v53, %s9907_s20  ;;  %v551_v53 = vsel %vm10077_vm2, %v546_v61, %v550_v19  ;;  %v1078_v27 = vrot.slane %v1077_v63, 4  ;;  %v1091_v34 = vor.u32 %v1090_v6, %v1087_v3  ;;  %v1096_v52 = vrot.slane %v1094_v24, 5  ;;  %v362_v21 = vld [vmem:[%s10016_s23 + $0x14c] sm:$0x1]  ;;  %v10474_v24 = vld [vmem:[%s10016_s23 + $0x1d0] sm:$0xf] }
  0x64   : > { %v10425_v14 = vrot.slane %v1567_v48, 4  ;;  %v10430_v18 = vrot.slane %v1581_v7, 4  ;;  %v8748_v8 = vcombine.low %v537_v59, %v551_v53  ;;  %v10438_v19 = vrot.slane %v1595_v12, 4  ;;  %v10453_v48 = vld [vmem:[%s10016_s23 + $0x140] sm:$0xf] }
  0x65   : > { %2700 = vrot.lane.b32.xlu0 %v9585_v32, %s9905_s14  ;;  %v10436_v32 = vrot.slane %v1483_v22, 4  ;;  %v8764_v39 = vcombine.low %v10390_v11, %v10395_v20  ;;  %v1092_v57 = vrot.slane %v1091_v34, 4  ;;  %v1497_v10 = vor.u32 %v10147_v0, %v10137_v62 }
  0x66   : > { %v1083_v25 = vsel %vm10077_vm2, %v1078_v27, %v1082_v33  ;;  %v10448_v58 = vrot.slane %v1617_v28, 4  ;;  %v10450_v22 = vrot.slane %v1620_v41, 5  ;;  %v1609_v11 = vor.u32 %v10408_v54, %v10399_v31  ;;  %v10479_v28 = vld [vmem:[%s10016_s23 + $0x1d8] sm:$0xf]  ;;  %v9590_v27 = vld [vmem:[%s10016_s23 + $0x180] ss:$8 sps:$4 sm:$0xff]  }
  0x67   : > { %2094 = vrot.lane.b32.xlu1 %v9586_v40, %s9903_s29  ;;  %v1097_v12 = vsel %vm10077_vm2, %v1092_v57, %v1096_v52  ;;  %v1631_v20 = vshrl.u32 %v8626_v47, 16  ;;  %v10463_v40 = vld [vmem:[%s10016_s23 + $0x148] sm:$0xf]  ;;  %v553_v49 = vshrl.u32 %v10453_v48, 16  ;;  %v1634_v60 = vshll.u32 %v8626_v47, 16 }
  0x68   : > { %v8812_v3 = vcombine.low %v10413_v1, %v8626_v47  ;;  %v556_v31 = vshll.u32 %v10453_v48, 16  ;;  %v562_v54 = vshll.u32 %v361_v16, 16  ;;  %v8796_v2 = vcombine.low %v1083_v25, %v1097_v12  ;;  %v8595_v16 = vld [vmem:[%s10016_s23 + $0x1d4] sm:$0x1] }
  0x69   : > { %2174 = vrot.lane.b32.xlu0 %v8748_v8, %s9908_s15  ;;  %v555_v61 = vrot.slane %v553_v49, 4  ;;  %v567_v6 = vshrl.u32 %v10463_v40, 16  ;;  %v570_v63 = vshll.u32 %v10463_v40, 16  ;;  %v1623_v59 = vor.u32 %v10450_v22, %v10448_v58  ;;  %v9591_v58 = vld [vmem:[%s10016_s23 + $0x188] ss:$8 sps:$4 sm:$0xff]  }
  0x6a   : > { %v558_v1 = vrot.slane %v556_v31, 5  ;;  %v576_v33 = vshll.u32 %v362_v21, 16  ;;  %v1099_v41 = vshrl.u32 %v10474_v24, 16  ;;  %v10483_v53 = vrot.slane %v1631_v20, 4 }
  0x6b   : > { %2286 = vrot.lane.b32.xlu1 %v8764_v39, %s9904_s13  ;;  %v569_v34 = vrot.slane %v567_v6, 4  ;;  %v572_v52 = vrot.slane %v570_v63, 5  ;;  %v1102_v8 = vshll.u32 %v10474_v24, 16  ;;  %v564_v39 = vrot.slane %v562_v54, 5  ;;  %v8596_v6 = vld [vmem:[%s10016_s23 + $0x1dc] sm:$0x1] }
  0x6c   : > { %v559_v47 = vor.u32 %v558_v1, %v555_v61  ;;  %v1101_v57 = vrot.slane %v1099_v41, 4  ;;  %v1113_v25 = vshrl.u32 %v10479_v28, 16  ;;  %v1116_v20 = vshll.u32 %v10479_v28, 16  ;;  %v10497_v41 = vld [vmem:[%s10016_s23 + $0x148] sm:$0xf] }
  0x6d   : > { %2398 = vrot.lane.b32.xlu0 %v9588_v35, %s9906_s17  ;;  %v573_v22 = vor.u32 %v572_v52, %v569_v34  ;;  %v578_v35 = vrot.slane %v576_v33, 5  ;;  %v1104_v12 = vrot.slane %v1102_v8, 5  ;;  %v10492_v49 = vrot.slane %v1634_v60, 5 }
  0x6e   : > { %v560_v21 = vrot.slane %v559_v47, 4  ;;  %v1115_v31 = vrot.slane %v1113_v25, 4  ;;  %v1108_v61 = vshll.u32 %v8595_v16, 16  ;;  %v1118_v63 = vrot.slane %v1116_v20, 5 }
  0x6f   : > { %2478 = vrot.lane.b32.xlu1 %v8796_v2, %s9909_s19  ;;  %v574_v54 = vrot.slane %v573_v22, 4  ;;  %v1105_v2 = vor.u32 %v1104_v12, %v1101_v57  ;;  %v1122_v1 = vshll.u32 %v8596_v6, 16  ;;  %v1645_v60 = vshrl.u32 %v10497_v41, 16  ;;  %v8628_v12 = vld [vmem:[%s10016_s23 + $0x150] sm:$0xf] }
  0x70   : > { %v565_v33 = vsel %vm10077_vm2, %v560_v21, %v564_v39  ;;  %v1110_v34 = vrot.slane %v1108_v61, 5  ;;  %v1648_v52 = vshll.u32 %v10497_v41, 16  ;;  %v1119_v47 = vor.u32 %v1118_v63, %v1115_v31  ;;  %v9593_v21 = vld [vmem:[%s10016_s23 + $0x218] ss:$8 sps:$4 sm:$0xff]   ;;  %v10527_v61 = vld [vmem:[%s10016_s23 + $0x150] sm:$0xf] }
  0x71   : > { %2590 = vrot.lane.b32.xlu0 %v8812_v3, %s9907_s20  ;;  %v579_v3 = vsel %vm10077_vm2, %v574_v54, %v578_v35  ;;  %v1106_v8 = vrot.slane %v1105_v2, 4  ;;  %v1124_v57 = vrot.slane %v1122_v1, 5  ;;  %v10506_v25 = vrot.slane %v1609_v11, 4  ;;  %v364_v63 = vld [vmem:[%s10016_s23 + $0x15c] sm:$0x1] }
  0x72   : > { %v8749_v22 = vcombine.low %v565_v33, %v579_v3  ;;  %v10509_v39 = vrot.slane %v1645_v60, 4  ;;  %v10511_v20 = vrot.slane %v1648_v52, 5  ;;  %v1120_v35 = vrot.slane %v1119_v47, 4  ;;  %v10548_v60 = vld [vmem:[%s10016_s23 + $0x1e0] sm:$0xf] }
  0x73   : > { %2702 = vrot.lane.b32.xlu1 %v9590_v27, %s9905_s14  ;;  %v8765_v27 = vcombine.low %v10474_v24, %v10479_v28  ;;  %v10519_v11 = vrot.slane %v1497_v10, 4  ;;  %v10521_v16 = vrot.slane %v1623_v59, 4  ;;  %v1111_v31 = vsel %vm10077_vm2, %v1106_v8, %v1110_v34  ;;  %v10535_v10 = vld [vmem:[%s10016_s23 + $0x158] sm:$0xf]  ;;  %v363_v24 = vld [vmem:[%s10016_s23 + $0x154] sm:$0x1] }
  0x74   : > { %v1659_v6 = vshrl.u32 %v8628_v12, 16  ;;  %v1125_v62 = vsel %vm10077_vm2, %v1120_v35, %v1124_v57  ;;  %v1662_v0 = vshll.u32 %v8628_v12, 16  ;;  %v581_v59 = vshrl.u32 %v10527_v61, 16 }
  0x75   : > { %2096 = vrot.lane.b32.xlu0 %v9591_v58, %s9903_s29  ;;  %v1637_v58 = vor.u32 %v10492_v49, %v10483_v53  ;;  %v1651_v28 = vor.u32 %v10511_v20, %v10509_v39  ;;  %v8813_v54 = vcombine.low %v10497_v41, %v8628_v12  ;;  %v584_v53 = vshll.u32 %v10527_v61, 16  ;;  %v10551_v41 = vld [vmem:[%s10016_s23 + $0x1e8] sm:$0xf] }
  0x76   : > { %v590_v49 = vshll.u32 %v363_v24, 16  ;;  %v8797_v2 = vcombine.low %v1111_v31, %v1125_v62  ;;  %v583_v1 = vrot.slane %v581_v59, 4  ;;  %v595_v33 = vshrl.u32 %v10535_v10, 16  ;;  %v9596_v62 = vld [vmem:[%s10016_s23 + $0x198] ss:$8 sps:$4 sm:$0xff]  }
  0x77   : > { %2176 = vrot.lane.b32.xlu1 %v8749_v22, %s9908_s15  ;;  %v598_v34 = vshll.u32 %v10535_v10, 16  ;;  %v1661_v52 = vrot.slane %v1659_v6, 4  ;;  %v586_v3 = vrot.slane %v584_v53, 5  ;;  %v604_v8 = vshll.u32 %v364_v63, 16  ;;  %v9595_v22 = vld [vmem:[%s10016_s23 + $0x190] ss:$8 sps:$4 sm:$0xff]  }
  0x78   : > { %v1127_v47 = vshrl.u32 %v10548_v60, 16  ;;  %v1664_v57 = vrot.slane %v1662_v0, 5  ;;  %v597_v12 = vrot.slane %v595_v33, 4  ;;  %v1130_v20 = vshll.u32 %v10548_v60, 16  ;;  %v8597_v63 = vld [vmem:[%s10016_s23 + $0x1e4] sm:$0x1] }
  0x79   : > { %2288 = vrot.lane.b32.xlu0 %v8765_v27, %s9904_s13  ;;  %v600_v39 = vrot.slane %v598_v34, 5  ;;  %v587_v27 = vor.u32 %v586_v3, %v583_v1  ;;  %v592_v35 = vrot.slane %v590_v49, 5  ;;  %v1141_v6 = vshrl.u32 %v10551_v41, 16  ;;  %v8598_v34 = vld [vmem:[%s10016_s23 + $0x1ec] sm:$0x1] }
  0x7a   : > { %v1129_v31 = vrot.slane %v1127_v47, 4  ;;  %v606_v59 = vrot.slane %v604_v8, 5  ;;  %v1144_v0 = vshll.u32 %v10551_v41, 16  ;;  %v1136_v7 = vshll.u32 %v8597_v63, 16 }
  0x7b   : > { %2400 = vrot.lane.b32.xlu1 %v9593_v21, %s9906_s17  ;;  %v601_v24 = vor.u32 %v600_v39, %v597_v12  ;;  %v1132_v21 = vrot.slane %v1130_v20, 5  ;;  %v588_v53 = vrot.slane %v587_v27, 4  ;;  %v1143_v33 = vrot.slane %v1141_v6, 4  ;;  %v10567_v12 = vld [vmem:[%s10016_s23 + $0x158] sm:$0xf] }
  0x7c   : > { %v1150_v47 = vshll.u32 %v8598_v34, 16  ;;  %v1665_v8 = vor.u32 %v1664_v57, %v1661_v52  ;;  %v1138_v20 = vrot.slane %v1136_v7, 5  ;;  %v10572_v27 = vld [vmem:[%s10016_s23 + $0x160] sm:$0xf]  ;;  %v1673_v6 = vshrl.u32 %v10567_v12, 16 }
  0x7d   : > { %2480 = vrot.lane.b32.xlu0 %v8797_v2, %s9909_s19  ;;  %v602_v1 = vrot.slane %v601_v24, 4  ;;  %v1146_v2 = vrot.slane %v1144_v0, 5  ;;  %v1133_v3 = vor.u32 %v1132_v21, %v1129_v31  ;;  %v593_v39 = vsel %vm10077_vm2, %v588_v53, %v592_v35  ;;  %v10594_v34 = vld [vmem:[%s10016_s23 + $0x240] sm:$0xf] }
  0x7e   : > { %v1152_v21 = vrot.slane %v1150_v47, 5  ;;  %v10578_v0 = vrot.slane %v1637_v58, 4  ;;  %v1676_v7 = vshll.u32 %v10567_v12, 16  ;;  %v1687_v57 = vshrl.u32 %v10572_v27, 16  ;;  %v9600_v58 = vld [vmem:[%s10016_s23 + $0x228] ss:$8 sps:$4 sm:$0xff]  }
  0x7f   : > { %2592 = vrot.lane.b32.xlu1 %v8813_v54, %s9907_s20  ;;  %v607_v54 = vsel %vm10077_vm2, %v602_v1, %v606_v59  ;;  %v1134_v31 = vrot.slane %v1133_v3, 4  ;;  %v1147_v24 = vor.u32 %v1146_v2, %v1143_v33  ;;  %v10582_v35 = vrot.slane %v1651_v28, 4  ;;  %v365_v1 = vld [vmem:[%s10016_s23 + $0x244] sm:$0x1] }
  0x80   : > { %v8750_v52 = vcombine.low %v593_v39, %v607_v54  ;;  %v10587_v63 = vrot.slane %v1665_v8, 4  ;;  %v1690_v33 = vshll.u32 %v10572_v27, 16  ;;  %v609_v2 = vshrl.u32 %v10594_v34, 16  ;;  %v366_v8 = vld [vmem:[%s10016_s23 + $0x24c] sm:$0x1] }
  0x81   : > { %2704 = vrot.lane.b32.xlu0 %v9595_v22, %s9905_s14  ;;  %14117 = vst [vmem:[#allocation6_spill] sm:$0xff] %v10582_v35  ;;  %v8766_v22 = vcombine.low %v10548_v60, %v10551_v41  ;;  %v1148_v59 = vrot.slane %v1147_v24, 4  ;;  %v1139_v53 = vsel %vm10077_vm2, %v1134_v31, %v1138_v20  ;;  %v10601_v41 = vrot.slane %v1673_v6, 4 }
  0x82   : > { %14118 = vst [vmem:[#allocation7_spill] sm:$0xff] %v10587_v63  ;;  %v10608_v3 = vrot.slane %v1676_v7, 5  ;;  %v10610_v47 = vrot.slane %v1687_v57, 4  ;;  %v612_v39 = vshll.u32 %v10594_v34, 16  ;;  %v618_v20 = vshll.u32 %v365_v1, 16 }
  0x83   : > { %2098 = vrot.lane.b32.xlu1 %v9596_v62, %s9903_s29  ;;  %v1153_v60 = vsel %vm10077_vm2, %v1148_v59, %v1152_v21  ;;  %v10604_v62 = vld [vmem:[%s10016_s23 + $0x248] sm:$0xf]  ;;  %v611_v6 = vrot.slane %v609_v2, 4  ;;  %v10618_v21 = vld [vmem:[%s10016_s23 + $0x2d0] sm:$0xf]  ;;  %v632_v57 = vshll.u32 %v366_v8, 16 }
  0x84   : > { %v8798_v54 = vcombine.low %v1139_v53, %v1153_v60  ;;  %v623_v31 = vshrl.u32 %v10604_v62, 16  ;;  %v626_v24 = vshll.u32 %v10604_v62, 16  ;;  %v614_v7 = vrot.slane %v612_v39, 5  ;;  %v10621_v59 = vld [vmem:[%s10016_s23 + $0x2d8] sm:$0xf] }
  0x85   : > { %2178 = vrot.lane.b32.xlu0 %v8750_v52, %s9908_s15  ;;  %v1692_v52 = vrot.slane %v1690_v33, 5  ;;  %v1155_v28 = vshrl.u32 %v10618_v21, 16  ;;  %v9603_v53 = vld [vmem:[%s10016_s23 + $0x1a0] ss:$8 sps:$4 sm:$0xff]   ;;  %v1158_v2 = vshll.u32 %v10618_v21, 16  ;;  %v620_v33 = vrot.slane %v618_v20, 5 }
  0x86   : > { %v625_v60 = vrot.slane %v623_v31, 4  ;;  %v628_v1 = vrot.slane %v626_v24, 5  ;;  %v615_v49 = vor.u32 %v614_v7, %v611_v6  ;;  %v634_v39 = vrot.slane %v632_v57, 5  ;;  %v8599_v6 = vld [vmem:[%s10016_s23 + $0x2d4] sm:$0x1] }
  0x87   : > { %2290 = vrot.lane.b32.xlu1 %v8766_v22, %s9904_s13  ;;  %v8814_v22 = vcombine.low %v10567_v12, %v10572_v27  ;;  %v1157_v8 = vrot.slane %v1155_v28, 4  ;;  %v1160_v12 = vrot.slane %v1158_v2, 5  ;;  %v1169_v27 = vshrl.u32 %v10621_v59, 16  ;;  %v10643_v57 = vld [vmem:[%s10016_s23 + $0x248] sm:$0xf] }
  0x88   : > { %v629_v46 = vor.u32 %v628_v1, %v625_v60  ;;  %v1172_v31 = vshll.u32 %v10621_v59, 16  ;;  %v1679_v20 = vor.u32 %v10608_v3, %v10601_v41  ;;  %v1693_v28 = vor.u32 %v1692_v52, %v10610_v47 }
  0x89   : > { %2402 = vrot.lane.b32.xlu0 %v9600_v58, %s9906_s17  ;;  %v616_v24 = vrot.slane %v615_v49, 4  ;;  %v1164_v7 = vshll.u32 %v8599_v6, 16  ;;  %v1171_v1 = vrot.slane %v1169_v27, 4  ;;  %v1161_v42 = vor.u32 %v1160_v12, %v1157_v8 }
  0x8a   : > { %v630_v60 = vrot.slane %v629_v46, 4  ;;  %v1174_v2 = vrot.slane %v1172_v31, 5  ;;  %v1701_v3 = vshrl.u32 %v10643_v57, 16  ;;  %v1715_v27 = vshrl.u32 %v10647_v45, 16 }
  0x8b   : > { %2482 = vrot.lane.b32.xlu1 %v8798_v54, %s9909_s19  ;;  %v8600_v54 = vld [vmem:[%s10016_s23 + $0x2dc] sm:$0x1]  ;;  %v621_v63 = vsel %vm10077_vm2, %v616_v24, %v620_v33  ;;  %v1166_v35 = vrot.slane %v1164_v7, 5  ;;  %v1162_v47 = vrot.slane %v1161_v42, 4  ;;  %v1718_v42 = vshll.u32 %v10647_v45, 16 }
  0x8c   : > { %v1178_v41 = vshll.u32 %v8600_v54, 16  ;;  %v635_v49 = vsel %vm10077_vm2, %v630_v60, %v634_v39  ;;  %v1175_v52 = vor.u32 %v1174_v2, %v1171_v1  ;;  %v1703_v33 = vrot.slane %v1701_v3, 4  ;;  %v10682_v2 = vld [vmem:[%s10016_s23 + $0x250] sm:$0xf] }
  0x8d   : > { %v10631_v58 = vpop.permute.xlu0 %2084  ;;  %2594 = vrot.lane.b32.xlu0 %v8814_v22, %s9907_s20  ;;  %v1704_v22 = vshll.u32 %v10643_v57, 16  ;;  %v8751_v8 = vcombine.low %v621_v63, %v635_v49  ;;  %v10665_v24 = vrot.slane %v1679_v20, 4  ;;  %v9609_v63 = vld [vmem:[%s10016_s23 + $0x318] ss:$8 sps:$4 sm:$0xff]   ;;  %v1167_v54 = vsel %vm10077_vm2, %v1162_v47, %v1166_v35  ;;  %v368_v47 = vld [vmem:[%s10016_s23 + $0x25c] sm:$0x1] }
  0x8e   : > { %v1180_v12 = vrot.slane %v1178_v41, 5  ;;  %v1176_v39 = vrot.slane %v1175_v52, 4  ;;  %v1717_v7 = vrot.slane %v1715_v27, 4  ;;  %v1720_v20 = vrot.slane %v1718_v42, 5  ;;  %v10685_v41 = vld [vmem:[%s10016_s23 + $0x258] sm:$0xf] }
  0x8f   : > { %2706 = vrot.lane.b32.xlu1 %v9603_v53, %s9905_s14  ;;  %v8767_v53 = vcombine.low %v10618_v21, %v10621_v59  ;;  %v1706_v6 = vrot.slane %v1704_v22, 5  ;;  %v10672_v21 = vrot.slane %v1693_v28, 4  ;;  %v8815_v35 = vcombine.low %v10643_v57, %v10647_v45  ;;  %v367_v28 = vld [vmem:[%s10016_s23 + $0x254] sm:$0x1] }
  0x90   : > { %v10633_v55 = vpop.permute.xlu1 %2276  ;;  %v1181_v59 = vsel %vm10077_vm2, %v1176_v39, %v1180_v12  ;;  %v1721_v49 = vor.u32 %v1720_v20, %v1717_v7  ;;  %v637_v52 = vshrl.u32 %v10682_v2, 16  ;;  %v640_v22 = vshll.u32 %v10682_v2, 16  ;;  %v9613_v39 = vld [vmem:[%s10016_s23 + $0x290] ss:$8 sps:$4 sm:$0xff]  }
  0x91   : > { %2100 = vrot.lane.b32.xlu0 %v9605_v13, %s9903_s29  ;;  %v10662_v31 = vpop.permute.xlu0 %2692  ;;  %v1707_v60 = vor.u32 %v1706_v6, %v1703_v33  ;;  %v8799_v3 = vcombine.low %v1167_v54, %v1181_v59  ;;  %v646_v45 = vshll.u32 %v367_v28, 16  ;;  %v651_v57 = vshrl.u32 %v10685_v41, 16  ;;  %v10695_v33 = vld [vmem:[%s10016_s23 + $0x2e0] sm:$0xf]  ;;  %v10704_v54 = vld [vmem:[%s10016_s23 + $0x2e8] sm:$0xf] }
  0x92   : > { %v660_v12 = vshll.u32 %v368_v47, 16  ;;  %v639_v6 = vrot.slane %v637_v52, 4  ;;  %v642_v42 = vrot.slane %v640_v22, 5  ;;  %v1183_v7 = vshrl.u32 %v10695_v33, 16 }
  0x93   : > { %2180 = vrot.lane.b32.xlu1 %v8751_v8, %s9908_s15  ;;  %v654_v8 = vshll.u32 %v10685_v41, 16  ;;  %v10698_v27 = vrot.slane %v1707_v60, 4  ;;  %v10707_v59 = vrot.slane %v1721_v49, 4  ;;  %v648_v28 = vrot.slane %v646_v45, 5 }
  0x94   : > { %v10655_v46 = vpop.permute.xlu1 %2388  ;;  %v653_v47 = vrot.slane %v651_v57, 4  ;;  %v662_v60 = vrot.slane %v660_v12, 5  ;;  %v1185_v52 = vrot.slane %v1183_v7, 4  ;;  %v1186_v22 = vshll.u32 %v10695_v33, 16 }
  0x95   : > { %2292 = vrot.lane.b32.xlu0 %v8767_v53, %s9904_s13  ;;  %v10700_v53 = vpop.permute.xlu0 %2390  ;;  %14119 = vst [vmem:[#allocation8_spill] sm:$0xff] %v10707_v59  ;;  %v656_v13 = vrot.slane %v654_v8, 5  ;;  %v14120_v49 = vcombine.low %v10039_v23, %v10048_v26  ;;  %v1197_v57 = vshrl.u32 %v10704_v54, 16  ;;  %v1200_v8 = vshll.u32 %v10704_v54, 16  ;;  %v8679_v23 = vld [vmem:[%s10016_s23 + $0xc] sm:$0x1] }
  0x96   : > { %v14121_v12 = vcombine.low %v10087_v4, %v10091_v9  ;;  %v1188_v7 = vrot.slane %v1186_v22, 5  ;;  %v8601_v22 = vld [vmem:[%s10016_s23 + $0x2e4] sm:$0x1]  ;;  %v8633_v26 = vld [vmem:[%s10016_s23 + $0x258] sm:$0xf] }
  0x97   : > { %2404 = vrot.lane.b32.xlu1 %v9609_v63, %s9906_s17  ;;  %v643_v63 = vor.u32 %v642_v42, %v639_v6  ;;  %v2775_v59 = vsel %vm2772_vm3, %v14120_v49, %v10631_v58  ;;  %v657_v45 = vor.u32 %v656_v13, %v653_v47  ;;  %v1199_v13 = vrot.slane %v1197_v57, 4 }
  0x98   : > { %v10677_v1 = vpop.permute.xlu1 %2580  ;;  %v1202_v47 = vrot.slane %v1200_v8, 5  ;;  %v1486_v49 = vshll.u32 %v8679_v23, 16  ;;  %v8602_v23 = vld [vmem:[%s10016_s23 + $0x2ec] sm:$0x1] }
  0x99   : > { %2484 = vrot.lane.b32.xlu0 %v8799_v3, %s9909_s19  ;;  %v9614_v3 = vld [vmem:[%s10016_s23 + $0x298] ss:$8 sps:$4 sm:$0xff]   ;;  %v644_v42 = vrot.slane %v643_v63, 4  ;;  %v658_v58 = vrot.slane %v657_v45, 4 }
  0x9a   : > { %v1488_v8 = vrot.slane %v1486_v49, 5  ;;  %v8634_v49 = vld [vmem:[%s10016_s23 + $0x260] sm:$0xf] }
  0x9b   : > { %2596 = vrot.lane.b32.xlu1 %v8815_v35, %s9907_s20  ;;  %v8680_v35 = vld [vmem:[%s10016_s23 + $0x14] sm:$0x1]  ;;  %v649_v9 = vsel %vm10077_vm2, %v644_v42, %v648_v28  ;;  %v663_v57 = vsel %vm10077_vm2, %v658_v58, %v662_v60  ;;  %v1203_v58 = vor.u32 %v1202_v47, %v1199_v13  ;;  %v304_v47 = vld [vmem:[%s10016_s23 + $0x260] sm:$0xf] }
  0x9c   : > { %v2087_v20 = vpop.permute.xlu1 %2086  ;;  %v1500_v63 = vshll.u32 %v8680_v35, 16  ;;  %v8752_v42 = vcombine.low %v649_v9, %v663_v57  ;;  %v1489_v60 = vsel %vm10077_vm2, %v10436_v32, %v1488_v8  ;;  %v1729_v9 = vshrl.u32 %v8633_v26, 16 }
  0x9d   : > { %v10724_v6 = vsel %vm2772_vm3, %v14121_v12, %v2087_v20  ;;  %2708 = vrot.lane.b32.xlu0 %v9613_v39, %s9905_s14  ;;  %v8768_v20 = vcombine.low %v10695_v33, %v10704_v54  ;;  %v1189_v12 = vor.u32 %v1188_v7, %v1185_v52  ;;  %v1192_v39 = vshll.u32 %v8601_v22, 16  ;;  %v9619_v33 = vld [vmem:[%s10016_s23 + $0x328] ss:$8 sps:$4 sm:$0xff]  }
  0x9e   : > { %v2165_v4 = vpop.permute.xlu0 %2164  ;;  %v1502_v54 = vrot.slane %v1500_v63, 5  ;;  %v1732_v63 = vshll.u32 %v8633_v26, 16  ;;  %v1204_v13 = vrot.slane %v1203_v58, 4 }
  0x9f   : > { %v2823_v45 = vsel %vm2821_vm4, %v2775_v59, %v2165_v4  ;;  %2102 = vrot.lane.b32.xlu1 %v9614_v3, %s9903_s29  ;;  %v1190_v35 = vrot.slane %v1189_v12, 4  ;;  %v1194_v7 = vrot.slane %v1192_v39, 5  ;;  %v1206_v4 = vshll.u32 %v8602_v23, 16 }
  0xa0   : > { %v2856_v28 = vsel %vm2854_vm5, %v2823_v45, %v10633_v55  ;;  %v2279_v52 = vpop.permute.xlu1 %2278  ;;  %v1503_v55 = vsel %vm10077_vm2, %v10519_v11, %v1502_v54  ;;  %v1731_v45 = vrot.slane %v1729_v9, 4  ;;  %v1734_v57 = vrot.slane %v1732_v63, 5  ;;  %v369_v54 = vld [vmem:[%s10016_s23 + $0x264] sm:$0x1] }
  0xa1   : > { %v2889_v59 = vsel %vm2887_vm6, %v2856_v28, %v10655_v46  ;;  %2182 = vrot.lane.b32.xlu0 %v8752_v42, %s9908_s15  ;;  %v8839_v22 = vcombine.low %v1489_v60, %v1503_v55  ;;  %v1195_v32 = vsel %vm10077_vm2, %v1190_v35, %v1194_v7  ;;  %v1208_v12 = vrot.slane %v1206_v4, 5  ;;  %v305_v42 = vld [vmem:[%s10016_s23 + $0x268] sm:$0xf]  ;;  %v370_v35 = vld [vmem:[%s10016_s23 + $0x26c] sm:$0x1] }
  0xa2   : > { %v2469_v3 = vpop.permute.xlu0 %2468  ;;  %v1743_v23 = vshrl.u32 %v8634_v49, 16  ;;  %v1746_v39 = vshll.u32 %v8634_v49, 16  ;;  %v8816_v28 = vcombine.low %v8633_v26, %v8634_v49  ;;  %v668_v60 = vshll.u32 %v304_v47, 16  ;;  %v9621_v26 = vld [vmem:[%s10016_s23 + $0x2a0] ss:$8 sps:$4 sm:$0xff]  }
  0xa3   : > { %v2922_v46 = vsel %vm2920_vm7, %v2889_v59, %v2469_v3  ;;  %2294 = vrot.lane.b32.xlu1 %v8768_v20, %s9904_s13  ;;  %8865 = vmatprep.mubr.msk.bf16.mxu0 %vm2772_vm3, %v8839_v22  ;;  %v1209_v20 = vsel %vm10077_vm2, %v1204_v13, %v1208_v12  ;;  %v665_v59 = vshrl.u32 %v304_v47, 16  ;;  %v674_v49 = vshll.u32 %v369_v54, 16  ;;  %v8681_v55 = vld [vmem:[%s10016_s23 + $0x1c] sm:$0x1]  ;;  %v8682_v22 = vld [vmem:[%s10016_s23 + $0x24] sm:$0x1] }
  0xa4   : > { %v2955_v11 = vsel %vm2953_vm8, %v2922_v46, %v10677_v1  ;;  %v1735_v1 = vor.u32 %v1734_v57, %v1731_v45  ;;  %v8800_v7 = vcombine.low %v1195_v32, %v1209_v20  ;;  %v10771_v58 = vrot.slane %v1743_v23, 4  ;;  %v8539_v23 = vld [vmem:[%s10016_s23 + $0x2f0] sm:$0xf] }
  0xa5   : > { %v2988_v8 = vsel %vm2986_vm9, %v2955_v11, %v10662_v31  ;;  %2406 = vrot.lane.b32.xlu0 %v9619_v33, %s9906_s17  ;;  %v10773_v3 = vrot.slane %v1746_v39, 5  ;;  %v667_v9 = vrot.slane %v665_v59, 4  ;;  %v670_v63 = vrot.slane %v668_v60, 5  ;;  %v9622_v11 = vld [vmem:[%s10016_s23 + $0x2a8] ss:$8 sps:$4 sm:$0xff]  }
  0xa6   : > { %3195 = vmatmul.mubr.bf16.vlgmr.msra.gmra.mxu0 %v2988_v8  ;;  %v2471_v31 = vpop.permute.xlu1 %2470  ;;  %v10777_v4 = vrot.slane %v1735_v1, 4  ;;  %v679_v46 = vshrl.u32 %v305_v42, 16  ;;  %v676_v13 = vrot.slane %v674_v49, 5  ;;  %v682_v47 = vshll.u32 %v305_v42, 16 }
  0xa7   : > { %v2167_v33 = vpop.permute.xlu0 %2166  ;;  %2486 = vrot.lane.b32.xlu1 %v8800_v7, %s9909_s19  ;;  %v671_v45 = vor.u32 %v670_v63, %v667_v9  ;;  %v688_v8 = vshll.u32 %v370_v35, 16  ;;  %v1749_v54 = vor.u32 %v10773_v3, %v10771_v58  ;;  %v1514_v1 = vshll.u32 %v8681_v55, 16  ;;  %v8540_v7 = vld [vmem:[%s10016_s23 + $0x2f8] sm:$0xf] }
  0xa8   : > { %v2825_v32 = vsel %vm2821_vm4, %v10724_v6, %v2167_v33  ;;  %v681_v57 = vrot.slane %v679_v46, 4  ;;  %v684_v6 = vrot.slane %v682_v47, 5  ;;  %v1528_v60 = vshll.u32 %v8682_v22, 16  ;;  %v8603_v46 = vld [vmem:[%s10016_s23 + $0x2f4] sm:$0x1] }
  0xa9   : > { %v2858_v12 = vsel %vm2854_vm5, %v2825_v32, %v2279_v52  ;;  %2598 = vrot.lane.b32.xlu0 %v8816_v28, %s9907_s20  ;;  %v672_v28 = vrot.slane %v671_v45, 4  ;;  %v690_v59 = vrot.slane %v688_v8, 5  ;;  %v1211_v33 = vshrl.u32 %v8539_v23, 16  ;;  %v8604_v8 = vld [vmem:[%s10016_s23 + $0x2fc] sm:$0x1] }
  0xaa   : > { %v2891_v39 = vsel %vm2887_vm6, %v2858_v12, %v10700_v53  ;;  %v2695_v20 = vpop.permute.xlu1 %2694  ;;  %v685_v49 = vor.u32 %v684_v6, %v681_v57  ;;  %v1516_v53 = vrot.slane %v1514_v1, 5  ;;  %v1214_v63 = vshll.u32 %v8539_v23, 16 }
  0xab   : > { %v2924_v42 = vsel %vm2920_vm7, %v2891_v39, %v2471_v31  ;;  %v2583_v52 = vpop.permute.xlu0 %2582  ;;  %2710 = vrot.lane.b32.xlu1 %v9621_v26, %s9905_s14  ;;  %v677_v55 = vsel %vm10077_vm2, %v672_v28, %v676_v13  ;;  %v1530_v31 = vrot.slane %v1528_v60, 5  ;;  %v1213_v32 = vrot.slane %v1211_v33, 4  ;;  %v9625_v28 = vld [vmem:[%s10016_s23 + $0x338] ss:$8 sps:$4 sm:$0xff]  }
  0xac   : > { %v2957_v35 = vsel %vm2953_vm8, %v2924_v42, %v2583_v52  ;;  %v686_v22 = vrot.slane %v685_v49, 4  ;;  %v1517_v26 = vsel %vm10077_vm2, %v10264_v36, %v1516_v53  ;;  %v1225_v47 = vshrl.u32 %v8540_v7, 16  ;;  %v8683_v53 = vld [vmem:[%s10016_s23 + $0x2c] sm:$0x1] }
  0xad   : > { %2104 = vrot.lane.b32.xlu0 %v9622_v11, %s9903_s29  ;;  %v2991_v9 = vsel %vm2986_vm9, %v2957_v35, %v2695_v20  ;;  %v1531_v12 = vsel %vm10077_vm2, %v10341_v37, %v1530_v31  ;;  %v1216_v13 = vrot.slane %v1214_v63, 5  ;;  %v1228_v45 = vshll.u32 %v8540_v7, 16  ;;  %v8636_v35 = vld [vmem:[%s10016_s23 + $0x270] sm:$0xf] }
  0xae   : > { %v8769_v57 = vcombine.low %v8539_v23, %v8540_v7  ;;  %v691_v39 = vsel %vm10077_vm2, %v686_v22, %v690_v59  ;;  %v8840_v20 = vcombine.low %v1517_v26, %v1531_v12  ;;  %v14122_v36 = vcombine.low %v10143_v29, %v10155_v5  ;;  %v8635_v7 = vld [vmem:[%s10016_s23 + $0x268] sm:$0xf]  ;;  %v8684_v22 = vld [vmem:[%s10016_s23 + $0x34] sm:$0x1] }
  0xaf   : > { %v2089_v11 = vpop.permute.xlu0 %2088  ;;  %v1227_v1 = vrot.slane %v1225_v47, 4  ;;  %v8753_v42 = vcombine.low %v677_v55, %v691_v39  ;;  %v1230_v52 = vrot.slane %v1228_v45, 5  ;;  %v1217_v60 = vor.u32 %v1216_v13, %v1213_v32  ;;  %v307_v39 = vld [vmem:[%s10016_s23 + $0x278] sm:$0xf] }
  0xb0   : > { %v2781_v6 = vsel %vm2772_vm3, %v14122_v36, %v2089_v11  ;;  %v1220_v23 = vshll.u32 %v8603_v46, 16  ;;  %8866 = vmatprep.mubr.msk.bf16.mxu0 %vm2772_vm3, %v8840_v20  ;;  %v1234_v29 = vshll.u32 %v8604_v8, 16  ;;  %v1757_v5 = vshrl.u32 %v8635_v7, 16  ;;  %v306_v11 = vld [vmem:[%s10016_s23 + $0x270] sm:$0xf] }
  0xb1   : > { %v2169_v37 = vpop.permute.xlu1 %2168  ;;  %2296 = vrot.lane.b32.xlu0 %v8769_v57, %s9904_s13  ;;  %v1760_v49 = vshll.u32 %v8635_v7, 16  ;;  %2184 = vrot.lane.b32.xlu1 %v8753_v42, %s9908_s15  ;;  %v1218_v55 = vrot.slane %v1217_v60, 4  ;;  %v1231_v63 = vor.u32 %v1230_v52, %v1227_v1  ;;  %v1771_v46 = vshrl.u32 %v8636_v35, 16 }
  0xb2   : > { %v2827_v59 = vsel %vm2821_vm4, %v2781_v6, %v2169_v37  ;;  %3203 = vmatmul.mubr.bf16.gmra.mxu0 %v2991_v9  ;;  %v1222_v31 = vrot.slane %v1220_v23, 5  ;;  %v1236_v32 = vrot.slane %v1234_v29, 5  ;;  %v1759_v47 = vrot.slane %v1757_v5, 4  ;;  %v371_v23 = vld [vmem:[%s10016_s23 + $0x274] sm:$0x1] }
  0xb3   : > { %v2281_v33 = vpop.permute.xlu0 %2280  ;;  %v1762_v12 = vrot.slane %v1760_v49, 5  ;;  %v1232_v57 = vrot.slane %v1231_v63, 4  ;;  %v10826_v9 = vrot.slane %v1771_v46, 4  ;;  %v1774_v8 = vshll.u32 %v8636_v35, 16 }
  0xb4   : > { %v2860_v26 = vsel %vm2854_vm5, %v2827_v59, %v2281_v33  ;;  %v1223_v45 = vsel %vm10077_vm2, %v1218_v55, %v1222_v31  ;;  %v8817_v6 = vcombine.low %v8635_v7, %v8636_v35  ;;  %v1542_v1 = vshll.u32 %v8683_v53, 16  ;;  %v9628_v33 = vld [vmem:[%s10016_s23 + $0x2b8] ss:$8 sps:$4 sm:$0xff]   ;;  %v372_v31 = vld [vmem:[%s10016_s23 + $0x27c] sm:$0x1] }
  0xb5   : > { %v2393_v13 = vpop.permute.xlu1 %2392  ;;  %v1763_v36 = vor.u32 %v1762_v12, %v1759_v47  ;;  %2408 = vrot.lane.b32.xlu1 %v9625_v28, %s9906_s17  ;;  %v1237_v42 = vsel %vm10077_vm2, %v1232_v57, %v1236_v32  ;;  %v10833_v37 = vrot.slane %v1774_v8, 5  ;;  %v1556_v60 = vshll.u32 %v8684_v22, 16  ;;  %v9627_v28 = vld [vmem:[%s10016_s23 + $0x2b0] ss:$8 sps:$4 sm:$0xff]  }
  0xb6   : > { %v2893_v20 = vsel %vm2887_vm6, %v2860_v26, %v2393_v13  ;;  %v693_v59 = vshrl.u32 %v306_v11, 16  ;;  %v10839_v29 = vrot.slane %v1749_v54, 4  ;;  %v8801_v7 = vcombine.low %v1223_v45, %v1237_v42  ;;  %v8541_v26 = vld [vmem:[%s10016_s23 + $0x300] sm:$0xf]  ;;  %v8542_v45 = vld [vmem:[%s10016_s23 + $0x308] sm:$0xf] }
  0xb7   : > { %v2473_v52 = vpop.permute.xlu0 %2472  ;;  %v1544_v5 = vrot.slane %v1542_v1, 5  ;;  %v10843_v49 = vrot.slane %v1763_v36, 4  ;;  %v1558_v55 = vrot.slane %v1556_v60, 5  ;;  %v696_v46 = vshll.u32 %v306_v11, 16 }
  0xb8   : > { %v2926_v35 = vsel %vm2920_vm7, %v2893_v20, %v2473_v52  ;;  %v695_v63 = vrot.slane %v693_v59, 4  ;;  %2488 = vrot.lane.b32.xlu0 %v8801_v7, %s9909_s19  ;;  %v1777_v58 = vor.u32 %v10833_v37, %v10826_v9  ;;  %v702_v54 = vshll.u32 %v371_v23, 16  ;;  %v8605_v7 = vld [vmem:[%s10016_s23 + $0x304] sm:$0x1] }
  0xb9   : > { %v2585_v53 = vpop.permute.xlu1 %2584  ;;  %v1545_v3 = vsel %vm10077_vm2, %v10346_v38, %v1544_v5  ;;  %v707_v22 = vshrl.u32 %v307_v39, 16  ;;  %2600 = vrot.lane.b32.xlu1 %v8817_v6, %s9907_s20  ;;  %v1559_v12 = vsel %vm10077_vm2, %v10351_v30, %v1558_v55  ;;  %v698_v11 = vrot.slane %v696_v46, 5 }
  0xba   : > { %v2959_v32 = vsel %vm2953_vm8, %v2926_v35, %v2585_v53  ;;  %v710_v13 = vshll.u32 %v307_v39, 16  ;;  %v8841_v57 = vcombine.low %v1545_v3, %v1559_v12  ;;  %v704_v8 = vrot.slane %v702_v54, 5 }
  0xbb   : > { %v2697_v47 = vpop.permute.xlu0 %2696  ;;  %v709_v20 = vrot.slane %v707_v22, 4  ;;  %v716_v38 = vshll.u32 %v372_v31, 16  ;;  %v699_v1 = vor.u32 %v698_v11, %v695_v63  ;;  %v1239_v52 = vshrl.u32 %v8541_v26, 16  ;;  %v8606_v31 = vld [vmem:[%s10016_s23 + $0x30c] sm:$0x1] }
  0xbc   : > { %v712_v42 = vrot.slane %v710_v13, 5  ;;  %v2994_v6 = vsel %vm2986_vm9, %v2959_v32, %v2697_v47  ;;  %2712 = vrot.lane.b32.xlu0 %v9627_v28, %s9905_s14  ;;  %v14123_v30 = vcombine.low %v10210_v15, %v10213_v17  ;;  %8867 = vmatprep.mubr.msk.bf16.mxu0 %vm2772_vm3, %v8841_v57  ;;  %v1242_v23 = vshll.u32 %v8541_v26, 16  ;;  %v10874_v47 = vld [vmem:[%s10016_s23 + $0x278] sm:$0xf] }
  0xbd   : > { %v2091_v36 = vpop.permute.xlu1 %2090  ;;  %v718_v60 = vrot.slane %v716_v38, 5  ;;  %v1253_v59 = vshrl.u32 %v8542_v45, 16  ;;  %2106 = vrot.lane.b32.xlu1 %v9628_v33, %s9903_s29  ;;  %v700_v35 = vrot.slane %v699_v1, 4  ;;  %3211 = vmatmul.mubr.bf16.gmra.mxu0 %v2994_v6  ;;  %v1241_v53 = vrot.slane %v1239_v52, 4  ;;  %v8638_v38 = vld [vmem:[%s10016_s23 + $0x280] sm:$0xf] }
  0xbe   : > { %v2784_v39 = vsel %vm2772_vm3, %v14123_v30, %v2091_v36  ;;  %v713_v5 = vor.u32 %v712_v42, %v709_v20  ;;  %v1256_v55 = vshll.u32 %v8542_v45, 16  ;;  %v1244_v63 = vrot.slane %v1242_v23, 5  ;;  %v8685_v1 = vld [vmem:[%s10016_s23 + $0x3c] sm:$0x1] }
  0xbf   : > { %v2171_v28 = vpop.permute.xlu0 %2170  ;;  %v1255_v15 = vrot.slane %v1253_v59, 4  ;;  %v8770_v17 = vcombine.low %v8541_v26, %v8542_v45  ;;  %v705_v3 = vsel %vm10077_vm2, %v700_v35, %v704_v8  ;;  %v1248_v32 = vshll.u32 %v8605_v7, 16  ;;  %v8686_v35 = vld [vmem:[%s10016_s23 + $0x44] sm:$0x1] }
  0xc0   : > { %v2829_v46 = vsel %vm2821_vm4, %v2784_v39, %v2171_v28  ;;  %v714_v54 = vrot.slane %v713_v5, 4  ;;  %v1258_v33 = vrot.slane %v1256_v55, 5  ;;  %v1245_v11 = vor.u32 %v1244_v63, %v1241_v53  ;;  %v9631_v53 = vld [vmem:[%s10016_s23 + $0x348] ss:$8 sps:$4 sm:$0xff]   ;;  %v308_v63 = vld [vmem:[%s10016_s23 + $0x360] sm:$0xf] }
  0xc1   : > { %v2283_v22 = vpop.permute.xlu1 %2282  ;;  %v1262_v13 = vshll.u32 %v8606_v31, 16  ;;  %v1785_v57 = vshrl.u32 %v10874_v47, 16  ;;  %2298 = vrot.lane.b32.xlu1 %v8770_v17, %s9904_s13  ;;  %v1250_v45 = vrot.slane %v1248_v32, 5  ;;  %v1788_v36 = vshll.u32 %v10874_v47, 16  ;;  %v9633_v32 = vld [vmem:[%s10016_s23 + $0x2c0] ss:$8 sps:$4 sm:$0xff]  }
  0xc2   : > { %v2862_v12 = vsel %vm2854_vm5, %v2829_v46, %v2283_v22  ;;  %v719_v26 = vsel %vm10077_vm2, %v714_v54, %v718_v60  ;;  %v1259_v8 = vor.u32 %v1258_v33, %v1255_v15  ;;  %v1246_v6 = vrot.slane %v1245_v11, 4  ;;  %v309_v46 = vld [vmem:[%s10016_s23 + $0x368] sm:$0xf]  ;;  %v374_v11 = vld [vmem:[%s10016_s23 + $0x36c] sm:$0x1] }
  0xc3   : > { %v2395_v20 = vpop.permute.xlu0 %2394  ;;  %v8754_v42 = vcombine.low %v705_v3, %v719_v26  ;;  %v1264_v52 = vrot.slane %v1262_v13, 5  ;;  %v1787_v60 = vrot.slane %v1785_v57, 4  ;;  %v1790_v59 = vrot.slane %v1788_v36, 5  ;;  %v373_v3 = vld [vmem:[%s10016_s23 + $0x364] sm:$0x1] }
  0xc4   : > { %v2895_v30 = vsel %vm2887_vm6, %v2862_v12, %v2395_v20  ;;  %v1260_v39 = vrot.slane %v1259_v8, 4  ;;  %v1799_v7 = vshrl.u32 %v8638_v38, 16  ;;  %v10889_v5 = vrot.slane %v1777_v58, 4  ;;  %v10906_v20 = vld [vmem:[%s10016_s23 + $0x3f0] sm:$0xf] }
  0xc5   : > { %v2475_v23 = vpop.permute.xlu1 %2474  ;;  %2186 = vrot.lane.b32.xlu0 %v8754_v42, %s9908_s15  ;;  %v1251_v55 = vsel %vm10077_vm2, %v1246_v6, %v1250_v45  ;;  %v1802_v31 = vshll.u32 %v8638_v38, 16  ;;  %v8818_v9 = vcombine.low %v10874_v47, %v8638_v38  ;;  %v1570_v58 = vshll.u32 %v8685_v1, 16 }
  0xc6   : > { %v2928_v28 = vsel %vm2920_vm7, %v2895_v30, %v2475_v23  ;;  %v1265_v15 = vsel %vm10077_vm2, %v1260_v39, %v1264_v52  ;;  %v1801_v17 = vrot.slane %v1799_v7, 4  ;;  %v1791_v33 = vor.u32 %v1790_v59, %v1787_v60 }
  0xc7   : > { %v2587_v37 = vpop.permute.xlu0 %2586  ;;  %v8802_v54 = vcombine.low %v1251_v55, %v1265_v15  ;;  %v1804_v22 = vrot.slane %v1802_v31, 5  ;;  %v1584_v12 = vshll.u32 %v8686_v35, 16  ;;  %v1572_v26 = vrot.slane %v1570_v58, 5 }
  0xc8   : > { %v2961_v13 = vsel %vm2953_vm8, %v2928_v28, %v2587_v37  ;;  %v721_v45 = vshrl.u32 %v308_v63, 16  ;;  %v724_v8 = vshll.u32 %v308_v63, 16  ;;  %v730_v36 = vshll.u32 %v373_v3, 16  ;;  %v9634_v63 = vld [vmem:[%s10016_s23 + $0x3a8] ss:$8 sps:$4 sm:$0xff]  }
  0xc9   : > { %v2699_v57 = vpop.permute.xlu1 %2698  ;;  %2410 = vrot.lane.b32.xlu0 %v9631_v53, %s9906_s17  ;;  %2490 = vrot.lane.b32.xlu1 %v8802_v54, %s9909_s19  ;;  %v1805_v47 = vor.u32 %v1804_v22, %v1801_v17  ;;  %v1586_v38 = vrot.slane %v1584_v12, 5  ;;  %v735_v1 = vshrl.u32 %v309_v46, 16  ;;  %v1573_v42 = vsel %vm10077_vm2, %v10425_v14, %v1572_v26  ;;  %v8544_v14 = vld [vmem:[%s10016_s23 + $0x3f8] sm:$0xf]  ;;  %v8607_v22 = vld [vmem:[%s10016_s23 + $0x3f4] sm:$0x1] }
  0xca   : > { %v723_v6 = vrot.slane %v721_v45, 4  ;;  %v726_v52 = vrot.slane %v724_v8, 5  ;;  %v738_v30 = vshll.u32 %v309_v46, 16  ;;  %v10913_v23 = vrot.slane %v1791_v33, 4 }
  0xcb   : > { %v2093_v39 = vpop.permute.xlu0 %2092  ;;  %v1587_v60 = vsel %vm10077_vm2, %v10430_v18, %v1586_v38  ;;  %v732_v59 = vrot.slane %v730_v36, 5  ;;  %v737_v7 = vrot.slane %v735_v1, 4  ;;  %v744_v28 = vshll.u32 %v374_v11, 16  ;;  %v8608_v11 = vld [vmem:[%s10016_s23 + $0x3fc] sm:$0x1] }
  0xcc   : > { %v8842_v35 = vcombine.low %v1573_v42, %v1587_v60  ;;  %v727_v53 = vor.u32 %v726_v52, %v723_v6  ;;  %v740_v55 = vrot.slane %v738_v30, 5  ;;  %v2997_v15 = vsel %vm2986_vm9, %v2961_v13, %v2699_v57  ;;  %v10941_v42 = vld [vmem:[%s10016_s23 + $0x368] sm:$0xf] }
  0xcd   : > { %v2173_v31 = vpop.permute.xlu1 %2172  ;;  %2602 = vrot.lane.b32.xlu0 %v8818_v9, %s9907_s20  ;;  %2714 = vrot.lane.b32.xlu1 %v9633_v32, %s9905_s14  ;;  %v14124_v17 = vcombine.low %v10285_v50, %v10293_v51  ;;  %v1267_v37 = vshrl.u32 %v10906_v20, 16  ;;  %v1270_v58 = vshll.u32 %v10906_v20, 16  ;;  %v10929_v46 = vrot.slane %v1805_v47, 4 }
  0xce   : > { %8868 = vmatprep.mubr.msk.bf16.mxu0 %vm2772_vm3, %v8842_v35  ;;  %v728_v9 = vrot.slane %v727_v53, 4  ;;  %v741_v3 = vor.u32 %v740_v55, %v737_v7  ;;  %v746_v54 = vrot.slane %v744_v28, 5  ;;  %v1281_v51 = vshrl.u32 %v8544_v14, 16  ;;  %v9637_v7 = vld [vmem:[%s10016_s23 + $0x438] ss:$8 sps:$4 sm:$0xff]  }
  0xcf   : > { %v2787_v18 = vsel %vm2772_vm3, %v14124_v17, %v2093_v39  ;;  %v2285_v33 = vpop.permute.xlu0 %2284  ;;  %3219 = vmatmul.mubr.bf16.gmra.mxu0 %v2997_v15  ;;  %v1269_v32 = vrot.slane %v1267_v37, 4  ;;  %v1272_v50 = vrot.slane %v1270_v58, 5  ;;  %v1284_v12 = vshll.u32 %v8544_v14, 16  ;;  %v10946_v39 = vld [vmem:[%s10016_s23 + $0x370] sm:$0xf] }
  0xd0   : > { %v733_v13 = vsel %vm10077_vm2, %v728_v9, %v732_v59  ;;  %v742_v57 = vrot.slane %v741_v3, 4  ;;  %v2831_v26 = vsel %vm2821_vm4, %v2787_v18, %v2173_v31  ;;  %v8771_v45 = vcombine.low %v10906_v20, %v8544_v14  ;;  %v8687_v28 = vld [vmem:[%s10016_s23 + $0x12c] sm:$0x1]  ;;  %v8688_v31 = vld [vmem:[%s10016_s23 + $0x134] sm:$0x1] }
  0xd1   : > { %v2397_v8 = vpop.permute.xlu1 %2396  ;;  %2108 = vrot.lane.b32.xlu0 %v9634_v63, %s9903_s29  ;;  %v1283_v47 = vrot.slane %v1281_v51, 4  ;;  %v1286_v38 = vrot.slane %v1284_v12, 5  ;;  %v2864_v36 = vsel %vm2854_vm5, %v2831_v26, %v2285_v33  ;;  %v1273_v1 = vor.u32 %v1272_v50, %v1269_v32  ;;  %v10955_v37 = vld [vmem:[%s10016_s23 + $0x370] sm:$0xf]  ;;  %v375_v12 = vld [vmem:[%s10016_s23 + $0x374] sm:$0x1] }
  0xd2   : > { %v747_v6 = vsel %vm10077_vm2, %v742_v57, %v746_v54  ;;  %v1276_v52 = vshll.u32 %v8607_v22, 16  ;;  %v1290_v30 = vshll.u32 %v8608_v11, 16  ;;  %v1813_v20 = vshrl.u32 %v10941_v42, 16 }
  0xd3   : > { %v2477_v60 = vpop.permute.xlu0 %2476  ;;  %v8755_v59 = vcombine.low %v733_v13, %v747_v6  ;;  %v1274_v35 = vrot.slane %v1273_v1, 4  ;;  %v1287_v53 = vor.u32 %v1286_v38, %v1283_v47  ;;  %v1816_v55 = vshll.u32 %v10941_v42, 16 }
  0xd4   : > { %v1278_v14 = vrot.slane %v1276_v52, 5  ;;  %v1292_v63 = vrot.slane %v1290_v30, 5  ;;  %v1815_v15 = vrot.slane %v1813_v20, 4  ;;  %v1827_v17 = vshrl.u32 %v10946_v39, 16  ;;  %v9639_v20 = vld [vmem:[%s10016_s23 + $0x3b0] ss:$8 sps:$4 sm:$0xff]  }
  0xd5   : > { %v2589_v18 = vpop.permute.xlu1 %2588  ;;  %2188 = vrot.lane.b32.xlu1 %v8755_v59, %s9908_s15  ;;  %2300 = vrot.lane.b32.xlu0 %v8771_v45, %s9904_s13  ;;  %v2897_v58 = vsel %vm2887_vm6, %v2864_v36, %v2397_v8  ;;  %v1288_v9 = vrot.slane %v1287_v53, 4  ;;  %v1818_v3 = vrot.slane %v1816_v55, 5  ;;  %v1830_v54 = vshll.u32 %v10946_v39, 16  ;;  %v10970_v36 = vld [vmem:[%s10016_s23 + $0x378] sm:$0xf] }
  0xd6   : > { %v1279_v33 = vsel %vm10077_vm2, %v1274_v35, %v1278_v14  ;;  %v1829_v22 = vrot.slane %v1827_v17, 4  ;;  %v2930_v32 = vsel %vm2920_vm7, %v2897_v58, %v2477_v60  ;;  %v1598_v51 = vshll.u32 %v8687_v28, 16  ;;  %v8545_v53 = vld [vmem:[%s10016_s23 + $0x400] sm:$0xf]  ;;  %v8546_v17 = vld [vmem:[%s10016_s23 + $0x408] sm:$0xf] }
  0xd7   : > { %v2701_v50 = vpop.permute.xlu0 %2700  ;;  %v1293_v11 = vsel %vm10077_vm2, %v1288_v9, %v1292_v63  ;;  %v1819_v13 = vor.u32 %v1818_v3, %v1815_v15  ;;  %v1832_v57 = vrot.slane %v1830_v54, 5  ;;  %v8819_v26 = vcombine.low %v10941_v42, %v10946_v39  ;;  %v376_v42 = vld [vmem:[%s10016_s23 + $0x37c] sm:$0x1] }
  0xd8   : > { %v8803_v45 = vcombine.low %v1279_v33, %v1293_v11  ;;  %v1600_v47 = vrot.slane %v1598_v51, 5  ;;  %v1612_v38 = vshll.u32 %v8688_v31, 16  ;;  %v749_v1 = vshrl.u32 %v10955_v37, 16  ;;  %v8610_v51 = vld [vmem:[%s10016_s23 + $0x40c] sm:$0x1] }
  0xd9   : > { %v2095_v8 = vpop.permute.xlu1 %2094  ;;  %2412 = vrot.lane.b32.xlu1 %v9637_v7, %s9906_s17  ;;  %v10974_v6 = vrot.slane %v1819_v13, 4  ;;  %v1833_v52 = vor.u32 %v1832_v57, %v1829_v22  ;;  %v2963_v30 = vsel %vm2953_vm8, %v2930_v32, %v2589_v18  ;;  %v752_v39 = vshll.u32 %v10955_v37, 16  ;;  %v9640_v18 = vld [vmem:[%s10016_s23 + $0x3b8] ss:$8 sps:$4 sm:$0xff]   ;;  %v8609_v32 = vld [vmem:[%s10016_s23 + $0x404] sm:$0x1] }
  0xda   : > { %2492 = vrot.lane.b32.xlu0 %v8803_v45, %s9909_s19  ;;  %v1601_v60 = vsel %vm10077_vm2, %v10438_v19, %v1600_v47  ;;  %v1614_v59 = vrot.slane %v1612_v38, 5  ;;  %v751_v35 = vrot.slane %v749_v1, 4  ;;  %v758_v7 = vshll.u32 %v375_v12, 16 }
  0xdb   : > { %v2175_v55 = vpop.permute.xlu0 %2174  ;;  %v14125_v28 = vcombine.low %v10369_v44, %v10377_v43  ;;  %v754_v14 = vrot.slane %v752_v39, 5  ;;  %v763_v63 = vshrl.u32 %v10970_v36, 16  ;;  %v766_v15 = vshll.u32 %v10970_v36, 16 }
  0xdc   : > { %v1615_v19 = vsel %vm10077_vm2, %v10506_v25, %v1614_v59  ;;  %v760_v58 = vrot.slane %v758_v7, 5  ;;  %v772_v9 = vshll.u32 %v376_v42, 16  ;;  %v3000_v3 = vsel %vm2986_vm9, %v2963_v30, %v2701_v50  ;;  %v11009_v59 = vld [vmem:[%s10016_s23 + $0x378] sm:$0xf] }
  0xdd   : > { %v2790_v31 = vsel %vm2772_vm3, %v14125_v28, %v2095_v8  ;;  %v2287_v44 = vpop.permute.xlu1 %2286  ;;  %2604 = vrot.lane.b32.xlu1 %v8819_v26, %s9907_s20  ;;  %v8843_v43 = vcombine.low %v1601_v60, %v1615_v19  ;;  %v755_v54 = vor.u32 %v754_v14, %v751_v35  ;;  %v765_v33 = vrot.slane %v763_v63, 4  ;;  %v11012_v35 = vld [vmem:[%s10016_s23 + $0x380] sm:$0xf]  ;;  %v8689_v63 = vld [vmem:[%s10016_s23 + $0x13c] sm:$0x1] }
  0xde   : > { %v768_v22 = vrot.slane %v766_v15, 5  ;;  %v11000_v12 = vrot.slane %v1833_v52, 4  ;;  %2716 = vrot.lane.b32.xlu0 %v9639_v20, %s9905_s14  ;;  %v1295_v11 = vshrl.u32 %v8545_v53, 16  ;;  %v1298_v13 = vshll.u32 %v8545_v53, 16 }
  0xdf   : > { %v1309_v25 = vshrl.u32 %v8546_v17, 16  ;;  %v2399_v57 = vpop.permute.xlu0 %2398  ;;  %8869 = vmatprep.mubr.msk.bf16.mxu0 %vm2772_vm3, %v8843_v43  ;;  %v756_v50 = vrot.slane %v755_v54, 4  ;;  %v774_v45 = vrot.slane %v772_v9, 5  ;;  %v1312_v8 = vshll.u32 %v8546_v17, 16 }
  0xe0   : > { %v769_v26 = vor.u32 %v768_v22, %v765_v33  ;;  %3227 = vmatmul.mubr.bf16.gmra.mxu0 %v3000_v3  ;;  %v1297_v47 = vrot.slane %v1295_v11, 4  ;;  %v1300_v38 = vrot.slane %v1298_v13, 5  ;;  %v2833_v52 = vsel %vm2821_vm4, %v2790_v31, %v2175_v55  ;;  %v9643_v11 = vld [vmem:[%s10016_s23 + $0x448] ss:$8 sps:$4 sm:$0xff]  }
  0xe1   : > { %v1311_v1 = vrot.slane %v1309_v25, 4  ;;  %v2479_v30 = vpop.permute.xlu1 %2478  ;;  %2110 = vrot.lane.b32.xlu1 %v9640_v18, %s9903_s29  ;;  %v761_v20 = vsel %vm10077_vm2, %v756_v50, %v760_v58  ;;  %v1314_v39 = vrot.slane %v1312_v8, 5  ;;  %v8772_v60 = vcombine.low %v8545_v53, %v8546_v17  ;;  %v8690_v17 = vld [vmem:[%s10016_s23 + $0x144] sm:$0x1]  ;;  %v11022_v58 = vld [vmem:[%s10016_s23 + $0x380] sm:$0xf] }
  0xe2   : > { %v770_v42 = vrot.slane %v769_v26, 4  ;;  %v2866_v7 = vsel %vm2854_vm5, %v2833_v52, %v2287_v44  ;;  %v1301_v28 = vor.u32 %v1300_v38, %v1297_v47  ;;  %v1304_v14 = vshll.u32 %v8609_v32, 16  ;;  %v377_v26 = vld [vmem:[%s10016_s23 + $0x384] sm:$0x1]  ;;  %v11039_v52 = vld [vmem:[%s10016_s23 + $0x388] sm:$0xf] }
  0xe3   : > { %v1318_v55 = vshll.u32 %v8610_v51, 16  ;;  %v2591_v31 = vpop.permute.xlu0 %2590  ;;  %v1315_v18 = vor.u32 %v1314_v39, %v1311_v1  ;;  %v2899_v19 = vsel %vm2887_vm6, %v2866_v7, %v2399_v57  ;;  %v1841_v53 = vshrl.u32 %v11009_v59, 16 }
  0xe4   : > { %v775_v15 = vsel %vm10077_vm2, %v770_v42, %v774_v45  ;;  %v1302_v3 = vrot.slane %v1301_v28, 4  ;;  %v1306_v44 = vrot.slane %v1304_v14, 5  ;;  %v1844_v32 = vshll.u32 %v11009_v59, 16  ;;  %v9645_v28 = vld [vmem:[%s10016_s23 + $0x3c0] ss:$8 sps:$4 sm:$0xff]  }
  0xe5   : > { %v8756_v9 = vcombine.low %v761_v20, %v775_v15  ;;  %v1320_v43 = vrot.slane %v1318_v55, 5  ;;  %v2703_v54 = vpop.permute.xlu1 %2702  ;;  %2302 = vrot.lane.b32.xlu1 %v8772_v60, %s9904_s13  ;;  %v1316_v33 = vrot.slane %v1315_v18, 4  ;;  %v1843_v22 = vrot.slane %v1841_v53, 4  ;;  %v378_v15 = vld [vmem:[%s10016_s23 + $0x38c] sm:$0x1] }
  0xe6   : > { %v1855_v51 = vshrl.u32 %v11012_v35, 16  ;;  %v1307_v13 = vsel %vm10077_vm2, %v1302_v3, %v1306_v44  ;;  %v2932_v25 = vsel %vm2920_vm7, %v2899_v19, %v2479_v30  ;;  %v1858_v57 = vshll.u32 %v11012_v35, 16 }
  0xe7   : > { %2190 = vrot.lane.b32.xlu0 %v8756_v9, %s9908_s15  ;;  %v8820_v50 = vcombine.low %v11009_v59, %v11012_v35  ;;  %v2097_v45 = vpop.permute.xlu0 %2096  ;;  %v1321_v8 = vsel %vm10077_vm2, %v1316_v33, %v1320_v43  ;;  %v1846_v47 = vrot.slane %v1844_v32, 5  ;;  %v1626_v1 = vshll.u32 %v8689_v63, 16  ;;  %v8547_v43 = vld [vmem:[%s10016_s23 + $0x410] sm:$0xf] }
  0xe8   : > { %v1857_v38 = vrot.slane %v1855_v51, 4  ;;  %v8804_v20 = vcombine.low %v1307_v13, %v1321_v8  ;;  %v1860_v42 = vrot.slane %v1858_v57, 5  ;;  %v1640_v30 = vshll.u32 %v8690_v17, 16  ;;  %v8548_v51 = vld [vmem:[%s10016_s23 + $0x418] sm:$0xf] }
  0xe9   : > { %v777_v39 = vshrl.u32 %v11022_v58, 16  ;;  %v2177_v60 = vpop.permute.xlu1 %2176  ;;  %v1847_v7 = vor.u32 %v1846_v47, %v1843_v22  ;;  %v1628_v59 = vrot.slane %v1626_v1, 5  ;;  %v780_v35 = vshll.u32 %v11022_v58, 16  ;;  %v9646_v13 = vld [vmem:[%s10016_s23 + $0x3c8] ss:$8 sps:$4 sm:$0xff]  }
  0xea   : > { %v786_v14 = vshll.u32 %v377_v26, 16  ;;  %2494 = vrot.lane.b32.xlu1 %v8804_v20, %s9909_s19  ;;  %v2965_v55 = vsel %vm2953_vm8, %v2932_v25, %v2591_v31  ;;  %v1642_v63 = vrot.slane %v1640_v30, 5  ;;  %v791_v19 = vshrl.u32 %v11039_v52, 16 }
  0xeb   : > { %2414 = vrot.lane.b32.xlu0 %v9643_v11, %s9906_s17  ;;  %v779_v18 = vrot.slane %v777_v39, 4  ;;  %v2289_v53 = vpop.permute.xlu0 %2288  ;;  %v11049_v17 = vrot.slane %v1847_v7, 4  ;;  %v1861_v9 = vor.u32 %v1860_v42, %v1857_v38  ;;  %v1629_v3 = vsel %vm10077_vm2, %v10521_v16, %v1628_v59  ;;  %v8611_v39 = vld [vmem:[%s10016_s23 + $0x414] sm:$0x1]  ;;  %v8612_v59 = vld [vmem:[%s10016_s23 + $0x41c] sm:$0x1] }
  0xec   : > { %v782_v44 = vrot.slane %v780_v35, 5  ;;  %v1643_v31 = vsel %vm10077_vm2, %v10578_v0, %v1642_v63  ;;  %v788_v33 = vrot.slane %v786_v14, 5  ;;  %v793_v22 = vrot.slane %v791_v19, 4 }
  0xed   : > { %v794_v32 = vshll.u32 %v11039_v52, 16  ;;  %v2401_v11 = vpop.permute.xlu1 %2400  ;;  %v8844_v25 = vcombine.low %v1629_v3, %v1643_v31  ;;  %v800_v26 = vshll.u32 %v378_v15, 16  ;;  %v3003_v8 = vsel %vm2986_vm9, %v2965_v55, %v2703_v54  ;;  %v11077_v15 = vld [vmem:[%s10016_s23 + $0x388] sm:$0xf] }
  0xee   : > { %v783_v57 = vor.u32 %v782_v44, %v779_v18  ;;  %2718 = vrot.lane.b32.xlu1 %v9645_v28, %s9905_s14  ;;  %v14126_v0 = vcombine.low %v10453_v48, %v10463_v40  ;;  %v1323_v38 = vshrl.u32 %v8547_v43, 16  ;;  %v1326_v1 = vshll.u32 %v8547_v43, 16  ;;  %v11082_v44 = vld [vmem:[%s10016_s23 + $0x390] sm:$0xf] }
  0xef   : > { %2606 = vrot.lane.b32.xlu0 %v8820_v50, %s9907_s20  ;;  %v796_v16 = vrot.slane %v794_v32, 5  ;;  %v2481_v20 = vpop.permute.xlu0 %2480  ;;  %v11068_v42 = vrot.slane %v1861_v9, 4  ;;  %8870 = vmatprep.mubr.msk.bf16.mxu0 %vm2772_vm3, %v8844_v25  ;;  %v802_v30 = vrot.slane %v800_v26, 5  ;;  %v1337_v50 = vshrl.u32 %v8548_v51, 16  ;;  %v9649_v26 = vld [vmem:[%s10016_s23 + $0x458] ss:$8 sps:$4 sm:$0xff]  }
  0xf0   : > { %v2793_v47 = vsel %vm2772_vm3, %v14126_v0, %v2097_v45  ;;  %v784_v54 = vrot.slane %v783_v57, 4  ;;  %3235 = vmatmul.mubr.bf16.gmra.mxu0 %v3003_v8  ;;  %v1325_v28 = vrot.slane %v1323_v38, 4  ;;  %v1328_v48 = vrot.slane %v1326_v1, 5  ;;  %v8692_v38 = vld [vmem:[%s10016_s23 + $0x154] sm:$0x1] }
  0xf1   : > { %v797_v7 = vor.u32 %v796_v16, %v793_v22  ;;  %v1340_v40 = vshll.u32 %v8548_v51, 16  ;;  %v2593_v45 = vpop.permute.xlu1 %2592  ;;  %v2835_v14 = vsel %vm2821_vm4, %v2793_v47, %v2177_v60  ;;  %v1339_v55 = vrot.slane %v1337_v50, 4  ;;  %v8691_v47 = vld [vmem:[%s10016_s23 + $0x14c] sm:$0x1] }
  0xf2   : > { %v789_v35 = vsel %vm10077_vm2, %v784_v54, %v788_v33  ;;  %v8773_v63 = vcombine.low %v8547_v43, %v8548_v51  ;;  %v2868_v9 = vsel %vm2854_vm5, %v2835_v14, %v2289_v53  ;;  %v1329_v3 = vor.u32 %v1328_v48, %v1325_v28 }
  0xf3   : > { %2112 = vrot.lane.b32.xlu0 %v9646_v13, %s9903_s29  ;;  %v798_v18 = vrot.slane %v797_v7, 4  ;;  %v1342_v19 = vrot.slane %v1340_v40, 5  ;;  %v11084_v31 = vpop.permute.xlu0 %2704  ;;  %v1332_v33 = vshll.u32 %v8611_v39, 16  ;;  %v1346_v60 = vshll.u32 %v8612_v59, 16  ;;  %v11103_v39 = vld [vmem:[%s10016_s23 + $0x390] sm:$0xf] }
  0xf4   : > { %v1869_v43 = vshrl.u32 %v11077_v15, 16  ;;  %v1872_v22 = vshll.u32 %v11077_v15, 16  ;;  %v1330_v51 = vrot.slane %v1329_v3, 4  ;;  %v1883_v53 = vshrl.u32 %v11082_v44, 16  ;;  %v11113_v59 = vld [vmem:[%s10016_s23 + $0x398] sm:$0xf] }
  0xf5   : > { %v803_v32 = vsel %vm10077_vm2, %v798_v18, %v802_v30  ;;  %v1343_v13 = vor.u32 %v1342_v19, %v1339_v55  ;;  %v2099_v25 = vpop.permute.xlu1 %2098  ;;  %v2901_v8 = vsel %vm2887_vm6, %v2868_v9, %v2401_v11  ;;  %v1334_v16 = vrot.slane %v1332_v33, 5  ;;  %v380_v9 = vld [vmem:[%s10016_s23 + $0x39c] sm:$0x1] }
  0xf6   : > { %v8757_v57 = vcombine.low %v789_v35, %v803_v32  ;;  %v1348_v0 = vrot.slane %v1346_v60, 5  ;;  %v11096_v54 = vrot.slane %v1869_v43, 4  ;;  %v11098_v30 = vrot.slane %v1872_v22, 5  ;;  %v379_v35 = vld [vmem:[%s10016_s23 + $0x394] sm:$0x1] }
  0xf7   : > { %2304 = vrot.lane.b32.xlu0 %v8773_v63, %s9904_s13  ;;  %v1344_v1 = vrot.slane %v1343_v13, 4  ;;  %v11100_v50 = vrot.slane %v1883_v53, 4  ;;  %v2179_v7 = vpop.permute.xlu0 %2178  ;;  %v1335_v11 = vsel %vm10077_vm2, %v1330_v51, %v1334_v16  ;;  %v1886_v28 = vshll.u32 %v11082_v44, 16  ;;  %v9651_v43 = vld [vmem:[%s10016_s23 + $0x3d0] ss:$8 sps:$4 sm:$0xff]  }
  0xf8   : > { %2192 = vrot.lane.b32.xlu1 %v8757_v57, %s9908_s15  ;;  %v8821_v48 = vcombine.low %v11077_v15, %v11082_v44  ;;  %v2934_v40 = vsel %vm2920_vm7, %v2901_v8, %v2481_v20  ;;  %v14127_v63 = vcombine.low %v10527_v61, %v10535_v10  ;;  %v1654_v19 = vshll.u32 %v8691_v47, 16  ;;  %v11132_v57 = vld [vmem:[%s10016_s23 + $0x420] sm:$0xf] }
  0xf9   : > { %v1349_v14 = vsel %vm10077_vm2, %v1344_v1, %v1348_v0  ;;  %v2967_v55 = vsel %vm2953_vm8, %v2934_v40, %v2593_v45  ;;  %v2291_v3 = vpop.permute.xlu1 %2290  ;;  %v1668_v15 = vshll.u32 %v8692_v38, 16  ;;  %v805_v20 = vshrl.u32 %v11103_v39, 16  ;;  %v14128_v8 = vld [vmem:[#allocation6_spill] sm:$0xff]  ;;  %v11138_v1 = vld [vmem:[%s10016_s23 + $0x428] sm:$0xf] }
  0xfa   : > { %v2796_v18 = vsel %vm2772_vm3, %v14127_v63, %v2099_v25  ;;  %v8805_v33 = vcombine.low %v1335_v11, %v1349_v14  ;;  %v808_v60 = vshll.u32 %v11103_v39, 16  ;;  %v1656_v22 = vrot.slane %v1654_v19, 5  ;;  %v14129_v11 = vld [vmem:[#allocation7_spill] sm:$0xff]  ;;  %v9652_v19 = vld [vmem:[%s10016_s23 + $0x3d8] ss:$8 sps:$4 sm:$0xff]  }
  0xfb   : > { %v814_v32 = vshll.u32 %v379_v35, 16  ;;  %v819_v45 = vshrl.u32 %v11113_v59, 16  ;;  %v822_v61 = vshll.u32 %v11113_v59, 16  ;;  %v2403_v10 = vpop.permute.xlu0 %2402  ;;  %v1670_v51 = vrot.slane %v1668_v15, 5 }
  0xfc   : > { %2416 = vrot.lane.b32.xlu1 %v9649_v26, %s9906_s17  ;;  %2496 = vrot.lane.b32.xlu0 %v8805_v33, %s9909_s19  ;;  %v807_v13 = vrot.slane %v805_v20, 4  ;;  %v810_v53 = vrot.slane %v808_v60, 5  ;;  %v828_v25 = vshll.u32 %v380_v9, 16  ;;  %v1657_v16 = vsel %vm10077_vm2, %v14128_v8, %v1656_v22  ;;  %v8613_v60 = vld [vmem:[%s10016_s23 + $0x424] sm:$0x1] }
  0xfd   : > { %v816_v0 = vrot.slane %v814_v32, 5  ;;  %v821_v47 = vrot.slane %v819_v45, 4  ;;  %v824_v38 = vrot.slane %v822_v61, 5  ;;  %v2483_v26 = vpop.permute.xlu1 %2482  ;;  %v1671_v40 = vsel %vm10077_vm2, %v14129_v11, %v1670_v51 }
  0xfe   : > { %v811_v35 = vor.u32 %v810_v53, %v807_v13  ;;  %v830_v14 = vrot.slane %v828_v25, 5  ;;  %v3006_v63 = vsel %vm2986_vm9, %v2967_v55, %v11084_v31  ;;  %v8845_v9 = vcombine.low %v1657_v16, %v1671_v40  ;;  %v8614_v55 = vld [vmem:[%s10016_s23 + $0x42c] sm:$0x1]  ;;  %v11164_v40 = vld [vmem:[%s10016_s23 + $0x398] sm:$0xf] }
  0xff   : > { %v825_v33 = vor.u32 %v824_v38, %v821_v47  ;;  %v1351_v15 = vshrl.u32 %v11132_v57, 16  ;;  %v1354_v20 = vshll.u32 %v11132_v57, 16  ;;  %v2595_v22 = vpop.permute.xlu0 %2594  ;;  %v1365_v45 = vshrl.u32 %v11138_v1, 16 }
 0x100   : > { %2608 = vrot.lane.b32.xlu1 %v8821_v48, %s9907_s20  ;;  %2720 = vrot.lane.b32.xlu0 %v9651_v43, %s9905_s14  ;;  %v812_v32 = vrot.slane %v811_v35, 4  ;;  %v1368_v61 = vshll.u32 %v11138_v1, 16  ;;  %v8774_v31 = vcombine.low %v11132_v57, %v11138_v1  ;;  %v2837_v48 = vsel %vm2821_vm4, %v2796_v18, %v2179_v7 }
 0x101   : > { %8871 = vmatprep.mubr.msk.bf16.mxu0 %vm2772_vm3, %v8845_v9  ;;  %v826_v51 = vrot.slane %v825_v33, 4  ;;  %v1353_v13 = vrot.slane %v1351_v15, 4  ;;  %v1356_v53 = vrot.slane %v1354_v20, 5  ;;  %v2707_v25 = vpop.permute.xlu1 %2706  ;;  %v1367_v8 = vrot.slane %v1365_v45, 4  ;;  %v11170_v9 = vld [vmem:[%s10016_s23 + $0x3a0] sm:$0xf] }
 0x102   : > { %v817_v43 = vsel %vm10077_vm2, %v812_v32, %v816_v0  ;;  %3243 = vmatmul.mubr.bf16.gmra.mxu0 %v3006_v63  ;;  %v1370_v16 = vrot.slane %v1368_v61, 5  ;;  %v2870_v57 = vsel %vm2854_vm5, %v2837_v48, %v2291_v3  ;;  %v1360_v1 = vshll.u32 %v8613_v60, 16  ;;  %v9655_v0 = vld [vmem:[%s10016_s23 + $0x468] ss:$8 sps:$4 sm:$0xff]   ;;  %v8695_v48 = vld [vmem:[%s10016_s23 + $0x24c] sm:$0x1] }
 0x103   : > { %v831_v47 = vsel %vm10077_vm2, %v826_v51, %v830_v14  ;;  %v1357_v38 = vor.u32 %v1356_v53, %v1353_v13  ;;  %v1374_v11 = vshll.u32 %v8614_v55, 16  ;;  %v2101_v7 = vpop.permute.xlu0 %2100  ;;  %v2903_v63 = vsel %vm2887_vm6, %v2870_v57, %v2403_v10 }
 0x104   : > { %2114 = vrot.lane.b32.xlu1 %v9652_v19, %s9903_s29  ;;  %v8758_v18 = vcombine.low %v817_v43, %v831_v47  ;;  %v1371_v35 = vor.u32 %v1370_v16, %v1367_v8  ;;  %v1897_v3 = vshrl.u32 %v11164_v40, 16  ;;  %v11175_v14 = vrot.slane %v1886_v28, 5  ;;  %v8693_v19 = vld [vmem:[%s10016_s23 + $0x15c] sm:$0x1]  ;;  %v8694_v28 = vld [vmem:[%s10016_s23 + $0x164] sm:$0x1] }
 0x105   : > { %v1358_v33 = vrot.slane %v1357_v38, 4  ;;  %v1362_v15 = vrot.slane %v1360_v1, 5  ;;  %v1376_v20 = vrot.slane %v1374_v11, 5  ;;  %v2181_v60 = vpop.permute.xlu1 %2180  ;;  %v2936_v10 = vsel %vm2920_vm7, %v2903_v63, %v2483_v26  ;;  %v8696_v26 = vld [vmem:[%s10016_s23 + $0x254] sm:$0x1] }
 0x106   : > { %2194 = vrot.lane.b32.xlu0 %v8758_v18, %s9908_s15  ;;  %v1372_v32 = vrot.slane %v1371_v35, 4  ;;  %v1900_v45 = vshll.u32 %v11164_v40, 16  ;;  %v1911_v44 = vshrl.u32 %v11170_v9, 16  ;;  %v11185_v55 = vrot.slane %v1897_v3, 4  ;;  %v8697_v47 = vld [vmem:[%s10016_s23 + $0x25c] sm:$0x1] }
 0x107   : > { %v1363_v61 = vsel %vm10077_vm2, %v1358_v33, %v1362_v15  ;;  %v1914_v51 = vshll.u32 %v11170_v9, 16  ;;  %v2969_v13 = vsel %vm2953_vm8, %v2936_v10, %v2595_v22  ;;  %v2293_v53 = vpop.permute.xlu0 %2292  ;;  %v8822_v16 = vcombine.low %v11164_v40, %v11170_v9  ;;  %v8698_v38 = vld [vmem:[%s10016_s23 + $0x264] sm:$0x1]  ;;  %v8699_v10 = vld [vmem:[%s10016_s23 + $0x26c] sm:$0x1] }
 0x108   : > { %2306 = vrot.lane.b32.xlu1 %v8774_v31, %s9904_s13  ;;  %v1377_v43 = vsel %vm10077_vm2, %v1372_v32, %v1376_v20  ;;  %v11194_v8 = vrot.slane %v1900_v45, 5  ;;  %v1682_v57 = vshll.u32 %v8693_v19, 16  ;;  %v11200_v22 = vrot.slane %v1911_v44, 4  ;;  %v9657_v31 = vld [vmem:[%s10016_s23 + $0x3e0] ss:$8 sps:$4 sm:$0xff]  }
 0x109   : > { %v8806_v1 = vcombine.low %v1363_v61, %v1377_v43  ;;  %v1696_v11 = vshll.u32 %v8694_v28, 16  ;;  %v3009_v18 = vsel %vm2986_vm9, %v2969_v13, %v2707_v25  ;;  %v2405_v35 = vpop.permute.xlu1 %2404  ;;  %v14130_v3 = vcombine.low %v10594_v34, %v10604_v62  ;;  %v8700_v45 = vld [vmem:[%s10016_s23 + $0x274] sm:$0x1] }
 0x10a   : > { %2418 = vrot.lane.b32.xlu0 %v9655_v0, %s9906_s17  ;;  %v1684_v63 = vrot.slane %v1682_v57, 5  ;;  %v1710_v9 = vshll.u32 %v8695_v48, 16  ;;  %v1724_v33 = vshll.u32 %v8696_v26, 16  ;;  %v1738_v25 = vshll.u32 %v8697_v47, 16  ;;  %v8701_v48 = vld [vmem:[%s10016_s23 + $0x27c] sm:$0x1] }
 0x10b   : > { %v2799_v40 = vsel %vm2772_vm3, %v14130_v3, %v2101_v7  ;;  %v1698_v15 = vrot.slane %v1696_v11, 5  ;;  %v2485_v19 = vpop.permute.xlu0 %2484  ;;  %v1752_v32 = vshll.u32 %v8698_v38, 16  ;;  %v8702_v26 = vld [vmem:[%s10016_s23 + $0x284] sm:$0x1]  ;;  %v14131_v57 = vld [vmem:[#allocation8_spill] sm:$0xff]  ;;  %v11240_v3 = vrot.slane %v1914_v51, 5 }
 0x10c   : > { %v2839_v20 = vsel %vm2821_vm4, %v2799_v40, %v2181_v60  ;;  %2498 = vrot.lane.b32.xlu1 %v8806_v1, %s9909_s19  ;;  %v1685_v0 = vsel %vm10077_vm2, %v10665_v24, %v1684_v63  ;;  %v1712_v62 = vrot.slane %v1710_v9, 5  ;;  %v1726_v7 = vrot.slane %v1724_v33, 5  ;;  %v8703_v47 = vld [vmem:[%s10016_s23 + $0x36c] sm:$0x1]  ;;  %v8705_v63 = vld [vmem:[%s10016_s23 + $0x37c] sm:$0x1] }
 0x10d   : > { %v2872_v34 = vsel %vm2854_vm5, %v2839_v20, %v2293_v53  ;;  %v1699_v60 = vsel %vm10077_vm2, %v10672_v21, %v1698_v15  ;;  %v2597_v28 = vpop.permute.xlu1 %2596  ;;  %v1740_v61 = vrot.slane %v1738_v25, 5  ;;  %v1754_v13 = vrot.slane %v1752_v32, 5  ;;  %s9293_s19 = sshll.u32 %s9974_s28, 12 }
 0x10e   : > { %v2905_v44 = vsel %vm2887_vm6, %v2872_v34, %v2405_v35  ;;  %2610 = vrot.lane.b32.xlu0 %v8822_v16, %s9907_s20  ;;  %v8846_v24 = vcombine.low %v1685_v0, %v1699_v60  ;;  %v1713_v43 = vsel %vm10077_vm2, %v10698_v27, %v1712_v62  ;;  %v1727_v21 = vsel %vm10077_vm2, %v14131_v57, %v1726_v7  ;;  %v8704_v35 = vld [vmem:[%s10016_s23 + $0x374] sm:$0x1]  ;;  %v8706_v62 = vld [vmem:[%s10016_s23 + $0x384] sm:$0x1]  ;;  %v8707_v60 = vld [vmem:[%s10016_s23 + $0x38c] sm:$0x1]  ;;  %s14044_s21 = scalar_lea.hbm %s14101_s7, %s9293_s19 }
 0x10f   : > { %v2938_v53 = vsel %vm2920_vm7, %v2905_v44, %v2485_v19  ;;  %v2709_v38 = vpop.permute.xlu0 %2708  ;;  %v8847_v1 = vcombine.low %v1713_v43, %v1727_v21  ;;  %v1741_v11 = vsel %vm10077_vm2, %v10777_v4, %v1740_v61  ;;  %v1755_v16 = vsel %vm10077_vm2, %v10839_v29, %v1754_v13 }
 0x110   : > { %2722 = vrot.lane.b32.xlu1 %v9657_v31, %s9905_s14  ;;  %8872 = vmatprep.mubr.msk.bf16.mxu0 %vm2772_vm3, %v8846_v24  ;;  %v8848_v27 = vcombine.low %v1741_v11, %v1755_v16  ;;  %v1766_v40 = vshll.u32 %v8699_v10, 16  ;;  %v2971_v9 = vsel %vm2953_vm8, %v2938_v53, %v2597_v28  ;;  %v1780_v4 = vshll.u32 %v8700_v45, 16 }
 0x111   : > { %3251 = vmatmul.mubr.bf16.gmra.mxu0 %v3009_v18  ;;  %v2103_v33 = vpop.permute.xlu1 %2102  ;;  %v1794_v15 = vshll.u32 %v8701_v48, 16  ;;  %v1808_v20 = vshll.u32 %v8702_v26, 16  ;;  %v14132_v29 = vcombine.low %v10682_v2, %v10685_v41  ;;  %v3012_v31 = vsel %vm2986_vm9, %v2971_v9, %v2709_v38  ;;  %v8708_v26 = vld [vmem:[%s10016_s23 + $0x394] sm:$0x1]  ;;  %v11296_v9 = vld [vmem:[%s10016_s23 + $0x3a4] sm:$0x1] }
 0x112   : > { %8873 = vmatprep.mubr.msk.bf16.mxu0 %vm2772_vm3, %v8847_v1  ;;  %v1768_v19 = vrot.slane %v1766_v40, 5  ;;  %v8724_v18 = vcombine.low %v10955_v37, %v10970_v36  ;;  %v1782_v32 = vrot.slane %v1780_v4, 5  ;;  %v1822_v34 = vshll.u32 %v8703_v47, 16  ;;  %v11293_v40 = vld [vmem:[%s10016_s23 + $0x39c] sm:$0x1] }
 0x113   : > { %v2802_v51 = vsel %vm2772_vm3, %v14132_v29, %v2103_v33  ;;  %v2183_v25 = vpop.permute.xlu0 %2182  ;;  %v1796_v10 = vrot.slane %v1794_v15, 5  ;;  %v1810_v0 = vrot.slane %v1808_v20, 5  ;;  %v1836_v7 = vshll.u32 %v8704_v35, 16  ;;  %v3380_v4 = vld [vmem:[#allocation2 + $0x8] sm:$0x1] }
 0x114   : > { %v2841_v2 = vsel %vm2821_vm4, %v2802_v51, %v2183_v25  ;;  %v1769_v41 = vsel %vm10077_vm2, %v10843_v49, %v1768_v19  ;;  %v1850_v45 = vshll.u32 %v8705_v63, 16  ;;  %v1783_v28 = vsel %vm10077_vm2, %v10889_v5, %v1782_v32  ;;  %v3383_v15 = vld [vmem:[#allocation2 + $0x10] sm:$0x1] }
 0x115   : > { %v2295_v44 = vpop.permute.xlu1 %2294  ;;  %v1797_v61 = vsel %vm10077_vm2, %v10913_v23, %v1796_v10  ;;  %v1811_v13 = vsel %vm10077_vm2, %v10929_v46, %v1810_v0  ;;  %v1824_v48 = vrot.slane %v1822_v34, 5  ;;  %v11270_v24 = vcombine.low %v1769_v41, %v1783_v28  ;;  %v3508_v10 = vld [vmem:[#allocation2 + $0x1c] sm:$0x1]  ;;  %v3392_v41 = vld [vmem:[#allocation2 + $0x28] sm:$0x1] }
 0x116   : > { %v2874_v49 = vsel %vm2854_vm5, %v2841_v2, %v2295_v44  ;;  %v11272_v53 = vcombine.low %v1797_v61, %v1811_v13  ;;  %v1838_v43 = vrot.slane %v1836_v7, 5  ;;  %v1852_v57 = vrot.slane %v1850_v45, 5  ;;  %v3511_v2 = vld [vmem:[#allocation2 + $0x24] sm:$0x1]  ;;  %v3395_v61 = vld [vmem:[#allocation2 + $0x30] sm:$0x1] }
 0x117   : > { %v2407_v5 = vpop.permute.xlu0 %2406  ;;  %v1825_v23 = vsel %vm10077_vm2, %v10974_v6, %v1824_v48  ;;  %v1864_v21 = vshll.u32 %v8706_v62, 16  ;;  %v8725_v46 = vcombine.low %v11022_v58, %v11039_v52  ;;  %v8726_v1 = vcombine.low %v11103_v39, %v11113_v59  ;;  %v3389_v62 = vld [vmem:[#allocation2 + $0x20] sm:$0x1]  ;;  %v3517_v13 = vld [vmem:[#allocation2 + $0x34] sm:$0x1] }
 0x118   : > { %v2907_v47 = vsel %vm2887_vm6, %v2874_v49, %v2407_v5  ;;  %v1839_v38 = vsel %vm10077_vm2, %v11000_v12, %v1838_v43  ;;  %v1875_v11 = vor.u32 %v11098_v30, %v11096_v54  ;;  %v1853_v6 = vsel %vm10077_vm2, %v11049_v17, %v1852_v57  ;;  %v9750_v5 = vld [vmem:[%s10016_s23 + $0x268] sm:$0xf] }
 0x119   : > { %3259 = vmatmul.mubr.bf16.gmra.mxu0 %v3012_v31  ;;  %v11287_v16 = vcombine.low %v1825_v23, %v1839_v38  ;;  %v1866_v35 = vrot.slane %v1864_v21, 5  ;;  %v1878_v63 = vshll.u32 %v8707_v60, 16  ;;  %v2487_v12 = vpop.permute.xlu1 %2486  ;;  %v1889_v54 = vor.u32 %v11175_v14, %v11100_v50  ;;  %v3502_v31 = vld [vmem:[#allocation2 + $0xc] sm:$0x1]  ;;  %v3386_v50 = vld [vmem:[#allocation2 + $0x18] sm:$0x1] }
 0x11a   : > { %8874 = vmatprep.mubr.msk.bf16.mxu0 %vm2772_vm3, %v8848_v27  ;;  %v1876_v33 = vrot.slane %v1875_v11, 4  ;;  %v1892_v30 = vshll.u32 %v8708_v26, 16  ;;  %v2940_v20 = vsel %vm2920_vm7, %v2907_v47, %v2487_v12  ;;  %v14133_v19 = vmov 0   ;;  %v3520_v12 = vld [vmem:[#allocation2 + $0x3c] sm:$0x1] }
 0x11b   : > { %v2599_v17 = vpop.permute.xlu0 %2598  ;;  %v1867_v29 = vsel %vm10077_vm2, %v11068_v42, %v1866_v35  ;;  %v1880_v51 = vrot.slane %v1878_v63, 5  ;;  %3356 = vst.msk [vmem:[#allocation2] sm:$0xf] %vm3355_vm10, %v14133_v19  ;;  %3359 = vst.msk [vmem:[#allocation2 + $0x50] sm:$0xf] %vm3355_vm10, %v14133_v19  ;;  %v1890_v25 = vrot.slane %v1889_v54, 4  ;;  %v1903_v34 = vor.u32 %v11194_v8, %v11185_v55 }
 0x11c   : > { %3361 = vst.msk [vmem:[#allocation2 + $0xa0] sm:$0xf] %vm3355_vm10, %v14133_v19  ;;  %3363 = vst.msk [vmem:[#allocation2 + $0xf0] sm:$0xf] %vm3355_vm10, %v14133_v19  ;;  %v3505_v42 = vld [vmem:[#allocation2 + $0x14] sm:$0x1]  ;;  %v2973_v14 = vsel %vm2953_vm8, %v2940_v20, %v2599_v17  ;;  %v11322_v27 = vcombine.low %v1853_v6, %v1867_v29  ;;  %v1917_v28 = vor.u32 %v11240_v3, %v11200_v22 }
 0x11d   : > { %3366 = vst.msk [vmem:[#allocation2 + $0x48] sm:$0xf] %vm3355_vm10, %v14133_v19  ;;  %3368 = vst.msk [vmem:[#allocation2 + $0x98] sm:$0xf] %vm3355_vm10, %v14133_v19  ;;  %v1894_v32 = vrot.slane %v1892_v30, 5  ;;  %v1881_v0 = vsel %vm10077_vm2, %v1876_v33, %v1880_v51  ;;  %v2711_v7 = vpop.permute.xlu1 %2710  ;;  %v1906_v44 = vshll.u32 %v11293_v40, 16 }
 0x11e   : > { %3370 = vst.msk [vmem:[#allocation2 + $0xe8] sm:$0xf] %vm3355_vm10, %v14133_v19  ;;  %3372 = vst.msk [vmem:[#allocation2 + $0x138] sm:$0xf] %vm3355_vm10, %v14133_v19  ;;  %v1920_v55 = vshll.u32 %v11296_v9, 16  ;;  %v3015_v48 = vsel %vm2986_vm9, %v2973_v14, %v2711_v7  ;;  %v3381_v49 = vsel %vm11347_vm14, 0, %v3380_v4 }
 0x11f   : > { %3358 = vst.msk [vmem:[#allocation2 + $0x4] sm:$0x1] %vm3357_vm11, %v14133_v19  ;;  %3360 = vst.msk [vmem:[#allocation2 + $0x54] sm:$0x1] %vm3357_vm11, %v14133_v19  ;;  %v1895_v45 = vsel %vm10077_vm2, %v1890_v25, %v1894_v32  ;;  %v3514_v8 = vld [vmem:[#allocation2 + $0x2c] sm:$0x1]  ;;  %v2105_v57 = vpop.permute.xlu0 %2104 }
 0x120   : > { %3362 = vst.msk [vmem:[#allocation2 + $0xa4] sm:$0x1] %vm3357_vm11, %v14133_v19  ;;  %3364 = vst.msk [vmem:[#allocation2 + $0xf4] sm:$0x1] %vm3357_vm11, %v14133_v19  ;;  %v11356_v26 = vcombine.low %v1881_v0, %v1895_v45  ;;  %v3384_v22 = vsel %vm11347_vm14, 0, %v3383_v15  ;;  %v3503_v21 = vsel %vm11362_vm15, 0, %v3502_v31 }
 0x121   : > { %3367 = vst.msk [vmem:[#allocation2 + $0x4c] sm:$0x1] %vm3357_vm11, %v14133_v19  ;;  %3369 = vst.msk [vmem:[#allocation2 + $0x9c] sm:$0x1] %vm3357_vm11, %v14133_v19  ;;  %v9749_v3 = vld [vmem:[%s10016_s23 + $0x260] sm:$0xf]  ;;  %3267 = vmatmul.mubr.bf16.gmra.mxu0 %v3015_v48 }
 0x122   : > { %3371 = vst.msk [vmem:[#allocation2 + $0xec] sm:$0x1] %vm3357_vm11, %v14133_v19  ;;  %3373 = vst.msk [vmem:[#allocation2 + $0x13c] sm:$0x1] %vm3357_vm11, %v14133_v19  ;;  %v8721_v23 = vcombine.low %v9749_v3, %v9750_v5  ;;  %v3506_v38 = vsel %vm11362_vm15, 0, %v3505_v42  ;;  %v3387_v11 = vsel %vm11347_vm14, 0, %v3386_v50  ;;  %8875 = vmatprep.mubr.msk.bf16.mxu0 %vm2772_vm3, %v11270_v24 }
 0x123   : > { %3382 = vst [vmem:[#allocation2 + $0x8] sm:$0x1] %v3381_v49  ;;  %3385 = vst [vmem:[#allocation2 + $0x10] sm:$0x1] %v3384_v22  ;;  %v3398_v6 = vld [vmem:[#allocation2 + $0x38] sm:$0x1]  ;;  %v2185_v32 = vpop.permute.xlu1 %2184 }
 0x124   : > { %3504 = vst [vmem:[#allocation2 + $0xc] sm:$0x1] %v3503_v21  ;;  %3507 = vst [vmem:[#allocation2 + $0x14] sm:$0x1] %v3506_v38  ;;  %v3509_v35 = vsel %vm11362_vm15, 0, %v3508_v10  ;;  %v1904_v63 = vrot.slane %v1903_v34, 4  ;;  %v2805_v25 = vsel %vm2772_vm3, %v8721_v23, %v2105_v57  ;;  %v2297_v34 = vpop.permute.xlu0 %2296 }
 0x125   : > { %3388 = vst [vmem:[#allocation2 + $0x18] sm:$0x1] %v3387_v11  ;;  %v1908_v40 = vrot.slane %v1906_v44, 5  ;;  %v1918_v9 = vrot.slane %v1917_v28, 4  ;;  %v3401_v33 = vld [vmem:[#allocation2 + $0x40] sm:$0x1]  ;;  %v2843_v44 = vsel %vm2821_vm4, %v2805_v25, %v2185_v32 }
 0x126   : > { %v3523_v54 = vld [vmem:[#allocation2 + $0x44] sm:$0x1]  ;;  %3510 = vst [vmem:[#allocation2 + $0x1c] sm:$0x1] %v3509_v35  ;;  %v1922_v30 = vrot.slane %v1920_v55, 5  ;;  %v3390_v4 = vsel %vm11347_vm14, 0, %v3389_v62  ;;  %v2876_v28 = vsel %vm2854_vm5, %v2843_v44, %v2297_v34 }
 0x127   : > { %v3512_v15 = vsel %vm11362_vm15, 0, %v3511_v2  ;;  %v3393_v20 = vsel %vm11347_vm14, 0, %v3392_v41  ;;  %v3377_v17 = vld [vmem:[#allocation2] sm:$0x1]  ;;  %v1909_v29 = vsel %vm10077_vm2, %v1904_v63, %v1908_v40  ;;  %3391 = vst [vmem:[#allocation2 + $0x20] sm:$0x1] %v3390_v4  ;;  %v2409_v55 = vpop.permute.xlu1 %2408 }
 0x128   : > { %3513 = vst [vmem:[#allocation2 + $0x24] sm:$0x1] %v3512_v15  ;;  %3394 = vst [vmem:[#allocation2 + $0x28] sm:$0x1] %v3393_v20  ;;  %v3515_v24 = vsel %vm11362_vm15, 0, %v3514_v8  ;;  %v3396_v51 = vsel %vm11347_vm14, 0, %v3395_v61  ;;  %v1923_v42 = vsel %vm10077_vm2, %v1918_v9, %v1922_v30  ;;  %v2909_v61 = vsel %vm2887_vm6, %v2876_v28, %v2409_v55 }
 0x129   : > { %v3518_v31 = vsel %vm11362_vm15, 0, %v3517_v13  ;;  %v3499_v19 = vld [vmem:[#allocation2 + $0x4] sm:$0x1]  ;;  %3516 = vst [vmem:[#allocation2 + $0x2c] sm:$0x1] %v3515_v24  ;;  %v3378_v50 = vsel %vm11347_vm14, 0, %v3377_v17  ;;  %v11407_v10 = vcombine.low %v1909_v29, %v1923_v42 }
 0x12a   : > { %3397 = vst [vmem:[#allocation2 + $0x30] sm:$0x1] %v3396_v51  ;;  %3519 = vst [vmem:[#allocation2 + $0x34] sm:$0x1] %v3518_v31  ;;  %v3500_v14 = vsel %vm11362_vm15, 0, %v3499_v19  ;;  %v3399_v0 = vsel %vm11347_vm14, 0, %v3398_v6  ;;  %v2489_v13 = vpop.permute.xlu0 %2488 }
 0x12b   : > { %3379 = vst [vmem:[#allocation2] sm:$0x1] %v3378_v50  ;;  %3501 = vst [vmem:[#allocation2 + $0x4] sm:$0x1] %v3500_v14  ;;  %v3521_v62 = vsel %vm11362_vm15, 0, %v3520_v12  ;;  %v3402_v2 = vsel %vm11347_vm14, 0, %v3401_v33  ;;  %v2942_v49 = vsel %vm2920_vm7, %v2909_v61, %v2489_v13  ;;  %v2601_v22 = vpop.permute.xlu1 %2600 }
 0x12c   : > { %3400 = vst [vmem:[#allocation2 + $0x38] sm:$0x1] %v3399_v0  ;;  %v3524_v41 = vsel %vm11362_vm15, 0, %v3523_v54  ;;  %v3410_v7 = vld [vmem:[#allocation2 + $0x58] sm:$0x1]  ;;  %v2975_v3 = vsel %vm2953_vm8, %v2942_v49, %v2601_v22  ;;  %vm4871_vm10 = vcmask 1046532  }
 0x12d   : > { %3522 = vst [vmem:[#allocation2 + $0x3c] sm:$0x1] %v3521_v62  ;;  %3403 = vst [vmem:[#allocation2 + $0x40] sm:$0x1] %v3402_v2  ;;  %v3411_v45 = vsel %vm11347_vm14, 0, %v3410_v7 }
 0x12e   : > { %3525 = vst [vmem:[#allocation2 + $0x44] sm:$0x1] %v3524_v41  ;;  %3412 = vst [vmem:[#allocation2 + $0x58] sm:$0x1] %v3411_v45  ;;  %v3532_v8 = vld [vmem:[#allocation2 + $0x5c] sm:$0x1]  ;;  %v2713_v5 = vpop.permute.xlu0 %2712 }
 0x12f   : > { %v3533_v48 = vsel %vm11362_vm15, 0, %v3532_v8  ;;  %v3413_v23 = vld [vmem:[#allocation2 + $0x60] sm:$0x1]  ;;  %v3535_v57 = vld [vmem:[#allocation2 + $0x64] sm:$0x1]  ;;  %v2107_v21 = vpop.permute.xlu1 %2106  ;;  %v3018_v38 = vsel %vm2986_vm9, %v2975_v3, %v2713_v5  ;;  %vm11547_vm11 = vmor %vm4870_vm1, %vm4871_vm10 }
 0x130   : > { %3534 = vst [vmem:[#allocation2 + $0x5c] sm:$0x1] %v3533_v48  ;;  %v3414_v11 = vsel %vm11347_vm14, 0, %v3413_v23  ;;  %v3536_v6 = vsel %vm11362_vm15, 0, %v3535_v57  ;;  %3275 = vmatmul.mubr.bf16.gmra.mxu0 %v3018_v38  ;;  %v9751_v35 = vld [vmem:[%s10016_s23 + $0x270] sm:$0xf] }
 0x131   : > { %3415 = vst [vmem:[#allocation2 + $0x60] sm:$0x1] %v3414_v11  ;;  %3537 = vst [vmem:[#allocation2 + $0x64] sm:$0x1] %v3536_v6  ;;  %8876 = vmatprep.mubr.msk.bf16.mxu0 %vm2772_vm3, %v11272_v53  ;;  %v9752_v63 = vld [vmem:[%s10016_s23 + $0x278] sm:$0xf] }
 0x132   : > { %v8722_v40 = vcombine.low %v9751_v35, %v9752_v63  ;;  %v3416_v17 = vld [vmem:[#allocation2 + $0x68] sm:$0x1]  ;;  %v3538_v29 = vld [vmem:[#allocation2 + $0x6c] sm:$0x1]  ;;  %v9753_v14 = vld [vmem:[%s10016_s23 + $0x360] sm:$0xf] }
 0x133   : > { %v2299_v9 = vpop.permute.xlu1 %2298  ;;  %v3417_v31 = vsel %vm11347_vm14, 0, %v3416_v17  ;;  %v3539_v19 = vsel %vm11362_vm15, 0, %v3538_v29  ;;  %v9754_v25 = vld [vmem:[%s10016_s23 + $0x368] sm:$0xf]  ;;  %v3419_v2 = vld [vmem:[#allocation2 + $0x70] sm:$0x1] }
 0x134   : > { %v2808_v12 = vsel %vm2772_vm3, %v8722_v40, %v2107_v21  ;;  %3418 = vst [vmem:[#allocation2 + $0x68] sm:$0x1] %v3417_v31  ;;  %3540 = vst [vmem:[#allocation2 + $0x6c] sm:$0x1] %v3539_v19  ;;  %v8723_v32 = vcombine.low %v9753_v14, %v9754_v25  ;;  %v3404_v62 = vld [vmem:[#allocation2 + $0x48] sm:$0x1] }
 0x135   : > { %v3541_v41 = vld [vmem:[#allocation2 + $0x74] sm:$0x1]  ;;  %v3405_v7 = vsel %vm11347_vm14, 0, %v3404_v62  ;;  %v3420_v45 = vsel %vm11347_vm14, 0, %v3419_v2  ;;  %v3526_v61 = vld [vmem:[#allocation2 + $0x4c] sm:$0x1] }
 0x136   : > { %v3542_v44 = vsel %vm11362_vm15, 0, %v3541_v41  ;;  %3406 = vst [vmem:[#allocation2 + $0x48] sm:$0x1] %v3405_v7  ;;  %3421 = vst [vmem:[#allocation2 + $0x70] sm:$0x1] %v3420_v45  ;;  %v3527_v13 = vsel %vm11362_vm15, 0, %v3526_v61 }
 0x137   : > { %v2187_v33 = vpop.permute.xlu0 %2186  ;;  %3543 = vst [vmem:[#allocation2 + $0x74] sm:$0x1] %v3542_v44  ;;  %3528 = vst [vmem:[#allocation2 + $0x4c] sm:$0x1] %v3527_v13  ;;  %v3407_v23 = vld [vmem:[#allocation2 + $0x50] sm:$0x1] }
 0x138   : > { %v2845_v54 = vsel %vm2821_vm4, %v2808_v12, %v2187_v33  ;;  %v3529_v57 = vld [vmem:[#allocation2 + $0x54] sm:$0x1]  ;;  %v3408_v11 = vsel %vm11347_vm14, 0, %v3407_v23  ;;  %v3422_v35 = vld [vmem:[#allocation2 + $0x78] sm:$0x1] }
 0x139   : > { %v2878_v30 = vsel %vm2854_vm5, %v2845_v54, %v2299_v9  ;;  %v3530_v6 = vsel %vm11362_vm15, 0, %v3529_v57  ;;  %3409 = vst [vmem:[#allocation2 + $0x50] sm:$0x1] %v3408_v11  ;;  %v3544_v40 = vld [vmem:[#allocation2 + $0x7c] sm:$0x1]  ;;  %v3423_v9 = vsel %vm11347_vm14, 0, %v3422_v35 }
 0x13a   : > { %3531 = vst [vmem:[#allocation2 + $0x54] sm:$0x1] %v3530_v6  ;;  %v3545_v12 = vsel %vm11362_vm15, 0, %v3544_v40  ;;  %3424 = vst [vmem:[#allocation2 + $0x78] sm:$0x1] %v3423_v9 }
 0x13b   : > { %v2411_v4 = vpop.permute.xlu0 %2410  ;;  %v2491_v15 = vpop.permute.xlu1 %2490  ;;  %3546 = vst [vmem:[#allocation2 + $0x7c] sm:$0x1] %v3545_v12  ;;  %v11492_v14 = vld [vmem:[%s14096_s2] ss:$0 sm:$0xff]  ;;  %v3428_v25 = vld [vmem:[#allocation2 + $0x88] sm:$0x1] }
 0x13c   : > { %v2911_v20 = vsel %vm2887_vm6, %v2878_v30, %v2411_v4  ;;  %v3425_v30 = vld [vmem:[#allocation2 + $0x80] sm:$0x1]  ;;  %v3547_v4 = vld [vmem:[#allocation2 + $0x84] sm:$0x1]  ;;  %v11516_v11 = vld [vmem:[#allocation2] sm:$0xe] }
 0x13d   : > { %v2944_v53 = vsel %vm2920_vm7, %v2911_v20, %v2491_v15  ;;  %v3426_v17 = vsel %vm11347_vm14, 0, %v3425_v30  ;;  %v3548_v29 = vsel %vm11362_vm15, 0, %v3547_v4 }
 0x13e   : > { %3427 = vst [vmem:[#allocation2 + $0x80] sm:$0x1] %v3426_v17  ;;  %3549 = vst [vmem:[#allocation2 + $0x84] sm:$0x1] %v3548_v29  ;;  %v8913_v17 = vrot.slane %v11516_v11, 9 }
 0x13f   : > { %v2603_v24 = vpop.permute.xlu0 %2602  ;;  %v2715_v51 = vpop.permute.xlu1 %2714 }
 0x140   : > { %v2977_v42 = vsel %vm2953_vm8, %v2944_v53, %v2603_v24  ;;  %v4270_v30 = vld [vmem:[#allocation2 + $0x50] sm:$0xf] }
 0x141   : > { %v3021_v50 = vsel %vm2986_vm9, %v2977_v42, %v2715_v51  ;;  %v4262_v42 = vld [vmem:[#allocation2] sm:$0xf] }
 0x142   : > { %3283 = vmatmul.mubr.bf16.gmra.mxu0 %v3021_v50  ;;  %v4327_v41 = vshrl.u32 %v4262_v42, 16  ;;  %v4330_v44 = vshll.u32 %v4262_v42, 16 }
 0x143   : > { %v2109_v0 = vpop.permute.xlu0 %2108  ;;  %8877 = vmatprep.mubr.msk.bf16.mxu0 %vm2772_vm3, %v11287_v16 }
 0x144   : > { %v2811_v34 = vsel %vm2772_vm3, %v8723_v32, %v2109_v0  ;;  %v3550_v32 = vld [vmem:[#allocation2 + $0x8c] sm:$0x1]  ;;  %v3429_v0 = vsel %vm11347_vm14, 0, %v3428_v25  ;;  %v11505_v61 = vrot.slane %v4327_v41, 4  ;;  %v4332_v57 = vrot.slane %v4330_v44, 5 }
 0x145   : > { %3430 = vst [vmem:[#allocation2 + $0x88] sm:$0x1] %v3429_v0  ;;  %v4079_v41 = vld [vmem:[#allocation2 + $0x14] sm:$0x1] }
 0x146   : > { %v4333_v29 = vor.u32 %v4332_v57, %v11505_v61  ;;  %v4302_v61 = vld [vmem:[#allocation2 + $0x54] sm:$0x1] }
 0x147   : > { %v2189_v28 = vpop.permute.xlu1 %2188  ;;  %v2301_v55 = vpop.permute.xlu0 %2300 }
 0x148   : > { %v2847_v16 = vsel %vm2821_vm4, %v2811_v34, %v2189_v28  ;;  %v3551_v34 = vsel %vm11362_vm15, 0, %v3550_v32 }
 0x149   : > { %v2880_v8 = vsel %vm2854_vm5, %v2847_v16, %v2301_v55  ;;  %3552 = vst [vmem:[#allocation2 + $0x8c] sm:$0x1] %v3551_v34 }
 0x14b   : > { %v2413_v48 = vpop.permute.xlu1 %2412 }
 0x14c   : > { %v2913_v49 = vsel %vm2887_vm6, %v2880_v8, %v2413_v48  ;;  %v2493_v22 = vpop.permute.xlu0 %2492 }
 0x14d   : > { %v2946_v3 = vsel %vm2920_vm7, %v2913_v49, %v2493_v22  ;;  %v11508_v49 = vld [vmem:[#allocation2 + $0x48] sm:$0xf]  ;;  %v3431_v22 = vld [vmem:[#allocation2 + $0x90] sm:$0x1] }
 0x14e   : > { %v3432_v58 = vsel %vm11347_vm14, 0, %v3431_v22  ;;  %v5901_v6 = vshrl.u32 %v11508_v49, 16  ;;  %v5904_v35 = vshll.u32 %v11508_v49, 16  ;;  %v5777_v22 = vld [vmem:[#allocation2 + $0x4c] sm:$0x1] }
 0x14f   : > { %v2605_v5 = vpop.permute.xlu1 %2604  ;;  %3433 = vst [vmem:[#allocation2 + $0x90] sm:$0x1] %v3432_v58 }
 0x150   : > { %v2979_v21 = vsel %vm2953_vm8, %v2946_v3, %v2605_v5  ;;  %v2717_v38 = vpop.permute.xlu0 %2716  ;;  %v3553_v3 = vld [vmem:[#allocation2 + $0x94] sm:$0x1] }
 0x151   : > { %v3024_v63 = vsel %vm2986_vm9, %v2979_v21, %v2717_v38  ;;  %v3554_v52 = vsel %vm11362_vm15, 0, %v3553_v3 }
 0x152   : > { %3291 = vmatmul.mubr.bf16.gmra.mxu0 %v3024_v63  ;;  %3555 = vst [vmem:[#allocation2 + $0x94] sm:$0x1] %v3554_v52 }
 0x153   : > { %v2111_v33 = vpop.permute.xlu1 %2110  ;;  %8878 = vmatprep.mubr.msk.bf16.mxu0 %vm2772_vm3, %v11322_v27 }
 0x154   : > { %v2814_v15 = vsel %vm2772_vm3, %v8724_v18, %v2111_v33 }
 0x157   : > { %v2303_v54 = vpop.permute.xlu1 %2302 }
 0x159   : > { %v2191_v20 = vpop.permute.xlu0 %2190 }
 0x15a   : > { %v2849_v53 = vsel %vm2821_vm4, %v2814_v15, %v2191_v20  ;;  %v4070_v15 = vld [vmem:[#allocation2 + $0x8] sm:$0xf]  ;;  %v4073_v20 = vld [vmem:[#allocation2 + $0xc] sm:$0x1] }
 0x15b   : > { %v2882_v27 = vsel %vm2854_vm5, %v2849_v53, %v2303_v54  ;;  %v11520_v54 = vld [vmem:[#allocation2 + $0x4] sm:$0x1] }
 0x15c   : > { %v2495_v51 = vpop.permute.xlu1 %2494  ;;  %v4336_v53 = vshll.u32 %v11520_v54, 16 }
 0x15d   : > { %v2415_v24 = vpop.permute.xlu0 %2414 }
 0x15e   : > { %v2915_v31 = vsel %vm2887_vm6, %v2882_v27, %v2415_v24  ;;  %v11533_v44 = vrot.slane %v4336_v53, 5 }
 0x15f   : > { %v2948_v37 = vsel %vm2920_vm7, %v2915_v31, %v2495_v51 }
 0x160   : > { %v2719_v18 = vpop.permute.xlu1 %2718 }
 0x161   : > { %v2607_v36 = vpop.permute.xlu0 %2606 }
 0x162   : > { %v2981_v19 = vsel %vm2953_vm8, %v2948_v37, %v2607_v36  ;;  %v5903_v37 = vrot.slane %v5901_v6, 4  ;;  %v5906_v36 = vrot.slane %v5904_v35, 5  ;;  %v3440_v6 = vld [vmem:[#allocation2 + $0xa8] sm:$0x1]  ;;  %v3562_v35 = vld [vmem:[#allocation2 + $0xac] sm:$0x1] }
 0x163   : > { %v3027_v50 = vsel %vm2986_vm9, %v2981_v19, %v2719_v18  ;;  %v4439_v18 = vshrl.u32 %v4270_v30, 16  ;;  %v4442_v19 = vshll.u32 %v4270_v30, 16 }
 0x164   : > { %3299 = vmatmul.mubr.bf16.gmra.mxu0 %v3027_v50  ;;  %v5907_v3 = vor.u32 %v5906_v36, %v5903_v37 }
 0x165   : > { %v2113_v62 = vpop.permute.xlu0 %2112  ;;  %8879 = vmatprep.mubr.msk.bf16.mxu0 %vm2772_vm3, %v11356_v26 }
 0x166   : > { %v3196_v2 = vpop.f32.mrf.mxu0  ;;  %v2817_v28 = vsel %vm2772_vm3, %v8725_v46, %v2113_v62 }
 0x167   : > { %v3197_v7 = vadd.f32 %v11492_v14, %v3196_v2  ;;  %v4076_v2 = vld [vmem:[#allocation2 + $0x10] sm:$0xf] }
 0x168   : > { %v3198_v45 = vpop.f32.mrf.mxu0 }
 0x169   : > { %v3323_v55 = vmax.f32 %v3197_v7, 0.0  ;;  %v2305_v16 = vpop.permute.xlu0 %2304  ;;  %v4875_v45 = vrot.slane %v11520_v54, 5 }
 0x16a   : > { %v3199_v8 = vpop.f32.mrf.mxu0  ;;  %v2193_v13 = vpop.permute.xlu1 %2192 }
 0x16b   : > { %v9260_v26 = vpack.c.bf16 %v3323_v55, %v3323_v55  ;;  %v3200_v48 = vadd.f32 %v11492_v14, %v3199_v8  ;;  %v2851_v5 = vsel %vm2821_vm4, %v2817_v28, %v2193_v13  ;;  %v4782_v13 = vld [vmem:[#allocation2 + $0x50] sm:$0xe] }
 0x16c   : > { %v3201_v23 = vpop.f32.mrf.mxu0  ;;  %v2884_v46 = vsel %vm2854_vm5, %v2851_v5, %v2305_v16  ;;  %v4441_v5 = vrot.slane %v4439_v18, 4 }
 0x16d   : > { %v3748_v21 = vshrl.u32 %v9260_v26, 16  ;;  %v3324_v38 = vmax.f32 %v3200_v48, 0.0  ;;  %v3751_v12 = vshll.u32 %v9260_v26, 16  ;;  %v11537_v48 = vrot.slane %v4333_v29, 4 }
 0x16e   : > { %v2417_v63 = vpop.permute.xlu1 %2416  ;;  %v2497_v40 = vpop.permute.xlu0 %2496  ;;  %v4444_v23 = vrot.slane %v4442_v19, 5  ;;  %v11565_v29 = vsel %vm11547_vm11, %v8913_v17, %v4875_v45 }
 0x16f   : > { %v3750_v9 = vrot.slane %v3748_v21, 7  ;;  %v9261_v33 = vpack.c.bf16 %v3324_v38, %v3324_v38  ;;  %v2917_v4 = vsel %vm2887_vm6, %v2884_v46, %v2417_v63  ;;  %v5910_v38 = vshll.u32 %v5777_v22, 16 }
 0x170   : > { %v2950_v27 = vsel %vm2920_vm7, %v2917_v4, %v2497_v40  ;;  %v8921_v40 = vrot.slane %v4782_v13, 9  ;;  %v4445_v53 = vor.u32 %v4444_v23, %v4441_v5  ;;  %v4339_v17 = vsel %vm10077_vm2, %v11537_v48, %v11533_v44 }
 0x171   : > { %v3753_v24 = vor.u32 %v3751_v12, %v3750_v9  ;;  %v3754_v51 = vrot.slane %v3750_v9, 4  ;;  %v3756_v31 = vshrl.u32 %v9261_v33, 16  ;;  %v3759_v34 = vshll.u32 %v9261_v33, 16 }
 0x172   : > { %v2609_v42 = vpop.permute.xlu1 %2608  ;;  %v2721_v50 = vpop.permute.xlu0 %2720  ;;  %v4907_v9 = vrot.slane %v4302_v61, 5  ;;  %v3441_v12 = vsel %vm11347_vm14, 0, %v3440_v6 }
 0x173   : > { %v4071_v25 = vsel %vm11374_vm0, %v3753_v24, %v4070_v15  ;;  %v4074_v32 = vsel %vm11347_vm14, %v3754_v51, %v4073_v20  ;;  %v3758_v0 = vrot.slane %v3756_v31, 7  ;;  %v2983_v62 = vsel %vm2953_vm8, %v2950_v27, %v2609_v42  ;;  %v3204_v7 = vpop.f32.mrf.mxu0  ;;  %3442 = vst [vmem:[#allocation2 + $0xa8] sm:$0x1] %v3441_v12 }
 0x174   : > { %4072 = vst [vmem:[#allocation2 + $0x8] sm:$0xf] %v4071_v25  ;;  %4075 = vst [vmem:[#allocation2 + $0xc] sm:$0x1] %v4074_v32  ;;  %v3030_v28 = vsel %vm2986_vm9, %v2983_v62, %v2721_v50  ;;  %v3205_v8 = vadd.f32 %v11492_v14, %v3204_v7  ;;  %v4448_v27 = vshll.u32 %v4302_v61, 16  ;;  %v11569_v51 = vrot.slane %v5907_v3, 4 }
 0x175   : > { %v3761_v55 = vor.u32 %v3759_v34, %v3758_v0  ;;  %v3762_v16 = vrot.slane %v3758_v0, 4  ;;  %3307 = vmatmul.mubr.bf16.gmra.mxu0 %v3030_v28  ;;  %v3206_v26 = vpop.f32.mrf.mxu0  ;;  %v11571_v31 = vrot.slane %v5910_v38, 5  ;;  %v11582_v19 = vsel %vm11547_vm11, %v8921_v40, %v4907_v9  ;;  %v4082_v32 = vld [vmem:[#allocation2 + $0x18] sm:$0xf]  ;;  %v4088_v3 = vld [vmem:[#allocation2 + $0x20] sm:$0xf] }
 0x176   : > { %v2115_v57 = vpop.permute.xlu1 %2114  ;;  %v3325_v46 = vmax.f32 %v3205_v8, 0.0  ;;  %8880 = vmatprep.mubr.msk.bf16.mxu0 %vm2772_vm3, %v11407_v10  ;;  %v3563_v10 = vsel %vm11362_vm15, 0, %v3562_v35  ;;  %v11587_v7 = vrot.slane %v4445_v53, 4  ;;  %v11589_v45 = vrot.slane %v4448_v27, 5  ;;  %v4091_v9 = vld [vmem:[#allocation2 + $0x24] sm:$0x1] }
 0x177   : > { %v4077_v58 = vsel %vm11374_vm0, %v3761_v55, %v4076_v2  ;;  %v4080_v52 = vsel %vm11347_vm14, %v3762_v16, %v4079_v41  ;;  %v3207_v63 = vpop.f32.mrf.mxu0  ;;  %v2820_v33 = vsel %vm2772_vm3, %v8726_v1, %v2115_v57  ;;  %3564 = vst [vmem:[#allocation2 + $0xac] sm:$0x1] %v3563_v10  ;;  %v4085_v2 = vld [vmem:[#allocation2 + $0x1c] sm:$0x1] }
 0x178   : > { %4078 = vst [vmem:[#allocation2 + $0x10] sm:$0xf] %v4077_v58  ;;  %4081 = vst [vmem:[#allocation2 + $0x14] sm:$0x1] %v4080_v52  ;;  %v2195_v54 = vpop.permute.xlu0 %2194  ;;  %v9262_v30 = vpack.c.bf16 %v3325_v46, %v3325_v46  ;;  %v3208_v4 = vadd.f32 %v11492_v14, %v3207_v63 }
 0x179   : > { %v2853_v15 = vsel %vm2821_vm4, %v2820_v33, %v2195_v54  ;;  %v3209_v20 = vpop.f32.mrf.mxu0 }
 0x17a   : > { %v2307_v39 = vpop.permute.xlu1 %2306  ;;  %v3764_v59 = vshrl.u32 %v9262_v30, 16  ;;  %v3326_v1 = vmax.f32 %v3208_v4, 0.0  ;;  %v3767_v37 = vshll.u32 %v9262_v30, 16 }
 0x17b   : > { %v11567_v24 = vld [vmem:[#allocation2 + $0xc] sm:$0x1]  ;;  %v4775_v36 = vld [vmem:[#allocation2 + $0x8] sm:$0xe]  ;;  %v2886_v42 = vsel %vm2854_vm5, %v2853_v15, %v2307_v39 }
 0x17c   : > { %v4879_v18 = vrot.slane %v11567_v24, 5  ;;  %v11574_v11 = vld [vmem:[#allocation2 + $0x8] sm:$0xf]  ;;  %v2419_v50 = vpop.permute.xlu0 %2418  ;;  %v3766_v25 = vrot.slane %v3764_v59, 7  ;;  %v9263_v0 = vpack.c.bf16 %v3326_v1, %v3326_v1  ;;  %v8914_v34 = vrot.slane %v4775_v36, 9 }
 0x17d   : > { %v2919_v62 = vsel %vm2887_vm6, %v2886_v42, %v2419_v50  ;;  %v5066_v41 = vshrl.u32 %v11574_v11, 16  ;;  %v5033_v61 = vld [vmem:[#allocation2 + $0xc] sm:$0x1]  ;;  %v4350_v13 = vshll.u32 %v11567_v24, 16  ;;  %v3212_v5 = vpop.f32.mrf.mxu0  ;;  %v5069_v57 = vshll.u32 %v11574_v11, 16 }
 0x17e   : > { %v2499_v28 = vpop.permute.xlu1 %2498  ;;  %v3769_v55 = vor.u32 %v3767_v37, %v3766_v25  ;;  %v3770_v16 = vrot.slane %v3766_v25, 4  ;;  %v3772_v8 = vshrl.u32 %v9263_v0, 16  ;;  %v3775_v22 = vshll.u32 %v9263_v0, 16  ;;  %v5513_v63 = vld [vmem:[#allocation2 + $0x8] sm:$0xe] }
 0x17f   : > { %v2952_v26 = vsel %vm2920_vm7, %v2919_v62, %v2499_v28  ;;  %v4880_v23 = vsel %vm11547_vm11, %v8914_v34, %v4879_v18  ;;  %v3213_v6 = vadd.f32 %v11492_v14, %v3212_v5  ;;  %v5002_v35 = vld [vmem:[#allocation2 + $0x10] sm:$0xf]  ;;  %v3214_v12 = vpop.f32.mrf.mxu0  ;;  %v11603_v33 = vrot.slane %v5066_v41, 4  ;;  %v4263_v30 = vld [vmem:[#allocation2 + $0x8] sm:$0xf] }
 0x180   : > { %v4083_v58 = vsel %vm11374_vm0, %v3769_v55, %v4082_v32  ;;  %v4086_v52 = vsel %vm11347_vm14, %v3770_v16, %v4085_v2  ;;  %v2611_v46 = vpop.permute.xlu0 %2610  ;;  %v3774_v38 = vrot.slane %v3772_v8, 7  ;;  %v9041_v10 = vcombine.low %v11565_v29, %v4880_v23  ;;  %v5034_v27 = vld [vmem:[#allocation2 + $0x14] sm:$0x1]  ;;  %v5514_v39 = vld [vmem:[#allocation2 + $0x10] sm:$0xe] }
 0x181   : > { %4084 = vst [vmem:[#allocation2 + $0x18] sm:$0xf] %v4083_v58  ;;  %4087 = vst [vmem:[#allocation2 + $0x1c] sm:$0x1] %v4086_v52  ;;  %v2985_v40 = vsel %vm2953_vm8, %v2952_v26, %v2611_v46  ;;  %v5611_v54 = vrot.slane %v5033_v61, 5  ;;  %v3327_v53 = vmax.f32 %v3213_v6, 0.0  ;;  %v3215_v37 = vpop.f32.mrf.mxu0  ;;  %v9057_v62 = vcombine.low %v11574_v11, %v5002_v35 }
 0x182   : > { %v2723_v4 = vpop.permute.xlu1 %2722  ;;  %v3777_v15 = vor.u32 %v3775_v22, %v3774_v38  ;;  %v3778_v20 = vrot.slane %v3774_v38, 4  ;;  %6682 = vrot.lane.b32.xlu1 %v9041_v10, %s9906_s17  ;;  %v5080_v29 = vshrl.u32 %v5002_v35, 16  ;;  %v5083_v36 = vshll.u32 %v5002_v35, 16  ;;  %v11616_v0 = vld [vmem:[#allocation2 + $0x10] sm:$0xf] }
 0x183   : > { %v3033_v1 = vsel %vm2986_vm9, %v2985_v40, %v2723_v4  ;;  %v8945_v18 = vrot.slane %v5513_v63, 9  ;;  %v9264_v25 = vpack.c.bf16 %v3327_v53, %v3327_v53  ;;  %v3216_v32 = vadd.f32 %v11492_v14, %v3215_v37  ;;  %v3217_v34 = vpop.f32.mrf.mxu0  ;;  %v4094_v22 = vld [vmem:[#allocation2 + $0x28] sm:$0xf]  ;;  %v4097_v58 = vld [vmem:[#allocation2 + $0x2c] sm:$0x1] }
 0x184   : > { %3315 = vmatmul.mubr.bf16.gmra.mxu0 %v3033_v1  ;;  %v4089_v42 = vsel %vm11374_vm0, %v3777_v15, %v4088_v3  ;;  %v4092_v50 = vsel %vm11347_vm14, %v3778_v20, %v4091_v9  ;;  %v8946_v2 = vrot.slane %v5514_v39, 9  ;;  %v5615_v41 = vrot.slane %v5034_v27, 5  ;;  %v4776_v6 = vld [vmem:[#allocation2 + $0x10] sm:$0xe]  ;;  %v11635_v10 = vld [vmem:[#allocation2 + $0x14] sm:$0x1] }
 0x185   : > { %4090 = vst [vmem:[#allocation2 + $0x20] sm:$0xf] %v4089_v42  ;;  %4093 = vst [vmem:[#allocation2 + $0x24] sm:$0x1] %v4092_v50  ;;  %v4341_v28 = vshrl.u32 %v4263_v30, 16  ;;  %v3780_v55 = vshrl.u32 %v9264_v25, 16  ;;  %v5612_v8 = vsel %vm11547_vm11, %v8945_v18, %v5611_v54 }
 0x186   : > { %v3328_v16 = vmax.f32 %v3216_v32, 0.0  ;;  %v4344_v61 = vshll.u32 %v4263_v30, 16  ;;  %v3783_v26 = vshll.u32 %v9264_v25, 16  ;;  %6794 = vrot.lane.b32.xlu1 %v9057_v62, %s9907_s20  ;;  %v5616_v3 = vsel %vm11547_vm11, %v8946_v2, %v5615_v41  ;;  %v4100_v24 = vld [vmem:[#allocation2 + $0x30] sm:$0xf] }
 0x187   : > { %v4343_v5 = vrot.slane %v4341_v28, 4  ;;  %v5803_v23 = vshrl.u32 %v11616_v0, 16  ;;  %v3782_v11 = vrot.slane %v3780_v55, 7  ;;  %v9089_v46 = vcombine.low %v5612_v8, %v5616_v3 }
 0x188   : > { %v9265_v52 = vpack.c.bf16 %v3328_v16, %v3328_v16  ;;  %v4346_v38 = vrot.slane %v4344_v61, 5  ;;  %v11625_v35 = vrot.slane %v5069_v57, 5  ;;  %v11627_v63 = vrot.slane %v5080_v29, 4  ;;  %v11633_v12 = vld [vmem:[#allocation2 + $0x18] sm:$0xf] }
 0x189   : > { %v11629_v40 = vrot.slane %v5083_v36, 5  ;;  %v4352_v9 = vrot.slane %v4350_v13, 5  ;;  %v3785_v54 = vor.u32 %v3783_v26, %v3782_v11  ;;  %v3786_v30 = vrot.slane %v3782_v11, 4  ;;  %6922 = vrot.lane.b32.xlu0 %v9089_v46, %s9908_s15  ;;  %v11638_v15 = vld [vmem:[#allocation2 + $0x1c] sm:$0x1] }
 0x18a   : > { %v3788_v4 = vshrl.u32 %v9265_v52, 16  ;;  %v4777_v57 = vld [vmem:[#allocation2 + $0x18] sm:$0xe]  ;;  %v3791_v53 = vshll.u32 %v9265_v52, 16  ;;  %v4103_v13 = vld [vmem:[#allocation2 + $0x34] sm:$0x1]  ;;  %v4347_v27 = vor.u32 %v4346_v38, %v4343_v5  ;;  %v9105_v42 = vcombine.low %v11616_v0, %v11633_v12 }
 0x18b   : > { %v11644_v39 = vrot.slane %v5803_v23, 4  ;;  %v5806_v1 = vshll.u32 %v11616_v0, 16  ;;  %v5035_v37 = vld [vmem:[#allocation2 + $0x1c] sm:$0x1]  ;;  %v4095_v29 = vsel %vm11374_vm0, %v3785_v54, %v4094_v22  ;;  %v4098_v36 = vsel %vm11347_vm14, %v3786_v30, %v4097_v58  ;;  %v5515_v50 = vld [vmem:[#allocation2 + $0x18] sm:$0xe] }
 0x18c   : > { %v3790_v18 = vrot.slane %v3788_v4, 7  ;;  %v5516_v25 = vld [vmem:[#allocation2 + $0x20] sm:$0xe]  ;;  %4096 = vst [vmem:[#allocation2 + $0x28] sm:$0xf] %v4095_v29  ;;  %v4348_v32 = vrot.slane %v4347_v27, 4 }
 0x18d   : > { %4099 = vst [vmem:[#allocation2 + $0x2c] sm:$0x1] %v4098_v36  ;;  %v5817_v34 = vshrl.u32 %v11633_v12, 16  ;;  %v8915_v62 = vrot.slane %v4776_v6, 9  ;;  %v8916_v2 = vrot.slane %v4777_v57, 9  ;;  %7034 = vrot.lane.b32.xlu0 %v9105_v42, %s9906_s17  ;;  %v4883_v16 = vrot.slane %v11635_v10, 5 }
 0x18e   : > { %v5036_v41 = vld [vmem:[#allocation2 + $0x24] sm:$0x1]  ;;  %v3793_v28 = vor.u32 %v3791_v53, %v3790_v18  ;;  %v3794_v55 = vrot.slane %v3790_v18, 4  ;;  %v4887_v8 = vrot.slane %v11638_v15, 5  ;;  %v5003_v61 = vld [vmem:[#allocation2 + $0x18] sm:$0xf]  ;;  %v4353_v0 = vsel %vm10077_vm2, %v4348_v32, %v4352_v9 }
 0x18f   : > { %v8947_v26 = vrot.slane %v5515_v50, 9  ;;  %v5619_v22 = vrot.slane %v5035_v37, 5  ;;  %v8948_v3 = vrot.slane %v5516_v25, 9  ;;  %v5004_v5 = vld [vmem:[#allocation2 + $0x20] sm:$0xf]  ;;  %v9025_v58 = vcombine.low %v4339_v17, %v4353_v0  ;;  %v3220_v46 = vpop.f32.mrf.mxu0 }
 0x190   : > { %v4101_v23 = vsel %vm11374_vm0, %v3793_v28, %v4100_v24  ;;  %v4104_v11 = vsel %vm11347_vm14, %v3794_v55, %v4103_v13  ;;  %v5820_v52 = vshll.u32 %v11633_v12, 16  ;;  %v11669_v38 = vrot.slane %v5806_v1, 5  ;;  %v11677_v4 = vld [vmem:[#allocation2 + $0x20] sm:$0xf]  ;;  %v4264_v42 = vld [vmem:[#allocation2 + $0x10] sm:$0xf] }
 0x191   : > { %4102 = vst [vmem:[#allocation2 + $0x30] sm:$0xf] %v4101_v23  ;;  %4105 = vst [vmem:[#allocation2 + $0x34] sm:$0x1] %v4104_v11  ;;  %v3221_v6 = vadd.f32 %v11492_v14, %v3220_v46  ;;  %v4888_v9 = vsel %vm11547_vm11, %v8916_v2, %v4887_v8  ;;  %v5623_v54 = vrot.slane %v5036_v41, 5  ;;  %6602 = vrot.lane.b32.xlu1 %v9025_v58, %s9908_s15  ;;  %v3222_v30 = vpop.f32.mrf.mxu0  ;;  %v5094_v48 = vshrl.u32 %v5003_v61, 16 }
 0x192   : > { %v4884_v44 = vsel %vm11547_vm11, %v8915_v62, %v4883_v16  ;;  %v5097_v17 = vshll.u32 %v5003_v61, 16  ;;  %v5108_v12 = vshrl.u32 %v5004_v5, 16  ;;  %v5620_v53 = vsel %vm11547_vm11, %v8947_v26, %v5619_v22  ;;  %v4106_v58 = vld [vmem:[#allocation2 + $0x38] sm:$0xf] }
 0x193   : > { %v3329_v57 = vmax.f32 %v3221_v6, 0.0  ;;  %v5624_v24 = vsel %vm11547_vm11, %v8948_v3, %v5623_v54  ;;  %v5111_v13 = vshll.u32 %v5004_v5, 16  ;;  %v11683_v27 = vrot.slane %v5817_v34, 4  ;;  %v3223_v36 = vpop.f32.mrf.mxu0  ;;  %v11687_v18 = vld [vmem:[#allocation2 + $0x28] sm:$0xf] }
 0x194   : > { %v11685_v1 = vrot.slane %v5820_v52, 5  ;;  %v9042_v37 = vcombine.low %v4884_v44, %v4888_v9  ;;  %v9090_v29 = vcombine.low %v5620_v53, %v5624_v24  ;;  %v3224_v25 = vadd.f32 %v11492_v14, %v3223_v36  ;;  %v4109_v9 = vld [vmem:[#allocation2 + $0x3c] sm:$0x1]  ;;  %v5770_v24 = vld [vmem:[#allocation2 + $0x14] sm:$0x1] }
 0x195   : > { %v9266_v50 = vpack.c.bf16 %v3329_v57, %v3329_v57  ;;  %v9058_v32 = vcombine.low %v5003_v61, %v5004_v5  ;;  %v5831_v62 = vshrl.u32 %v11677_v4, 16  ;;  %v3225_v34 = vpop.f32.mrf.mxu0  ;;  %v11693_v2 = vrot.slane %v5094_v48, 4  ;;  %v4265_v61 = vld [vmem:[#allocation2 + $0x18] sm:$0xf] }
 0x196   : > { %6684 = vrot.lane.b32.xlu1 %v9042_v37, %s9906_s17  ;;  %6924 = vrot.lane.b32.xlu0 %v9090_v29, %s9908_s15  ;;  %v11695_v41 = vrot.slane %v5097_v17, 5  ;;  %v11697_v28 = vrot.slane %v5108_v12, 4  ;;  %v9106_v55 = vcombine.low %v11677_v4, %v11687_v18  ;;  %v3330_v8 = vmax.f32 %v3224_v25, 0.0 }
 0x197   : > { %v3796_v16 = vshrl.u32 %v9266_v50, 16  ;;  %v11701_v0 = vrot.slane %v5111_v13, 5  ;;  %v4355_v26 = vshrl.u32 %v4264_v42, 16  ;;  %v3799_v22 = vshll.u32 %v9266_v50, 16 }
 0x198   : > { %v5834_v3 = vshll.u32 %v11677_v4, 16  ;;  %v5845_v5 = vshrl.u32 %v11687_v18, 16  ;;  %v4358_v23 = vshll.u32 %v4264_v42, 16  ;;  %v9267_v52 = vpack.c.bf16 %v3330_v8, %v3330_v8 }
 0x199   : > { %v3798_v11 = vrot.slane %v3796_v16, 7  ;;  %v4357_v46 = vrot.slane %v4355_v26, 4  ;;  %v4364_v6 = vshll.u32 %v11635_v10, 16  ;;  %v4369_v30 = vshrl.u32 %v4265_v61, 16  ;;  %v5771_v10 = vld [vmem:[#allocation2 + $0x1c] sm:$0x1] }
 0x19a   : > { %6796 = vrot.lane.b32.xlu1 %v9058_v32, %s9907_s20  ;;  %7036 = vrot.lane.b32.xlu0 %v9106_v55, %s9906_s17  ;;  %v4360_v54 = vrot.slane %v4358_v23, 5  ;;  %v4372_v44 = vshll.u32 %v4265_v61, 16  ;;  %v4378_v48 = vshll.u32 %v11638_v15, 16  ;;  %v3804_v57 = vshrl.u32 %v9267_v52, 16  ;;  %v4112_v32 = vld [vmem:[#allocation2 + $0x40] sm:$0xf] }
 0x19b   : > { %v3801_v17 = vor.u32 %v3799_v22, %v3798_v11  ;;  %v3802_v12 = vrot.slane %v3798_v11, 4  ;;  %v3807_v53 = vshll.u32 %v9267_v52, 16  ;;  %v4366_v37 = vrot.slane %v4364_v6, 5  ;;  %v4115_v15 = vld [vmem:[#allocation2 + $0x44] sm:$0x1] }
 0x19c   : > { %v4361_v13 = vor.u32 %v4360_v54, %v4357_v46  ;;  %v4371_v29 = vrot.slane %v4369_v30, 4  ;;  %v4374_v36 = vrot.slane %v4372_v44, 5  ;;  %v3806_v25 = vrot.slane %v3804_v57, 7  ;;  %v11715_v26 = vld [vmem:[#allocation2 + $0x24] sm:$0x1] }
 0x19d   : > { %v4107_v42 = vsel %vm11374_vm0, %v3801_v17, %v4106_v58  ;;  %v4110_v50 = vsel %vm11347_vm14, %v3802_v12, %v4109_v9  ;;  %v4380_v34 = vrot.slane %v4378_v48, 5  ;;  %v5809_v8 = vor.u32 %v11669_v38, %v11644_v39  ;;  %v11719_v52 = vld [vmem:[#allocation2 + $0x2c] sm:$0x1]  ;;  %v4778_v46 = vld [vmem:[#allocation2 + $0x20] sm:$0xe] }
 0x19e   : > { %4108 = vst [vmem:[#allocation2 + $0x38] sm:$0xf] %v4107_v42  ;;  %4111 = vst [vmem:[#allocation2 + $0x3c] sm:$0x1] %v4110_v50  ;;  %v4362_v55 = vrot.slane %v4361_v13, 4  ;;  %v4375_v16 = vor.u32 %v4374_v36, %v4371_v29  ;;  %v5812_v61 = vshll.u32 %v5770_v24, 16  ;;  %v3809_v22 = vor.u32 %v3807_v53, %v3806_v25 }
 0x19f   : > { %v3810_v23 = vrot.slane %v3806_v25, 4  ;;  %v5823_v11 = vor.u32 %v11685_v1, %v11683_v27  ;;  %v5826_v58 = vshll.u32 %v5771_v10, 16  ;;  %v5810_v54 = vrot.slane %v5809_v8, 4  ;;  %v4779_v44 = vld [vmem:[#allocation2 + $0x28] sm:$0xe] }
 0x1a0   : > { %v4367_v6 = vsel %vm10077_vm2, %v4362_v55, %v4366_v37  ;;  %v4376_v9 = vrot.slane %v4375_v16, 4  ;;  %v5814_v30 = vrot.slane %v5812_v61, 5  ;;  %v4113_v39 = vsel %vm11374_vm0, %v3809_v22, %v4112_v32  ;;  %v3228_v27 = vpop.f32.mrf.mxu0  ;;  %v5037_v1 = vld [vmem:[#allocation2 + $0x2c] sm:$0x1]  ;;  %v5517_v12 = vld [vmem:[#allocation2 + $0x28] sm:$0xe] }
 0x1a1   : > { %v4116_v38 = vsel %vm11347_vm14, %v3810_v23, %v4115_v15  ;;  %v5824_v48 = vrot.slane %v5823_v11, 4  ;;  %v5828_v17 = vrot.slane %v5826_v58, 5  ;;  %4114 = vst [vmem:[#allocation2 + $0x40] sm:$0xf] %v4113_v39  ;;  %v3229_v24 = vadd.f32 %v11492_v14, %v3228_v27  ;;  %v5038_v37 = vld [vmem:[#allocation2 + $0x34] sm:$0x1] }
 0x1a2   : > { %4117 = vst [vmem:[#allocation2 + $0x44] sm:$0x1] %v4116_v38  ;;  %v4381_v57 = vsel %vm10077_vm2, %v4376_v9, %v4380_v34  ;;  %v5815_v53 = vsel %vm10077_vm2, %v5810_v54, %v5814_v30  ;;  %v8917_v13 = vrot.slane %v4778_v46, 9  ;;  %v5518_v29 = vld [vmem:[#allocation2 + $0x30] sm:$0xe]  ;;  %v4891_v42 = vrot.slane %v11715_v26, 5  ;;  %v3230_v25 = vpop.f32.mrf.mxu0 }
 0x1a3   : > { %v9026_v36 = vcombine.low %v4367_v6, %v4381_v57  ;;  %v5829_v10 = vsel %vm10077_vm2, %v5824_v48, %v5828_v17  ;;  %v8918_v50 = vrot.slane %v4779_v44, 9  ;;  %v3331_v15 = vmax.f32 %v3229_v24, 0.0  ;;  %v5005_v9 = vld [vmem:[#allocation2 + $0x28] sm:$0xf]  ;;  %v4266_v48 = vld [vmem:[#allocation2 + $0x20] sm:$0xf] }
 0x1a4   : > { %v9121_v32 = vcombine.low %v5815_v53, %v5829_v10  ;;  %v4895_v34 = vrot.slane %v11719_v52, 5  ;;  %v8949_v55 = vrot.slane %v5517_v12, 9  ;;  %v5848_v16 = vshll.u32 %v11687_v18, 16  ;;  %v3231_v23 = vpop.f32.mrf.mxu0  ;;  %v5006_v57 = vld [vmem:[#allocation2 + $0x30] sm:$0xf] }
 0x1a5   : > { %6604 = vrot.lane.b32.xlu1 %v9026_v36, %s9908_s15  ;;  %v5627_v8 = vrot.slane %v5037_v1, 5  ;;  %v8950_v61 = vrot.slane %v5518_v29, 9  ;;  %v5631_v22 = vrot.slane %v5038_v37, 5  ;;  %v9268_v11 = vpack.c.bf16 %v3331_v15, %v3331_v15  ;;  %v4118_v24 = vld [vmem:[#allocation2 + $0x58] sm:$0xf] }
 0x1a6   : > { %7114 = vrot.lane.b32.xlu0 %v9121_v32, %s9907_s20  ;;  %v4892_v58 = vsel %vm11547_vm11, %v8917_v13, %v4891_v42  ;;  %v4896_v46 = vsel %vm11547_vm11, %v8918_v50, %v4895_v34  ;;  %v3232_v6 = vadd.f32 %v11492_v14, %v3231_v23  ;;  %v11746_v54 = vrot.slane %v5831_v62, 4  ;;  %v3233_v38 = vpop.f32.mrf.mxu0  ;;  %v4121_v42 = vld [vmem:[#allocation2 + $0x5c] sm:$0x1] }
 0x1a7   : > { %v9043_v30 = vcombine.low %v4892_v58, %v4896_v46  ;;  %v5628_v44 = vsel %vm11547_vm11, %v8949_v55, %v5627_v8  ;;  %v5632_v39 = vsel %vm11547_vm11, %v8950_v61, %v5631_v22  ;;  %v11754_v17 = vrot.slane %v5834_v3, 5  ;;  %v4267_v3 = vld [vmem:[#allocation2 + $0x28] sm:$0xf]  ;;  %v4124_v61 = vld [vmem:[#allocation2 + $0x60] sm:$0xf] }
 0x1a8   : > { %v3812_v27 = vshrl.u32 %v9268_v11, 16  ;;  %v9091_v1 = vcombine.low %v5628_v44, %v5632_v39  ;;  %v3332_v12 = vmax.f32 %v3232_v6, 0.0  ;;  %v11758_v62 = vrot.slane %v5845_v5, 4  ;;  %v4127_v22 = vld [vmem:[#allocation2 + $0x64] sm:$0x1] }
 0x1a9   : > { %v11760_v53 = vrot.slane %v5848_v16, 5  ;;  %6686 = vrot.lane.b32.xlu1 %v9043_v30, %s9906_s17  ;;  %v5122_v13 = vshrl.u32 %v5005_v9, 16  ;;  %v5125_v37 = vshll.u32 %v5005_v9, 16  ;;  %v3815_v36 = vshll.u32 %v9268_v11, 16  ;;  %v9682_v16 = vld [vmem:[%s14097_s3 + $0x78] sm:$0xff]  }
 0x1aa   : > { %v3814_v29 = vrot.slane %v3812_v27, 7  ;;  %6926 = vrot.lane.b32.xlu0 %v9091_v1, %s9908_s15  ;;  %v9269_v4 = vpack.c.bf16 %v3332_v12, %v3332_v12  ;;  %v4383_v10 = vshrl.u32 %v4266_v48, 16  ;;  %v5136_v50 = vshrl.u32 %v5006_v57, 16  ;;  %v5742_v30 = vld [vmem:[#allocation2 + $0x30] sm:$0xf]  ;;  %9294 = vmatprep.subr.bf16.mxu1 %v9682_v16 }
 0x1ab   : > { %v5139_v25 = vshll.u32 %v5006_v57, 16  ;;  %v9059_v18 = vcombine.low %v5005_v9, %v5006_v57  ;;  %v4386_v5 = vshll.u32 %v4266_v48, 16  ;;  %v4392_v55 = vshll.u32 %v11715_v26, 16  ;;  %v11773_v44 = vld [vmem:[#allocation2 + $0x38] sm:$0xf] }
 0x1ac   : > { %v3817_v32 = vor.u32 %v3815_v36, %v3814_v29  ;;  %v3818_v15 = vrot.slane %v3814_v29, 4  ;;  %v3820_v34 = vshrl.u32 %v9269_v4, 16  ;;  %v3823_v8 = vshll.u32 %v9269_v4, 16  ;;  %v11778_v1 = vld [vmem:[#allocation2 + $0x34] sm:$0x1]  ;;  %v9683_v57 = vld [vmem:[%s14097_s3 + $0x38] sm:$0xff]  }
 0x1ad   : > { %6798 = vrot.lane.b32.xlu1 %v9059_v18, %s9907_s20  ;;  %v4385_v23 = vrot.slane %v4383_v10, 4  ;;  %v4388_v11 = vrot.slane %v4386_v5, 5  ;;  %v4397_v58 = vshrl.u32 %v4267_v3, 16  ;;  %v4400_v26 = vshll.u32 %v4267_v3, 16  ;;  %v4780_v12 = vld [vmem:[#allocation2 + $0x30] sm:$0xe]  ;;  %9295 = vmatpush3.bf16.msra.mxu1 %v9683_v57 }
 0x1ae   : > { %v4119_v46 = vsel %vm11374_vm0, %v3817_v32, %v4118_v24  ;;  %v4122_v6 = vsel %vm11347_vm14, %v3818_v15, %v4121_v42  ;;  %v3822_v9 = vrot.slane %v3820_v34, 7  ;;  %v11775_v39 = vrot.slane %v5122_v13, 4  ;;  %v11785_v3 = vld [vmem:[#allocation2 + $0x3c] sm:$0x1]  ;;  %v9685_v13 = vld [vmem:[%s14097_s3 + $0x70] sm:$0xff]   ;;  %v9689_v57 = vld [vmem:[%s14097_s3 + $0x28] sm:$0xff]  }
 0x1af   : > { %4120 = vst [vmem:[#allocation2 + $0x58] sm:$0xf] %v4119_v46  ;;  %4123 = vst [vmem:[#allocation2 + $0x5c] sm:$0x1] %v4122_v6  ;;  %v4389_v38 = vor.u32 %v4388_v11, %v4385_v23  ;;  %v4399_v48 = vrot.slane %v4397_v58, 4  ;;  %v4406_v27 = vshll.u32 %v11719_v52, 16  ;;  %v9107_v18 = vcombine.low %v5742_v30, %v11773_v44  ;;  %9296 = vmatprep.subr.bf16.mxu1 %v9685_v13 }
 0x1b0   : > { %v3825_v24 = vor.u32 %v3823_v8, %v3822_v9  ;;  %v3826_v29 = vrot.slane %v3822_v9, 4  ;;  %v11783_v36 = vrot.slane %v5125_v37, 5  ;;  %v4402_v4 = vrot.slane %v4400_v26, 5  ;;  %v4781_v5 = vld [vmem:[#allocation2 + $0x38] sm:$0xe]  ;;  %v3236_v32 = vpop.f32.mrf.mxu0  ;;  %v9686_v37 = vld [vmem:[%s14097_s3 + $0x30] sm:$0xff]  }
 0x1b1   : > { %v11790_v10 = vrot.slane %v5136_v50, 4  ;;  %v11792_v52 = vrot.slane %v5139_v25, 5  ;;  %v4394_v42 = vrot.slane %v4392_v55, 5  ;;  %v4390_v50 = vrot.slane %v4389_v38, 4  ;;  %v11802_v25 = vld [vmem:[#allocation2 + $0x24] sm:$0x1]  ;;  %7038 = vrot.lane.b32.xlu0 %v9107_v18, %s9906_s17  ;;  %9297 = vmatpush3.bf16.msra.mxu1 %v9686_v37 }
 0x1b2   : > { %v4125_v15 = vsel %vm11374_vm0, %v3825_v24, %v4124_v61  ;;  %v4128_v34 = vsel %vm11347_vm14, %v3826_v29, %v4127_v22  ;;  %v4403_v16 = vor.u32 %v4402_v4, %v4399_v48  ;;  %14142 = vst [vmem:[#allocation6_spill] sm:$0xff] %v11802_v25  ;;  %v4408_v55 = vrot.slane %v4406_v27, 5  ;;  %v3238_v58 = vpop.f32.mrf.mxu0  ;;  %v11807_v9 = vld [vmem:[#allocation2 + $0x2c] sm:$0x1] }
 0x1b3   : > { %4126 = vst [vmem:[#allocation2 + $0x60] sm:$0xf] %v4125_v15  ;;  %4129 = vst [vmem:[#allocation2 + $0x64] sm:$0x1] %v4128_v34  ;;  %v5859_v8 = vshrl.u32 %v5742_v30, 16  ;;  %v5862_v23 = vshll.u32 %v5742_v30, 16  ;;  %v5837_v48 = vor.u32 %v11754_v17, %v11746_v54  ;;  %v4395_v24 = vsel %vm10077_vm2, %v4390_v50, %v4394_v42 }
 0x1b4   : > { %v8919_v11 = vrot.slane %v4780_v12, 9  ;;  %v4404_v46 = vrot.slane %v4403_v16, 4  ;;  %v4899_v61 = vrot.slane %v11778_v1, 5  ;;  %v8920_v6 = vrot.slane %v4781_v5, 9  ;;  %14143 = vst [vmem:[#allocation7_spill] sm:$0xff] %v11807_v9  ;;  %v3239_v27 = vpop.f32.mrf.mxu0  ;;  %v9687_v12 = vld [vmem:[%s14097_s3 + $0x68] sm:$0xff]  }
 0x1b5   : > { %v4903_v22 = vrot.slane %v11785_v3, 5  ;;  %v5873_v26 = vshrl.u32 %v11773_v44, 16  ;;  %v5876_v38 = vshll.u32 %v11773_v44, 16  ;;  %v5840_v30 = vshll.u32 %v11802_v25, 16  ;;  %v11832_v5 = vld [vmem:[#allocation2 + $0x38] sm:$0xf]  ;;  %9298 = vmatprep.subr.bf16.mxu1 %v9687_v12 }
 0x1b6   : > { %v4409_v44 = vsel %vm10077_vm2, %v4404_v46, %v4408_v55  ;;  %v5851_v17 = vor.u32 %v11760_v53, %v11758_v62  ;;  %v11828_v4 = vrot.slane %v5859_v8, 4  ;;  %v11830_v13 = vrot.slane %v5862_v23, 5  ;;  %v3241_v37 = vpop.f32.mrf.mxu0  ;;  %v5744_v16 = vld [vmem:[#allocation2 + $0x40] sm:$0xf]  ;;  %9299 = vmatpush3.bf16.msra.mxu1 %v9689_v57  ;;  %v4269_v57 = vld [vmem:[#allocation2 + $0x38] sm:$0xf] }
 0x1b7   : > { %v4904_v54 = vsel %vm11547_vm11, %v8920_v6, %v4903_v22  ;;  %v9027_v29 = vcombine.low %v4395_v24, %v4409_v44  ;;  %v5838_v18 = vrot.slane %v5837_v48, 4  ;;  %v4900_v42 = vsel %vm11547_vm11, %v8919_v11, %v4899_v61  ;;  %v11843_v23 = vld [vmem:[#allocation2 + $0x40] sm:$0xf]  ;;  %v4268_v48 = vld [vmem:[#allocation2 + $0x30] sm:$0xf] }
 0x1b8   : > { %v5842_v15 = vrot.slane %v5840_v30, 5  ;;  %v5852_v34 = vrot.slane %v5851_v17, 4  ;;  %v5854_v50 = vshll.u32 %v11807_v9, 16  ;;  %v11838_v62 = vrot.slane %v5873_v26, 4  ;;  %v5775_v25 = vld [vmem:[#allocation2 + $0x3c] sm:$0x1] }
 0x1b9   : > { %6606 = vrot.lane.b32.xlu1 %v9027_v29, %s9908_s15  ;;  %v11840_v53 = vrot.slane %v5876_v38, 5  ;;  %v9044_v55 = vcombine.low %v4900_v42, %v4904_v54  ;;  %v3237_v8 = vadd.f32 %v11492_v14, %v3236_v32  ;;  %v5887_v38 = vshrl.u32 %v5744_v16, 16 }
 0x1ba   : > { %v5843_v11 = vsel %vm10077_vm2, %v5838_v18, %v5842_v15  ;;  %v5856_v58 = vrot.slane %v5854_v50, 5  ;;  %v9060_v30 = vcombine.low %v11832_v5, %v11843_v23  ;;  %v5890_v12 = vshll.u32 %v5744_v16, 16  ;;  %v11865_v18 = vld [vmem:[%s14096_s2] ss:$0 sm:$0xff] }
 0x1bb   : > { %v3333_v6 = vmax.f32 %v3237_v8, 0.0  ;;  %v11857_v54 = vrot.slane %v5887_v38, 4  ;;  %v9108_v17 = vcombine.low %v5744_v16, %v11508_v49  ;;  %v3240_v37 = vadd.f32 %v11865_v18, %v3239_v27  ;;  %v4130_v49 = vld [vmem:[#allocation2 + $0x68] sm:$0xf]  ;;  %v4133_v16 = vld [vmem:[#allocation2 + $0x6c] sm:$0x1] }
 0x1bc   : > { %v5857_v14 = vsel %vm10077_vm2, %v5852_v34, %v5856_v58  ;;  %v11860_v29 = vrot.slane %v5890_v12, 5  ;;  %v4411_v42 = vshrl.u32 %v4268_v48, 16  ;;  %v4414_v15 = vshll.u32 %v4268_v48, 16  ;;  %v5039_v12 = vld [vmem:[#allocation2 + $0x3c] sm:$0x1] }
 0x1bd   : > { %6688 = vrot.lane.b32.xlu1 %v9044_v55, %s9906_s17  ;;  %v9122_v24 = vcombine.low %v5843_v11, %v5857_v14  ;;  %v9270_v44 = vpack.c.bf16 %v3333_v6, %v3333_v6  ;;  %v4420_v55 = vshll.u32 %v11778_v1, 16  ;;  %v4425_v8 = vshrl.u32 %v4269_v57, 16  ;;  %v5519_v11 = vld [vmem:[#allocation2 + $0x38] sm:$0xe]  ;;  %v9690_v1 = vld [vmem:[%s14097_s3 + $0x60] sm:$0xff]  }
 0x1be   : > { %v3334_v58 = vmax.f32 %v3240_v37, 0.0  ;;  %v4413_v6 = vrot.slane %v4411_v42, 4  ;;  %v4416_v38 = vrot.slane %v4414_v15, 5  ;;  %v4428_v14 = vshll.u32 %v4269_v57, 16  ;;  %v5520_v57 = vld [vmem:[#allocation2 + $0x40] sm:$0xe]  ;;  %9300 = vmatprep.subr.bf16.mxu1 %v9690_v1 }
 0x1bf   : > { %7116 = vrot.lane.b32.xlu0 %v9122_v24, %s9907_s20  ;;  %v3828_v34 = vshrl.u32 %v9270_v44, 16  ;;  %v3831_v50 = vshll.u32 %v9270_v44, 16  ;;  %v4422_v27 = vrot.slane %v4420_v55, 5  ;;  %v4427_v48 = vrot.slane %v4425_v8, 4  ;;  %v9691_v44 = vld [vmem:[%s14097_s3 + $0x20] sm:$0xff]  }
 0x1c0   : > { %v4434_v24 = vshll.u32 %v11785_v3, 16  ;;  %v9271_v37 = vpack.c.bf16 %v3334_v58, %v3334_v58  ;;  %v4417_v42 = vor.u32 %v4416_v38, %v4413_v6  ;;  %v4430_v15 = vrot.slane %v4428_v14, 5  ;;  %v5040_v8 = vld [vmem:[#allocation2 + $0x44] sm:$0x1]  ;;  %9301 = vmatpush3.bf16.msra.mxu1 %v9691_v44  ;;  %v4139_v1 = vld [vmem:[#allocation2 + $0x74] sm:$0x1] }
 0x1c1   : > { %v3830_v61 = vrot.slane %v3828_v34, 7  ;;  %6800 = vrot.lane.b32.xlu1 %v9060_v30, %s9907_s20  ;;  %v8951_v46 = vrot.slane %v5519_v11, 9  ;;  %v5774_v34 = vld [vmem:[#allocation2 + $0x34] sm:$0x1]  ;;  %v5635_v59 = vrot.slane %v5039_v12, 5  ;;  %v5639_v12 = vrot.slane %v5040_v8, 5 }
 0x1c2   : > { %v3244_v20 = vpop.f32.mrf.mxu0  ;;  %v4436_v3 = vrot.slane %v4434_v24, 5  ;;  %v3836_v32 = vshrl.u32 %v9271_v37, 16  ;;  %v3839_v26 = vshll.u32 %v9271_v37, 16  ;;  %v4418_v22 = vrot.slane %v4417_v42, 4  ;;  %v4136_v24 = vld [vmem:[#allocation2 + $0x70] sm:$0xf] }
 0x1c3   : > { %v3833_v30 = vor.u32 %v3831_v50, %v3830_v61  ;;  %v3834_v55 = vrot.slane %v3830_v61, 4  ;;  %7040 = vrot.lane.b32.xlu0 %v9108_v17, %s9906_s17  ;;  %v4431_v9 = vor.u32 %v4430_v15, %v4427_v48  ;;  %v5636_v61 = vsel %vm11547_vm11, %v8951_v46, %v5635_v59 }
 0x1c4   : > { %v3246_v58 = vpop.f32.mrf.mxu0  ;;  %v8952_v17 = vrot.slane %v5520_v57, 9  ;;  %v3838_v6 = vrot.slane %v3836_v32, 7  ;;  %v4423_v38 = vsel %vm10077_vm2, %v4418_v22, %v4422_v27  ;;  %v5879_v59 = vor.u32 %v11840_v53, %v11838_v62  ;;  %v11897_v22 = vld [vmem:[#allocation2 + $0x5c] sm:$0x1]  ;;  %v4783_v27 = vld [vmem:[#allocation2 + $0x58] sm:$0xe] }
 0x1c5   : > { %v4131_v11 = vsel %vm11374_vm0, %v3833_v30, %v4130_v49  ;;  %v4134_v50 = vsel %vm11347_vm14, %v3834_v55, %v4133_v16  ;;  %v4432_v14 = vrot.slane %v4431_v9, 4  ;;  %v5865_v49 = vor.u32 %v11830_v13, %v11828_v4  ;;  %v9695_v62 = vld [vmem:[%s14097_s3 + $0x18] sm:$0xff]  }
 0x1c6   : > { %4132 = vst [vmem:[#allocation2 + $0x68] sm:$0xf] %v4131_v11  ;;  %4135 = vst [vmem:[#allocation2 + $0x6c] sm:$0x1] %v4134_v50  ;;  %v11887_v48 = vpop.f32.mrf.mxu0  ;;  %v5868_v16 = vshll.u32 %v5774_v34, 16  ;;  %v5882_v46 = vshll.u32 %v5775_v25, 16  ;;  %v3841_v44 = vor.u32 %v3839_v26, %v3838_v6  ;;  %v5640_v9 = vsel %vm11547_vm11, %v8952_v17, %v5639_v12 }
 0x1c7   : > { %v3842_v37 = vrot.slane %v3838_v6, 4  ;;  %v4437_v32 = vsel %vm10077_vm2, %v4432_v14, %v4436_v3  ;;  %v9092_v57 = vcombine.low %v5636_v61, %v5640_v9  ;;  %v5866_v4 = vrot.slane %v5865_v49, 4  ;;  %v5776_v34 = vld [vmem:[#allocation2 + $0x44] sm:$0x1]  ;;  %v9694_v25 = vld [vmem:[%s14097_s3 + $0x58] sm:$0xff]  }
 0x1c8   : > { %v3249_v42 = vpop.f32.mrf.mxu0  ;;  %v9028_v15 = vcombine.low %v4423_v38, %v4437_v32  ;;  %v5870_v13 = vrot.slane %v5868_v16, 5  ;;  %v4137_v53 = vsel %vm11374_vm0, %v3841_v44, %v4136_v24  ;;  %v5880_v30 = vrot.slane %v5879_v59, 4  ;;  %v11909_v3 = vld [vmem:[#allocation2 + $0x58] sm:$0xf]  ;;  %9302 = vmatprep.subr.bf16.mxu1 %v9694_v25  ;;  %v5041_v49 = vld [vmem:[#allocation2 + $0x5c] sm:$0x1] }
 0x1c9   : > { %v4140_v26 = vsel %vm11347_vm14, %v3842_v37, %v4139_v1  ;;  %v5884_v55 = vrot.slane %v5882_v46, 5  ;;  %v5167_v8 = vshll.u32 %v11843_v23, 16  ;;  %4138 = vst [vmem:[#allocation2 + $0x70] sm:$0xf] %v4137_v53  ;;  %6928 = vrot.lane.b32.xlu0 %v9092_v57, %s9908_s15  ;;  %v8922_v58 = vrot.slane %v4783_v27, 9  ;;  %9303 = vmatpush3.bf16.msra.mxu1 %v9695_v62  ;;  %v9696_v32 = vld [vmem:[%s14097_s3 + $0x50] sm:$0xff]  }
 0x1ca   : > { %4141 = vst [vmem:[#allocation2 + $0x74] sm:$0x1] %v4140_v26  ;;  %6608 = vrot.lane.b32.xlu1 %v9028_v15, %s9908_s15  ;;  %v4911_v11 = vrot.slane %v11897_v22, 5  ;;  %v3245_v50 = vadd.f32 %v11865_v18, %v3244_v20  ;;  %v5871_v61 = vsel %vm10077_vm2, %v5866_v4, %v5870_v13  ;;  %v5893_v6 = vor.u32 %v11860_v29, %v11857_v54  ;;  %v5521_v20 = vld [vmem:[#allocation2 + $0x58] sm:$0xe]  ;;  %v9697_v13 = vld [vmem:[%s14097_s3 + $0x10] sm:$0xff]  }
 0x1cb   : > { %v5885_v17 = vsel %vm10077_vm2, %v5880_v30, %v5884_v55  ;;  %v5896_v38 = vshll.u32 %v5776_v34, 16  ;;  %v5178_v1 = vshrl.u32 %v11909_v3, 16  ;;  %v14144_v16 = vshrl.u32 %v11832_v5, 16  ;;  %v11930_v29 = vld [vmem:[#allocation2 + $0x60] sm:$0xf]  ;;  %9304 = vmatprep.subr.bf16.mxu1 %v9696_v32  ;;  %v9699_v53 = vld [vmem:[%s14097_s3 + $0x48] sm:$0xff]  }
 0x1cc   : > { %v9123_v14 = vcombine.low %v5871_v61, %v5885_v17  ;;  %v4912_v12 = vsel %vm11547_vm11, %v8922_v58, %v4911_v11  ;;  %v3335_v24 = vmax.f32 %v3245_v50, 0.0  ;;  %v5894_v44 = vrot.slane %v5893_v6, 4  ;;  %v4271_v37 = vld [vmem:[#allocation2 + $0x58] sm:$0xf]  ;;  %v5522_v4 = vld [vmem:[#allocation2 + $0x60] sm:$0xe] }
 0x1cd   : > { %v11927_v59 = vrot.slane %v14144_v16, 4  ;;  %v9045_v46 = vcombine.low %v11582_v19, %v4912_v12  ;;  %v5898_v54 = vrot.slane %v5896_v38, 5  ;;  %v14145_v9 = vshll.u32 %v11832_v5, 16  ;;  %v5042_v25 = vld [vmem:[#allocation2 + $0x64] sm:$0x1]  ;;  %9305 = vmatpush3.bf16.msra.mxu1 %v9697_v13  ;;  %v9700_v11 = vld [vmem:[%s14097_s3 + $0x8] sm:$0xff]  }
 0x1ce   : > { %v14146_v42 = vshrl.u32 %v11843_v23, 16  ;;  %v11943_v57 = vrot.slane %v5167_v8, 5  ;;  %7118 = vrot.lane.b32.xlu0 %v9123_v14, %s9907_s20  ;;  %v9272_v19 = vpack.c.bf16 %v3335_v24, %v3335_v24  ;;  %v5181_v34 = vshll.u32 %v11909_v3, 16  ;;  %9306 = vmatprep.subr.bf16.mxu1 %v9699_v53  ;;  %v4145_v24 = vld [vmem:[#allocation2 + $0x7c] sm:$0x1] }
 0x1cf   : > { %v11937_v27 = vrot.slane %v14145_v9, 5  ;;  %6690 = vrot.lane.b32.xlu1 %v9045_v46, %s9906_s17  ;;  %v5899_v5 = vsel %vm10077_vm2, %v5894_v44, %v5898_v54  ;;  %v3248_v23 = vadd.f32 %v11865_v18, %v11887_v48  ;;  %v8953_v62 = vrot.slane %v5521_v20, 9  ;;  %v5746_v46 = vld [vmem:[#allocation2 + $0x60] sm:$0xf]  ;;  %v9781_v47 = vld [vmem:[#allocation2 + $0x68] sm:$0xf] }
 0x1d0   : > { %v11941_v15 = vrot.slane %v14146_v42, 4  ;;  %v3844_v26 = vshrl.u32 %v9272_v19, 16  ;;  %v14147_v30 = vsel %vm10077_vm2, %v11569_v51, %v11571_v31  ;;  %v11963_v8 = vrot.slane %v5178_v1, 4  ;;  %v4142_v51 = vld [vmem:[#allocation2 + $0x78] sm:$0xf] }
 0x1d1   : > { %v9124_v55 = vcombine.low %v5899_v5, %v14147_v30  ;;  %v9061_v58 = vcombine.low %v11909_v3, %v11930_v29  ;;  %v11967_v48 = vpop.f32.mrf.mxu0  ;;  %v3847_v50 = vshll.u32 %v9272_v19, 16  ;;  %v3336_v61 = vmax.f32 %v3248_v23, 0.0  ;;  %9307 = vmatpush3.bf16.msra.mxu1 %v9700_v11  ;;  %v4151_v11 = vld [vmem:[#allocation2 + $0x84] sm:$0x1] }
 0x1d2   : > { %14148 = vst [vmem:[#allocation8_spill] sm:$0xff] %v11963_v8  ;;  %v5643_v17 = vrot.slane %v5041_v49, 5  ;;  %v8954_v6 = vrot.slane %v5522_v4, 9  ;;  %v3846_v38 = vrot.slane %v3844_v26, 7  ;;  %v5647_v31 = vrot.slane %v5042_v25, 5 }
 0x1d3   : > { %7120 = vrot.lane.b32.xlu0 %v9124_v55, %s9907_s20  ;;  %v4453_v14 = vshrl.u32 %v4271_v37, 16  ;;  %v4456_v12 = vshll.u32 %v4271_v37, 16  ;;  %v3254_v3 = vpop.f32.mrf.mxu0  ;;  %v11973_v1 = vrot.slane %v5181_v34, 5  ;;  %6802 = vrot.lane.b32.xlu1 %v9061_v58, %s9907_s20  ;;  %v9273_v20 = vpack.c.bf16 %v3336_v61, %v3336_v61  ;;  %v11981_v37 = vld [vmem:[#allocation2 + $0x68] sm:$0xf] }
 0x1d4   : > { %v5644_v16 = vsel %vm11547_vm11, %v8953_v62, %v5643_v17  ;;  %v4462_v49 = vshll.u32 %v11897_v22, 16  ;;  %v3849_v44 = vor.u32 %v3847_v50, %v3846_v38  ;;  %v3850_v54 = vrot.slane %v3846_v38, 4  ;;  %v4784_v34 = vld [vmem:[#allocation2 + $0x60] sm:$0xe]  ;;  %v11991_v26 = vld [vmem:[#allocation2 + $0x64] sm:$0x1] }
 0x1d5   : > { %14149 = vst [vmem:[#allocation9_spill] sm:$0xff] %v11973_v1  ;;  %v5648_v32 = vsel %vm11547_vm11, %v8954_v6, %v5647_v31  ;;  %v4455_v9 = vrot.slane %v4453_v14, 4  ;;  %v11983_v42 = vpop.f32.mrf.mxu0  ;;  %v5192_v19 = vshrl.u32 %v11930_v29, 16  ;;  %v3852_v4 = vshrl.u32 %v9273_v20, 16  ;;  %v4148_v62 = vld [vmem:[#allocation2 + $0x80] sm:$0xf] }
 0x1d6   : > { %v9093_v13 = vcombine.low %v5644_v16, %v5648_v32  ;;  %v4458_v5 = vrot.slane %v4456_v12, 5  ;;  %v4143_v22 = vsel %vm11374_vm0, %v3849_v44, %v4142_v51  ;;  %v4146_v23 = vsel %vm11347_vm14, %v3850_v54, %v4145_v24  ;;  %v4785_v17 = vld [vmem:[#allocation2 + $0x68] sm:$0xe]  ;;  %v11996_v51 = vld [vmem:[#allocation2 + $0x6c] sm:$0x1] }
 0x1d7   : > { %v5195_v25 = vshll.u32 %v11930_v29, 16  ;;  %v5915_v53 = vshrl.u32 %v5746_v46, 16  ;;  %v3257_v30 = vpop.f32.mrf.mxu0  ;;  %4144 = vst [vmem:[#allocation2 + $0x78] sm:$0xf] %v4143_v22  ;;  %4147 = vst [vmem:[#allocation2 + $0x7c] sm:$0x1] %v4146_v23  ;;  %v9109_v61 = vcombine.low %v5746_v46, %v11981_v37  ;;  %v14152_v22 = vsel %vm10077_vm2, %v11587_v7, %v11589_v45 }
 0x1d8   : > { %v3854_v55 = vrot.slane %v3852_v4, 7  ;;  %v3855_v58 = vshll.u32 %v9273_v20, 16  ;;  %6930 = vrot.lane.b32.xlu0 %v9093_v13, %s9908_s15  ;;  %v4459_v50 = vor.u32 %v4458_v5, %v4455_v9  ;;  %v4464_v6 = vrot.slane %v4462_v49, 5  ;;  %v12001_v16 = vld [vmem:[#allocation2 + $0x68] sm:$0xf]  ;;  %v9702_v9 = vld [vmem:[%s14097_s3 + $0x40] sm:$0xff]  }
 0x1d9   : > { %v5918_v38 = vshll.u32 %v5746_v46, 16  ;;  %v5929_v29 = vshrl.u32 %v11981_v37, 16  ;;  %v8923_v31 = vrot.slane %v4784_v34, 9  ;;  %v11998_v14 = vpop.f32.mrf.mxu0  ;;  %v4915_v20 = vrot.slane %v11991_v26, 5  ;;  %v9703_v4 = vld [vmem:[%s14097_s3] sm:$0xff]   ;;  %9308 = vmatprep.subr.bf16.mxu1 %v9702_v9 }
 0x1da   : > { %v3857_v12 = vor.u32 %v3855_v58, %v3854_v55  ;;  %v3858_v3 = vrot.slane %v3854_v55, 4  ;;  %v4460_v24 = vrot.slane %v4459_v50, 4  ;;  %v12003_v44 = vrot.slane %v5192_v19, 4  ;;  %v5043_v34 = vld [vmem:[#allocation2 + $0x6c] sm:$0x1]  ;;  %9309 = vmatpush3.bf16.msra.mxu1 %v9703_v4 }
 0x1db   : > { %v12005_v54 = vrot.slane %v5195_v25, 5  ;;  %v5932_v49 = vshll.u32 %v11981_v37, 16  ;;  %v8924_v46 = vrot.slane %v4785_v17, 9  ;;  %v3262_v32 = vpop.f32.mrf.mxu0  ;;  %v4919_v37 = vrot.slane %v11996_v51, 5  ;;  %v5012_v55 = vld [vmem:[#allocation2 + $0x70] sm:$0xf] }
 0x1dc   : > { %14150 = vst [vmem:[#allocation10_spill] sm:$0xff] %v12003_v44  ;;  %v4149_v13 = vsel %vm11374_vm0, %v3857_v12, %v4148_v62  ;;  %v4152_v19 = vsel %vm11347_vm14, %v3858_v3, %v4151_v11  ;;  %v4465_v5 = vsel %vm10077_vm2, %v4460_v24, %v4464_v6  ;;  %7042 = vrot.lane.b32.xlu0 %v9109_v61, %s9906_s17  ;;  %v12027_v25 = vrot.slane %v5915_v53, 4  ;;  %v5523_v58 = vld [vmem:[#allocation2 + $0x68] sm:$0xe]  ;;  %v5044_v53 = vld [vmem:[#allocation2 + $0x74] sm:$0x1] }
 0x1dd   : > { %14151 = vst [vmem:[#allocation11_spill] sm:$0xff] %v12005_v54  ;;  %4150 = vst [vmem:[#allocation2 + $0x80] sm:$0xf] %v4149_v13  ;;  %v9029_v23 = vcombine.low %v14152_v22, %v4465_v5  ;;  %v12029_v62 = vrot.slane %v5918_v38, 5  ;;  %v3253_v30 = vadd.f32 %v11865_v18, %v11967_v48  ;;  %v12033_v11 = vpop.f32.mrf.mxu0  ;;  %v12035_v50 = vrot.slane %v5929_v29, 4 }
 0x1de   : > { %4153 = vst [vmem:[#allocation2 + $0x84] sm:$0x1] %v4152_v19  ;;  %v4916_v61 = vsel %vm11547_vm11, %v8923_v31, %v4915_v20  ;;  %v4920_v7 = vsel %vm11547_vm11, %v8924_v46, %v4919_v37  ;;  %v5206_v45 = vshrl.u32 %v12001_v16, 16  ;;  %v5524_v17 = vld [vmem:[#allocation2 + $0x70] sm:$0xe]  ;;  %v12043_v48 = vrot.slane %v5932_v49, 5 }
 0x1df   : > { %6610 = vrot.lane.b32.xlu1 %v9029_v23, %s9908_s15  ;;  %v9046_v6 = vcombine.low %v4916_v61, %v4920_v7  ;;  %v3337_v38 = vmax.f32 %v3253_v30, 0.0  ;;  %v5209_v29 = vshll.u32 %v12001_v16, 16  ;;  %v4272_v12 = vld [vmem:[#allocation2 + $0x60] sm:$0xf]  ;;  %v3265_v3 = vpop.f32.mrf.mxu0  ;;  %v5220_v24 = vshrl.u32 %v5012_v55, 16 }
 0x1e0   : > { %v5223_v31 = vshll.u32 %v5012_v55, 16  ;;  %v8955_v20 = vrot.slane %v5523_v58, 9  ;;  %v5651_v32 = vrot.slane %v5043_v34, 5  ;;  %v8956_v9 = vrot.slane %v5524_v17, 9  ;;  %v4273_v37 = vld [vmem:[#allocation2 + $0x68] sm:$0xf] }
 0x1e1   : > { %v9274_v46 = vpack.c.bf16 %v3337_v38, %v3337_v38  ;;  %v5655_v13 = vrot.slane %v5044_v53, 5  ;;  %v3256_v4 = vadd.f32 %v11865_v18, %v11983_v42  ;;  %v12048_v19 = vpop.f32.mrf.mxu0  ;;  %v12050_v49 = vrot.slane %v5206_v45, 4  ;;  %v4154_v53 = vld [vmem:[#allocation2 + $0x88] sm:$0xf] }
 0x1e2   : > { %v9062_v5 = vcombine.low %v12001_v16, %v5012_v55  ;;  %v4467_v22 = vshrl.u32 %v4272_v12, 16  ;;  %v4470_v23 = vshll.u32 %v4272_v12, 16  ;;  %v5652_v34 = vsel %vm11547_vm11, %v8955_v20, %v5651_v32  ;;  %v4157_v55 = vld [vmem:[#allocation2 + $0x8c] sm:$0x1] }
 0x1e3   : > { %14153 = vst [vmem:[#allocation12_spill] sm:$0xff] %v12050_v49  ;;  %6692 = vrot.lane.b32.xlu1 %v9046_v6, %s9906_s17  ;;  %v3860_v30 = vshrl.u32 %v9274_v46, 16  ;;  %v5656_v58 = vsel %vm11547_vm11, %v8956_v9, %v5655_v13  ;;  %v3338_v61 = vmax.f32 %v3256_v4, 0.0  ;;  %v3270_v42 = vpop.f32.mrf.mxu0  ;;  %v3863_v7 = vshll.u32 %v9274_v46, 16  ;;  %v12066_v9 = vld [vmem:[#allocation2 + $0x70] sm:$0xf] }
 0x1e4   : > { %v9094_v45 = vcombine.low %v5652_v34, %v5656_v58  ;;  %v4469_v17 = vrot.slane %v4467_v22, 4  ;;  %v4472_v38 = vrot.slane %v4470_v23, 5  ;;  %v4481_v12 = vshrl.u32 %v4273_v37, 16  ;;  %v12070_v23 = vld [vmem:[#allocation2 + $0x78] sm:$0xf] }
 0x1e5   : > { %v3862_v16 = vrot.slane %v3860_v30, 7  ;;  %v9275_v3 = vpack.c.bf16 %v3338_v61, %v3338_v61  ;;  %v4484_v49 = vshll.u32 %v4273_v37, 16  ;;  %v12058_v6 = vpop.f32.mrf.mxu0  ;;  %v12060_v54 = vrot.slane %v5209_v29, 5  ;;  %v4160_v34 = vld [vmem:[#allocation2 + $0x90] sm:$0xf] }
 0x1e6   : > { %v12062_v20 = vrot.slane %v5220_v24, 4  ;;  %6932 = vrot.lane.b32.xlu0 %v9094_v45, %s9908_s15  ;;  %v4473_v32 = vor.u32 %v4472_v38, %v4469_v17  ;;  %v4476_v46 = vshll.u32 %v11991_v26, 16  ;;  %v4490_v37 = vshll.u32 %v11996_v51, 16  ;;  %v12074_v42 = vld [vmem:[#allocation2 + $0x74] sm:$0x1] }
 0x1e7   : > { %14154 = vst [vmem:[#allocation13_spill] sm:$0xff] %v12060_v54  ;;  %v3865_v13 = vor.u32 %v3863_v7, %v3862_v16  ;;  %v3866_v4 = vrot.slane %v3862_v16, 4  ;;  %6804 = vrot.lane.b32.xlu1 %v9062_v5, %s9907_s20  ;;  %v3868_v22 = vshrl.u32 %v9275_v3, 16  ;;  %v3273_v29 = vpop.f32.mrf.mxu0  ;;  %v12072_v30 = vrot.slane %v5223_v31, 5  ;;  %v4786_v51 = vld [vmem:[#allocation2 + $0x70] sm:$0xe] }
 0x1e8   : > { %14155 = vst [vmem:[#allocation14_spill] sm:$0xff] %v12062_v20  ;;  %v3871_v24 = vshll.u32 %v9275_v3, 16  ;;  %v4483_v58 = vrot.slane %v4481_v12, 4  ;;  %v4486_v61 = vrot.slane %v4484_v49, 5  ;;  %v4474_v45 = vrot.slane %v4473_v32, 4 }
 0x1e9   : > { %14156 = vst [vmem:[#allocation15_spill] sm:$0xff] %v12072_v30  ;;  %v4155_v26 = vsel %vm11374_vm0, %v3865_v13, %v4154_v53  ;;  %v4158_v5 = vsel %vm11347_vm14, %v3866_v4, %v4157_v55  ;;  %v3870_v7 = vrot.slane %v3868_v22, 7  ;;  %v4787_v17 = vld [vmem:[#allocation2 + $0x78] sm:$0xe]  ;;  %v4163_v31 = vld [vmem:[#allocation2 + $0x94] sm:$0x1]  ;;  %v9110_v49 = vcombine.low %v12066_v9, %v12070_v23 }
 0x1ea   : > { %4156 = vst [vmem:[#allocation2 + $0x88] sm:$0xf] %v4155_v26  ;;  %4159 = vst [vmem:[#allocation2 + $0x8c] sm:$0x1] %v4158_v5  ;;  %v4478_v38 = vrot.slane %v4476_v46, 5  ;;  %v4487_v16 = vor.u32 %v4486_v61, %v4483_v58  ;;  %v5943_v3 = vshrl.u32 %v12066_v9, 16 }
 0x1eb   : > { %v5778_v12 = vld [vmem:[#allocation2 + $0x64] sm:$0x1]  ;;  %v3873_v29 = vor.u32 %v3871_v24, %v3870_v7  ;;  %v3874_v53 = vrot.slane %v3870_v7, 4  ;;  %v4492_v13 = vrot.slane %v4490_v37, 5  ;;  %v5946_v55 = vshll.u32 %v12066_v9, 16  ;;  %7044 = vrot.lane.b32.xlu0 %v9110_v49, %s9906_s17 }
 0x1ec   : > { %v12084_v4 = vld [vmem:[#allocation2 + $0x7c] sm:$0x1]  ;;  %v4488_v32 = vrot.slane %v4487_v16, 4  ;;  %v8925_v22 = vrot.slane %v4786_v51, 9  ;;  %v4923_v46 = vrot.slane %v12074_v42, 5  ;;  %v8926_v58 = vrot.slane %v4787_v17, 9 }
 0x1ed   : > { %v5779_v61 = vld [vmem:[#allocation2 + $0x6c] sm:$0x1]  ;;  %v4161_v26 = vsel %vm11374_vm0, %v3873_v29, %v4160_v34  ;;  %v4164_v24 = vsel %vm11347_vm14, %v3874_v53, %v4163_v31  ;;  %v4479_v37 = vsel %vm10077_vm2, %v4474_v45, %v4478_v38  ;;  %v5957_v9 = vshrl.u32 %v12070_v23, 16  ;;  %v12109_v53 = vld [vmem:[#allocation2 + $0x78] sm:$0xf] }
 0x1ee   : > { %4162 = vst [vmem:[#allocation2 + $0x90] sm:$0xf] %v4161_v26  ;;  %4165 = vst [vmem:[#allocation2 + $0x94] sm:$0x1] %v4164_v24  ;;  %v4493_v5 = vsel %vm10077_vm2, %v4488_v32, %v4492_v13  ;;  %v5960_v7 = vshll.u32 %v12070_v23, 16  ;;  %v4927_v51 = vrot.slane %v12084_v4, 5  ;;  %v5921_v34 = vor.u32 %v12029_v62, %v12027_v25 }
 0x1ef   : > { %v9030_v17 = vcombine.low %v4479_v37, %v4493_v5  ;;  %v5924_v16 = vshll.u32 %v5778_v12, 16  ;;  %v5935_v31 = vor.u32 %v12043_v48, %v12035_v50  ;;  %v5938_v45 = vshll.u32 %v5779_v61, 16  ;;  %v5045_v13 = vld [vmem:[#allocation2 + $0x7c] sm:$0x1]  ;;  %v5525_v48 = vld [vmem:[#allocation2 + $0x78] sm:$0xe] }
 0x1f0   : > { %v4924_v38 = vsel %vm11547_vm11, %v8925_v22, %v4923_v46  ;;  %v4928_v49 = vsel %vm11547_vm11, %v8926_v58, %v4927_v51  ;;  %v5922_v29 = vrot.slane %v5921_v34, 4  ;;  %v3261_v23 = vadd.f32 %v11865_v18, %v11998_v14  ;;  %v12114_v46 = vld [vmem:[#allocation2 + $0x80] sm:$0xf]  ;;  %v12116_v61 = vpop.f32.mrf.mxu0  ;;  %v5046_v5 = vld [vmem:[#allocation2 + $0x84] sm:$0x1] }
 0x1f1   : > { %6612 = vrot.lane.b32.xlu1 %v9030_v17, %s9908_s15  ;;  %v9047_v25 = vcombine.low %v4924_v38, %v4928_v49  ;;  %v5926_v62 = vrot.slane %v5924_v16, 5  ;;  %v5936_v12 = vrot.slane %v5935_v31, 4  ;;  %v5940_v50 = vrot.slane %v5938_v45, 5  ;;  %v5526_v58 = vld [vmem:[#allocation2 + $0x80] sm:$0xe] }
 0x1f2   : > { %v12112_v32 = vrot.slane %v5943_v3, 4  ;;  %v3339_v22 = vmax.f32 %v3261_v23, 0.0  ;;  %v12118_v26 = vrot.slane %v5946_v55, 5  ;;  %v12120_v14 = vrot.slane %v5957_v9, 4  ;;  %v3443_v51 = vld [vmem:[#allocation2 + $0xb0] sm:$0x1]  ;;  %v3278_v55 = vpop.f32.mrf.mxu0 }
 0x1f3   : > { %v5927_v24 = vsel %vm10077_vm2, %v5922_v29, %v5926_v62  ;;  %v5941_v37 = vsel %vm10077_vm2, %v5936_v12, %v5940_v50  ;;  %v12126_v3 = vrot.slane %v5960_v7, 5  ;;  %v5234_v16 = vshrl.u32 %v12109_v53, 16  ;;  %v3565_v31 = vld [vmem:[#allocation2 + $0xb4] sm:$0x1]  ;;  %v4274_v45 = vld [vmem:[#allocation2 + $0x70] sm:$0xf] }
 0x1f4   : > { %v9125_v34 = vcombine.low %v5927_v24, %v5941_v37  ;;  %v9276_v17 = vpack.c.bf16 %v3339_v22, %v3339_v22  ;;  %v9063_v9 = vcombine.low %v12109_v53, %v12114_v46  ;;  %v8957_v38 = vrot.slane %v5525_v48, 9  ;;  %v4275_v50 = vld [vmem:[#allocation2 + $0x78] sm:$0xf]  ;;  %v12135_v22 = vpop.f32.mrf.mxu0  ;;  %v4166_v37 = vld [vmem:[#allocation2 + $0xa8] sm:$0xf] }
 0x1f5   : > { %6694 = vrot.lane.b32.xlu1 %v9047_v25, %s9906_s17  ;;  %v5659_v49 = vrot.slane %v5045_v13, 5  ;;  %v8958_v29 = vrot.slane %v5526_v58, 9  ;;  %v5663_v62 = vrot.slane %v5046_v5, 5  ;;  %v3264_v12 = vadd.f32 %v11865_v18, %v12033_v11  ;;  %v4169_v55 = vld [vmem:[#allocation2 + $0xac] sm:$0x1] }
 0x1f6   : > { %7122 = vrot.lane.b32.xlu0 %v9125_v34, %s9907_s20  ;;  %v3876_v23 = vshrl.u32 %v9276_v17, 16  ;;  %v3879_v7 = vshll.u32 %v9276_v17, 16  ;;  %v3444_v24 = vsel %vm11347_vm14, 0, %v3443_v51  ;;  %v3566_v13 = vsel %vm11362_vm15, 0, %v3565_v31  ;;  %v3281_v17 = vpop.f32.mrf.mxu0  ;;  %v5783_v1 = vld [vmem:[#allocation2 + $0x8c] sm:$0x1] }
 0x1f7   : > { %v5660_v25 = vsel %vm11547_vm11, %v8957_v38, %v5659_v49  ;;  %v4495_v48 = vshrl.u32 %v4274_v45, 16  ;;  %v5664_v5 = vsel %vm11547_vm11, %v8958_v29, %v5663_v62  ;;  %v3340_v34 = vmax.f32 %v3264_v12, 0.0  ;;  %3445 = vst [vmem:[#allocation2 + $0xb0] sm:$0x1] %v3444_v24  ;;  %3567 = vst [vmem:[#allocation2 + $0xb4] sm:$0x1] %v3566_v13 }
 0x1f8   : > { %v3878_v58 = vrot.slane %v3876_v23, 7  ;;  %v4498_v11 = vshll.u32 %v4274_v45, 16  ;;  %v9095_v38 = vcombine.low %v5660_v25, %v5664_v5  ;;  %v4504_v51 = vshll.u32 %v12074_v42, 16  ;;  %v12151_v12 = vld [vmem:[#allocation2 + $0x88] sm:$0xf] }
 0x1f9   : > { %6806 = vrot.lane.b32.xlu1 %v9063_v9, %s9907_s20  ;;  %v4497_v49 = vrot.slane %v4495_v48, 4  ;;  %v4509_v30 = vshrl.u32 %v4275_v50, 16  ;;  %v9277_v23 = vpack.c.bf16 %v3340_v34, %v3340_v34  ;;  %v12147_v44 = vrot.slane %v5234_v16, 4  ;;  %v12158_v24 = vld [vmem:[#allocation2 + $0x80] sm:$0xf] }
 0x1fa   : > { %v3881_v31 = vor.u32 %v3879_v7, %v3878_v58  ;;  %v3882_v20 = vrot.slane %v3878_v58, 4  ;;  %v4500_v54 = vrot.slane %v4498_v11, 5  ;;  %6934 = vrot.lane.b32.xlu0 %v9095_v38, %s9908_s15  ;;  %v4512_v62 = vshll.u32 %v4275_v50, 16  ;;  %v12162_v13 = vld [vmem:[#allocation2 + $0x84] sm:$0x1] }
 0x1fb   : > { %14157 = vst [vmem:[#allocation16_spill] sm:$0xff] %v12147_v44  ;;  %v4511_v29 = vrot.slane %v4509_v30, 4  ;;  %v4518_v45 = vshll.u32 %v12084_v4, 16  ;;  %v5237_v7 = vshll.u32 %v12109_v53, 16  ;;  %v3884_v25 = vshrl.u32 %v9277_v23, 16 }
 0x1fc   : > { %v4167_v9 = vsel %vm11374_vm0, %v3881_v31, %v4166_v37  ;;  %v4170_v42 = vsel %vm11347_vm14, %v3882_v20, %v4169_v55  ;;  %v5248_v30 = vshrl.u32 %v12114_v46, 16  ;;  %v4501_v4 = vor.u32 %v4500_v54, %v4497_v49  ;;  %v4788_v48 = vld [vmem:[#allocation2 + $0x80] sm:$0xe]  ;;  %v4789_v53 = vld [vmem:[#allocation2 + $0x88] sm:$0xe] }
 0x1fd   : > { %4168 = vst [vmem:[#allocation2 + $0xa8] sm:$0xf] %v4167_v9  ;;  %4171 = vst [vmem:[#allocation2 + $0xac] sm:$0x1] %v4170_v42  ;;  %v4514_v50 = vrot.slane %v4512_v62, 5  ;;  %v3886_v58 = vrot.slane %v3884_v25, 7  ;;  %v9111_v20 = vcombine.low %v12158_v24, %v12151_v12  ;;  %v5949_v31 = vor.u32 %v12118_v26, %v12112_v32 }
 0x1fe   : > { %v3887_v37 = vshll.u32 %v9277_v23, 16  ;;  %v4506_v5 = vrot.slane %v4504_v51, 5  ;;  %v4172_v34 = vld [vmem:[#allocation2 + $0xb0] sm:$0xf]  ;;  %v4175_v11 = vld [vmem:[#allocation2 + $0xb4] sm:$0x1] }
 0x1ff   : > { %v4502_v17 = vrot.slane %v4501_v4, 4  ;;  %v4515_v55 = vor.u32 %v4514_v50, %v4511_v29  ;;  %v4520_v38 = vrot.slane %v4518_v45, 5  ;;  %v3890_v49 = vrot.slane %v3886_v58, 4  ;;  %7046 = vrot.lane.b32.xlu0 %v9111_v20, %s9906_s17  ;;  %v12171_v51 = vld [vmem:[#allocation2 + $0x8c] sm:$0x1] }
 0x200   : > { %v3889_v54 = vor.u32 %v3887_v37, %v3886_v58  ;;  %v5971_v62 = vshrl.u32 %v12158_v24, 16  ;;  %v5974_v9 = vshll.u32 %v12158_v24, 16  ;;  %v5985_v29 = vshrl.u32 %v12151_v12, 16  ;;  %v5780_v25 = vld [vmem:[#allocation2 + $0x74] sm:$0x1] }
 0x201   : > { %v4507_v23 = vsel %vm10077_vm2, %v4502_v17, %v4506_v5  ;;  %v4516_v42 = vrot.slane %v4515_v55, 4  ;;  %v8927_v45 = vrot.slane %v4788_v48, 9  ;;  %v4176_v26 = vsel %vm11347_vm14, %v3890_v49, %v4175_v11  ;;  %v5781_v50 = vld [vmem:[#allocation2 + $0x7c] sm:$0x1]  ;;  %v3446_v58 = vld [vmem:[#allocation2 + $0xb8] sm:$0x1] }
 0x202   : > { %v4173_v32 = vsel %vm11374_vm0, %v3889_v54, %v4172_v34  ;;  %v4931_v24 = vrot.slane %v12162_v13, 5  ;;  %v8928_v4 = vrot.slane %v4789_v53, 9  ;;  %4177 = vst [vmem:[#allocation2 + $0xb4] sm:$0x1] %v4176_v26  ;;  %v5988_v5 = vshll.u32 %v12151_v12, 16  ;;  %v12185_v34 = vpop.f32.mrf.mxu0 }
 0x203   : > { %4174 = vst [vmem:[#allocation2 + $0xb0] sm:$0xf] %v4173_v32  ;;  %v4521_v37 = vsel %vm10077_vm2, %v4516_v42, %v4520_v38  ;;  %v4935_v48 = vrot.slane %v12171_v51, 5  ;;  %v5950_v20 = vrot.slane %v5949_v31, 4  ;;  %v3568_v17 = vld [vmem:[#allocation2 + $0xbc] sm:$0x1]  ;;  %v5963_v54 = vor.u32 %v12126_v3, %v12120_v14 }
 0x204   : > { %v9031_v55 = vcombine.low %v4507_v23, %v4521_v37  ;;  %v4932_v11 = vsel %vm11547_vm11, %v8927_v45, %v4931_v24  ;;  %v5952_v53 = vshll.u32 %v5780_v25, 16  ;;  %v5966_v38 = vshll.u32 %v5781_v50, 16  ;;  %v3434_v42 = vld [vmem:[#allocation2 + $0x98] sm:$0x1]  ;;  %v3286_v32 = vpop.f32.mrf.mxu0  ;;  %v12202_v3 = vld [vmem:[#allocation2 + $0x88] sm:$0xf] }
 0x205   : > { %v4936_v49 = vsel %vm11547_vm11, %v8928_v4, %v4935_v48  ;;  %v3269_v12 = vadd.f32 %v11865_v18, %v12048_v19  ;;  %v3447_v31 = vsel %vm11347_vm14, 0, %v3446_v58  ;;  %v12197_v23 = vrot.slane %v5237_v7, 5  ;;  %v12206_v50 = vld [vmem:[#allocation2 + $0x90] sm:$0xf]  ;;  %v3449_v7 = vld [vmem:[#allocation2 + $0xc0] sm:$0x1] }
 0x206   : > { %6614 = vrot.lane.b32.xlu1 %v9031_v55, %s9908_s15  ;;  %v9048_v45 = vcombine.low %v4932_v11, %v4936_v49  ;;  %v5964_v25 = vrot.slane %v5963_v54, 4  ;;  %3448 = vst [vmem:[#allocation2 + $0xb8] sm:$0x1] %v3447_v31  ;;  %v3569_v14 = vsel %vm11362_vm15, 0, %v3568_v17  ;;  %v12204_v26 = vrot.slane %v5248_v30, 4  ;;  %v12208_v58 = vpop.f32.mrf.mxu0 }
 0x207   : > { %14158 = vst [vmem:[#allocation17_spill] sm:$0xff] %v12197_v23  ;;  %v5954_v19 = vrot.slane %v5952_v53, 5  ;;  %v5968_v24 = vrot.slane %v5966_v38, 5  ;;  %v3341_v4 = vmax.f32 %v3269_v12, 0.0  ;;  %3570 = vst [vmem:[#allocation2 + $0xbc] sm:$0x1] %v3569_v14  ;;  %v9064_v32 = vcombine.low %v12202_v3, %v12206_v50 }
 0x208   : > { %14159 = vst [vmem:[#allocation18_spill] sm:$0xff] %v12204_v26  ;;  %v12210_v37 = vrot.slane %v5971_v62, 4  ;;  %v12212_v48 = vrot.slane %v5974_v9, 5  ;;  %v12214_v55 = vrot.slane %v5985_v29, 4  ;;  %v12216_v17 = vrot.slane %v5988_v5, 5  ;;  %v3289_v12 = vpop.f32.mrf.mxu0 }
 0x209   : > { %v12218_v11 = vld [vmem:[#allocation2 + $0x90] sm:$0xf]  ;;  %v5955_v30 = vsel %vm10077_vm2, %v5950_v20, %v5954_v19  ;;  %v5969_v53 = vsel %vm10077_vm2, %v5964_v25, %v5968_v24  ;;  %v9278_v54 = vpack.c.bf16 %v3341_v4, %v3341_v4  ;;  %v3571_v38 = vld [vmem:[#allocation2 + $0xc4] sm:$0x1]  ;;  %v4276_v62 = vld [vmem:[#allocation2 + $0x80] sm:$0xf] }
 0x20a   : > { %6696 = vrot.lane.b32.xlu1 %v9048_v45, %s9906_s17  ;;  %v9126_v9 = vcombine.low %v5955_v30, %v5969_v53  ;;  %v3435_v31 = vsel %vm11347_vm14, 0, %v3434_v42  ;;  %v5999_v25 = vshrl.u32 %v12218_v11, 16  ;;  %v6002_v14 = vshll.u32 %v12218_v11, 16  ;;  %v4277_v19 = vld [vmem:[#allocation2 + $0x88] sm:$0xf] }
 0x20b   : > { %v3892_v20 = vshrl.u32 %v9278_v54, 16  ;;  %3436 = vst [vmem:[#allocation2 + $0x98] sm:$0x1] %v3435_v31  ;;  %v3272_v45 = vadd.f32 %v11865_v18, %v12058_v6  ;;  %v3450_v24 = vsel %vm11347_vm14, 0, %v3449_v7  ;;  %v3572_v42 = vsel %vm11362_vm15, 0, %v3571_v38 }
 0x20c   : > { %7124 = vrot.lane.b32.xlu0 %v9126_v9, %s9907_s20  ;;  %v4523_v4 = vshrl.u32 %v4276_v62, 16  ;;  %v3895_v53 = vshll.u32 %v9278_v54, 16  ;;  %v12241_v31 = vrot.slane %v5999_v25, 4  ;;  %3451 = vst [vmem:[#allocation2 + $0xc0] sm:$0x1] %v3450_v24  ;;  %v4526_v5 = vshll.u32 %v4276_v62, 16 }
 0x20d   : > { %v3894_v30 = vrot.slane %v3892_v20, 7  ;;  %v4178_v12 = vld [vmem:[#allocation2 + $0xb8] sm:$0xf]  ;;  %3573 = vst [vmem:[#allocation2 + $0xc4] sm:$0x1] %v3572_v42  ;;  %v3342_v9 = vmax.f32 %v3272_v45, 0.0 }
 0x20e   : > { %v4181_v29 = vld [vmem:[#allocation2 + $0xbc] sm:$0x1]  ;;  %6808 = vrot.lane.b32.xlu1 %v9064_v32, %s9907_s20  ;;  %v4525_v18 = vrot.slane %v4523_v4, 4  ;;  %v4532_v6 = vshll.u32 %v12162_v13, 16  ;;  %v4537_v7 = vshrl.u32 %v4277_v19, 16  ;;  %v4528_v38 = vrot.slane %v4526_v5, 5 }
 0x20f   : > { %v3897_v49 = vor.u32 %v3895_v53, %v3894_v30  ;;  %v3898_v16 = vrot.slane %v3894_v30, 4  ;;  %v4540_v26 = vshll.u32 %v4277_v19, 16  ;;  %v5527_v20 = vld [vmem:[#allocation2 + $0x88] sm:$0xe]  ;;  %v12245_v54 = vrot.slane %v6002_v14, 5 }
 0x210   : > { %v9279_v25 = vpack.c.bf16 %v3342_v9, %v3342_v9  ;;  %v4539_v23 = vrot.slane %v4537_v7, 4  ;;  %v4546_v24 = vshll.u32 %v12171_v51, 16  ;;  %v4529_v45 = vor.u32 %v4528_v38, %v4525_v18  ;;  %v5047_v42 = vld [vmem:[#allocation2 + $0x8c] sm:$0x1]  ;;  %v5528_v4 = vld [vmem:[#allocation2 + $0x90] sm:$0xe] }
 0x211   : > { %v4179_v62 = vsel %vm11374_vm0, %v3897_v49, %v4178_v12  ;;  %v4182_v32 = vsel %vm11347_vm14, %v3898_v16, %v4181_v29  ;;  %v4542_v13 = vrot.slane %v4540_v26, 5  ;;  %v4534_v30 = vrot.slane %v4532_v6, 5  ;;  %v5048_v53 = vld [vmem:[#allocation2 + $0x94] sm:$0x1]  ;;  %v5782_v7 = vld [vmem:[#allocation2 + $0x84] sm:$0x1] }
 0x212   : > { %4180 = vst [vmem:[#allocation2 + $0xb8] sm:$0xf] %v4179_v62  ;;  %4183 = vst [vmem:[#allocation2 + $0xbc] sm:$0x1] %v4182_v32  ;;  %v5753_v5 = vld [vmem:[#allocation2 + $0x98] sm:$0xf]  ;;  %v12253_v16 = vpop.f32.mrf.mxu0 }
 0x213   : > { %v3900_v19 = vshrl.u32 %v9279_v25, 16  ;;  %v3903_v14 = vshll.u32 %v9279_v25, 16  ;;  %v8959_v9 = vrot.slane %v5527_v20, 9  ;;  %v6013_v51 = vshrl.u32 %v5753_v5, 16  ;;  %v4184_v29 = vld [vmem:[#allocation2 + $0xc0] sm:$0xf] }
 0x214   : > { %v6016_v44 = vshll.u32 %v5753_v5, 16  ;;  %v9112_v49 = vcombine.low %v12218_v11, %v5753_v5  ;;  %v4530_v12 = vrot.slane %v4529_v45, 4  ;;  %v4543_v18 = vor.u32 %v4542_v13, %v4539_v23  ;;  %v4187_v6 = vld [vmem:[#allocation2 + $0xc4] sm:$0x1]  ;;  %v3294_v45 = vpop.f32.mrf.mxu0 }
 0x215   : > { %v3902_v26 = vrot.slane %v3900_v19, 7  ;;  %v4548_v38 = vrot.slane %v4546_v24, 5  ;;  %v5667_v62 = vrot.slane %v5047_v42, 5  ;;  %v12255_v32 = vrot.slane %v6013_v51, 4  ;;  %v3437_v51 = vld [vmem:[#allocation2 + $0xa0] sm:$0x1] }
 0x216   : > { %v12257_v25 = vrot.slane %v6016_v44, 5  ;;  %7048 = vrot.lane.b32.xlu0 %v9112_v49, %s9906_s17  ;;  %v8960_v20 = vrot.slane %v5528_v4, 9  ;;  %v5977_v11 = vor.u32 %v12212_v48, %v12210_v37  ;;  %v4535_v19 = vsel %vm10077_vm2, %v4530_v12, %v4534_v30  ;;  %v3559_v4 = vld [vmem:[#allocation2 + $0xa4] sm:$0x1]  ;;  %v12268_v49 = vpop.f32.mrf.mxu0 }
 0x217   : > { %v3905_v5 = vor.u32 %v3903_v14, %v3902_v26  ;;  %v3906_v8 = vrot.slane %v3902_v26, 4  ;;  %v4544_v23 = vrot.slane %v4543_v18, 4  ;;  %v5668_v24 = vsel %vm11547_vm11, %v8959_v9, %v5667_v62  ;;  %v12276_v9 = vld [vmem:[#allocation2 + $0xac] sm:$0x1]  ;;  %v3452_v26 = vld [vmem:[#allocation2 + $0xc8] sm:$0x1] }
 0x218   : > { %v5671_v13 = vrot.slane %v5048_v53, 5  ;;  %v5980_v44 = vshll.u32 %v5782_v7, 16  ;;  %v5991_v42 = vor.u32 %v12216_v17, %v12214_v55  ;;  %v5994_v30 = vshll.u32 %v5783_v1, 16  ;;  %v4791_v53 = vld [vmem:[#allocation2 + $0xa8] sm:$0xe]  ;;  %v3297_v18 = vpop.f32.mrf.mxu0 }
 0x219   : > { %v4185_v37 = vsel %vm11374_vm0, %v3905_v5, %v4184_v29  ;;  %v4188_v48 = vsel %vm11347_vm14, %v3906_v8, %v4187_v6  ;;  %v4549_v14 = vsel %vm10077_vm2, %v4544_v23, %v4548_v38  ;;  %v5978_v7 = vrot.slane %v5977_v11, 4  ;;  %v3574_v29 = vld [vmem:[#allocation2 + $0xcc] sm:$0x1]  ;;  %v3556_v6 = vld [vmem:[#allocation2 + $0x9c] sm:$0x1] }
 0x21a   : > { %4186 = vst [vmem:[#allocation2 + $0xc0] sm:$0xf] %v4185_v37  ;;  %4189 = vst [vmem:[#allocation2 + $0xc4] sm:$0x1] %v4188_v48  ;;  %v9032_v55 = vcombine.low %v4535_v19, %v4549_v14  ;;  %v5672_v17 = vsel %vm11547_vm11, %v8960_v20, %v5671_v13  ;;  %v5992_v12 = vrot.slane %v5991_v42, 4  ;;  %v5996_v8 = vrot.slane %v5994_v30, 5 }
 0x21b   : > { %v9096_v62 = vcombine.low %v5668_v24, %v5672_v17  ;;  %v3438_v38 = vsel %vm11347_vm14, 0, %v3437_v51  ;;  %v3560_v1 = vsel %vm11362_vm15, 0, %v3559_v4  ;;  %v5279_v45 = vshll.u32 %v12206_v50, 16  ;;  %v5784_v19 = vld [vmem:[#allocation2 + $0x94] sm:$0x1] }
 0x21c   : > { %6616 = vrot.lane.b32.xlu1 %v9032_v55, %s9908_s15  ;;  %v5982_v5 = vrot.slane %v5980_v44, 5  ;;  %3439 = vst [vmem:[#allocation2 + $0xa0] sm:$0x1] %v3438_v38  ;;  %3561 = vst [vmem:[#allocation2 + $0xa4] sm:$0x1] %v3560_v1  ;;  %v8930_v20 = vrot.slane %v4791_v53, 9  ;;  %v5997_v23 = vsel %vm10077_vm2, %v5992_v12, %v5996_v8  ;;  %v6005_v30 = vor.u32 %v12245_v54, %v12241_v31 }
 0x21d   : > { %v4943_v11 = vrot.slane %v12276_v9, 5  ;;  %6936 = vrot.lane.b32.xlu0 %v9096_v62, %s9908_s15  ;;  %v12293_v24 = vld [vmem:[%s14096_s2] ss:$0 sm:$0xff]  ;;  %v3453_v44 = vsel %vm11347_vm14, 0, %v3452_v26  ;;  %v3575_v42 = vsel %vm11362_vm15, 0, %v3574_v29  ;;  %v14160_v4 = vshll.u32 %v12114_v46, 16 }
 0x21e   : > { %v3277_v13 = vadd.f32 %v12293_v24, %v12116_v61  ;;  %v12301_v51 = vld [vmem:[#allocation2 + $0xa8] sm:$0xf]  ;;  %v5983_v48 = vsel %vm10077_vm2, %v5978_v7, %v5982_v5  ;;  %v4790_v14 = vld [vmem:[#allocation2 + $0xa0] sm:$0xe]  ;;  %3454 = vst [vmem:[#allocation2 + $0xc8] sm:$0x1] %v3453_v44  ;;  %v6019_v46 = vor.u32 %v12257_v25, %v12255_v32 }
 0x21f   : > { %v12305_v37 = vrot.slane %v14160_v4, 5  ;;  %3576 = vst [vmem:[#allocation2 + $0xcc] sm:$0x1] %v3575_v42  ;;  %v3557_v61 = vsel %vm11362_vm15, 0, %v3556_v6  ;;  %v9127_v53 = vcombine.low %v5983_v48, %v5997_v23  ;;  %v6008_v17 = vshll.u32 %v5784_v19, 16 }
 0x220   : > { %v3343_v55 = vmax.f32 %v3277_v13, 0.0  ;;  %3558 = vst [vmem:[#allocation2 + $0x9c] sm:$0x1] %v3557_v61  ;;  %v12315_v12 = vld [vmem:[#allocation2 + $0xb0] sm:$0xf]  ;;  %v14161_v7 = vshrl.u32 %v12202_v3, 16  ;;  %v4944_v25 = vsel %vm11547_vm11, %v8930_v20, %v4943_v11  ;;  %v3280_v20 = vadd.f32 %v12293_v24, %v12135_v22 }
 0x221   : > { %v14162_v29 = vshll.u32 %v12202_v3, 16  ;;  %v14164_v62 = vshrl.u32 %v12206_v50, 16  ;;  %v5290_v54 = vshrl.u32 %v12301_v51, 16  ;;  %v12330_v8 = vrot.slane %v5279_v45, 5  ;;  %7126 = vrot.lane.b32.xlu0 %v9127_v53, %s9907_s20  ;;  %v3455_v1 = vld [vmem:[#allocation2 + $0xd0] sm:$0x1] }
 0x222   : > { %v12319_v26 = vrot.slane %v14161_v7, 4  ;;  %v8929_v32 = vrot.slane %v4790_v14, 9  ;;  %v9280_v38 = vpack.c.bf16 %v3343_v55, %v3343_v55  ;;  %v3577_v6 = vld [vmem:[#allocation2 + $0xd4] sm:$0x1]  ;;  %v6006_v3 = vrot.slane %v6005_v30, 4 }
 0x223   : > { %v12323_v18 = vrot.slane %v14162_v29, 5  ;;  %v12327_v31 = vrot.slane %v14164_v62, 4  ;;  %14166 = vst [vmem:[#allocation21_spill] sm:$0xff] %v12330_v8  ;;  %v12338_v23 = vld [vmem:[#allocation2 + $0xa8] sm:$0xe]  ;;  %v6010_v44 = vrot.slane %v6008_v17, 5 }
 0x224   : > { %v12340_v45 = vld [vmem:[#allocation2 + $0xa4] sm:$0x1]  ;;  %v3908_v13 = vshrl.u32 %v9280_v38, 16  ;;  %v6020_v42 = vrot.slane %v6019_v46, 4  ;;  %v12345_v4 = vrot.slane %v5290_v54, 4  ;;  %v3456_v48 = vsel %vm11347_vm14, 0, %v3455_v1  ;;  %v12352_v46 = vpop.f32.mrf.mxu0 }
 0x225   : > { %14163 = vst [vmem:[#allocation19_spill] sm:$0xff] %v12323_v18  ;;  %14165 = vst [vmem:[#allocation20_spill] sm:$0xff] %v12327_v31  ;;  %v4939_v11 = vrot.slane %v12340_v45, 5  ;;  %v3578_v14 = vsel %vm11362_vm15, 0, %v3577_v6  ;;  %v5050_v61 = vld [vmem:[#allocation2 + $0xb4] sm:$0x1]  ;;  %v6011_v6 = vsel %vm10077_vm2, %v6006_v3, %v6010_v44 }
 0x226   : > { %14167 = vst [vmem:[#allocation22_spill] sm:$0xff] %v12345_v4  ;;  %v5530_v30 = vld [vmem:[#allocation2 + $0xb0] sm:$0xe]  ;;  %v3910_v53 = vrot.slane %v3908_v13, 7  ;;  %v3911_v55 = vshll.u32 %v9280_v38, 16  ;;  %v3344_v7 = vmax.f32 %v3280_v20, 0.0  ;;  %v9065_v38 = vcombine.low %v12301_v51, %v12315_v12  ;;  %v3302_v19 = vpop.f32.mrf.mxu0 }
 0x227   : > { %3457 = vst [vmem:[#allocation2 + $0xd0] sm:$0x1] %v3456_v48  ;;  %3579 = vst [vmem:[#allocation2 + $0xd4] sm:$0x1] %v3578_v14  ;;  %v8961_v17 = vrot.slane %v12338_v23, 9  ;;  %v4940_v29 = vsel %vm11547_vm11, %v8929_v32, %v4939_v11  ;;  %v8962_v5 = vrot.slane %v5530_v30, 9  ;;  %v5072_v32 = vor.u32 %v11625_v35, %v11603_v33 }
 0x228   : > { %v4278_v22 = vld [vmem:[#allocation2 + $0xa0] sm:$0xf]  ;;  %v4190_v62 = vld [vmem:[#allocation2 + $0xc8] sm:$0xf]  ;;  %v4193_v54 = vld [vmem:[#allocation2 + $0xcc] sm:$0x1]  ;;  %v9049_v13 = vcombine.low %v4940_v29, %v4944_v25  ;;  %v3913_v20 = vor.u32 %v3911_v55, %v3910_v53  ;;  %v9281_v50 = vpack.c.bf16 %v3344_v7, %v3344_v7 }
 0x229   : > { %v5785_v1 = vld [vmem:[#allocation2 + $0x9c] sm:$0x1]  ;;  %v3914_v48 = vrot.slane %v3910_v53, 4  ;;  %v5049_v23 = vld [vmem:[#allocation2 + $0xac] sm:$0x1]  ;;  %v4551_v8 = vshrl.u32 %v4278_v22, 16  ;;  %v12367_v53 = vpop.f32.mrf.mxu0 }
 0x22a   : > { %v6022_v14 = vshll.u32 %v5785_v1, 16  ;;  %v4279_v4 = vld [vmem:[#allocation2 + $0xa8] sm:$0xf]  ;;  %6698 = vrot.lane.b32.xlu1 %v9049_v13, %s9906_s17  ;;  %v4191_v3 = vsel %vm11374_vm0, %v3913_v20, %v4190_v62  ;;  %v5679_v11 = vrot.slane %v5050_v61, 5  ;;  %v3916_v19 = vshrl.u32 %v9281_v50, 16 }
 0x22b   : > { %v4194_v25 = vsel %vm11347_vm14, %v3914_v48, %v4193_v54  ;;  %4192 = vst [vmem:[#allocation2 + $0xc8] sm:$0xf] %v4191_v3  ;;  %v5675_v30 = vrot.slane %v5049_v23, 5  ;;  %v4553_v55 = vrot.slane %v4551_v8, 4  ;;  %v4554_v7 = vshll.u32 %v4278_v22, 16  ;;  %v3305_v54 = vpop.f32.mrf.mxu0 }
 0x22c   : > { %v6024_v44 = vrot.slane %v6022_v14, 5  ;;  %4195 = vst [vmem:[#allocation2 + $0xcc] sm:$0x1] %v4194_v25  ;;  %v4560_v35 = vshll.u32 %v12340_v45, 16  ;;  %v4565_v29 = vshrl.u32 %v4279_v4, 16  ;;  %v4568_v62 = vshll.u32 %v4279_v4, 16 }
 0x22d   : > { %v12372_v1 = vld [vmem:[#allocation2 + $0xb8] sm:$0xf]  ;;  %v3918_v61 = vrot.slane %v3916_v19, 7  ;;  %v3919_v20 = vshll.u32 %v9281_v50, 16  ;;  %v4556_v14 = vrot.slane %v4554_v7, 5  ;;  %v5680_v8 = vsel %vm11547_vm11, %v8962_v5, %v5679_v11 }
 0x22e   : > { %v6025_v33 = vsel %vm10077_vm2, %v6020_v42, %v6024_v44  ;;  %v4196_v48 = vld [vmem:[#allocation2 + $0xd0] sm:$0xf]  ;;  %6810 = vrot.lane.b32.xlu1 %v9065_v38, %s9907_s20  ;;  %v4199_v23 = vld [vmem:[#allocation2 + $0xd4] sm:$0x1]  ;;  %v4567_v22 = vrot.slane %v4565_v29, 4  ;;  %v4570_v42 = vrot.slane %v4568_v62, 5  ;;  %v5676_v50 = vsel %vm11547_vm11, %v8961_v17, %v5675_v30 }
 0x22f   : > { %v9128_v13 = vcombine.low %v6011_v6, %v6025_v33  ;;  %v4574_v45 = vshll.u32 %v12276_v9, 16  ;;  %v3921_v4 = vor.u32 %v3919_v20, %v3918_v61  ;;  %v3922_v3 = vrot.slane %v3918_v61, 4  ;;  %v12379_v44 = vld [vmem:[#allocation2 + $0xb0] sm:$0xf]  ;;  %v12391_v33 = vld [vmem:[#allocation2 + $0xb4] sm:$0x1] }
 0x230   : > { %v4557_v25 = vor.u32 %v4556_v14, %v4553_v55  ;;  %v4562_v6 = vrot.slane %v4560_v35, 5  ;;  %v4571_v38 = vor.u32 %v4570_v42, %v4567_v22  ;;  %v9113_v19 = vcombine.low %v12379_v44, %v12372_v1  ;;  %v4792_v35 = vld [vmem:[#allocation2 + $0xb0] sm:$0xe]  ;;  %v3458_v29 = vld [vmem:[#allocation2 + $0xd8] sm:$0x1] }
 0x231   : > { %7128 = vrot.lane.b32.xlu0 %v9128_v13, %s9907_s20  ;;  %v5086_v5 = vor.u32 %v11629_v40, %v11627_v63  ;;  %v4197_v9 = vsel %vm11374_vm0, %v3921_v4, %v4196_v48  ;;  %v4200_v11 = vsel %vm11347_vm14, %v3922_v3, %v4199_v23  ;;  %v9097_v55 = vcombine.low %v5676_v50, %v5680_v8  ;;  %v4793_v40 = vld [vmem:[#allocation2 + $0xb8] sm:$0xe]  ;;  %v9757_v20 = vld [vmem:[#allocation2 + $0xc] sm:$0x1]  ;;  %v12399_v14 = vld [vmem:[#allocation2 + $0xbc] sm:$0x1] }
 0x232   : > { %v4558_v7 = vrot.slane %v4557_v25, 4  ;;  %4198 = vst [vmem:[#allocation2 + $0xd0] sm:$0xf] %v4197_v9  ;;  %4201 = vst [vmem:[#allocation2 + $0xd4] sm:$0x1] %v4200_v11  ;;  %v4572_v17 = vrot.slane %v4571_v38, 4  ;;  %v3285_v9 = vadd.f32 %v12293_v24, %v12185_v34 }
 0x233   : > { %v4576_v30 = vrot.slane %v4574_v45, 5  ;;  %v6027_v62 = vshrl.u32 %v12379_v44, 16  ;;  %v6030_v63 = vshll.u32 %v12379_v44, 16  ;;  %v6041_v13 = vshrl.u32 %v12372_v1, 16  ;;  %v9758_v22 = vld [vmem:[#allocation2 + $0x14] sm:$0x1] }
 0x234   : > { %v4563_v54 = vsel %vm10077_vm2, %v4558_v7, %v4562_v6  ;;  %v5073_v61 = vrot.slane %v5072_v32, 4  ;;  %v5075_v48 = vshll.u32 %v9757_v20, 16  ;;  %v5087_v8 = vrot.slane %v5086_v5, 4  ;;  %v3580_v4 = vld [vmem:[#allocation2 + $0xdc] sm:$0x1] }
 0x235   : > { %6938 = vrot.lane.b32.xlu0 %v9097_v55, %s9908_s15  ;;  %v4577_v23 = vsel %vm10077_vm2, %v4572_v17, %v4576_v30  ;;  %v5089_v42 = vshll.u32 %v9758_v22, 16  ;;  %v8931_v45 = vrot.slane %v4792_v35, 9  ;;  %v4947_v44 = vrot.slane %v12391_v33, 5  ;;  %v5531_v50 = vld [vmem:[#allocation2 + $0xb8] sm:$0xe]  ;;  %v12409_v55 = vpop.permute.xlu1 %6682 }
 0x236   : > { %v9033_v3 = vcombine.low %v4563_v54, %v4577_v23  ;;  %v5077_v25 = vrot.slane %v5075_v48, 5  ;;  %v8932_v6 = vrot.slane %v4793_v40, 9  ;;  %v4951_v32 = vrot.slane %v12399_v14, 5  ;;  %v5051_v5 = vld [vmem:[#allocation2 + $0xbc] sm:$0x1]  ;;  %v12420_v40 = vpop.f32.mrf.mxu0 }
 0x237   : > { %v5091_v38 = vrot.slane %v5089_v42, 5  ;;  %v3459_v11 = vsel %vm11347_vm14, 0, %v3458_v29  ;;  %v6044_v7 = vshll.u32 %v12372_v1, 16  ;;  %v4948_v17 = vsel %vm11547_vm11, %v8931_v45, %v4947_v44  ;;  %v5052_v29 = vld [vmem:[#allocation2 + $0xc4] sm:$0x1] }
 0x238   : > { %6618 = vrot.lane.b32.xlu1 %v9033_v3, %s9908_s15  ;;  %v5078_v35 = vsel %vm10077_vm2, %v5073_v61, %v5077_v25  ;;  %3460 = vst [vmem:[#allocation2 + $0xd8] sm:$0x1] %v3459_v11  ;;  %v3581_v34 = vsel %vm11362_vm15, 0, %v3580_v4  ;;  %v5532_v30 = vld [vmem:[#allocation2 + $0xc0] sm:$0xe]  ;;  %v4952_v1 = vsel %vm11547_vm11, %v8932_v6, %v4951_v32  ;;  %v3345_v61 = vmax.f32 %v3285_v9, 0.0  ;;  %v3310_v4 = vpop.f32.mrf.mxu0 }
 0x239   : > { %7050 = vrot.lane.b32.xlu0 %v9113_v19, %s9906_s17  ;;  %v5092_v54 = vsel %vm10077_vm2, %v5087_v8, %v5091_v38  ;;  %v12424_v19 = vpop.permute.xlu0 %6922  ;;  %3582 = vst [vmem:[#allocation2 + $0xdc] sm:$0x1] %v3581_v34  ;;  %v8963_v20 = vrot.slane %v5531_v50, 9  ;;  %v14168_v48 = vshll.u32 %v12301_v51, 16  ;;  %v9050_v42 = vcombine.low %v4948_v17, %v4952_v1  ;;  %v12438_v6 = vld [vmem:[#allocation2 + $0xb8] sm:$0xf] }
 0x23a   : > { %v12432_v22 = vcombine.low %v5078_v35, %v5092_v54  ;;  %v5683_v45 = vrot.slane %v5051_v5, 5  ;;  %v14170_v3 = vshrl.u32 %v12315_v12, 16  ;;  %v9282_v25 = vpack.c.bf16 %v3345_v61, %v3345_v61  ;;  %v12451_v5 = vld [vmem:[#allocation2 + $0xc0] sm:$0xf]  ;;  %v12453_v35 = vpop.f32.mrf.mxu0  ;;  %v12465_v54 = vld [vmem:[#allocation2 + $0x8] sm:$0xf] }
 0x23b   : > { %v12430_v23 = vrot.slane %v14168_v48, 5  ;;  %v8964_v44 = vrot.slane %v5532_v30, 9  ;;  %v5687_v38 = vrot.slane %v5052_v29, 5  ;;  %v14172_v50 = vshll.u32 %v12315_v12, 16  ;;  %v3461_v29 = vld [vmem:[#allocation2 + $0xe0] sm:$0x1]  ;;  %v12461_v30 = vpop.permute.xlu1 %6794 }
 0x23c   : > { %v12436_v8 = vrot.slane %v14170_v3, 4  ;;  %v12444_v51 = vrot.slane %v6027_v62, 4  ;;  %v12446_v9 = vrot.slane %v6030_v63, 5  ;;  %v12448_v11 = vrot.slane %v6041_v13, 4  ;;  %6700 = vrot.lane.b32.xlu1 %v9050_v42, %s9906_s17  ;;  %v3583_v63 = vld [vmem:[#allocation2 + $0xe4] sm:$0x1] }
 0x23d   : > { %14169 = vst [vmem:[#allocation23_spill] sm:$0xff] %v12430_v23  ;;  %v12442_v32 = vrot.slane %v14172_v50, 5  ;;  %v12455_v17 = vrot.slane %v6044_v7, 5  ;;  %v3924_v34 = vshrl.u32 %v9282_v25, 16  ;;  %v5684_v12 = vsel %vm11547_vm11, %v8963_v20, %v5683_v45  ;;  %v12463_v13 = vld [vmem:[#allocation2] sm:$0xf]  ;;  %v3313_v20 = vpop.f32.mrf.mxu0  ;;  %v12471_v3 = vpop.permute.xlu0 %7034 }
 0x23e   : > { %14171 = vst [vmem:[#allocation24_spill] sm:$0xff] %v12436_v8  ;;  %v5688_v62 = vsel %vm11547_vm11, %v8964_v44, %v5687_v38  ;;  %v3927_v45 = vshll.u32 %v9282_v25, 16  ;;  %v9066_v44 = vcombine.low %v12438_v6, %v12451_v5  ;;  %v3288_v38 = vadd.f32 %v12293_v24, %v12208_v58  ;;  %v4280_v50 = vld [vmem:[#allocation2 + $0xb0] sm:$0xf] }
 0x23f   : > { %14173 = vst [vmem:[#allocation25_spill] sm:$0xff] %v12442_v32  ;;  %v9098_v7 = vcombine.low %v5684_v12, %v5688_v62  ;;  %v3926_v42 = vrot.slane %v3924_v34, 7  ;;  %v4202_v4 = vld [vmem:[#allocation2 + $0xd8] sm:$0xf]  ;;  %v3462_v12 = vsel %vm11347_vm14, 0, %v3461_v29  ;;  %v3584_v34 = vsel %vm11362_vm15, 0, %v3583_v63 }
 0x240   : > { %v4205_v32 = vld [vmem:[#allocation2 + $0xdc] sm:$0x1]  ;;  %v5100_v25 = vor.u32 %v11695_v41, %v11693_v2  ;;  %6812 = vrot.lane.b32.xlu1 %v9066_v44, %s9907_s20  ;;  %v3346_v58 = vmax.f32 %v3288_v38, 0.0  ;;  %3463 = vst [vmem:[#allocation2 + $0xe0] sm:$0x1] %v3462_v12  ;;  %v5114_v29 = vor.u32 %v11701_v0, %v11697_v28  ;;  %v6603_v44 = vpop.permute.xlu1 %6602  ;;  %v5335_v38 = vshll.u32 %v12451_v5, 16 }
 0x241   : > { %6940 = vrot.lane.b32.xlu0 %v9098_v7, %s9908_s15  ;;  %v9761_v62 = vld [vmem:[#allocation2 + $0x1c] sm:$0x1]  ;;  %v3929_v48 = vor.u32 %v3927_v45, %v3926_v42  ;;  %v3930_v61 = vrot.slane %v3926_v42, 4  ;;  %3585 = vst [vmem:[#allocation2 + $0xe4] sm:$0x1] %v3584_v34 }
 0x242   : > { %v5103_v20 = vshll.u32 %v9761_v62, 16  ;;  %v5101_v7 = vrot.slane %v5100_v25, 4  ;;  %v9762_v63 = vld [vmem:[#allocation2 + $0x24] sm:$0x1]  ;;  %v9283_v42 = vpack.c.bf16 %v3346_v58, %v3346_v58  ;;  %v4281_v45 = vld [vmem:[#allocation2 + $0xb8] sm:$0xf] }
 0x243   : > { %v5117_v23 = vshll.u32 %v9762_v63, 16  ;;  %v4203_v2 = vsel %vm11374_vm0, %v3929_v48, %v4202_v4  ;;  %v4206_v41 = vsel %vm11347_vm14, %v3930_v61, %v4205_v32  ;;  %v4579_v62 = vshrl.u32 %v4280_v50, 16  ;;  %v6925_v48 = vpop.permute.xlu0 %6924  ;;  %v12495_v63 = vld [vmem:[#allocation2 + $0xc8] sm:$0xf] }
 0x244   : > { %v5105_v8 = vrot.slane %v5103_v20, 5  ;;  %4204 = vst [vmem:[#allocation2 + $0xd8] sm:$0xf] %v4203_v2  ;;  %4207 = vst [vmem:[#allocation2 + $0xdc] sm:$0x1] %v4206_v41  ;;  %v5115_v12 = vrot.slane %v5114_v29, 4 }
 0x245   : > { %v5119_v34 = vrot.slane %v5117_v23, 5  ;;  %v4582_v25 = vshll.u32 %v4280_v50, 16  ;;  %v3932_v28 = vshrl.u32 %v9283_v42, 16  ;;  %v3935_v0 = vshll.u32 %v9283_v42, 16  ;;  %v12501_v29 = vld [vmem:[#allocation2 + $0xc0] sm:$0xf]  ;;  %v12503_v42 = vpop.f32.mrf.mxu0 }
 0x246   : > { %v5106_v20 = vsel %vm10077_vm2, %v5101_v7, %v5105_v8  ;;  %v4581_v4 = vrot.slane %v4579_v62, 4  ;;  %v4593_v58 = vshrl.u32 %v4281_v45, 16  ;;  %v4596_v2 = vshll.u32 %v4281_v45, 16 }
 0x247   : > { %v5120_v32 = vsel %vm10077_vm2, %v5115_v12, %v5119_v34  ;;  %v4584_v61 = vrot.slane %v4582_v25, 5  ;;  %v3934_v41 = vrot.slane %v3932_v28, 7  ;;  %v4588_v23 = vshll.u32 %v12391_v33, 16  ;;  %v4208_v8 = vld [vmem:[#allocation2 + $0xe0] sm:$0xf]  ;;  %v12516_v28 = vpop.permute.xlu0 %7036 }
 0x248   : > { %v9074_v1 = vcombine.low %v5106_v20, %v5120_v32  ;;  %v4602_v50 = vshll.u32 %v12399_v14, 16  ;;  %v4211_v7 = vld [vmem:[#allocation2 + $0xe4] sm:$0x1]  ;;  %v4595_v31 = vrot.slane %v4593_v58, 4  ;;  %v4598_v18 = vrot.slane %v4596_v2, 5  ;;  %v3318_v20 = vpop.f32.mrf.mxu0 }
 0x249   : > { %v4585_v62 = vor.u32 %v4584_v61, %v4581_v4  ;;  %v9114_v12 = vcombine.low %v12501_v29, %v12495_v63  ;;  %v7324_v45 = vsel %vm2821_vm4, %v12432_v22, %v12424_v19  ;;  %v14174_v33 = vcombine.low %v12463_v13, %v12465_v54  ;;  %v12526_v19 = vpop.permute.xlu1 %6684  ;;  %v12529_v54 = vld [vmem:[#allocation2 + $0xc4] sm:$0x1]  ;;  %v12547_v20 = vld [vmem:[#allocation2 + $0xcc] sm:$0x1] }
 0x24a   : > { %v3937_v34 = vor.u32 %v3935_v0, %v3934_v41  ;;  %v3938_v25 = vrot.slane %v3934_v41, 4  ;;  %v12520_v4 = vsel %vm2887_vm6, %v7324_v45, %v12471_v3  ;;  %v14175_v32 = vshrl.u32 %v12438_v6, 16  ;;  %v4794_v41 = vld [vmem:[#allocation2 + $0xc0] sm:$0xe]  ;;  %v4795_v45 = vld [vmem:[#allocation2 + $0xc8] sm:$0xe] }
 0x24b   : > { %v12514_v14 = vsel %vm2821_vm4, %v14174_v33, %v6603_v44  ;;  %v4586_v22 = vrot.slane %v4585_v62, 4  ;;  %v4599_v13 = vor.u32 %v4598_v18, %v4595_v31  ;;  %7052 = vrot.lane.b32.xlu0 %v9114_v12, %s9906_s17  ;;  %v14176_v44 = vshll.u32 %v12438_v6, 16  ;;  %v12539_v33 = vpop.f32.mrf.mxu0 }
 0x24c   : > { %v12524_v61 = vrot.slane %v14175_v32, 4  ;;  %v4209_v3 = vsel %vm11374_vm0, %v3937_v34, %v4208_v8  ;;  %v4212_v58 = vsel %vm11347_vm14, %v3938_v25, %v4211_v7  ;;  %v4590_v2 = vrot.slane %v4588_v23, 5  ;;  %v5786_v34 = vld [vmem:[#allocation2 + $0xb4] sm:$0x1]  ;;  %v5787_v25 = vld [vmem:[#allocation2 + $0xbc] sm:$0x1] }
 0x24d   : > { %v12533_v0 = vrot.slane %v14176_v44, 5  ;;  %v14177_v18 = vshrl.u32 %v12451_v5, 16  ;;  %v12545_v62 = vrot.slane %v5335_v38, 5  ;;  %4210 = vst [vmem:[#allocation2 + $0xe0] sm:$0xf] %v4209_v3  ;;  %v4600_v6 = vrot.slane %v4599_v13, 4  ;;  %v3321_v38 = vpop.f32.mrf.mxu0 }
 0x24e   : > { %4213 = vst [vmem:[#allocation2 + $0xe4] sm:$0x1] %v4212_v58  ;;  %v4604_v12 = vrot.slane %v4602_v50, 5  ;;  %v12550_v8 = vsel %vm2821_vm4, %v9074_v1, %v6925_v48  ;;  %v4591_v23 = vsel %vm10077_vm2, %v4586_v22, %v4590_v2  ;;  %v6055_v7 = vshrl.u32 %v12501_v29, 16  ;;  %v3470_v3 = vld [vmem:[#allocation2 + $0xf8] sm:$0x1]  ;;  %v12563_v2 = vpop.permute.xlu1 %6796 }
 0x24f   : > { %v12543_v31 = vrot.slane %v14177_v18, 4  ;;  %14178 = vst [vmem:[#allocation26_spill] sm:$0xff] %v12545_v62  ;;  %v6058_v5 = vshll.u32 %v12501_v29, 16  ;;  %v8933_v13 = vrot.slane %v4794_v41, 9  ;;  %v4955_v50 = vrot.slane %v12529_v54, 5  ;;  %v7115_v29 = vpop.permute.xlu0 %7114 }
 0x250   : > { %v4605_v32 = vsel %vm10077_vm2, %v4600_v6, %v4604_v12  ;;  %v8934_v44 = vrot.slane %v4795_v45, 9  ;;  %v6069_v48 = vshrl.u32 %v12495_v63, 16  ;;  %v4959_v22 = vrot.slane %v12547_v20, 5  ;;  %v3592_v12 = vld [vmem:[#allocation2 + $0xfc] sm:$0x1] }
 0x251   : > { %v9034_v1 = vcombine.low %v4591_v23, %v4605_v32  ;;  %v6033_v58 = vor.u32 %v12446_v9, %v12444_v51  ;;  %v4956_v18 = vsel %vm11547_vm11, %v8933_v13, %v4955_v50  ;;  %v6036_v6 = vshll.u32 %v5786_v34, 16  ;;  %v12576_v32 = vld [vmem:[#allocation2 + $0xc8] sm:$0xf] }
 0x252   : > { %v6047_v41 = vor.u32 %v12455_v17, %v12448_v11  ;;  %v6050_v45 = vshll.u32 %v5787_v25, 16  ;;  %v4960_v23 = vsel %vm11547_vm11, %v8934_v44, %v4959_v22  ;;  %v3293_v51 = vadd.f32 %v12293_v24, %v12253_v16  ;;  %v5533_v17 = vld [vmem:[#allocation2 + $0xc8] sm:$0xe]  ;;  %v12583_v16 = vld [vmem:[#allocation2 + $0xd0] sm:$0xf] }
 0x253   : > { %6620 = vrot.lane.b32.xlu1 %v9034_v1, %s9908_s15  ;;  %v6034_v38 = vrot.slane %v6033_v58, 4  ;;  %v3471_v9 = vsel %vm11347_vm14, 0, %v3470_v3  ;;  %v9051_v34 = vcombine.low %v4956_v18, %v4960_v23  ;;  %v6038_v13 = vrot.slane %v6036_v6, 5  ;;  %v3473_v58 = vld [vmem:[#allocation2 + $0x100] sm:$0x1]  ;;  %v12598_v1 = vpop.permute.xlu1 %6604 }
 0x254   : > { %v6048_v50 = vrot.slane %v6047_v41, 4  ;;  %v6052_v11 = vrot.slane %v6050_v45, 5  ;;  %3472 = vst [vmem:[#allocation2 + $0xf8] sm:$0x1] %v3471_v9  ;;  %v12578_v25 = vrot.slane %v6055_v7, 4  ;;  %v3347_v44 = vmax.f32 %v3293_v51, 0.0  ;;  %v12596_v9 = vpop.permute.xlu0 %6926 }
 0x255   : > { %v3593_v22 = vsel %vm11362_vm15, 0, %v3592_v12  ;;  %v12585_v3 = vrot.slane %v6058_v5, 5  ;;  %v12587_v62 = vrot.slane %v6069_v48, 4  ;;  %v6039_v18 = vsel %vm10077_vm2, %v6034_v38, %v6038_v13  ;;  %v5053_v6 = vld [vmem:[#allocation2 + $0xcc] sm:$0x1] }
 0x256   : > { %v6053_v7 = vsel %vm10077_vm2, %v6048_v50, %v6052_v11  ;;  %3594 = vst [vmem:[#allocation2 + $0xfc] sm:$0x1] %v3593_v22  ;;  %v5534_v41 = vld [vmem:[#allocation2 + $0xd0] sm:$0xe]  ;;  %v9284_v12 = vpack.c.bf16 %v3347_v44, %v3347_v44  ;;  %v5054_v51 = vld [vmem:[#allocation2 + $0xd4] sm:$0x1]  ;;  %v9067_v50 = vcombine.low %v12576_v32, %v12583_v16  ;;  %v3296_v5 = vadd.f32 %v12293_v24, %v12268_v49 }
 0x257   : > { %6702 = vrot.lane.b32.xlu1 %v9051_v34, %s9906_s17  ;;  %v9129_v45 = vcombine.low %v6039_v18, %v6053_v7  ;;  %v3595_v48 = vld [vmem:[#allocation2 + $0x104] sm:$0x1]  ;;  %v8965_v34 = vrot.slane %v5533_v17, 9  ;;  %v5691_v22 = vrot.slane %v5053_v6, 5  ;;  %v8966_v18 = vrot.slane %v5534_v41, 9 }
 0x258   : > { %v3940_v11 = vshrl.u32 %v9284_v12, 16  ;;  %v3943_v44 = vshll.u32 %v9284_v12, 16  ;;  %v5695_v7 = vrot.slane %v5054_v51, 5  ;;  %v3474_v23 = vsel %vm11347_vm14, 0, %v3473_v58  ;;  %v4282_v51 = vld [vmem:[#allocation2 + $0xc0] sm:$0xf] }
 0x259   : > { %7130 = vrot.lane.b32.xlu0 %v9129_v45, %s9907_s20  ;;  %v3596_v13 = vsel %vm11362_vm15, 0, %v3595_v48  ;;  %v5692_v17 = vsel %vm11547_vm11, %v8965_v34, %v5691_v22  ;;  %3475 = vst [vmem:[#allocation2 + $0x100] sm:$0x1] %v3474_v23  ;;  %v7403_v6 = vsel %vm2953_vm8, %v12520_v4, %v7115_v29  ;;  %v7243_v49 = vsel %vm2887_vm6, %v12514_v14, %v12409_v55  ;;  %v12625_v14 = vpop.permute.xlu0 %7038  ;;  %v12627_v34 = vpop.permute.xlu1 %6686  ;;  %v9764_v22 = vld [vmem:[#allocation2 + $0x34] sm:$0x1] }
 0x25a   : > { %v3942_v38 = vrot.slane %v3940_v11, 7  ;;  %3597 = vst [vmem:[#allocation2 + $0x104] sm:$0x1] %v3596_v13  ;;  %v5696_v58 = vsel %vm11547_vm11, %v8966_v18, %v5695_v7  ;;  %v3348_v45 = vmax.f32 %v3296_v5, 0.0  ;;  %7681 = vmatprep.mubr.bf16.mxu1 %v7403_v6  ;;  %v7275_v12 = vsel %vm2953_vm8, %v7243_v49, %v12461_v30 }
 0x25b   : > { %6814 = vrot.lane.b32.xlu1 %v9067_v50, %s9907_s20  ;;  %v4214_v41 = vld [vmem:[#allocation2 + $0xf8] sm:$0xf]  ;;  %v5128_v23 = vor.u32 %v11783_v36, %v11775_v39  ;;  %v9099_v29 = vcombine.low %v5692_v17, %v5696_v58  ;;  %7682 = vmatmul.mubr.bf16.vlgmr.msra.gmra.mxu1 %v7275_v12  ;;  %v9763_v50 = vld [vmem:[#allocation2 + $0x2c] sm:$0x1]  ;;  %v5142_v30 = vor.u32 %v11792_v52, %v11790_v10  ;;  %v5145_v18 = vshll.u32 %v9764_v22, 16 }
 0x25c   : > { %v3945_v48 = vor.u32 %v3943_v44, %v3942_v38  ;;  %v3946_v13 = vrot.slane %v3942_v38, 4  ;;  %v5131_v55 = vshll.u32 %v9763_v50, 16  ;;  %v9285_v5 = vpack.c.bf16 %v3348_v45, %v3348_v45  ;;  %v4283_v44 = vld [vmem:[#allocation2 + $0xc8] sm:$0xf]  ;;  %v12636_v17 = vld [vmem:[#allocation2 + $0xd8] sm:$0xf] }
 0x25d   : > { %v4217_v4 = vld [vmem:[#allocation2 + $0xfc] sm:$0x1]  ;;  %v5129_v11 = vrot.slane %v5128_v23, 4  ;;  %6942 = vrot.lane.b32.xlu0 %v9099_v29, %s9908_s15  ;;  %v4607_v7 = vshrl.u32 %v4282_v51, 16  ;;  %v5143_v10 = vrot.slane %v5142_v30, 4  ;;  %v5147_v52 = vrot.slane %v5145_v18, 5 }
 0x25e   : > { %v4215_v39 = vsel %vm11374_vm0, %v3945_v48, %v4214_v41  ;;  %v4218_v36 = vsel %vm11347_vm14, %v3946_v13, %v4217_v4  ;;  %v5133_v38 = vrot.slane %v5131_v55, 5  ;;  %v3948_v6 = vshrl.u32 %v9285_v5, 16  ;;  %v12641_v23 = vld [vmem:[#allocation2 + $0xd0] sm:$0xf]  ;;  %v9766_v55 = vld [vmem:[#allocation2 + $0x18] sm:$0xf] }
 0x25f   : > { %4216 = vst [vmem:[#allocation2 + $0xf8] sm:$0xf] %v4215_v39  ;;  %4219 = vst [vmem:[#allocation2 + $0xfc] sm:$0x1] %v4218_v36  ;;  %v3951_v49 = vshll.u32 %v9285_v5, 16  ;;  %v4609_v41 = vrot.slane %v4607_v7, 4  ;;  %v5148_v13 = vsel %vm10077_vm2, %v5143_v10, %v5147_v52  ;;  %v9115_v29 = vcombine.low %v12641_v23, %v12636_v17 }
 0x260   : > { %v5134_v58 = vsel %vm10077_vm2, %v5129_v11, %v5133_v38  ;;  %v4610_v45 = vshll.u32 %v4282_v51, 16  ;;  %v4616_v12 = vshll.u32 %v12529_v54, 16  ;;  %v3950_v48 = vrot.slane %v3948_v6, 7  ;;  %v9765_v50 = vld [vmem:[#allocation2 + $0x10] sm:$0xf]  ;;  %v12649_v54 = vpop.permute.xlu0 %7116  ;;  %v12651_v38 = vpop.permute.xlu1 %6798 }
 0x261   : > { %v4621_v4 = vshrl.u32 %v4283_v44, 16  ;;  %v9010_v5 = vcombine.low %v9765_v50, %v9766_v55  ;;  %v4220_v30 = vld [vmem:[#allocation2 + $0x100] sm:$0xf]  ;;  %v4223_v22 = vld [vmem:[#allocation2 + $0x104] sm:$0x1]  ;;  %v12647_v11 = vcombine.low %v5134_v58, %v5148_v13  ;;  %v4624_v18 = vshll.u32 %v4283_v44, 16  ;;  %7054 = vrot.lane.b32.xlu0 %v9115_v29, %s9906_s17 }
 0x262   : > { %v4612_v51 = vrot.slane %v4610_v45, 5  ;;  %v3953_v39 = vor.u32 %v3951_v49, %v3950_v48  ;;  %v3954_v36 = vrot.slane %v3950_v48, 4  ;;  %v4630_v6 = vshll.u32 %v12547_v20, 16  ;;  %v12662_v13 = vld [vmem:[#allocation2 + $0xd4] sm:$0x1] }
 0x263   : > { %v4623_v7 = vrot.slane %v4621_v4, 4  ;;  %v14179_v10 = vshll.u32 %v12495_v63, 16  ;;  %v12660_v58 = vsel %vm2887_vm6, %v12550_v8, %v12516_v28  ;;  %v4626_v45 = vrot.slane %v4624_v18, 5  ;;  %v4796_v28 = vld [vmem:[#allocation2 + $0xd0] sm:$0xe] }
 0x264   : > { %v4613_v44 = vor.u32 %v4612_v51, %v4609_v41  ;;  %v12666_v49 = vsel %vm2821_vm4, %v9010_v5, %v12598_v1  ;;  %v14180_v20 = vshrl.u32 %v12576_v32, 16  ;;  %v4221_v63 = vsel %vm11374_vm0, %v3953_v39, %v4220_v30  ;;  %v5788_v8 = vld [vmem:[#allocation2 + $0xc4] sm:$0x1]  ;;  %v9721_v41 = vld [vmem:[%s14097_s3 + $0x88] sm:$0xff]   ;;  %v4797_v51 = vld [vmem:[#allocation2 + $0xd8] sm:$0xe] }
 0x265   : > { %v6074_v52 = vrot.slane %v14179_v10, 5  ;;  %v4224_v4 = vsel %vm11347_vm14, %v3954_v36, %v4223_v22  ;;  %v9722_v1 = vld [vmem:[%s14099_s5] sm:$0xff]   ;;  %v14181_v29 = vshll.u32 %v12576_v32, 16  ;;  %v14183_v55 = vshrl.u32 %v12583_v16, 16  ;;  %4222 = vst [vmem:[#allocation2 + $0x100] sm:$0xf] %v4221_v63  ;;  %9441 = vmatprep.subr.bf16.mxu1 %v9721_v41 }
 0x266   : > { %v12670_v48 = vrot.slane %v14180_v20, 4  ;;  %4225 = vst [vmem:[#allocation2 + $0x104] sm:$0x1] %v4224_v4  ;;  %v4614_v30 = vrot.slane %v4613_v44, 4  ;;  %v4627_v22 = vor.u32 %v4626_v45, %v4623_v7  ;;  %v14185_v18 = vshll.u32 %v12583_v16, 16  ;;  %9477 = vmatprep.subr.bf16.mxu0 %v9722_v1  ;;  %v12699_v45 = vpop.permute.xlu0 %7040  ;;  %9442 = vmatpush3.bf16.msra.mxu1 %v9721_v41 }
 0x267   : > { %v12684_v50 = vrot.slane %v14181_v29, 5  ;;  %v12688_v5 = vrot.slane %v14183_v55, 4  ;;  %v4618_v36 = vrot.slane %v4616_v12, 5  ;;  %v4632_v10 = vrot.slane %v4630_v6, 5  ;;  %v12695_v32 = vld [vmem:[#allocation2 + $0xdc] sm:$0x1]  ;;  %9478 = vmatpush3.bf16.msra.mxu0 %v9722_v1  ;;  %v12704_v6 = vpop.permute.xlu1 %6606 }
 0x268   : > { %v12692_v39 = vrot.slane %v14185_v18, 5  ;;  %v6083_v20 = vshrl.u32 %v12641_v23, 16  ;;  %v4628_v29 = vrot.slane %v4627_v22, 4  ;;  %v6086_v55 = vshll.u32 %v12641_v23, 16  ;;  %v5789_v7 = vld [vmem:[#allocation2 + $0xcc] sm:$0x1] }
 0x269   : > { %14182 = vst [vmem:[#allocation27_spill] sm:$0xff] %v12684_v50  ;;  %14184 = vst [vmem:[#allocation28_spill] sm:$0xff] %v12688_v5  ;;  %v6097_v63 = vshrl.u32 %v12636_v17, 16  ;;  %v8935_v44 = vrot.slane %v4796_v28, 9  ;;  %v4619_v16 = vsel %vm10077_vm2, %v4614_v30, %v4618_v36  ;;  %v6100_v12 = vshll.u32 %v12636_v17, 16 }
 0x26a   : > { %14186 = vst [vmem:[#allocation29_spill] sm:$0xff] %v12692_v39  ;;  %v4963_v4 = vrot.slane %v12662_v13, 5  ;;  %v8936_v22 = vrot.slane %v4797_v51, 9  ;;  %v4633_v23 = vsel %vm10077_vm2, %v4628_v29, %v4632_v10  ;;  %v4967_v28 = vrot.slane %v12695_v32, 5  ;;  %v3476_v1 = vld [vmem:[#allocation2 + $0x108] sm:$0x1] }
 0x26b   : > { %v6061_v18 = vor.u32 %v12585_v3, %v12578_v25  ;;  %v6064_v41 = vshll.u32 %v5788_v8, 16  ;;  %v9035_v39 = vcombine.low %v4619_v16, %v4633_v23  ;;  %v6075_v17 = vor.u32 %v6074_v52, %v12587_v62  ;;  %v3598_v5 = vld [vmem:[#allocation2 + $0x10c] sm:$0x1]  ;;  %v12715_v50 = vld [vmem:[#allocation2 + $0xd8] sm:$0xf] }
 0x26c   : > { %v4964_v30 = vsel %vm11547_vm11, %v8935_v44, %v4963_v4  ;;  %v6078_v36 = vshll.u32 %v5789_v7, 16  ;;  %v4968_v51 = vsel %vm11547_vm11, %v8936_v22, %v4967_v28  ;;  %v3301_v25 = vadd.f32 %v12293_v24, %v12352_v46  ;;  %v3464_v52 = vld [vmem:[#allocation2 + $0xe8] sm:$0x1]  ;;  %v12731_v46 = vld [vmem:[#allocation2 + $0xe0] sm:$0xf]  ;;  %v12734_v22 = vpop.permute.xlu0 %6928 }
 0x26d   : > { %v6062_v10 = vrot.slane %v6061_v18, 4  ;;  %v6066_v29 = vrot.slane %v6064_v41, 5  ;;  %6622 = vrot.lane.b32.xlu1 %v9035_v39, %s9908_s15  ;;  %v9052_v3 = vcombine.low %v4964_v30, %v4968_v51  ;;  %v6076_v8 = vrot.slane %v6075_v17, 4  ;;  %v12748_v41 = vld [vmem:[#allocation2 + $0x20] sm:$0xf] }
 0x26e   : > { %v6080_v16 = vrot.slane %v6078_v36, 5  ;;  %v3477_v62 = vsel %vm11347_vm14, 0, %v3476_v1  ;;  %v12727_v44 = vsel %vm2821_vm4, %v12647_v11, %v12596_v9  ;;  %v3349_v7 = vmax.f32 %v3301_v25, 0.0  ;;  %v12744_v11 = vpop.permute.xlu1 %6688  ;;  %v12750_v1 = vld [vmem:[#allocation2 + $0x28] sm:$0xf] }
 0x26f   : > { %3478 = vst [vmem:[#allocation2 + $0x108] sm:$0x1] %v3477_v62  ;;  %v3599_v4 = vsel %vm11362_vm15, 0, %v3598_v5  ;;  %v5374_v39 = vshrl.u32 %v12715_v50, 16  ;;  %v12736_v23 = vrot.slane %v6083_v20, 4  ;;  %v12738_v28 = vrot.slane %v6086_v55, 5 }
 0x270   : > { %v6067_v18 = vsel %vm10077_vm2, %v6062_v10, %v6066_v29  ;;  %v6081_v9 = vsel %vm10077_vm2, %v6076_v8, %v6080_v16  ;;  %3600 = vst [vmem:[#allocation2 + $0x10c] sm:$0x1] %v3599_v4  ;;  %v12746_v5 = vrot.slane %v6097_v63, 4  ;;  %v9286_v30 = vpack.c.bf16 %v3349_v7, %v3349_v7  ;;  %v3479_v17 = vld [vmem:[#allocation2 + $0x110] sm:$0x1] }
 0x271   : > { %v9130_v55 = vcombine.low %v6067_v18, %v6081_v9  ;;  %v3601_v36 = vld [vmem:[#allocation2 + $0x114] sm:$0x1]  ;;  %v12754_v51 = vrot.slane %v6100_v12, 5  ;;  %6704 = vrot.lane.b32.xlu1 %v9052_v3, %s9906_s17  ;;  %v3465_v29 = vsel %vm11347_vm14, 0, %v3464_v52  ;;  %v12761_v25 = vld [vmem:[#allocation2 + $0xe0] sm:$0xf]  ;;  %v9068_v12 = vcombine.low %v12715_v50, %v12731_v46 }
 0x272   : > { %v3956_v8 = vshrl.u32 %v9286_v30, 16  ;;  %v12764_v16 = vrot.slane %v5374_v39, 4  ;;  %3466 = vst [vmem:[#allocation2 + $0xe8] sm:$0x1] %v3465_v29  ;;  %v4284_v3 = vld [vmem:[#allocation2 + $0xd0] sm:$0xf]  ;;  %v3304_v7 = vadd.f32 %v12293_v24, %v12367_v53  ;;  %v7406_v39 = vsel %vm2953_vm8, %v12660_v58, %v12649_v54  ;;  %v12782_v53 = vpop.permute.xlu0 %7118  ;;  %v12787_v58 = vpop.permute.xlu1 %6800 }
 0x273   : > { %7132 = vrot.lane.b32.xlu0 %v9130_v55, %s9907_s20  ;;  %v3480_v52 = vsel %vm11347_vm14, 0, %v3479_v17  ;;  %v3602_v4 = vsel %vm11362_vm15, 0, %v3601_v36  ;;  %v4285_v18 = vld [vmem:[#allocation2 + $0xd8] sm:$0xf]  ;;  %v3959_v55 = vshll.u32 %v9286_v30, 16  ;;  %v6111_v62 = vshrl.u32 %v12761_v25, 16  ;;  %7689 = vmatprep.mubr.bf16.mxu1 %v7406_v39 }
 0x274   : > { %14187 = vst [vmem:[#allocation30_spill] sm:$0xff] %v12764_v16  ;;  %v3958_v9 = vrot.slane %v3956_v8, 7  ;;  %3481 = vst [vmem:[#allocation2 + $0x110] sm:$0x1] %v3480_v52  ;;  %v7245_v24 = vsel %vm2887_vm6, %v12666_v49, %v12526_v19  ;;  %v3350_v36 = vmax.f32 %v3304_v7, 0.0  ;;  %v4635_v30 = vshrl.u32 %v4284_v3, 16 }
 0x275   : > { %3603 = vst [vmem:[#allocation2 + $0x114] sm:$0x1] %v3602_v4  ;;  %6816 = vrot.lane.b32.xlu1 %v9068_v12, %s9907_s20  ;;  %v7278_v54 = vsel %vm2953_vm8, %v7245_v24, %v12563_v2  ;;  %v4638_v29 = vshll.u32 %v4284_v3, 16  ;;  %v4644_v39 = vshll.u32 %v12662_v13, 16  ;;  %v4649_v19 = vshrl.u32 %v4285_v18, 16 }
 0x276   : > { %v4226_v17 = vld [vmem:[#allocation2 + $0x108] sm:$0xf]  ;;  %v3961_v8 = vor.u32 %v3959_v55, %v3958_v9  ;;  %v3962_v52 = vrot.slane %v3958_v9, 4  ;;  %7690 = vmatmul.mubr.bf16.gmra.mxu1 %v7278_v54  ;;  %v9287_v49 = vpack.c.bf16 %v3350_v36, %v3350_v36  ;;  %v4637_v63 = vrot.slane %v4635_v30, 4  ;;  %v5535_v55 = vld [vmem:[#allocation2 + $0xd8] sm:$0xe]  ;;  %v12805_v16 = vpop.permute.xlu1 %6608 }
 0x277   : > { %v4229_v4 = vld [vmem:[#allocation2 + $0x10c] sm:$0x1]  ;;  %v4640_v10 = vrot.slane %v4638_v29, 5  ;;  %v4652_v20 = vshll.u32 %v4285_v18, 16  ;;  %v4651_v3 = vrot.slane %v4649_v19, 4  ;;  %v12797_v13 = vrot.slane %v6111_v62, 4 }
 0x278   : > { %v4227_v12 = vsel %vm11374_vm0, %v3961_v8, %v4226_v17  ;;  %v4230_v2 = vsel %vm11347_vm14, %v3962_v52, %v4229_v4  ;;  %v3964_v24 = vshrl.u32 %v9287_v49, 16  ;;  %v5055_v18 = vld [vmem:[#allocation2 + $0xdc] sm:$0x1]  ;;  %v3967_v30 = vshll.u32 %v9287_v49, 16  ;;  %v5056_v52 = vld [vmem:[#allocation2 + $0xe4] sm:$0x1]  ;;  %v12802_v4 = vpop.permute.xlu0 %7120 }
 0x279   : > { %4228 = vst [vmem:[#allocation2 + $0x108] sm:$0xf] %v4227_v12  ;;  %4231 = vst [vmem:[#allocation2 + $0x10c] sm:$0x1] %v4230_v2  ;;  %v12795_v9 = vld [vmem:[#allocation2 + $0xe8] sm:$0xf]  ;;  %v4641_v36 = vor.u32 %v4640_v10, %v4637_v63 }
 0x27a   : > { %v4654_v54 = vrot.slane %v4652_v20, 5  ;;  %v9116_v17 = vcombine.low %v12761_v25, %v12795_v9  ;;  %v4646_v29 = vrot.slane %v4644_v39, 5  ;;  %v4658_v8 = vshll.u32 %v12695_v32, 16  ;;  %v5536_v7 = vld [vmem:[#allocation2 + $0xe0] sm:$0xe] }
 0x27b   : > { %v3966_v12 = vrot.slane %v3964_v24, 7  ;;  %v4642_v2 = vrot.slane %v4641_v36, 4  ;;  %v14188_v20 = vcombine.low %v12748_v41, %v12750_v1  ;;  %v12817_v32 = vsel %vm2887_vm6, %v12727_v44, %v12625_v14  ;;  %v4232_v39 = vld [vmem:[#allocation2 + $0x110] sm:$0xf] }
 0x27c   : > { %v4655_v62 = vor.u32 %v4654_v54, %v4651_v3  ;;  %v6128_v63 = vshll.u32 %v12795_v9, 16  ;;  %7056 = vrot.lane.b32.xlu0 %v9116_v17, %s9906_s17  ;;  %v4235_v49 = vld [vmem:[#allocation2 + $0x114] sm:$0x1]  ;;  %v8967_v3 = vrot.slane %v5535_v55, 9  ;;  %v4660_v19 = vrot.slane %v4658_v8, 5  ;;  %v12831_v8 = vpop.permute.xlu1 %6690 }
 0x27d   : > { %v12812_v10 = vsel %vm2821_vm4, %v14188_v20, %v12704_v6  ;;  %v3969_v24 = vor.u32 %v3967_v30, %v3966_v12  ;;  %v3970_v36 = vrot.slane %v3966_v12, 4  ;;  %v4647_v6 = vsel %vm10077_vm2, %v4642_v2, %v4646_v29  ;;  %v5790_v30 = vld [vmem:[#allocation2 + $0xd4] sm:$0x1]  ;;  %v5791_v2 = vld [vmem:[#allocation2 + $0xdc] sm:$0x1] }
 0x27e   : > { %v4656_v54 = vrot.slane %v4655_v62, 4  ;;  %v5699_v41 = vrot.slane %v5055_v18, 5  ;;  %v8968_v1 = vrot.slane %v5536_v7, 9  ;;  %v5703_v20 = vrot.slane %v5056_v52, 5  ;;  %v9769_v52 = vld [vmem:[#allocation2 + $0x3c] sm:$0x1] }
 0x27f   : > { %v4233_v14 = vsel %vm11374_vm0, %v3969_v24, %v4232_v39  ;;  %v4236_v44 = vsel %vm11347_vm14, %v3970_v36, %v4235_v49  ;;  %v5156_v55 = vor.u32 %v11937_v27, %v11927_v59  ;;  %v5159_v12 = vshll.u32 %v9769_v52, 16  ;;  %v3467_v62 = vld [vmem:[#allocation2 + $0xf0] sm:$0x1]  ;;  %v9770_v49 = vld [vmem:[#allocation2 + $0x44] sm:$0x1] }
 0x280   : > { %v4661_v17 = vsel %vm10077_vm2, %v4656_v54, %v4660_v19  ;;  %4234 = vst [vmem:[#allocation2 + $0x110] sm:$0xf] %v4233_v14  ;;  %4237 = vst [vmem:[#allocation2 + $0x114] sm:$0x1] %v4236_v44  ;;  %v5700_v7 = vsel %vm11547_vm11, %v8967_v3, %v5699_v41  ;;  %v5704_v29 = vsel %vm11547_vm11, %v8968_v1, %v5703_v20  ;;  %v12837_v19 = vpop.permute.xlu0 %6930  ;;  %v5173_v24 = vshll.u32 %v9770_v49, 16 }
 0x281   : > { %v9036_v18 = vcombine.low %v4647_v6, %v4661_v17  ;;  %v9100_v39 = vcombine.low %v5700_v7, %v5704_v29  ;;  %v5157_v59 = vrot.slane %v5156_v55, 4  ;;  %v5170_v27 = vor.u32 %v11943_v57, %v11941_v15  ;;  %v3589_v41 = vld [vmem:[#allocation2 + $0xf4] sm:$0x1]  ;;  %v3482_v1 = vld [vmem:[#allocation2 + $0x118] sm:$0x1] }
 0x282   : > { %v5161_v36 = vrot.slane %v5159_v12, 5  ;;  %v6089_v3 = vor.u32 %v12738_v28, %v12736_v23  ;;  %v6092_v54 = vshll.u32 %v5790_v30, 16  ;;  %v6103_v6 = vor.u32 %v12754_v51, %v12746_v5  ;;  %v3604_v57 = vld [vmem:[#allocation2 + $0x11c] sm:$0x1]  ;;  %v3586_v30 = vld [vmem:[#allocation2 + $0xec] sm:$0x1] }
 0x283   : > { %6624 = vrot.lane.b32.xlu1 %v9036_v18, %s9908_s15  ;;  %6944 = vrot.lane.b32.xlu0 %v9100_v39, %s9908_s15  ;;  %v5171_v20 = vrot.slane %v5170_v27, 4  ;;  %v5175_v14 = vrot.slane %v5173_v24, 5  ;;  %v6106_v44 = vshll.u32 %v5791_v2, 16  ;;  %v3468_v15 = vsel %vm11347_vm14, 0, %v3467_v62  ;;  %v12857_v52 = vld [vmem:[#allocation2 + $0xfc] sm:$0x1] }
 0x284   : > { %v14189_v17 = vshll.u32 %v12761_v25, 16  ;;  %v6090_v18 = vrot.slane %v6089_v3, 4  ;;  %v6094_v23 = vrot.slane %v6092_v54, 5  ;;  %v6104_v28 = vrot.slane %v6103_v6, 4  ;;  %3469 = vst [vmem:[#allocation2 + $0xf0] sm:$0x1] %v3468_v15  ;;  %v12859_v25 = vpop.permute.xlu1 %6802  ;;  %v12865_v24 = vpop.permute.xlu0 %7042 }
 0x285   : > { %v5162_v5 = vsel %vm10077_vm2, %v5157_v59, %v5161_v36  ;;  %v5176_v51 = vsel %vm10077_vm2, %v5171_v20, %v5175_v14  ;;  %v6108_v7 = vrot.slane %v6106_v44, 5  ;;  %v3590_v29 = vsel %vm11362_vm15, 0, %v3589_v41  ;;  %v4799_v12 = vld [vmem:[#allocation2 + $0xf8] sm:$0xe]  ;;  %v5792_v49 = vld [vmem:[#allocation2 + $0xe4] sm:$0x1] }
 0x286   : > { %v6116_v55 = vrot.slane %v14189_v17, 5  ;;  %v14190_v2 = vshrl.u32 %v12795_v9, 16  ;;  %v6130_v39 = vrot.slane %v6128_v63, 5  ;;  %v9076_v27 = vcombine.low %v5162_v5, %v5176_v51  ;;  %3591 = vst [vmem:[#allocation2 + $0xf4] sm:$0x1] %v3590_v29 }
 0x287   : > { %v6095_v59 = vsel %vm10077_vm2, %v6090_v18, %v6094_v23  ;;  %v6109_v36 = vsel %vm10077_vm2, %v6104_v28, %v6108_v7  ;;  %v12872_v3 = vld [vmem:[%s14096_s2] ss:$0 sm:$0xff]  ;;  %v3483_v63 = vsel %vm11347_vm14, 0, %v3482_v1  ;;  %v3605_v54 = vsel %vm11362_vm15, 0, %v3604_v57  ;;  %v12899_v5 = vld [vmem:[#allocation2 + $0xf8] sm:$0xf] }
 0x288   : > { %v6127_v62 = vrot.slane %v14190_v2, 4  ;;  %v3309_v9 = vadd.f32 %v12872_v3, %v12420_v40  ;;  %v9131_v6 = vcombine.low %v6095_v59, %v6109_v36  ;;  %v8938_v41 = vrot.slane %v4799_v12, 9  ;;  %3484 = vst [vmem:[#allocation2 + $0x118] sm:$0x1] %v3483_v63  ;;  %3606 = vst [vmem:[#allocation2 + $0x11c] sm:$0x1] %v3605_v54  ;;  %v12901_v51 = vpop.permute.xlu0 %6932 }
 0x289   : > { %v4975_v20 = vrot.slane %v12857_v52, 5  ;;  %v3587_v14 = vsel %vm11362_vm15, 0, %v3586_v30  ;;  %v14191_v44 = vshll.u32 %v12715_v50, 16  ;;  %v4798_v40 = vld [vmem:[#allocation2 + $0xf0] sm:$0xe]  ;;  %v6117_v1 = vor.u32 %v6116_v55, %v12797_v13  ;;  %v9728_v36 = vld [vmem:[%s14097_s3 + $0x80] sm:$0xff]  }
 0x28a   : > { %v3351_v17 = vmax.f32 %v3309_v9, 0.0  ;;  %3588 = vst [vmem:[#allocation2 + $0xec] sm:$0x1] %v3587_v14  ;;  %v6120_v18 = vshll.u32 %v5792_v49, 16  ;;  %v14193_v57 = vshrl.u32 %v12731_v46, 16  ;;  %7134 = vrot.lane.b32.xlu0 %v9131_v6, %s9907_s20  ;;  %v6131_v28 = vor.u32 %v6130_v39, %v6127_v62  ;;  %9443 = vmatprep.subr.bf16.mxu1 %v9728_v36 }
 0x28b   : > { %v12885_v15 = vrot.slane %v14191_v44, 5  ;;  %v7409_v30 = vsel %vm2953_vm8, %v12817_v32, %v12782_v53  ;;  %v7247_v50 = vsel %vm2887_vm6, %v12812_v10, %v12627_v34  ;;  %v14195_v13 = vshll.u32 %v12731_v46, 16  ;;  %v12907_v7 = vld [vmem:[#allocation2 + $0x30] sm:$0xf]  ;;  %v12909_v29 = vld [vmem:[#allocation2 + $0x38] sm:$0xf]  ;;  %v12915_v10 = vpop.permute.xlu1 %6610  ;;  %9444 = vmatpush3.bf16.msra.mxu1 %v9728_v36 }
 0x28c   : > { %v12890_v23 = vrot.slane %v14193_v57, 4  ;;  %v9288_v53 = vpack.c.bf16 %v3351_v17, %v3351_v17  ;;  %v12913_v32 = vrot.slane %v6117_v1, 4  ;;  %7697 = vmatprep.mubr.bf16.mxu1 %v7409_v30  ;;  %v3485_v34 = vld [vmem:[#allocation2 + $0x120] sm:$0x1]  ;;  %v7333_v2 = vsel %vm2821_vm4, %v9076_v27, %v12734_v22  ;;  %v3607_v49 = vld [vmem:[#allocation2 + $0x124] sm:$0x1]  ;;  %v12935_v1 = vpop.permute.xlu0 %7044 }
 0x28d   : > { %14192 = vst [vmem:[#allocation31_spill] sm:$0xff] %v12885_v15  ;;  %v12905_v55 = vrot.slane %v14195_v13, 5  ;;  %v8937_v46 = vrot.slane %v4798_v40, 9  ;;  %v4976_v62 = vsel %vm11547_vm11, %v8938_v41, %v4975_v20  ;;  %v7281_v39 = vsel %vm2953_vm8, %v7247_v50, %v12651_v38  ;;  %v12923_v59 = vld [vmem:[#allocation2 + $0x100] sm:$0xf] }
 0x28e   : > { %14194 = vst [vmem:[#allocation32_spill] sm:$0xff] %v12890_v23  ;;  %v12928_v9 = vld [vmem:[#allocation2 + $0xf4] sm:$0x1]  ;;  %v3972_v63 = vshrl.u32 %v9288_v53, 16  ;;  %v6122_v54 = vrot.slane %v6120_v18, 5  ;;  %7698 = vmatmul.mubr.bf16.gmra.mxu1 %v7281_v39  ;;  %v3975_v20 = vshll.u32 %v9288_v53, 16  ;;  %v3312_v44 = vadd.f32 %v12872_v3, %v12453_v35 }
 0x28f   : > { %14196 = vst [vmem:[#allocation33_spill] sm:$0xff] %v12905_v55  ;;  %v5057_v6 = vld [vmem:[#allocation2 + $0xfc] sm:$0x1]  ;;  %v5537_v41 = vld [vmem:[#allocation2 + $0xf8] sm:$0xe]  ;;  %v4971_v38 = vrot.slane %v12928_v9, 5  ;;  %v9069_v13 = vcombine.low %v12899_v5, %v12923_v59  ;;  %v12950_v55 = vpop.permute.xlu1 %6692 }
 0x290   : > { %v6132_v14 = vrot.slane %v6131_v28, 4  ;;  %v5058_v40 = vld [vmem:[#allocation2 + $0x104] sm:$0x1]  ;;  %v5538_v17 = vld [vmem:[#allocation2 + $0x100] sm:$0xe]  ;;  %v3974_v18 = vrot.slane %v3972_v63, 7  ;;  %v6123_v50 = vsel %vm10077_vm2, %v12913_v32, %v6122_v54  ;;  %v7377_v28 = vsel %vm2887_vm6, %v7333_v2, %v12699_v45 }
 0x291   : > { %v4238_v57 = vld [vmem:[#allocation2 + $0x118] sm:$0xf]  ;;  %v4241_v30 = vld [vmem:[#allocation2 + $0x11c] sm:$0x1]  ;;  %v4972_v35 = vsel %vm11547_vm11, %v8937_v46, %v4971_v38  ;;  %v5793_v53 = vld [vmem:[#allocation2 + $0xec] sm:$0x1] }
 0x292   : > { %v3352_v39 = vmax.f32 %v3312_v44, 0.0  ;;  %v3486_v63 = vsel %vm11347_vm14, 0, %v3485_v34  ;;  %v3608_v27 = vsel %vm11362_vm15, 0, %v3607_v49  ;;  %v9053_v22 = vcombine.low %v4972_v35, %v4976_v62  ;;  %v4286_v38 = vld [vmem:[#allocation2 + $0xf0] sm:$0xf] }
 0x293   : > { %v3977_v32 = vor.u32 %v3975_v20, %v3974_v18  ;;  %v3978_v54 = vrot.slane %v3974_v18, 4  ;;  %v6134_v12 = vshll.u32 %v5793_v53, 16  ;;  %3487 = vst [vmem:[#allocation2 + $0x120] sm:$0x1] %v3486_v63  ;;  %3609 = vst [vmem:[#allocation2 + $0x124] sm:$0x1] %v3608_v27 }
 0x294   : > { %v9289_v45 = vpack.c.bf16 %v3352_v39, %v3352_v39  ;;  %v8969_v2 = vrot.slane %v5537_v41, 9  ;;  %v5707_v36 = vrot.slane %v5057_v6, 5  ;;  %v8970_v46 = vrot.slane %v5538_v17, 9  ;;  %6706 = vrot.lane.b32.xlu1 %v9053_v22, %s9906_s17  ;;  %v4287_v6 = vld [vmem:[#allocation2 + $0xf8] sm:$0xf]  ;;  %v14197_v17 = vld [vmem:[#allocation8_spill] sm:$0xff]  ;;  %v12961_v22 = vpop.permute.xlu0 %7122 }
 0x295   : > { %v4239_v34 = vsel %vm11374_vm0, %v3977_v32, %v4238_v57  ;;  %v4242_v62 = vsel %vm11347_vm14, %v3978_v54, %v4241_v30  ;;  %v6136_v49 = vrot.slane %v6134_v12, 5  ;;  %v5711_v20 = vrot.slane %v5058_v40, 5  ;;  %v14198_v18 = vld [vmem:[#allocation9_spill] sm:$0xff] }
 0x296   : > { %4240 = vst [vmem:[#allocation2 + $0x118] sm:$0xf] %v4239_v34  ;;  %4243 = vst [vmem:[#allocation2 + $0x11c] sm:$0x1] %v4242_v62  ;;  %v3980_v27 = vshrl.u32 %v9289_v45, 16  ;;  %v3983_v44 = vshll.u32 %v9289_v45, 16  ;;  %v7412_v41 = vsel %vm2953_vm8, %v7377_v28, %v12802_v4  ;;  %v5184_v35 = vor.u32 %v14198_v18, %v14197_v17 }
 0x297   : > { %v6137_v57 = vsel %vm10077_vm2, %v6132_v14, %v6136_v49  ;;  %v5708_v12 = vsel %vm11547_vm11, %v8969_v2, %v5707_v36  ;;  %7705 = vmatprep.mubr.bf16.mxu1 %v7412_v41  ;;  %v4663_v40 = vshrl.u32 %v4286_v38, 16  ;;  %v4666_v30 = vshll.u32 %v4286_v38, 16  ;;  %v12971_v14 = vpop.permute.xlu1 %6804  ;;  %v14199_v62 = vld [vmem:[#allocation10_spill] sm:$0xff]  ;;  %v14200_v49 = vld [vmem:[#allocation11_spill] sm:$0xff] }
 0x298   : > { %v9132_v53 = vcombine.low %v6123_v50, %v6137_v57  ;;  %v3982_v39 = vrot.slane %v3980_v27, 7  ;;  %v5712_v4 = vsel %vm11547_vm11, %v8970_v46, %v5711_v20  ;;  %v4672_v28 = vshll.u32 %v12928_v9, 16  ;;  %6818 = vrot.lane.b32.xlu1 %v9069_v13, %s9907_s20  ;;  %v12981_v57 = vld [vmem:[#allocation2 + $0x108] sm:$0xf] }
 0x299   : > { %v4665_v63 = vrot.slane %v4663_v40, 4  ;;  %v4668_v32 = vrot.slane %v4666_v30, 5  ;;  %v4677_v54 = vshrl.u32 %v4287_v6, 16  ;;  %v4680_v45 = vshll.u32 %v4287_v6, 16  ;;  %v12983_v40 = vpop.permute.xlu0 %6934 }
 0x29a   : > { %7136 = vrot.lane.b32.xlu0 %v9132_v53, %s9907_s20  ;;  %v3985_v2 = vor.u32 %v3983_v44, %v3982_v39  ;;  %v3986_v36 = vrot.slane %v3982_v39, 4  ;;  %v4244_v38 = vld [vmem:[#allocation2 + $0x120] sm:$0xf]  ;;  %v4247_v50 = vld [vmem:[#allocation2 + $0x124] sm:$0x1]  ;;  %v4674_v34 = vrot.slane %v4672_v28, 5  ;;  %v5198_v46 = vor.u32 %v14200_v49, %v14199_v62 }
 0x29b   : > { %v4669_v20 = vor.u32 %v4668_v32, %v4665_v63  ;;  %v4679_v9 = vrot.slane %v4677_v54, 4  ;;  %v4682_v27 = vrot.slane %v4680_v45, 5  ;;  %v4686_v13 = vshll.u32 %v12857_v52, 16  ;;  %v9774_v44 = vld [vmem:[#allocation2 + $0x5c] sm:$0x1]  ;;  %v12995_v62 = vpop.permute.xlu1 %6612 }
 0x29c   : > { %v4245_v41 = vsel %vm11374_vm0, %v3985_v2, %v4244_v38  ;;  %v4248_v6 = vsel %vm11347_vm14, %v3986_v36, %v4247_v50  ;;  %v9101_v17 = vcombine.low %v5708_v12, %v5712_v4  ;;  %v5187_v18 = vshll.u32 %v9774_v44, 16  ;;  %v9775_v32 = vld [vmem:[#allocation2 + $0x64] sm:$0x1]  ;;  %v5762_v45 = vld [vmem:[#allocation2 + $0x100] sm:$0xf] }
 0x29d   : > { %v5416_v30 = vshrl.u32 %v12923_v59, 16  ;;  %4246 = vst [vmem:[#allocation2 + $0x120] sm:$0xf] %v4245_v41  ;;  %4249 = vst [vmem:[#allocation2 + $0x124] sm:$0x1] %v4248_v6  ;;  %v4670_v53 = vrot.slane %v4669_v20, 4  ;;  %v4683_v39 = vor.u32 %v4682_v27, %v4679_v9  ;;  %v14201_v28 = vcombine.low %v12907_v7, %v12909_v29 }
 0x29e   : > { %v5185_v52 = vrot.slane %v5184_v35, 4  ;;  %6946 = vrot.lane.b32.xlu0 %v9101_v17, %s9908_s15  ;;  %v4688_v12 = vrot.slane %v4686_v13, 5  ;;  %v5199_v4 = vrot.slane %v5198_v46, 4  ;;  %v5201_v54 = vshll.u32 %v9775_v32, 16  ;;  %v4800_v50 = vld [vmem:[#allocation2 + $0x100] sm:$0xe] }
 0x29f   : > { %v7205_v63 = vsel %vm2821_vm4, %v14201_v28, %v12805_v16  ;;  %v4675_v2 = vsel %vm10077_vm2, %v4670_v53, %v4674_v34  ;;  %v4684_v36 = vrot.slane %v4683_v39, 4  ;;  %v5189_v38 = vrot.slane %v5187_v18, 5  ;;  %v13006_v9 = vld [vmem:[#allocation2 + $0x104] sm:$0x1]  ;;  %v3488_v34 = vld [vmem:[#allocation2 + $0x128] sm:$0x1]  ;;  %v13021_v28 = vpop.permute.xlu0 %7046 }
 0x2a0   : > { %v9117_v35 = vcombine.low %v5762_v45, %v12981_v57  ;;  %v14202_v7 = vshrl.u32 %v12899_v5, 16  ;;  %v14204_v29 = vshll.u32 %v12899_v5, 16  ;;  %v5419_v46 = vshll.u32 %v12923_v59, 16  ;;  %v13014_v17 = vld [vmem:[#allocation2 + $0x10c] sm:$0x1] }
 0x2a1   : > { %v5203_v20 = vrot.slane %v5201_v54, 5  ;;  %v13008_v27 = vrot.slane %v5416_v30, 4  ;;  %v4689_v13 = vsel %vm10077_vm2, %v4684_v36, %v4688_v12  ;;  %v5190_v41 = vsel %vm10077_vm2, %v5185_v52, %v5189_v38  ;;  %v4801_v5 = vld [vmem:[#allocation2 + $0x108] sm:$0xe]  ;;  %v3610_v53 = vld [vmem:[#allocation2 + $0x12c] sm:$0x1]  ;;  %v13030_v36 = vpop.permute.xlu1 %6694 }
 0x2a2   : > { %v12999_v16 = vrot.slane %v14202_v7, 4  ;;  %v13003_v49 = vrot.slane %v14204_v29, 5  ;;  %v6139_v6 = vshrl.u32 %v5762_v45, 16  ;;  %v9037_v44 = vcombine.low %v4675_v2, %v4689_v13  ;;  %7058 = vrot.lane.b32.xlu0 %v9117_v35, %s9906_s17  ;;  %v5539_v39 = vld [vmem:[#allocation2 + $0x108] sm:$0xe] }
 0x2a3   : > { %14206 = vst [vmem:[#allocation10_spill] sm:$0xff] %v13008_v27  ;;  %v5204_v59 = vsel %vm10077_vm2, %v5199_v4, %v5203_v20  ;;  %v7249_v18 = vsel %vm2887_vm6, %v7205_v63, %v12744_v11  ;;  %v8939_v30 = vrot.slane %v4800_v50, 9  ;;  %v6142_v52 = vshll.u32 %v5762_v45, 16  ;;  %v13028_v2 = vld [vmem:[#allocation2 + $0x10c] sm:$0x1] }
 0x2a4   : > { %14203 = vst [vmem:[#allocation8_spill] sm:$0xff] %v12999_v16  ;;  %14205 = vst [vmem:[#allocation9_spill] sm:$0xff] %v13003_v49  ;;  %v13023_v12 = vcombine.low %v5190_v41, %v5204_v59  ;;  %v6153_v32 = vshrl.u32 %v12981_v57, 16  ;;  %v7284_v54 = vsel %vm2953_vm8, %v7249_v18, %v12787_v58  ;;  %v5060_v4 = vld [vmem:[#allocation2 + $0x114] sm:$0x1]  ;;  %6626 = vrot.lane.b32.xlu1 %v9037_v44, %s9908_s15  ;;  %v4979_v11 = vrot.slane %v13006_v9, 5 }
 0x2a5   : > { %14207 = vst [vmem:[#allocation11_spill] sm:$0xff] %v13028_v2  ;;  %7706 = vmatmul.mubr.bf16.gmra.mxu1 %v7284_v54  ;;  %v8940_v63 = vrot.slane %v4801_v5, 9  ;;  %v4983_v38 = vrot.slane %v13014_v17, 5  ;;  %v3317_v45 = vadd.f32 %v12872_v3, %v12503_v42  ;;  %v5540_v35 = vld [vmem:[#allocation2 + $0x110] sm:$0xe]  ;;  %v6156_v50 = vshll.u32 %v12981_v57, 16 }
 0x2a6   : > { %v3489_v58 = vsel %vm11347_vm14, 0, %v3488_v34  ;;  %v3611_v7 = vsel %vm11362_vm15, 0, %v3610_v53  ;;  %v8971_v29 = vrot.slane %v5539_v39, 9  ;;  %v13042_v20 = vrot.slane %v5419_v46, 5  ;;  %v13049_v59 = vld [vmem:[#allocation2 + $0x108] sm:$0xf] }
 0x2a7   : > { %v4980_v13 = vsel %vm11547_vm11, %v8939_v30, %v4979_v11  ;;  %v4984_v41 = vsel %vm11547_vm11, %v8940_v63, %v4983_v38  ;;  %v3353_v5 = vmax.f32 %v3317_v45, 0.0  ;;  %3490 = vst [vmem:[#allocation2 + $0x128] sm:$0x1] %v3489_v58  ;;  %3612 = vst [vmem:[#allocation2 + $0x12c] sm:$0x1] %v3611_v7  ;;  %v5715_v57 = vrot.slane %v13028_v2, 5  ;;  %v13057_v63 = vpop.permute.xlu0 %7124  ;;  %v13068_v58 = vpop.permute.xlu1 %6806 }
 0x2a8   : > { %14208 = vst [vmem:[#allocation34_spill] sm:$0xff] %v13042_v20  ;;  %v9054_v42 = vcombine.low %v4980_v13, %v4984_v41  ;;  %v8972_v44 = vrot.slane %v5540_v35, 9  ;;  %v5719_v34 = vrot.slane %v5060_v4, 5  ;;  %v9776_v18 = vld [vmem:[#allocation2 + $0x50] sm:$0xf]  ;;  %v13051_v39 = vrot.slane %v6139_v6, 4 }
 0x2a9   : > { %v9777_v53 = vld [vmem:[#allocation2 + $0x58] sm:$0xf]  ;;  %v13053_v54 = vrot.slane %v6142_v52, 5  ;;  %v9290_v30 = vpack.c.bf16 %v3353_v5, %v3353_v5  ;;  %v13055_v11 = vld [vmem:[#allocation2 + $0x110] sm:$0xf]  ;;  %v13059_v38 = vrot.slane %v6153_v32, 4  ;;  %v5716_v4 = vsel %vm11547_vm11, %v8971_v29, %v5715_v57 }
 0x2aa   : > { %v9013_v46 = vcombine.low %v9776_v18, %v9777_v53  ;;  %v13061_v45 = vrot.slane %v6156_v50, 5  ;;  %6708 = vrot.lane.b32.xlu1 %v9054_v42, %s9906_s17  ;;  %v5720_v6 = vsel %vm11547_vm11, %v8972_v44, %v5719_v34  ;;  %v3491_v35 = vld [vmem:[#allocation2 + $0x130] sm:$0x1]  ;;  %v3613_v52 = vld [vmem:[#allocation2 + $0x134] sm:$0x1]  ;;  %v9070_v42 = vcombine.low %v13049_v59, %v13055_v11  ;;  %v14210_v53 = vld [vmem:[#allocation13_spill] sm:$0xff] }
 0x2ab   : > { %v3988_v7 = vshrl.u32 %v9290_v30, 16  ;;  %v9102_v13 = vcombine.low %v5716_v4, %v5720_v6  ;;  %v3991_v50 = vshll.u32 %v9290_v30, 16  ;;  %v3320_v29 = vadd.f32 %v12872_v3, %v12539_v33  ;;  %v14209_v18 = vld [vmem:[#allocation12_spill] sm:$0xff]  ;;  %v4288_v4 = vld [vmem:[#allocation2 + $0x100] sm:$0xf]  ;;  %v13091_v27 = vpop.permute.xlu0 %7048 }
 0x2ac   : > { %v3492_v44 = vsel %vm11347_vm14, 0, %v3491_v35  ;;  %v3614_v34 = vsel %vm11362_vm15, 0, %v3613_v52  ;;  %v5212_v30 = vor.u32 %v14210_v53, %v14209_v18  ;;  %v13086_v6 = vsel %vm2821_vm4, %v9013_v46, %v12915_v10  ;;  %v9778_v3 = vld [vmem:[#allocation2 + $0x6c] sm:$0x1]  ;;  %v9779_v53 = vld [vmem:[#allocation2 + $0x74] sm:$0x1] }
 0x2ad   : > { %v3990_v57 = vrot.slane %v3988_v7, 7  ;;  %6948 = vrot.lane.b32.xlu0 %v9102_v13, %s9908_s15  ;;  %v3354_v33 = vmax.f32 %v3320_v29, 0.0  ;;  %3493 = vst [vmem:[#allocation2 + $0x130] sm:$0x1] %v3492_v44  ;;  %3615 = vst [vmem:[#allocation2 + $0x134] sm:$0x1] %v3614_v34  ;;  %v13093_v29 = vpop.permute.xlu1 %6614 }
 0x2ae   : > { %v4250_v5 = vld [vmem:[#allocation2 + $0x128] sm:$0xf]  ;;  %v4253_v32 = vld [vmem:[#allocation2 + $0x12c] sm:$0x1]  ;;  %6820 = vrot.lane.b32.xlu1 %v9070_v42, %s9907_s20  ;;  %v5215_v35 = vshll.u32 %v9778_v3, 16  ;;  %v14211_v7 = vld [vmem:[#allocation14_spill] sm:$0xff] }
 0x2af   : > { %v14212_v13 = vld [vmem:[#allocation15_spill] sm:$0xff]  ;;  %v3993_v41 = vor.u32 %v3991_v50, %v3990_v57  ;;  %v3994_v2 = vrot.slane %v3990_v57, 4  ;;  %v5213_v18 = vrot.slane %v5212_v30, 4  ;;  %v5229_v20 = vshll.u32 %v9779_v53, 16  ;;  %v13286_v15 = vld [vmem:[#allocation2 + $0x120] sm:$0xf] }
 0x2b0   : > { %v5226_v52 = vor.u32 %v14212_v13, %v14211_v7  ;;  %v9291_v10 = vpack.c.bf16 %v3354_v33, %v3354_v33  ;;  %v5217_v46 = vrot.slane %v5215_v35, 5  ;;  %v4289_v16 = vld [vmem:[#allocation2 + $0x108] sm:$0xf]  ;;  %v4691_v42 = vshrl.u32 %v4288_v4, 16 }
 0x2b1   : > { %v4251_v44 = vsel %vm11374_vm0, %v3993_v41, %v4250_v5  ;;  %v4254_v34 = vsel %vm11347_vm14, %v3994_v2, %v4253_v32  ;;  %v5231_v50 = vrot.slane %v5229_v20, 5  ;;  %v4694_v57 = vshll.u32 %v4288_v4, 16  ;;  %v13107_v32 = vld [vmem:[#allocation2 + $0x118] sm:$0xf] }
 0x2b2   : > { %v5227_v49 = vrot.slane %v5226_v52, 4  ;;  %4252 = vst [vmem:[#allocation2 + $0x128] sm:$0xf] %v4251_v44  ;;  %4255 = vst [vmem:[#allocation2 + $0x12c] sm:$0x1] %v4254_v34  ;;  %v5447_v30 = vshll.u32 %v13055_v11, 16  ;;  %v5218_v7 = vsel %vm10077_vm2, %v5213_v18, %v5217_v46  ;;  %v7336_v4 = vsel %vm2821_vm4, %v13023_v12, %v12837_v19  ;;  %v13113_v44 = vpop.permute.xlu0 %6936 }
 0x2b3   : > { %v3996_v3 = vshrl.u32 %v9291_v10, 16  ;;  %v3999_v33 = vshll.u32 %v9291_v10, 16  ;;  %v4693_v35 = vrot.slane %v4691_v42, 4  ;;  %v4696_v52 = vrot.slane %v4694_v57, 5  ;;  %v5764_v57 = vld [vmem:[#allocation2 + $0x110] sm:$0xf] }
 0x2b4   : > { %v5232_v13 = vsel %vm10077_vm2, %v5227_v49, %v5231_v50  ;;  %v4705_v41 = vshrl.u32 %v4289_v16, 16  ;;  %v4700_v2 = vshll.u32 %v13006_v9, 16  ;;  %v4708_v20 = vshll.u32 %v4289_v16, 16  ;;  %v4256_v10 = vld [vmem:[#allocation2 + $0x130] sm:$0xf] }
 0x2b5   : > { %v3998_v5 = vrot.slane %v3996_v3, 7  ;;  %v13104_v53 = vcombine.low %v5218_v7, %v5232_v13  ;;  %v4259_v42 = vld [vmem:[#allocation2 + $0x134] sm:$0x1]  ;;  %v4697_v18 = vor.u32 %v4696_v52, %v4693_v35  ;;  %v4714_v49 = vshll.u32 %v13014_v17, 16  ;;  %v13119_v3 = vpop.permute.xlu1 %6696  ;;  %v4802_v52 = vld [vmem:[#allocation2 + $0x110] sm:$0xe] }
 0x2b6   : > { %v4707_v46 = vrot.slane %v4705_v41, 4  ;;  %v13117_v34 = vsel %vm2887_vm6, %v7336_v4, %v12865_v24  ;;  %v4710_v50 = vrot.slane %v4708_v20, 5  ;;  %v14213_v19 = vshrl.u32 %v13049_v59, 16  ;;  %v13138_v4 = vld [vmem:[#allocation2 + $0x114] sm:$0x1] }
 0x2b7   : > { %v4001_v9 = vor.u32 %v3999_v33, %v3998_v5  ;;  %v4002_v16 = vrot.slane %v3998_v5, 4  ;;  %v14215_v35 = vshll.u32 %v13049_v59, 16  ;;  %v14217_v17 = vshrl.u32 %v13055_v11, 16  ;;  %v13140_v59 = vld [vmem:[#allocation2 + $0x11c] sm:$0x1] }
 0x2b8   : > { %v13123_v12 = vrot.slane %v14213_v19, 4  ;;  %v4698_v24 = vrot.slane %v4697_v18, 4  ;;  %v4711_v5 = vor.u32 %v4710_v50, %v4707_v46  ;;  %v9118_v20 = vcombine.low %v5764_v57, %v13107_v32  ;;  %v4803_v19 = vld [vmem:[#allocation2 + $0x118] sm:$0xe] }
 0x2b9   : > { %v13127_v7 = vrot.slane %v14215_v35, 5  ;;  %v13131_v13 = vrot.slane %v14217_v17, 4  ;;  %v4257_v33 = vsel %vm11374_vm0, %v4001_v9, %v4256_v10  ;;  %v4260_v41 = vsel %vm11347_vm14, %v4002_v16, %v4259_v42  ;;  %v9780_v17 = vld [vmem:[#allocation2 + $0x60] sm:$0xf]  ;;  %v5794_v9 = vld [vmem:[#allocation2 + $0x104] sm:$0x1] }
 0x2ba   : > { %14214 = vst [vmem:[#allocation12_spill] sm:$0xff] %v13123_v12  ;;  %v13142_v35 = vrot.slane %v5447_v30, 5  ;;  %4258 = vst [vmem:[#allocation2 + $0x130] sm:$0xf] %v4257_v33  ;;  %v4702_v11 = vrot.slane %v4700_v2, 5  ;;  %v4716_v18 = vrot.slane %v4714_v49, 5  ;;  %v9014_v10 = vcombine.low %v9780_v17, %v9781_v47  ;;  %7060 = vrot.lane.b32.xlu0 %v9118_v20, %s9906_s17  ;;  %v13149_v49 = vpop.permute.xlu0 %7126  ;;  %v13156_v20 = vpop.permute.xlu1 %6808 }
 0x2bb   : > { %14216 = vst [vmem:[#allocation13_spill] sm:$0xff] %v13127_v7  ;;  %14218 = vst [vmem:[#allocation14_spill] sm:$0xff] %v13131_v13  ;;  %v4712_v13 = vrot.slane %v4711_v5, 4  ;;  %v6167_v42 = vshrl.u32 %v5764_v57, 16  ;;  %v6170_v46 = vshll.u32 %v5764_v57, 16  ;;  %v8941_v16 = vrot.slane %v4802_v52, 9 }
 0x2bc   : > { %14219 = vst [vmem:[#allocation15_spill] sm:$0xff] %v13142_v35  ;;  %4261 = vst [vmem:[#allocation2 + $0x134] sm:$0x1] %v4260_v41  ;;  %v4703_v50 = vsel %vm10077_vm2, %v4698_v24, %v4702_v11  ;;  %v4987_v30 = vrot.slane %v13138_v4, 5  ;;  %v8942_v35 = vrot.slane %v4803_v19, 9  ;;  %v4991_v33 = vrot.slane %v13140_v59, 5 }
 0x2bd   : > { %v5795_v2 = vld [vmem:[#allocation2 + $0x10c] sm:$0x1]  ;;  %v4717_v41 = vsel %vm10077_vm2, %v4712_v13, %v4716_v18  ;;  %v6181_v5 = vshrl.u32 %v13107_v32, 16  ;;  %v6145_v57 = vor.u32 %v13053_v54, %v13051_v39  ;;  %v6148_v52 = vshll.u32 %v5794_v9, 16  ;;  %v13169_v47 = vld [vmem:[#allocation2 + $0x11c] sm:$0x1] }
 0x2be   : > { %v9038_v24 = vcombine.low %v4703_v50, %v4717_v41  ;;  %v6184_v11 = vshll.u32 %v13107_v32, 16  ;;  %v4992_v19 = vsel %vm11547_vm11, %v8942_v35, %v4991_v33  ;;  %v6159_v17 = vor.u32 %v13061_v45, %v13059_v38  ;;  %14220 = vst [vmem:[#allocation35_spill] sm:$0xff] %v13169_v47  ;;  %v5541_v9 = vld [vmem:[#allocation2 + $0x118] sm:$0xe]  ;;  %v13175_v50 = vld [vmem:[#allocation2 + $0x120] sm:$0xf] }
 0x2bf   : > { %v13165_v13 = vsel %vm2821_vm4, %v9014_v10, %v12995_v62  ;;  %v4988_v18 = vsel %vm11547_vm11, %v8941_v16, %v4987_v30  ;;  %v6146_v39 = vrot.slane %v6145_v57, 4  ;;  %v6162_v54 = vshll.u32 %v5795_v2, 16  ;;  %v5542_v62 = vld [vmem:[#allocation2 + $0x120] sm:$0xe]  ;;  %v13185_v2 = vld [vmem:[#allocation2 + $0x124] sm:$0x1] }
 0x2c0   : > { %v7339_v32 = vsel %vm2821_vm4, %v13104_v53, %v12901_v51  ;;  %6628 = vrot.lane.b32.xlu1 %v9038_v24, %s9908_s15  ;;  %v9055_v35 = vcombine.low %v4988_v18, %v4992_v19  ;;  %v6150_v38 = vrot.slane %v6148_v52, 5  ;;  %v6160_v45 = vrot.slane %v6159_v17, 4  ;;  %14221 = vst [vmem:[#allocation36_spill] sm:$0xff] %v13185_v2  ;;  %v13193_v57 = vld [vmem:[#allocation2 + $0x118] sm:$0xf]  ;;  %v13195_v52 = vpop.permute.xlu0 %7128 }
 0x2c1   : > { %v13177_v10 = vrot.slane %v6167_v42, 4  ;;  %v13179_v16 = vrot.slane %v6170_v46, 5  ;;  %v13183_v30 = vsel %vm2887_vm6, %v7339_v32, %v12935_v1  ;;  %v6164_v33 = vrot.slane %v6162_v54, 5  ;;  %v13202_v19 = vld [vmem:[#allocation2 + $0x110] sm:$0xf] }
 0x2c2   : > { %v13187_v51 = vrot.slane %v6181_v5, 4  ;;  %v13189_v53 = vrot.slane %v6184_v11, 5  ;;  %v6151_v41 = vsel %vm10077_vm2, %v6146_v39, %v6150_v38  ;;  %v8973_v42 = vrot.slane %v5541_v9, 9  ;;  %14222 = vst [vmem:[#allocation37_spill] sm:$0xff] %v13202_v19  ;;  %v13204_v11 = vpop.permute.xlu1 %6616  ;;  %v14223_v38 = vld [vmem:[#allocation16_spill] sm:$0xff] }
 0x2c3   : > { %v6165_v46 = vsel %vm10077_vm2, %v6160_v45, %v6164_v33  ;;  %v9071_v1 = vcombine.low %v13193_v57, %v13175_v50  ;;  %v5723_v24 = vrot.slane %v13169_v47, 5  ;;  %v8974_v5 = vrot.slane %v5542_v62, 9  ;;  %v9782_v62 = vld [vmem:[#allocation2 + $0x7c] sm:$0x1]  ;;  %v5544_v23 = vld [vmem:[#allocation2 + $0x130] sm:$0xe] }
 0x2c4   : > { %6710 = vrot.lane.b32.xlu1 %v9055_v35, %s9906_s17  ;;  %v9133_v17 = vcombine.low %v6151_v41, %v6165_v46  ;;  %v5727_v18 = vrot.slane %v13185_v2, 5  ;;  %v7415_v39 = vsel %vm2953_vm8, %v13117_v34, %v12961_v22  ;;  %v7251_v54 = vsel %vm2887_vm6, %v13086_v6, %v12831_v8  ;;  %v14224_v35 = vld [vmem:[#allocation17_spill] sm:$0xff]  ;;  %v14225_v34 = vld [vmem:[#allocation18_spill] sm:$0xff] }
 0x2c5   : > { %v5724_v9 = vsel %vm11547_vm11, %v8973_v42, %v5723_v24  ;;  %7713 = vmatprep.mubr.bf16.mxu1 %v7415_v39  ;;  %v7287_v32 = vsel %vm2953_vm8, %v7251_v54, %v12859_v25  ;;  %v5240_v45 = vor.u32 %v14224_v35, %v14223_v38  ;;  %v5243_v33 = vshll.u32 %v9782_v62, 16  ;;  %v9783_v6 = vld [vmem:[#allocation2 + $0x84] sm:$0x1]  ;;  %v13225_v42 = vld [vmem:[#allocation2 + $0x118] sm:$0xf]  ;;  %v13233_v38 = vpop.permute.xlu0 %6938 }
 0x2c6   : > { %7138 = vrot.lane.b32.xlu0 %v9133_v17, %s9907_s20  ;;  %v5728_v22 = vsel %vm11547_vm11, %v8974_v5, %v5727_v18  ;;  %7714 = vmatmul.mubr.bf16.gmra.mxu1 %v7287_v32  ;;  %v5254_v8 = vor.u32 %v12305_v37, %v14225_v34  ;;  %v5257_v41 = vshll.u32 %v9783_v6, 16  ;;  %14226 = vst [vmem:[#allocation16_spill] sm:$0xff] %v13225_v42  ;;  %v4719_v25 = vshrl.u32 %v13202_v19, 16  ;;  %v13230_v17 = vpop.permute.xlu1 %6698  ;;  %v5767_v6 = vld [vmem:[#allocation2 + $0x128] sm:$0xf] }
 0x2c7   : > { %v5458_v46 = vshrl.u32 %v13193_v57, 16  ;;  %v9103_v24 = vcombine.low %v5724_v9, %v5728_v22  ;;  %v5241_v39 = vrot.slane %v5240_v45, 4  ;;  %v4722_v54 = vshll.u32 %v13202_v19, 16  ;;  %v5766_v45 = vld [vmem:[#allocation2 + $0x120] sm:$0xf] }
 0x2c8   : > { %6822 = vrot.lane.b32.xlu1 %v9071_v1, %s9907_s20  ;;  %v5245_v5 = vrot.slane %v5243_v33, 5  ;;  %v5255_v18 = vrot.slane %v5254_v8, 4  ;;  %v5259_v32 = vrot.slane %v5257_v41, 5  ;;  %v4721_v37 = vrot.slane %v4719_v25, 4 }
 0x2c9   : > { %v4724_v62 = vrot.slane %v4722_v54, 5  ;;  %v4733_v34 = vshrl.u32 %v13225_v42, 16  ;;  %v4736_v9 = vshll.u32 %v13225_v42, 16  ;;  %v4728_v33 = vshll.u32 %v13138_v4, 16  ;;  %v13259_v19 = vpop.permute.xlu0 %7050 }
 0x2ca   : > { %6950 = vrot.lane.b32.xlu0 %v9103_v24, %s9908_s15  ;;  %v5246_v22 = vsel %vm10077_vm2, %v5241_v39, %v5245_v5  ;;  %v5260_v1 = vsel %vm10077_vm2, %v5255_v18, %v5259_v32  ;;  %v4742_v8 = vshll.u32 %v13140_v59, 16  ;;  %v6195_v42 = vshrl.u32 %v5766_v45, 16  ;;  %v4804_v39 = vld [vmem:[#allocation2 + $0x120] sm:$0xe]  ;;  %v5796_v5 = vld [vmem:[#allocation2 + $0x114] sm:$0x1] }
 0x2cb   : > { %v13245_v41 = vcombine.low %v5246_v22, %v5260_v1  ;;  %v4725_v25 = vor.u32 %v4724_v62, %v4721_v37  ;;  %v4735_v54 = vrot.slane %v4733_v34, 4  ;;  %v4738_v35 = vrot.slane %v4736_v9, 5  ;;  %v13251_v59 = vld [vmem:[#allocation2 + $0x124] sm:$0x1]  ;;  %v4805_v22 = vld [vmem:[#allocation2 + $0x128] sm:$0xe]  ;;  %v13253_v1 = vpop.permute.xlu1 %6810 }
 0x2cc   : > { %v6198_v2 = vshll.u32 %v5766_v45, 16  ;;  %v13249_v47 = vrot.slane %v5458_v46, 4  ;;  %v9119_v32 = vcombine.low %v5766_v45, %v5767_v6  ;;  %14228 = vst [vmem:[#allocation18_spill] sm:$0xff] %v13253_v1  ;;  %v4730_v37 = vrot.slane %v4728_v33, 5  ;;  %v13257_v24 = vld [vmem:[#allocation2 + $0x12c] sm:$0x1] }
 0x2cd   : > { %v4726_v18 = vrot.slane %v4725_v25, 4  ;;  %v4739_v4 = vor.u32 %v4738_v35, %v4735_v54  ;;  %v4744_v62 = vrot.slane %v4742_v8, 5  ;;  %v13255_v34 = vrot.slane %v6195_v42, 4  ;;  %v5797_v25 = vld [vmem:[#allocation2 + $0x11c] sm:$0x1] }
 0x2ce   : > { %14227 = vst [vmem:[#allocation17_spill] sm:$0xff] %v13249_v47  ;;  %v6209_v9 = vshrl.u32 %v5767_v6, 16  ;;  %v13261_v46 = vrot.slane %v6198_v2, 5  ;;  %7062 = vrot.lane.b32.xlu0 %v9119_v32, %s9906_s17  ;;  %v6212_v35 = vshll.u32 %v5767_v6, 16  ;;  %v8943_v45 = vrot.slane %v4804_v39, 9 }
 0x2cf   : > { %v4740_v7 = vrot.slane %v4739_v4, 4  ;;  %v4731_v54 = vsel %vm10077_vm2, %v4726_v18, %v4730_v37  ;;  %v4995_v42 = vrot.slane %v13251_v59, 5  ;;  %v8944_v8 = vrot.slane %v4805_v22, 9  ;;  %v5543_v47 = vld [vmem:[#allocation2 + $0x128] sm:$0xe] }
 0x2d0   : > { %v13266_v33 = vrot.slane %v6209_v9, 4  ;;  %v4999_v2 = vrot.slane %v13257_v24, 5  ;;  %v6173_v4 = vor.u32 %v13179_v16, %v13177_v10  ;;  %v6176_v6 = vshll.u32 %v5796_v5, 16  ;;  %v13274_v39 = vld [vmem:[#allocation2 + $0x12c] sm:$0x1] }
 0x2d1   : > { %v4745_v12 = vsel %vm10077_vm2, %v4740_v7, %v4744_v62  ;;  %v4996_v18 = vsel %vm11547_vm11, %v8943_v45, %v4995_v42  ;;  %v6187_v37 = vor.u32 %v13189_v53, %v13187_v51  ;;  %v6190_v22 = vshll.u32 %v5797_v25, 16  ;;  %v13280_v9 = vld [vmem:[#allocation2 + $0x134] sm:$0x1]  ;;  %v13282_v7 = vpop.permute.xlu0 %6940 }
 0x2d2   : > { %v9039_v32 = vcombine.low %v4731_v54, %v4745_v12  ;;  %v5000_v62 = vsel %vm11547_vm11, %v8944_v8, %v4999_v2  ;;  %v6174_v10 = vrot.slane %v6173_v4, 4  ;;  %v6178_v16 = vrot.slane %v6176_v6, 5  ;;  %v13288_v12 = vpop.permute.xlu1 %6618  ;;  %v13292_v54 = vld [vmem:[#allocation2 + $0x128] sm:$0xf] }
 0x2d3   : > { %v8975_v5 = vrot.slane %v5543_v47, 9  ;;  %v9056_v45 = vcombine.low %v4996_v18, %v5000_v62  ;;  %v6188_v51 = vrot.slane %v6187_v37, 4  ;;  %v6192_v53 = vrot.slane %v6190_v22, 5  ;;  %v5798_v37 = vld [vmem:[#allocation2 + $0x124] sm:$0x1] }
 0x2d4   : > { %6630 = vrot.lane.b32.xlu1 %v9039_v32, %s9908_s15  ;;  %v5731_v25 = vrot.slane %v13274_v39, 5  ;;  %v6214_v42 = vrot.slane %v6212_v35, 5  ;;  %v8976_v1 = vrot.slane %v5544_v23, 9  ;;  %v5735_v8 = vrot.slane %v13280_v9, 5 }
 0x2d5   : > { %v7418_v47 = vsel %vm2953_vm8, %v13183_v30, %v13057_v63  ;;  %v6179_v2 = vsel %vm10077_vm2, %v6174_v10, %v6178_v16  ;;  %v6193_v4 = vsel %vm10077_vm2, %v6188_v51, %v6192_v53  ;;  %v4747_v6 = vshrl.u32 %v13286_v15, 16  ;;  %v13304_v18 = vpop.permute.xlu0 %7052  ;;  %v13314_v51 = vld [vmem:[#allocation2 + $0x12c] sm:$0x1] }
 0x2d6   : > { %7721 = vmatprep.mubr.bf16.mxu1 %v7418_v47  ;;  %v4750_v32 = vshll.u32 %v13286_v15, 16  ;;  %v9134_v23 = vcombine.low %v6179_v2, %v6193_v4  ;;  %v5732_v35 = vsel %vm11547_vm11, %v8975_v5, %v5731_v25  ;;  %v5736_v63 = vsel %vm11547_vm11, %v8976_v1, %v5735_v8  ;;  %v13321_v8 = vpop.permute.xlu1 %6700 }
 0x2d7   : > { %v4761_v30 = vshrl.u32 %v13292_v54, 16  ;;  %v4749_v22 = vrot.slane %v4747_v6, 4  ;;  %v4756_v10 = vshll.u32 %v13251_v59, 16  ;;  %v4764_v16 = vshll.u32 %v13292_v54, 16 }
 0x2d8   : > { %6712 = vrot.lane.b32.xlu1 %v9056_v45, %s9906_s17  ;;  %v4752_v62 = vrot.slane %v4750_v32, 5  ;;  %7140 = vrot.lane.b32.xlu0 %v9134_v23, %s9907_s20  ;;  %v9104_v53 = vcombine.low %v5732_v35, %v5736_v63  ;;  %v4770_v25 = vshll.u32 %v13257_v24, 16  ;;  %v7253_v1 = vsel %vm2887_vm6, %v13165_v13, %v12950_v55 }
 0x2d9   : > { %v4763_v5 = vrot.slane %v4761_v30, 4  ;;  %v4766_v47 = vrot.slane %v4764_v16, 5  ;;  %v7290_v59 = vsel %vm2953_vm8, %v7253_v1, %v12971_v14  ;;  %v6201_v2 = vor.u32 %v13261_v46, %v13255_v34  ;;  %v13337_v30 = vpop.permute.xlu0 %7130  ;;  %v9784_v34 = vld [vmem:[#allocation2 + $0x70] sm:$0xf]  ;;  %v9785_v46 = vld [vmem:[#allocation2 + $0x78] sm:$0xf] }
 0x2da   : > { %v4753_v45 = vor.u32 %v4752_v62, %v4749_v22  ;;  %v14229_v4 = vshll.u32 %v13193_v57, 16  ;;  %7722 = vmatmul.mubr.bf16.gmra.mxu1 %v7290_v59  ;;  %v6204_v24 = vshll.u32 %v5798_v37, 16  ;;  %v6215_v32 = vor.u32 %v6214_v42, %v13266_v33 }
 0x2db   : > { %v6218_v55 = vshll.u32 %v13314_v51, 16  ;;  %v14230_v13 = vshrl.u32 %v13175_v50, 16  ;;  %v4767_v63 = vor.u32 %v4766_v47, %v4763_v5  ;;  %v6202_v14 = vrot.slane %v6201_v2, 4  ;;  %v13355_v2 = vld [vmem:[#allocation2 + $0x130] sm:$0xf] }
 0x2dc   : > { %v13329_v6 = vrot.slane %v14229_v4, 5  ;;  %v4754_v35 = vrot.slane %v4753_v45, 4  ;;  %v9015_v57 = vcombine.low %v9784_v34, %v9785_v46  ;;  %6952 = vrot.lane.b32.xlu0 %v9104_v53, %s9908_s15  ;;  %v6206_v22 = vrot.slane %v6204_v24, 5  ;;  %v13344_v45 = vld [vmem:[#allocation2 + $0x128] sm:$0xf] }
 0x2dd   : > { %v13335_v23 = vrot.slane %v14230_v13, 4  ;;  %v6216_v37 = vrot.slane %v6215_v32, 4  ;;  %v6220_v62 = vrot.slane %v6218_v55, 5  ;;  %v14231_v33 = vshll.u32 %v13175_v50, 16  ;;  %v13365_v24 = vld [vmem:[#allocation2 + $0x130] sm:$0xf] }
 0x2de   : > { %v4758_v16 = vrot.slane %v4756_v10, 5  ;;  %v4768_v1 = vrot.slane %v4767_v63, 4  ;;  %v4772_v59 = vrot.slane %v4770_v25, 5  ;;  %v7342_v5 = vsel %vm2821_vm4, %v13245_v41, %v12983_v40  ;;  %v13357_v10 = vpop.permute.xlu1 %6812  ;;  %v3494_v41 = vld [vmem:[#allocation2 + $0x138] sm:$0x1]  ;;  %v14232_v34 = vld [vmem:[#allocation19_spill] sm:$0xff] }
 0x2df   : > { %v13342_v42 = vrot.slane %v14231_v33, 5  ;;  %v7214_v47 = vsel %vm2821_vm4, %v9015_v57, %v13093_v29  ;;  %v6207_v53 = vsel %vm10077_vm2, %v6202_v14, %v6206_v22  ;;  %v6221_v50 = vsel %vm10077_vm2, %v6216_v37, %v6220_v62  ;;  %v9786_v55 = vld [vmem:[#allocation2 + $0x80] sm:$0xf]  ;;  %v9787_v13 = vld [vmem:[#allocation2 + $0x88] sm:$0xf]  ;;  %v14233_v37 = vld [vmem:[#allocation20_spill] sm:$0xff] }
 0x2e0   : > { %v7383_v25 = vsel %vm2887_vm6, %v7342_v5, %v13021_v28  ;;  %v4759_v4 = vsel %vm10077_vm2, %v4754_v35, %v4758_v16  ;;  %v4773_v40 = vsel %vm10077_vm2, %v4768_v1, %v4772_v59  ;;  %v9135_v29 = vcombine.low %v6207_v53, %v6221_v50  ;;  %v3616_v28 = vld [vmem:[#allocation2 + $0x13c] sm:$0x1]  ;;  %v9788_v57 = vld [vmem:[#allocation2 + $0x8c] sm:$0x1]  ;;  %v9789_v16 = vld [vmem:[#allocation2 + $0x94] sm:$0x1]  ;;  %v13377_v5 = vpop.permute.xlu0 %6942 }
 0x2e1   : > { %v9040_v32 = vcombine.low %v4759_v4, %v4773_v40  ;;  %v9016_v63 = vcombine.low %v9786_v55, %v9787_v13  ;;  %v5486_v14 = vshrl.u32 %v13344_v45, 16  ;;  %v5268_v46 = vor.u32 %v14232_v34, %v12319_v26  ;;  %v14234_v62 = vld [vmem:[#allocation21_spill] sm:$0xff]  ;;  %v13375_v59 = vld [vmem:[#allocation2 + $0x134] sm:$0x1] }
 0x2e2   : > { %7142 = vrot.lane.b32.xlu0 %v9135_v29, %s9907_s20  ;;  %v9072_v35 = vcombine.low %v13344_v45, %v13355_v2  ;;  %v5271_v22 = vshll.u32 %v9788_v57, 16  ;;  %v5282_v33 = vor.u32 %v14234_v62, %v14233_v37  ;;  %v5285_v1 = vshll.u32 %v9789_v16, 16  ;;  %v14236_v37 = vld [vmem:[#allocation23_spill] sm:$0xff] }
 0x2e3   : > { %6632 = vrot.lane.b32.xlu1 %v9040_v32, %s9908_s15  ;;  %v5269_v26 = vrot.slane %v5268_v46, 4  ;;  %v3495_v53 = vsel %vm11347_vm14, 0, %v3494_v41  ;;  %v6223_v50 = vshrl.u32 %v13365_v24, 16  ;;  %v6226_v4 = vshll.u32 %v13365_v24, 16  ;;  %v13389_v41 = vpop.permute.xlu1 %6620 }
 0x2e4   : > { %v5273_v40 = vrot.slane %v5271_v22, 5  ;;  %v5283_v29 = vrot.slane %v5282_v33, 4  ;;  %v5287_v55 = vrot.slane %v5285_v1, 5  ;;  %3496 = vst [vmem:[#allocation2 + $0x138] sm:$0x1] %v3495_v53  ;;  %v3617_v13 = vsel %vm11362_vm15, 0, %v3616_v28 }
 0x2e5   : > { %v6225_v34 = vrot.slane %v6223_v50, 4  ;;  %v6228_v57 = vrot.slane %v6226_v4, 5  ;;  %3618 = vst [vmem:[#allocation2 + $0x13c] sm:$0x1] %v3617_v13  ;;  %v6232_v32 = vshll.u32 %v13375_v59, 16  ;;  %v7421_v60 = vsel %vm2953_vm8, %v7383_v25, %v13149_v49  ;;  %v14235_v28 = vld [vmem:[#allocation22_spill] sm:$0xff] }
 0x2e6   : > { %v5274_v46 = vsel %vm10077_vm2, %v5269_v26, %v5273_v40  ;;  %v5288_v22 = vsel %vm10077_vm2, %v5283_v29, %v5287_v55  ;;  %7729 = vmatprep.mubr.bf16.mxu1 %v7421_v60  ;;  %v7255_v43 = vsel %vm2887_vm6, %v7214_v47, %v13030_v36  ;;  %v5296_v62 = vor.u32 %v14236_v37, %v14235_v28  ;;  %v9790_v26 = vld [vmem:[#allocation2 + $0xac] sm:$0x1]  ;;  %v14237_v50 = vld [vmem:[#allocation24_spill] sm:$0xff]  ;;  %v14238_v4 = vld [vmem:[#allocation25_spill] sm:$0xff]  ;;  %v13406_v29 = vpop.permute.xlu0 %7054 }
 0x2e7   : > { %v7217_v33 = vsel %vm2821_vm4, %v9016_v63, %v13204_v11  ;;  %6824 = vrot.lane.b32.xlu1 %v9072_v35, %s9907_s20  ;;  %v9080_v49 = vcombine.low %v5274_v46, %v5288_v22  ;;  %v6229_v25 = vor.u32 %v6228_v57, %v6225_v34  ;;  %v7293_v16 = vsel %vm2953_vm8, %v7255_v43, %v13068_v58  ;;  %v9791_v47 = vld [vmem:[#allocation2 + $0xb4] sm:$0x1]  ;;  %v13415_v58 = vpop.permute.xlu1 %6702  ;;  %v9792_v43 = vld [vmem:[#allocation2 + $0xa0] sm:$0xf] }
 0x2e8   : > { %7730 = vmatmul.mubr.bf16.gmra.mxu1 %v7293_v16  ;;  %v5297_v1 = vrot.slane %v5296_v62, 4  ;;  %v5299_v53 = vshll.u32 %v9790_v26, 16  ;;  %v5310_v36 = vor.u32 %v14238_v4, %v14237_v50  ;;  %v5313_v40 = vshll.u32 %v9791_v47, 16  ;;  %v9734_v50 = vld [vmem:[%s10016_s23 + $0xe8] ss:$8 sps:$4 sm:$0xff]   ;;  %v14239_v47 = vld [vmem:[#allocation26_spill] sm:$0xff] }
 0x2e9   : > { %v13408_v55 = vrot.slane %v5486_v14, 4  ;;  %v5489_v11 = vshll.u32 %v13344_v45, 16  ;;  %v7345_v63 = vsel %vm2821_vm4, %v9080_v49, %v13113_v44  ;;  %v13413_v35 = vrot.slane %v6232_v32, 5  ;;  %v9793_v44 = vld [vmem:[#allocation2 + $0xa8] sm:$0xf] }
 0x2ea   : > { %v13417_v13 = vrot.slane %v6229_v25, 4  ;;  %v7385_v34 = vsel %vm2887_vm6, %v7345_v63, %v13091_v27  ;;  %v5301_v57 = vrot.slane %v5299_v53, 5  ;;  %v5311_v60 = vrot.slane %v5310_v36, 4  ;;  %v9794_v53 = vld [vmem:[#allocation2 + $0xbc] sm:$0x1] }
 0x2eb   : > { %v5769_v46 = vld [vmem:[#allocation2 + $0x138] sm:$0xf]  ;;  %v7424_v14 = vsel %vm2953_vm8, %v7385_v34, %v13195_v52  ;;  %v5315_v22 = vrot.slane %v5313_v40, 5  ;;  %v9017_v32 = vcombine.low %v9792_v43, %v9793_v44  ;;  %v7257_v28 = vsel %vm2887_vm6, %v7217_v33, %v13119_v3  ;;  %v7133_v40 = vpop.permute.xlu0 %7132 }
 0x2ec   : > { %v6237_v37 = vshrl.u32 %v5769_v46, 16  ;;  %v6240_v62 = vshll.u32 %v5769_v46, 16  ;;  %v9120_v49 = vcombine.low %v13365_v24, %v5769_v46  ;;  %v13426_v27 = vld [vmem:[#allocation2 + $0x13c] sm:$0x1]  ;;  %7737 = vmatprep.mubr.bf16.mxu1 %v7424_v14  ;;  %v5302_v25 = vsel %vm10077_vm2, %v5297_v1, %v5301_v57  ;;  %v9733_v33 = vld [vmem:[%s10016_s23 + $0xd8] ss:$8 sps:$4 sm:$0xff]  }
 0x2ed   : > { %v6246_v52 = vshll.u32 %v13426_v27, 16  ;;  %v5316_v16 = vsel %vm10077_vm2, %v5311_v60, %v5315_v22  ;;  %v5324_v26 = vor.u32 %v12533_v0, %v12524_v61  ;;  %v5327_v3 = vshll.u32 %v9794_v53, 16  ;;  %v9795_v60 = vld [vmem:[#allocation2 + $0xc4] sm:$0x1]  ;;  %v13442_v0 = vpop.permute.xlu1 %6814  ;;  %9479 = vmatprep.mubr.msk.bf16.mxu0 %vm2772_vm3, %v9733_v33 }
 0x2ee   : > { %v6239_v4 = vrot.slane %v6237_v37, 4  ;;  %v6242_v24 = vrot.slane %v6240_v62, 5  ;;  %7064 = vrot.lane.b32.xlu0 %v9120_v49, %s9906_s17  ;;  %v9081_v36 = vcombine.low %v5302_v25, %v5316_v16  ;;  %v5338_v1 = vor.u32 %v14239_v47, %v12543_v31  ;;  %9480 = vmatmul.mubr.msk.bf16.vlgmr.msra.gmra.mxu0 %vm2772_vm3, %v9734_v50  ;;  %v9796_v62 = vld [vmem:[#allocation2 + $0xb0] sm:$0xf]  ;;  %v9797_v49 = vld [vmem:[#allocation2 + $0xb8] sm:$0xf] }
 0x2ef   : > { %v6248_v63 = vrot.slane %v6246_v52, 5  ;;  %v7296_v34 = vsel %vm2953_vm8, %v7257_v28, %v13156_v20  ;;  %v5325_v57 = vrot.slane %v5324_v26, 4  ;;  %v5341_v61 = vshll.u32 %v9795_v60, 16  ;;  %v14241_v16 = vld [vmem:[#allocation28_spill] sm:$0xff]  ;;  %v14242_v26 = vld [vmem:[#allocation29_spill] sm:$0xff] }
 0x2f0   : > { %v6243_v46 = vor.u32 %v6242_v24, %v6239_v4  ;;  %v7348_v14 = vsel %vm2821_vm4, %v9081_v36, %v13233_v38  ;;  %7738 = vmatmul.mubr.bf16.gmra.mxu1 %v7296_v34  ;;  %v5329_v22 = vrot.slane %v5327_v3, 5  ;;  %v5339_v43 = vrot.slane %v5338_v1, 4  ;;  %v9799_v50 = vld [vmem:[#allocation2 + $0xd4] sm:$0x1]  ;;  %v13470_v24 = vpop.permute.xlu0 %7056 }
 0x2f1   : > { %v6235_v31 = vsel %vm10077_vm2, %v13417_v13, %v13413_v35  ;;  %v7220_v20 = vsel %vm2821_vm4, %v9017_v32, %v13288_v12  ;;  %v7387_v44 = vsel %vm2887_vm6, %v7348_v14, %v13259_v19  ;;  %v5343_v28 = vrot.slane %v5341_v61, 5  ;;  %v14240_v12 = vld [vmem:[#allocation27_spill] sm:$0xff]  ;;  %v6623_v34 = vpop.permute.xlu1 %6622 }
 0x2f2   : > { %v6244_v37 = vrot.slane %v6243_v46, 4  ;;  %v5330_v38 = vsel %vm10077_vm2, %v5325_v57, %v5329_v22  ;;  %v9018_v25 = vcombine.low %v9796_v62, %v9797_v49  ;;  %v7427_v52 = vsel %vm2953_vm8, %v7387_v44, %v13337_v30  ;;  %v9798_v19 = vld [vmem:[#allocation2 + $0xcc] sm:$0x1]  ;;  %v9735_v57 = vld [vmem:[%s10016_s23 + $0xf8] ss:$8 sps:$4 sm:$0xff]  }
 0x2f3   : > { %v5344_v35 = vsel %vm10077_vm2, %v5339_v43, %v5343_v28  ;;  %7745 = vmatprep.mubr.bf16.mxu1 %v7427_v52  ;;  %v5352_v13 = vor.u32 %v14240_v12, %v12670_v48  ;;  %v5355_v32 = vshll.u32 %v9798_v19, 16  ;;  %v5366_v53 = vor.u32 %v14242_v26, %v14241_v16  ;;  %v14243_v22 = vld [vmem:[#allocation18_spill] sm:$0xff]  ;;  %v9801_v44 = vld [vmem:[#allocation2 + $0xc8] sm:$0xf]  ;;  %v9802_v49 = vld [vmem:[#allocation2 + $0xdc] sm:$0x1]  ;;  %9483 = vmatprep.mubr.msk.bf16.mxu0 %vm2772_vm3, %v9735_v57 }
 0x2f4   : > { %v6249_v3 = vsel %vm10077_vm2, %v6244_v37, %v6248_v63  ;;  %v9082_v33 = vcombine.low %v5330_v38, %v5344_v35  ;;  %v7259_v30 = vsel %vm2887_vm6, %v7220_v20, %v13230_v17  ;;  %v5369_v4 = vshll.u32 %v9799_v50, 16  ;;  %v9736_v17 = vld [vmem:[%s10016_s23 + $0x108] ss:$8 sps:$4 sm:$0xff]   ;;  %v9800_v20 = vld [vmem:[#allocation2 + $0xc0] sm:$0xf]  ;;  %v14247_v12 = vld [vmem:[#allocation33_spill] sm:$0xff] }
 0x2f5   : > { %v9136_v36 = vcombine.low %v6235_v31, %v6249_v3  ;;  %v5353_v47 = vrot.slane %v5352_v13, 4  ;;  %v5357_v48 = vrot.slane %v5355_v32, 5  ;;  %v5367_v1 = vrot.slane %v5366_v53, 4  ;;  %v14244_v37 = vld [vmem:[#allocation30_spill] sm:$0xff]  ;;  %v14245_v38 = vld [vmem:[#allocation31_spill] sm:$0xff]  ;;  %v14246_v35 = vld [vmem:[#allocation32_spill] sm:$0xff]  ;;  %v13501_v53 = vpop.permute.xlu0 %6944 }
 0x2f6   : > { %v5500_v60 = vshrl.u32 %v13355_v2, 16  ;;  %v7351_v63 = vsel %vm2821_vm4, %v9082_v33, %v13282_v7  ;;  %v7223_v61 = vsel %vm2821_vm4, %v9018_v25, %v13389_v41  ;;  %v5371_v46 = vrot.slane %v5369_v4, 5  ;;  %v9803_v19 = vld [vmem:[#allocation2 + $0xe4] sm:$0x1]  ;;  %9484 = vmatmul.mubr.msk.bf16.gmra.mxu0 %vm2772_vm3, %v9736_v17  ;;  %v14248_v3 = vld [vmem:[#allocation8_spill] sm:$0xff]  ;;  %v14249_v33 = vld [vmem:[#allocation9_spill] sm:$0xff]  ;;  %v13507_v4 = vpop.permute.xlu1 %6704 }
 0x2f7   : > { %7144 = vrot.lane.b32.xlu0 %v9136_v36, %s9907_s20  ;;  %v7389_v14 = vsel %vm2887_vm6, %v7351_v63, %v13304_v18  ;;  %v7299_v43 = vsel %vm2953_vm8, %v7259_v30, %v14243_v22  ;;  %v5358_v31 = vsel %vm10077_vm2, %v5353_v47, %v5357_v48  ;;  %v9019_v28 = vcombine.low %v9800_v20, %v9801_v44  ;;  %v9805_v17 = vld [vmem:[#allocation2 + $0x104] sm:$0x1]  ;;  %v9737_v22 = vld [vmem:[%s10016_s23 + $0x1f8] ss:$8 sps:$4 sm:$0xff]   ;;  %v14252_v20 = vld [vmem:[#allocation12_spill] sm:$0xff]  ;;  %s272_s20 = sand.u32 1, %s9892_s25  }
 0x2f8   : > { %7746 = vmatmul.mubr.bf16.gmra.mxu1 %v7299_v43  ;;  %v5372_v7 = vsel %vm10077_vm2, %v5367_v1, %v5371_v46  ;;  %v7430_v41 = vsel %vm2953_vm8, %v7389_v14, %v7133_v40  ;;  %v5380_v62 = vor.u32 %v14245_v38, %v14244_v37  ;;  %v5383_v18 = vshll.u32 %v9802_v49, 16  ;;  %v9804_v1 = vld [vmem:[#allocation2 + $0xfc] sm:$0x1]  ;;  %v14254_v38 = vld [vmem:[#allocation11_spill] sm:$0xff]  ;;  %9487 = vmatprep.mubr.msk.bf16.mxu0 %vm2772_vm3, %v9737_v22  ;;  %v9739_v22 = vld [vmem:[%s10016_s23 + $0x218] ss:$8 sps:$4 sm:$0xff]  }
 0x2f9   : > { %v9083_v25 = vcombine.low %v5358_v31, %v5372_v7  ;;  %7753 = vmatprep.mubr.bf16.mxu1 %v7430_v41  ;;  %v7261_v52 = vsel %vm2887_vm6, %v7223_v61, %v13321_v8  ;;  %v5394_v13 = vor.u32 %v14247_v12, %v14246_v35  ;;  %v5397_v32 = vshll.u32 %v9803_v19, 16  ;;  %v14250_v61 = vld [vmem:[#allocation10_spill] sm:$0xff]  ;;  %v14253_v44 = vld [vmem:[#allocation13_spill] sm:$0xff]  ;;  %v14256_v35 = vld [vmem:[#allocation15_spill] sm:$0xff]  ;;  %s8484_s16 = sshll.u32 %s272_s20, 8  ;;  %s14054_s28 = scalar_lea.sflag [#allocation4], %s272_s20 }
 0x2fa   : > { %v13499_v40 = vrot.slane %v5489_v11, 5  ;;  %v5381_v16 = vrot.slane %v5380_v62, 4  ;;  %v5385_v26 = vrot.slane %v5383_v18, 5  ;;  %v5408_v30 = vor.u32 %v14249_v33, %v14248_v3  ;;  %v13535_v12 = vpop.permute.xlu1 %6816  ;;  %v9806_v33 = vld [vmem:[#allocation2 + $0x114] sm:$0x1]  ;;  %s13861_s18 = scalar_lea.vmem [#allocation3], %s8484_s16 }
 0x2fb   : > { %v5503_v8 = vshll.u32 %v13355_v2, 16  ;;  %v7226_v50 = vsel %vm2821_vm4, %v9019_v28, %v6623_v34  ;;  %v5395_v36 = vrot.slane %v5394_v13, 4  ;;  %v5399_v47 = vrot.slane %v5397_v32, 5  ;;  %v14251_v34 = vld [vmem:[#allocation34_spill] sm:$0xff]  ;;  %s8418_s29 = sshll.u32 %s13861_s18, 4  ;;  %s14046_s29 = int_to_ptr.vmem [resolvable:$true] %s8418_s29 }
 0x2fc   : > { %v13509_v45 = vrot.slane %v5500_v60, 4  ;;  %v7302_v11 = vsel %vm2953_vm8, %v7261_v52, %v13357_v10  ;;  %v5386_v48 = vsel %vm10077_vm2, %v5381_v16, %v5385_v26  ;;  %v5411_v57 = vshll.u32 %v9804_v1, 16  ;;  %v9738_v60 = vld [vmem:[%s10016_s23 + $0x208] ss:$8 sps:$4 sm:$0xff]   ;;  %v14255_v52 = vld [vmem:[#allocation14_spill] sm:$0xff]  ;;  %s9840_s22 = scalar_lea.vmem %s14046_s29, 4096 }
 0x2fd   : > { %v5400_v2 = vsel %vm10077_vm2, %v5395_v36, %v5399_v47  ;;  %v5409_v63 = vrot.slane %v5408_v30, 4  ;;  %v5422_v46 = vor.u32 %v14251_v34, %v14250_v61  ;;  %v5425_v14 = vshll.u32 %v9805_v17, 16  ;;  %v14258_v47 = vld [vmem:[#allocation35_spill] sm:$0xff]  ;;  %p9841_p11 = scmp.ne.s32.totalorder %s14046_s29, %s9840_s22 }
 0x2fe   : > { %v7354_v43 = vsel %vm2821_vm4, %v9083_v25, %v13377_v5  ;;  %v13523_v10 = vcombine.low %v5386_v48, %v5400_v2  ;;  %v7263_v31 = vsel %vm2887_vm6, %v7226_v50, %v13415_v58  ;;  %v5436_v28 = vor.u32 %v14253_v44, %v14252_v20  ;;  %v7135_v5 = vpop.permute.xlu0 %7134  ;;  %9488 = vmatmul.mubr.msk.bf16.gmra.mxu0 %vm2772_vm3, %v9738_v60  ;;  %v14257_v50 = vld [vmem:[#allocation17_spill] sm:$0xff]  ;;  %v14260_v2 = vld [vmem:[#allocation16_spill] sm:$0xff]  ;;  %v6625_v20 = vpop.permute.xlu1 %6624 }
 0x2ff   : > { %v5413_v7 = vrot.slane %v5411_v57, 5  ;;  %v5423_v41 = vrot.slane %v5422_v46, 4  ;;  %v5427_v37 = vrot.slane %v5425_v14, 5  ;;  %v5439_v62 = vshll.u32 %v14254_v38, 16  ;;  %9491 = vmatprep.mubr.msk.bf16.mxu0 %vm2772_vm3, %v9739_v22  ;;  %v9748_v22 = vld [vmem:[%s10016_s23 + $0x468] ss:$8 sps:$4 sm:$0xff]   ;;  %p9842_p12 = pnand %p9841_p11, %p9991_p5 }
 0x300   : > { %v5505_v49 = vrot.slane %v5503_v8, 5  ;;  %v7391_v18 = vsel %vm2887_vm6, %v7354_v43, %v13406_v29  ;;  %7754 = vmatmul.mubr.bf16.gmra.mxu1 %v7302_v11  ;;  %v5437_v25 = vrot.slane %v5436_v28, 4  ;;  %v5450_v58 = vor.u32 %v14256_v35, %v14255_v52 }
 0x301   : > { %v7433_v13 = vsel %vm2953_vm8, %v7391_v18, %v7135_v5  ;;  %v5414_v19 = vsel %vm10077_vm2, %v5409_v63, %v5413_v7  ;;  %v5428_v32 = vsel %vm10077_vm2, %v5423_v41, %v5427_v37  ;;  %v5441_v16 = vrot.slane %v5439_v62, 5  ;;  %v14261_v63 = vld [vmem:[#allocation37_spill] sm:$0xff]  ;;  %v6252_v7 = vld [vmem:[#allocation2 + $0x20] sm:$0xe]  ;;  %v9807_v41 = vld [vmem:[#allocation2 + $0xd0] sm:$0xf]  ;;  %p9843_p13 = pneg %p9842_p12 }
 0x302   : > { %7761 = vmatprep.mubr.bf16.mxu1 %v7433_v13  ;;  %v7305_v29 = vsel %vm2953_vm8, %v7263_v31, %v13442_v0  ;;  %v13545_v26 = vcombine.low %v5414_v19, %v5428_v32  ;;  %v5451_v3 = vrot.slane %v5450_v58, 4  ;;  %v5453_v30 = vshll.u32 %v9806_v33, 16  ;;  %v14259_v0 = vld [vmem:[#allocation36_spill] sm:$0xff]  ;;  %v9808_v37 = vld [vmem:[#allocation2 + $0xd8] sm:$0xf]  ;;  %v14262_v32 = vld [vmem:[#allocation6_spill] sm:$0xff] }
 0x303   : > { %v5442_v8 = vsel %vm10077_vm2, %v5437_v25, %v5441_v16  ;;  %v5464_v36 = vor.u32 %v13329_v6, %v14257_v50  ;;  %v5467_v11 = vshll.u32 %v14258_v47, 16  ;;  %v5478_v48 = vor.u32 %v13342_v42, %v13335_v23  ;;  %v9740_v31 = vld [vmem:[%s10016_s23 + $0x228] ss:$8 sps:$4 sm:$0xff]  }
 0x304   : > { %v5455_v1 = vrot.slane %v5453_v30, 5  ;;  %v5481_v57 = vshll.u32 %v14259_v0, 16  ;;  %v9023_v61 = vcombine.low %v14261_v63, %v14260_v2  ;;  %v5492_v34 = vor.u32 %v13499_v40, %v13408_v55 }
 0x305   : > { %v5465_v46 = vrot.slane %v5464_v36, 4  ;;  %v5469_v17 = vrot.slane %v5467_v11, 5  ;;  %v5479_v14 = vrot.slane %v5478_v48, 4  ;;  %v5495_v6 = vshll.u32 %v13274_v39, 16  ;;  %v6253_v39 = vld [vmem:[#allocation2 + $0x28] sm:$0xe] }
 0x306   : > { %v5456_v60 = vsel %vm10077_vm2, %v5451_v3, %v5455_v1  ;;  %v5483_v43 = vrot.slane %v5481_v57, 5  ;;  %v5493_v23 = vrot.slane %v5492_v34, 4  ;;  %v5506_v42 = vor.u32 %v5505_v49, %v13509_v45  ;;  %9492 = vmatmul.mubr.msk.bf16.gmra.mxu0 %vm2772_vm3, %v9740_v31  ;;  %v14264_v3 = vld [vmem:[#allocation7_spill] sm:$0xff]  ;;  %v6707_v0 = vpop.permute.xlu1 %6706 }
 0x307   : > { %v13565_v44 = vcombine.low %v5442_v8, %v5456_v60  ;;  %v5470_v55 = vsel %vm10077_vm2, %v5465_v46, %v5469_v17  ;;  %v5497_v40 = vrot.slane %v5495_v6, 5  ;;  %v5509_v28 = vshll.u32 %v13280_v9, 16  ;;  %v9742_v8 = vld [vmem:[%s10016_s23 + $0x328] ss:$8 sps:$4 sm:$0xff]   ;;  %v9747_v6 = vld [vmem:[%s10016_s23 + $0x458] ss:$8 sps:$4 sm:$0xff]  }
 0x308   : > { %v9020_v38 = vcombine.low %v9807_v41, %v9808_v37  ;;  %7762 = vmatmul.mubr.bf16.gmra.mxu1 %v7305_v29  ;;  %v5484_v45 = vsel %vm10077_vm2, %v5479_v14, %v5483_v43  ;;  %v5507_v62 = vrot.slane %v5506_v42, 4  ;;  %v9024_v49 = vcombine.low %v13286_v15, %v13292_v54  ;;  %v9744_v48 = vld [vmem:[%s10016_s23 + $0x348] ss:$8 sps:$4 sm:$0xff]  }
 0x309   : > { %v13575_v18 = vcombine.low %v5470_v55, %v5484_v45  ;;  %v5498_v9 = vsel %vm10077_vm2, %v5493_v23, %v5497_v40  ;;  %v5511_v5 = vrot.slane %v5509_v28, 5  ;;  %v8979_v52 = vrot.slane %v6252_v7, 9  ;;  %v9746_v1 = vld [vmem:[%s10016_s23 + $0x448] ss:$8 sps:$4 sm:$0xff]   ;;  %v9810_v40 = vld [vmem:[#allocation2 + $0xf8] sm:$0xf] }
 0x30a   : > { %v7229_v25 = vsel %vm2821_vm4, %v9020_v38, %v6625_v20  ;;  %v8980_v35 = vrot.slane %v6253_v39, 9  ;;  %v7357_v58 = vsel %vm2821_vm4, %v13523_v10, %v13501_v53  ;;  %v14263_v16 = vrot.slane %v14262_v32, 5  ;;  %v9741_v10 = vld [vmem:[%s10016_s23 + $0x318] ss:$8 sps:$4 sm:$0xff]   ;;  %v6819_v14 = vpop.permute.xlu1 %6818  ;;  %v9809_v55 = vld [vmem:[#allocation2 + $0xf0] sm:$0xf] }
 0x30b   : > { %v5512_v13 = vsel %vm10077_vm2, %v5507_v62, %v5511_v5  ;;  %v14265_v33 = vrot.slane %v14264_v3, 5  ;;  %v7265_v56 = vsel %vm2887_vm6, %v7229_v25, %v13507_v4  ;;  %v7393_v36 = vsel %vm2887_vm6, %v7357_v58, %v13470_v24  ;;  %9495 = vmatprep.mubr.msk.bf16.mxu0 %vm2772_vm3, %v9741_v10  ;;  %v9743_v4 = vld [vmem:[%s10016_s23 + $0x338] ss:$8 sps:$4 sm:$0xff]  }
 0x30c   : > { %v13586_v19 = vcombine.low %v5498_v9, %v5512_v13  ;;  %v13592_v29 = vsel %vm11547_vm11, %v8979_v52, %v14263_v16  ;;  %v7137_v50 = vpop.permute.xlu0 %7136  ;;  %v7308_v11 = vsel %vm2953_vm8, %v7265_v56, %v13535_v12  ;;  %v9745_v24 = vld [vmem:[%s10016_s23 + $0x438] ss:$8 sps:$4 sm:$0xff]   ;;  %v9021_v28 = vcombine.low %v9809_v55, %v9810_v40  ;;  %v9812_v56 = vld [vmem:[#allocation2 + $0x108] sm:$0xf]  ;;  %v6250_v40 = vld [vmem:[#allocation2 + $0x10] sm:$0xe] }
 0x30d   : > { %v13598_v30 = vsel %vm11547_vm11, %v8980_v35, %v14265_v33  ;;  %v7436_v47 = vsel %vm2953_vm8, %v7393_v36, %v7137_v50  ;;  %v9811_v33 = vld [vmem:[#allocation2 + $0x100] sm:$0xf]  ;;  %s9844_s23 = sshll.u32 %s9910_s8, 4  ;;  %s9845_s23 = int_to_ptr.vmem [resolvable:$false] %s9844_s23 }
 0x30e   : > { %v9138_v53 = vcombine.low %v13592_v29, %v13598_v30  ;;  %7769 = vmatprep.mubr.bf16.mxu1 %v7436_v47  ;;  %9496 = vmatmul.mubr.msk.bf16.gmra.mxu0 %vm2772_vm3, %v9742_v8  ;;  %v9022_v10 = vcombine.low %v9811_v33, %v9812_v56  ;;  %v6254_v56 = vld [vmem:[#allocation2 + $0x30] sm:$0xe]  ;;  %v6261_v29 = vld [vmem:[#allocation2 + $0x78] sm:$0xe]  ;;  %v6263_v30 = vld [vmem:[#allocation2 + $0x88] sm:$0xe]  ;;  %p9847_p0 = scmp.lt.s32.totalorder %s14046_s29, %s9845_s23 }
 0x30f   : > { %9499 = vmatprep.mubr.msk.bf16.mxu0 %vm2772_vm3, %v9743_v4  ;;  %s9846_s17 = scalar_lea.vmem %s9845_s23, 8192 }
 0x310   : > { %7770 = vmatmul.mubr.bf16.gmra.mxu1 %v7308_v11  ;;  %v6947_v46 = vpop.permute.xlu0 %6946  ;;  %p9848_p1 = scmp.lt.s32.totalorder %s9846_s17, %s9840_s22 }
 0x311   : > { %v7360_v41 = vsel %vm2821_vm4, %v13545_v26, %v6947_v46 }
 0x312   : > { %p9849_p2 = por %p9848_p1, %p9847_p0 }
 0x314   : > { %v7059_v23 = vpop.permute.xlu0 %7058  ;;  %p9850_p3 = pnand %p9849_p2, %p9843_p13 }
 0x315   : > { %v7395_v45 = vsel %vm2887_vm6, %v7360_v41, %v7059_v23  ;;  %v8977_v41 = vrot.slane %v6250_v40, 9 }
 0x316   : > { %9500 = vmatmul.mubr.msk.bf16.gmra.mxu0 %vm2772_vm3, %v9744_v48  ;;  %v6627_v42 = vpop.permute.xlu1 %6626 }
 0x317   : > { %9503 = vmatprep.mubr.msk.bf16.mxu0 %vm2772_vm3, %v9745_v24  ;;  %v7232_v39 = vsel %vm2821_vm4, %v9021_v28, %v6627_v42 }
 0x318   : > { %v7267_v38 = vsel %vm2887_vm6, %v7232_v39, %v6707_v0 }
 0x319   : > { %v7311_v5 = vsel %vm2953_vm8, %v7267_v38, %v6819_v14 }
 0x31b   : > { %v9310_v57 = vpop.f32.mrf.mxu1 }
 0x31c   : > { %v6709_v20 = vpop.permute.xlu1 %6708 }
 0x31d   : > { %v9311_v12 = vpop.f32.mrf.mxu1 }
 0x31e   : > { %9504 = vmatmul.mubr.msk.bf16.gmra.mxu0 %vm2772_vm3, %v9746_v1  ;;  %v13621_v34 = vadd.f32 %v9311_v12, %v9310_v57 }
 0x31f   : > { %v9313_v17 = vpop.f32.mrf.mxu1  ;;  %9507 = vmatprep.mubr.msk.bf16.mxu0 %vm2772_vm3, %v9747_v6  ;;  %v6949_v31 = vpop.permute.xlu0 %6948 }
 0x320   : > { %v6821_v37 = vpop.permute.xlu1 %6820  ;;  %v7363_v47 = vsel %vm2821_vm4, %v13565_v44, %v6949_v31 }
 0x321   : > { %v9314_v60 = vpop.f32.mrf.mxu1 }
 0x322   : > { %v13625_v43 = vadd.f32 %v9314_v60, %v9313_v17 }
 0x326   : > { %9508 = vmatmul.mubr.msk.bf16.gmra.mxu0 %vm2772_vm3, %v9748_v22 }
 0x32c   : > { %v7061_v7 = vpop.permute.xlu0 %7060 }
 0x32d   : > { %v7397_v4 = vsel %vm2887_vm6, %v7363_v47, %v7061_v7  ;;  %v9813_v7 = vld [vmem:[#allocation2 + $0x1c] sm:$0x1] }
 0x32e   : > { %v6352_v39 = vrot.slane %v9813_v7, 5 }
 0x332   : > { %v6629_v35 = vpop.permute.xlu1 %6628 }
 0x333   : > { %v7235_v50 = vsel %vm2821_vm4, %v9022_v10, %v6629_v35 }
 0x334   : > { %v7269_v11 = vsel %vm2887_vm6, %v7235_v50, %v6709_v20 }
 0x335   : > { %v7314_v0 = vsel %vm2953_vm8, %v7269_v11, %v6821_v37  ;;  %v9814_v37 = vld [vmem:[#allocation2 + $0x14] sm:$0x1]  ;;  %v8981_v11 = vrot.slane %v6254_v56, 9  ;;  %v6265_v56 = vld [vmem:[#allocation2 + $0x98] sm:$0xe] }
 0x336   : > { %v9316_v25 = vpop.f32.mrf.mxu1  ;;  %v6711_v16 = vpop.permute.xlu1 %6710  ;;  %v6348_v38 = vrot.slane %v9814_v37, 5 }
 0x338   : > { %v7139_v62 = vpop.permute.xlu0 %7138  ;;  %v9317_v52 = vpop.f32.mrf.mxu1  ;;  %v6349_v54 = vsel %vm11547_vm11, %v8977_v41, %v6348_v38  ;;  %v6260_v41 = vld [vmem:[#allocation2 + $0x70] sm:$0xe]  ;;  %v8988_v38 = vrot.slane %v6261_v29, 9 }
 0x339   : > { %v7439_v9 = vsel %vm2953_vm8, %v7395_v45, %v7139_v62  ;;  %v13636_v58 = vadd.f32 %v9317_v52, %v9316_v25 }
 0x33a   : > { %7777 = vmatprep.mubr.bf16.mxu1 %v7439_v9  ;;  %v9319_v13 = vpop.f32.mrf.mxu1  ;;  %v6823_v36 = vpop.permute.xlu1 %6822 }
 0x33b   : > { %7778 = vmatmul.mubr.bf16.gmra.mxu1 %v7311_v5 }
 0x33c   : > { %v6951_v32 = vpop.permute.xlu0 %6950  ;;  %v9320_v26 = vpop.f32.mrf.mxu1 }
 0x33d   : > { %v13638_v3 = vadd.f32 %v9320_v26, %v9319_v13  ;;  %v7366_v44 = vsel %vm2821_vm4, %v13575_v18, %v6951_v32  ;;  %v6251_v18 = vld [vmem:[#allocation2 + $0x18] sm:$0xe] }
 0x33e   : > { %v8978_v28 = vrot.slane %v6251_v18, 9  ;;  %v6255_v32 = vld [vmem:[#allocation2 + $0x38] sm:$0xe] }
 0x33f   : > { %v8982_v10 = vrot.slane %v6255_v32, 9 }
 0x340   : > { %v7063_v8 = vpop.permute.xlu0 %7062  ;;  %v6353_v25 = vsel %vm11547_vm11, %v8978_v28, %v6352_v39 }
 0x341   : > { %v7399_v6 = vsel %vm2887_vm6, %v7366_v44, %v7063_v8  ;;  %v9137_v33 = vcombine.low %v6349_v54, %v6353_v25  ;;  %v9815_v8 = vld [vmem:[#allocation2 + $0x3c] sm:$0x1]  ;;  %v9822_v25 = vld [vmem:[#allocation2 + $0x8c] sm:$0x1] }
 0x342   : > { %v6368_v50 = vrot.slane %v9815_v8, 5  ;;  %v6267_v8 = vld [vmem:[#allocation2 + $0xb8] sm:$0xe] }
 0x346   : > { %v6631_v1 = vpop.permute.xlu1 %6630 }
 0x347   : > { %v7238_v12 = vsel %vm2821_vm4, %v9023_v61, %v6631_v1  ;;  %v6369_v1 = vsel %vm11547_vm11, %v8982_v10, %v6368_v50 }
 0x348   : > { %v7271_v17 = vsel %vm2887_vm6, %v7238_v12, %v6711_v16 }
 0x349   : > { %v7317_v2 = vsel %vm2953_vm8, %v7271_v17, %v6823_v36  ;;  %v9817_v17 = vld [vmem:[#allocation2 + $0x44] sm:$0x1] }
 0x34a   : > { %v7141_v48 = vpop.permute.xlu0 %7140  ;;  %v6713_v31 = vpop.permute.xlu1 %6712 }
 0x34b   : > { %v7442_v24 = vsel %vm2953_vm8, %v7397_v4, %v7141_v48  ;;  %v9816_v4 = vld [vmem:[#allocation2 + $0x34] sm:$0x1] }
 0x34c   : > { %7785 = vmatprep.mubr.bf16.mxu1 %v7442_v24  ;;  %v6364_v48 = vrot.slane %v9816_v4, 5  ;;  %v6256_v24 = vld [vmem:[#allocation2 + $0x40] sm:$0xe] }
 0x34d   : > { %7786 = vmatmul.mubr.bf16.gmra.mxu1 %v7314_v0  ;;  %v6257_v0 = vld [vmem:[#allocation2 + $0x48] sm:$0xe] }
 0x34e   : > { %v6953_v57 = vpop.permute.xlu0 %6952  ;;  %v9322_v46 = vpop.f32.mrf.mxu1  ;;  %v6365_v12 = vsel %vm11547_vm11, %v8981_v11, %v6364_v48  ;;  %v9825_v48 = vld [vmem:[#allocation2 + $0x94] sm:$0x1] }
 0x34f   : > { %v7369_v9 = vsel %vm2821_vm4, %v13586_v19, %v6953_v57  ;;  %v6259_v57 = vld [vmem:[#allocation2 + $0x68] sm:$0xe]  ;;  %v9139_v44 = vcombine.low %v6365_v12, %v6369_v1  ;;  %v8992_v1 = vrot.slane %v6265_v56, 9  ;;  %v6266_v12 = vld [vmem:[#allocation2 + $0xb0] sm:$0xe] }
 0x350   : > { %v9323_v14 = vpop.f32.mrf.mxu1  ;;  %v6275_v56 = vld [vmem:[#allocation2 + $0x108] sm:$0xe] }
 0x351   : > { %v13655_v60 = vadd.f32 %v9323_v14, %v9322_v46  ;;  %v8983_v46 = vrot.slane %v6256_v24, 9  ;;  %v6372_v14 = vrot.slane %v9817_v17, 5  ;;  %v6404_v24 = vrot.slane %v9825_v48, 5 }
 0x352   : > { %v9325_v42 = vpop.f32.mrf.mxu1 }
 0x353   : > { %v6373_v40 = vsel %vm11547_vm11, %v8983_v46, %v6372_v14  ;;  %v8994_v46 = vrot.slane %v6267_v8, 9  ;;  %v8993_v14 = vrot.slane %v6266_v12, 9  ;;  %v9835_v12 = vld [vmem:[#allocation2 + $0x10c] sm:$0x1] }
 0x354   : > { %v7143_v22 = vpop.permute.xlu0 %7142  ;;  %v9326_v63 = vpop.f32.mrf.mxu1 }
 0x355   : > { %v7445_v23 = vsel %vm2953_vm8, %v7399_v6, %v7143_v22  ;;  %v13659_v61 = vadd.f32 %v9326_v63, %v9325_v42  ;;  %v6633_v20 = vpop.permute.xlu1 %6632  ;;  %v8984_v6 = vrot.slane %v6257_v0, 9  ;;  %v9818_v22 = vld [vmem:[#allocation2 + $0x4c] sm:$0x1]  ;;  %v6258_v42 = vld [vmem:[#allocation2 + $0x60] sm:$0xe] }
 0x356   : > { %7793 = vmatprep.mubr.bf16.mxu1 %v7445_v23  ;;  %v7241_v62 = vsel %vm2821_vm4, %v9024_v49, %v6633_v20  ;;  %v6376_v23 = vrot.slane %v9818_v22, 5  ;;  %v9819_v63 = vld [vmem:[#allocation2 + $0x6c] sm:$0x1]  ;;  %v8985_v18 = vrot.slane %v6258_v42, 9  ;;  %v9820_v20 = vld [vmem:[#allocation2 + $0x64] sm:$0x1] }
 0x357   : > { %7794 = vmatmul.mubr.bf16.gmra.mxu1 %v7317_v2  ;;  %v7273_v15 = vsel %vm2887_vm6, %v7241_v62, %v6713_v31  ;;  %v8986_v2 = vrot.slane %v6259_v57, 9  ;;  %v6384_v31 = vrot.slane %v9819_v63, 5  ;;  %v9826_v0 = vld [vmem:[#allocation2 + $0x9c] sm:$0x1] }
 0x358   : > { %v6377_v28 = vsel %vm11547_vm11, %v8984_v6, %v6376_v23  ;;  %v6408_v57 = vrot.slane %v9826_v0, 5  ;;  %v9828_v6 = vld [vmem:[#allocation2 + $0xb4] sm:$0x1]  ;;  %v6274_v0 = vld [vmem:[#allocation2 + $0x100] sm:$0xe] }
 0x359   : > { %v6825_v5 = vpop.permute.xlu1 %6824  ;;  %v6385_v7 = vsel %vm11547_vm11, %v8986_v2, %v6384_v31  ;;  %v6412_v22 = vrot.slane %v9828_v6, 5  ;;  %v6269_v31 = vld [vmem:[#allocation2 + $0xc8] sm:$0xe] }
 0x35a   : > { %v7320_v19 = vsel %vm2953_vm8, %v7273_v15, %v6825_v5  ;;  %v8990_v5 = vrot.slane %v6263_v30, 9  ;;  %v9824_v15 = vld [vmem:[#allocation2 + $0x84] sm:$0x1]  ;;  %v6409_v2 = vsel %vm11547_vm11, %v8992_v1, %v6408_v57  ;;  %v9002_v57 = vrot.slane %v6275_v56, 9 }
 0x35b   : > { %v6396_v54 = vrot.slane %v9824_v15, 5 }
 0x360   : > { %v7065_v55 = vpop.permute.xlu0 %7064 }
 0x361   : > { %v7401_v35 = vsel %vm2887_vm6, %v7369_v9, %v7065_v55  ;;  %v6380_v55 = vrot.slane %v9820_v20, 5  ;;  %v6262_v9 = vld [vmem:[#allocation2 + $0x80] sm:$0xe]  ;;  %v6271_v20 = vld [vmem:[#allocation2 + $0xd8] sm:$0xe] }
 0x363   : > { %v6381_v39 = vsel %vm11547_vm11, %v8985_v18, %v6380_v55 }
 0x364   : > { %v9141_v37 = vcombine.low %v6381_v39, %v6385_v7  ;;  %v6268_v7 = vld [vmem:[#allocation2 + $0xc0] sm:$0xe]  ;;  %v9829_v39 = vld [vmem:[#allocation2 + $0xcc] sm:$0x1] }
 0x365   : > { %v9328_v45 = vpop.f32.mrf.mxu1 }
 0x367   : > { %v9329_v52 = vpop.f32.mrf.mxu1 }
 0x368   : > { %v13670_v26 = vadd.f32 %v9329_v52, %v9328_v45  ;;  %v9821_v45 = vld [vmem:[#allocation2 + $0x7c] sm:$0x1]  ;;  %v6400_v52 = vrot.slane %v9822_v25, 5  ;;  %v9831_v25 = vld [vmem:[#allocation2 + $0xc4] sm:$0x1] }
 0x369   : > { %v7145_v13 = vpop.permute.xlu0 %7144  ;;  %v9331_v49 = vpop.f32.mrf.mxu1  ;;  %v6392_v62 = vrot.slane %v9821_v45, 5  ;;  %v9830_v45 = vld [vmem:[#allocation2 + $0xdc] sm:$0x1] }
 0x36a   : > { %v7448_v16 = vsel %vm2953_vm8, %v7401_v35, %v7145_v13  ;;  %v8987_v35 = vrot.slane %v6260_v41, 9  ;;  %v9823_v13 = vld [vmem:[#allocation2 + $0x74] sm:$0x1]  ;;  %v6424_v41 = vrot.slane %v9829_v39, 5  ;;  %v6464_v39 = vrot.slane %v13314_v51, 5 }
 0x36b   : > { %7801 = vmatprep.mubr.bf16.mxu1 %v7448_v16  ;;  %v9332_v36 = vpop.f32.mrf.mxu1  ;;  %v6388_v32 = vrot.slane %v9823_v13, 5  ;;  %v8989_v16 = vrot.slane %v6262_v9, 9  ;;  %v6281_v51 = vld [vmem:[#allocation2 + $0x138] sm:$0xe] }
 0x36c   : > { %7802 = vmatmul.mubr.bf16.gmra.mxu1 %v7320_v19  ;;  %v13678_v47 = vadd.f32 %v9332_v36, %v9331_v49  ;;  %v6393_v49 = vsel %vm11547_vm11, %v8988_v38, %v6392_v62  ;;  %v6264_v19 = vld [vmem:[#allocation2 + $0x90] sm:$0xe]  ;;  %v8998_v38 = vrot.slane %v6271_v20, 9  ;;  %v6432_v62 = vrot.slane %v9830_v45, 5 }
 0x36d   : > { %9445 = vmatprep.mubr.msk.bf16.mxu1 %vm2821_vm4, %v9137_v33  ;;  %v6401_v33 = vsel %vm11547_vm11, %v8990_v5, %v6400_v52  ;;  %v6389_v10 = vsel %vm11547_vm11, %v8987_v35, %v6388_v32  ;;  %v6397_v36 = vsel %vm11547_vm11, %v8989_v16, %v6396_v54  ;;  %v8991_v11 = vrot.slane %v6264_v19, 9  ;;  %v9832_v32 = vld [vmem:[#allocation2 + $0xd4] sm:$0x1]  ;;  %v6272_v54 = vld [vmem:[#allocation2 + $0xe0] sm:$0xe] }
 0x36e   : > { %v9142_v50 = vcombine.low %v6389_v10, %v6393_v49  ;;  %v9143_v4 = vcombine.low %v6397_v36, %v6401_v33  ;;  %v8995_v5 = vrot.slane %v6268_v7, 9  ;;  %v6420_v52 = vrot.slane %v9831_v25, 5  ;;  %v6273_v19 = vld [vmem:[#allocation2 + $0xe8] sm:$0xe] }
 0x36f   : > { %v6405_v42 = vsel %vm11547_vm11, %v8991_v11, %v6404_v24  ;;  %v6428_v16 = vrot.slane %v9832_v32, 5  ;;  %v6433_v49 = vsel %vm11547_vm11, %v8998_v38, %v6432_v62  ;;  %v9833_v11 = vld [vmem:[#allocation2 + $0xe4] sm:$0x1]  ;;  %v9000_v48 = vrot.slane %v6273_v19, 9  ;;  %v9834_v24 = vld [vmem:[#allocation2 + $0xec] sm:$0x1] }
 0x370   : > { %v6421_v33 = vsel %vm11547_vm11, %v8995_v5, %v6420_v52  ;;  %v6440_v1 = vrot.slane %v9834_v24, 5 }
 0x374   : > { %9446 = vmatmul.mubr.msk.bf16.vlgmr.msra.gmra.mxu1 %vm2821_vm4, %v9138_v53  ;;  %v9140_v53 = vcombine.low %v6373_v40, %v6377_v28  ;;  %v9144_v40 = vcombine.low %v6405_v42, %v6409_v2  ;;  %v6413_v28 = vsel %vm11547_vm11, %v8993_v14, %v6412_v22  ;;  %v6441_v22 = vsel %vm11547_vm11, %v9000_v48, %v6440_v1  ;;  %v6277_v42 = vld [vmem:[#allocation2 + $0x118] sm:$0xe]  ;;  %v6279_v2 = vld [vmem:[#allocation2 + $0x128] sm:$0xe] }
 0x375   : > { %9449 = vmatprep.mubr.msk.bf16.mxu1 %vm2821_vm4, %v9139_v44  ;;  %v9827_v44 = vld [vmem:[#allocation2 + $0xbc] sm:$0x1] }
 0x376   : > { %v6416_v17 = vrot.slane %v9827_v44, 5  ;;  %v9001_v44 = vrot.slane %v6274_v0, 9 }
 0x378   : > { %v6417_v63 = vsel %vm11547_vm11, %v8994_v46, %v6416_v17  ;;  %v6448_v46 = vrot.slane %v9835_v12, 5  ;;  %v9836_v17 = vld [vmem:[#allocation2 + $0x104] sm:$0x1] }
 0x379   : > { %v9145_v30 = vcombine.low %v6413_v28, %v6417_v63  ;;  %v6444_v14 = vrot.slane %v9836_v17, 5  ;;  %v9837_v28 = vld [vmem:[#allocation2 + $0x11c] sm:$0x1] }
 0x37a   : > { %v6456_v7 = vrot.slane %v9837_v28, 5 }
 0x37c   : > { %9450 = vmatmul.mubr.msk.bf16.gmra.mxu1 %vm2821_vm4, %v9140_v53  ;;  %v8996_v53 = vrot.slane %v6269_v31, 9  ;;  %v6445_v31 = vsel %vm11547_vm11, %v9001_v44, %v6444_v14 }
 0x37d   : > { %9453 = vmatprep.mubr.msk.bf16.mxu1 %vm2821_vm4, %v9141_v37  ;;  %v6270_v37 = vld [vmem:[#allocation2 + $0xd0] sm:$0xe] }
 0x37e   : > { %v8997_v13 = vrot.slane %v6270_v37, 9  ;;  %v6425_v15 = vsel %vm11547_vm11, %v8996_v53, %v6424_v41  ;;  %v9006_v53 = vrot.slane %v6279_v2, 9  ;;  %v9838_v37 = vld [vmem:[#allocation2 + $0x114] sm:$0x1] }
 0x37f   : > { %v9146_v10 = vcombine.low %v6421_v33, %v6425_v15  ;;  %v6452_v38 = vrot.slane %v9838_v37, 5  ;;  %v6468_v33 = vrot.slane %v13375_v59, 5 }
 0x380   : > { %v6429_v8 = vsel %vm11547_vm11, %v8997_v13, %v6428_v16  ;;  %v6465_v32 = vsel %vm11547_vm11, %v9006_v53, %v6464_v39  ;;  %v6280_v16 = vld [vmem:[#allocation2 + $0x130] sm:$0xe] }
 0x381   : > { %v9147_v36 = vcombine.low %v6429_v8, %v6433_v49  ;;  %v9007_v8 = vrot.slane %v6280_v16, 9 }
 0x384   : > { %9454 = vmatmul.mubr.msk.bf16.gmra.mxu1 %vm2821_vm4, %v9142_v50  ;;  %v8999_v50 = vrot.slane %v6272_v54, 9 }
 0x385   : > { %9457 = vmatprep.mubr.msk.bf16.mxu1 %vm2821_vm4, %v9143_v4  ;;  %v6436_v4 = vrot.slane %v9833_v11, 5  ;;  %v6469_v11 = vsel %vm11547_vm11, %v9007_v8, %v6468_v33 }
 0x386   : > { %v9334_v23 = vpop.f32.mrf.mxu1 }
 0x387   : > { %v6437_v6 = vsel %vm11547_vm11, %v8999_v50, %v6436_v4  ;;  %v9008_v50 = vrot.slane %v6281_v51, 9 }
 0x388   : > { %v9335_v18 = vpop.f32.mrf.mxu1  ;;  %v9148_v63 = vcombine.low %v6437_v6, %v6441_v22 }
 0x389   : > { %v13715_v55 = vadd.f32 %v9335_v18, %v9334_v23  ;;  %v6449_v23 = vsel %vm11547_vm11, %v9002_v57, %v6448_v46  ;;  %v6276_v18 = vld [vmem:[#allocation2 + $0x110] sm:$0xe] }
 0x38a   : > { %v9337_v29 = vpop.f32.mrf.mxu1  ;;  %v9149_v20 = vcombine.low %v6445_v31, %v6449_v23  ;;  %v9003_v41 = vrot.slane %v6276_v18, 9 }
 0x38c   : > { %9458 = vmatmul.mubr.msk.bf16.gmra.mxu1 %vm2821_vm4, %v9144_v40  ;;  %v9338_v9 = vpop.f32.mrf.mxu1  ;;  %v9004_v40 = vrot.slane %v6277_v42, 9  ;;  %v6453_v15 = vsel %vm11547_vm11, %v9003_v41, %v6452_v38 }
 0x38d   : > { %9461 = vmatprep.mubr.msk.bf16.mxu1 %vm2821_vm4, %v9145_v30  ;;  %v13721_v35 = vadd.f32 %v9338_v9, %v9337_v29  ;;  %v6278_v29 = vld [vmem:[#allocation2 + $0x120] sm:$0xe]  ;;  %v9839_v9 = vld [vmem:[#allocation2 + $0x124] sm:$0x1] }
 0x38e   : > { %v9005_v62 = vrot.slane %v6278_v29, 9  ;;  %v6460_v5 = vrot.slane %v9839_v9, 5  ;;  %v6457_v52 = vsel %vm11547_vm11, %v9004_v40, %v6456_v7 }
 0x38f   : > { %v9150_v49 = vcombine.low %v6453_v15, %v6457_v52 }
 0x390   : > { %v6461_v19 = vsel %vm11547_vm11, %v9005_v62, %v6460_v5 }
 0x394   : > { %9462 = vmatmul.mubr.msk.bf16.gmra.mxu1 %vm2821_vm4, %v9146_v10  ;;  %v9151_v10 = vcombine.low %v6461_v19, %v6465_v32 }
 0x395   : > { %9465 = vmatprep.mubr.msk.bf16.mxu1 %vm2821_vm4, %v9147_v36  ;;  %v6472_v36 = vrot.slane %v13426_v27, 5 }
 0x397   : > { %v6473_v4 = vsel %vm11547_vm11, %v9008_v50, %v6472_v36 }
 0x398   : > { %v9152_v24 = vcombine.low %v6469_v11, %v6473_v4 }
 0x39a   : > { %v9340_v30 = vpop.f32.mrf.mxu1 }
 0x39c   : > { %9466 = vmatmul.mubr.msk.bf16.gmra.mxu1 %vm2821_vm4, %v9148_v63  ;;  %v9341_v45 = vpop.f32.mrf.mxu1 }
 0x39d   : > { %9469 = vmatprep.mubr.msk.bf16.mxu1 %vm2821_vm4, %v9149_v20  ;;  %v13744_v25 = vadd.f32 %v9341_v45, %v9340_v30 }
 0x39e   : > { %v9343_v13 = vpop.f32.mrf.mxu1 }
 0x3a0   : > { %v9344_v54 = vpop.f32.mrf.mxu1 }
 0x3a1   : > { %v13755_v56 = vadd.f32 %v9344_v54, %v9343_v13 }
 0x3a4   : > { %9470 = vmatmul.mubr.msk.bf16.gmra.mxu1 %vm2821_vm4, %v9150_v49 }
 0x3a5   : > { %9473 = vmatprep.mubr.msk.bf16.mxu1 %vm2821_vm4, %v9151_v10 }
 0x3a8   : > { %v9346_v48 = vpop.f32.mrf.mxu1 }
 0x3aa   : > { %v9347_v59 = vpop.f32.mrf.mxu1 }
 0x3ab   : > { %v13764_v1 = vadd.f32 %v9347_v59, %v9346_v48 }
 0x3ac   : > { %9474 = vmatmul.mubr.msk.bf16.gmra.mxu1 %vm2821_vm4, %v9152_v24  ;;  %v9349_v0 = vpop.f32.mrf.mxu1 }
 0x3ae   : > { %v9350_v57 = vpop.f32.mrf.mxu1  ;;  %v9481_v13 = vpop.f32.mrf.mxu0 }
 0x3af   : > { %v13767_v27 = vadd.f32 %v9350_v57, %v9349_v0 }
 0x3b0   : > { %v9352_v12 = vpop.f32.mrf.mxu1  ;;  %v8180_v32 = vpop.f32.mrf.mxu0 }
 0x3b2   : > { %v9353_v46 = vpop.f32.mrf.mxu1  ;;  %v9482_v51 = vpop.f32.mrf.mxu0 }
 0x3b3   : > { %v13769_v44 = vadd.f32 %v9353_v46, %v9352_v12 }
 0x3b4   : > { %v9355_v17 = vpop.f32.mrf.mxu1  ;;  %v8183_v19 = vpop.f32.mrf.mxu0 }
 0x3b6   : > { %v9356_v14 = vpop.f32.mrf.mxu1  ;;  %v9485_v8 = vpop.f32.mrf.mxu0 }
 0x3b7   : > { %v13771_v6 = vadd.f32 %v9356_v14, %v9355_v17 }
 0x3b8   : > { %v9358_v21 = vpop.f32.mrf.mxu1  ;;  %v13793_v50 = vpop.f32.mrf.mxu0 }
 0x3ba   : > { %v9359_v22 = vpop.f32.mrf.mxu1  ;;  %v13795_v36 = vpop.f32.mrf.mxu0 }
 0x3bb   : > { %v13773_v23 = vadd.f32 %v9359_v22, %v9358_v21 }
 0x3bc   : > { %v9361_v42 = vpop.f32.mrf.mxu1  ;;  %v13797_v48 = vpop.f32.mrf.mxu0 }
 0x3be   : > { %v9362_v2 = vpop.f32.mrf.mxu1  ;;  %v13801_v57 = vpop.f32.mrf.mxu0 }
 0x3bf   : > { %v13775_v63 = vadd.f32 %v9362_v2, %v9361_v42 }
 0x3c0   : > { %v9364_v31 = vpop.f32.mrf.mxu1  ;;  %v13805_v17 = vpop.f32.mrf.mxu0 }
 0x3c2   : > { %v9365_v18 = vpop.f32.mrf.mxu1  ;;  %v13809_v42 = vpop.f32.mrf.mxu0 }
 0x3c3   : > { %v13777_v20 = vadd.f32 %v9365_v18, %v9364_v31 }
 0x3c4   : > { %v9367_v40 = vpop.f32.mrf.mxu1  ;;  %v13813_v18 = vpop.f32.mrf.mxu0 }
 0x3c6   : > { %v9368_v28 = vpop.f32.mrf.mxu1 }
 0x3c7   : > { %v13779_v7 = vadd.f32 %v9368_v28, %v9367_v40  ;;  %v13815_v40 = vpop.f32.mrf.mxu0 }
 0x3c8   : > { %v9370_v29 = vpop.f32.mrf.mxu1 }
 0x3c9   : > { %v13817_v28 = vpop.f32.mrf.mxu0 }
 0x3ca   : > { %v9371_v30 = vpop.f32.mrf.mxu1 }
 0x3cb   : > { %v13781_v53 = vadd.f32 %v9371_v30, %v9370_v29  ;;  %v13821_v30 = vpop.f32.mrf.mxu0 }
 0x3cc   : > { %v9373_v39 = vpop.f32.mrf.mxu1 }
 0x3ce   : > { %v9374_v41 = vpop.f32.mrf.mxu1 }
 0x3cf   : > { %v13783_v37 = vadd.f32 %v9374_v41, %v9373_v39  ;;  %v13828_v41 = vld [vmem:[%s14100_s6] ss:$0 sm:$0xff] }
 0x3d0   : > { %v9376_v38 = vpop.f32.mrf.mxu1 }
 0x3d2   : > { %v9377_v45 = vpop.f32.mrf.mxu1 }
 0x3d3   : > { %v13785_v62 = vadd.f32 %v9377_v45, %v9376_v38  ;;  %v13832_v45 = vpop.f32.mrf.mxu0 }
 0x3d4   : > { %v9379_v9 = vpop.f32.mrf.mxu1 }
 0x3d6   : > { %v9380_v5 = vpop.f32.mrf.mxu1 }
 0x3d7   : > { %v13787_v52 = vadd.f32 %v9380_v5, %v9379_v9  ;;  %v13840_v5 = vld [vmem:[%s14098_s4] ss:$0 sm:$0xff] }
 0x3fb   : > { %v9382_v16 = vpop.f32.mrf.mxu1 }
 0x3fd   : > { %v9383_v15 = vpop.f32.mrf.mxu1 }
 0x3fe   : > { %v13789_v54 = vadd.f32 %v9383_v15, %v9382_v16  ;;  %v8189_v16 = vadd.f32 %v9481_v13, %v13828_v41  ;;  %v7692_v15 = vadd.f32 %v13636_v58, %v13840_v5  ;;  %v7695_v13 = vadd.f32 %v13638_v3, %v13840_v5 }
 0x3ff   : > { %v9385_v49 = vpop.f32.mrf.mxu1 }
 0x401   : > { %v9386_v33 = vpop.f32.mrf.mxu1 }
 0x402   : > { %v13791_v10 = vadd.f32 %v9386_v33, %v9385_v49  ;;  %v13845_v33 = vpop.f32.mrf.mxu0 }
 0x40d   : > { %v9388_v11 = vpop.f32.mrf.mxu1 }
 0x40f   : > { %v9389_v4 = vpop.f32.mrf.mxu1 }
 0x410   : > { %v13799_v24 = vadd.f32 %v9389_v4, %v9388_v11  ;;  %v7684_v4 = vadd.f32 %v13621_v34, %v13840_v5  ;;  %v8184_v34 = vadd.f32 %v13828_v41, %v8183_v19 }
 0x411   : > { %v9391_v59 = vpop.f32.mrf.mxu1 }
 0x413   : > { %v9392_v0 = vpop.f32.mrf.mxu1 }
 0x414   : > { %v13803_v12 = vadd.f32 %v9392_v0, %v9391_v59  ;;  %v8181_v0 = vadd.f32 %v13828_v41, %v8180_v32  ;;  %v8205_v32 = vadd.f32 %v9485_v8, %v13828_v41 }
 0x417   : > { %v9394_v46 = vpop.f32.mrf.mxu1 }
 0x419   : > { %v9395_v14 = vpop.f32.mrf.mxu1 }
 0x41a   : > { %v13807_v21 = vadd.f32 %v9395_v14, %v9394_v46 }
 0x41b   : > { %v9397_v22 = vpop.f32.mrf.mxu1 }
 0x41c   : > { %14266 = vst [vmem:[#allocation19_spill] sm:$0xff] %v13807_v21 }
 0x41d   : > { %v9398_v2 = vpop.f32.mrf.mxu1 }
 0x41e   : > { %v13811_v31 = vadd.f32 %v9398_v2, %v9397_v22  ;;  %v8192_v22 = vadd.f32 %v9482_v51, %v13828_v41  ;;  %v13855_v2 = vpop.f32.mrf.mxu0 }
 0x420   : > { %14267 = vst [vmem:[#allocation20_spill] sm:$0xff] %v13811_v31 }
 0x42c   : > { %v13819_v29 = vpop.f32.mrf.mxu1 }
 0x42e   : > { %v13823_v39 = vpop.f32.mrf.mxu1 }
 0x430   : > { %v13830_v38 = vpop.f32.mrf.mxu1 }
 0x432   : > { %v13834_v9 = vpop.f32.mrf.mxu1 }
 0x433   : > { %14268 = vst [vmem:[#allocation21_spill] sm:$0xff] %v13834_v9 }
 0x434   : > { %v9447_v49 = vpop.f32.mrf.mxu1 }
 0x435   : > { %v7853_v11 = vadd.f32 %v9447_v49, %v7692_v15  ;;  %v7687_v15 = vadd.f32 %v13625_v43, %v13840_v5  ;;  %v13867_v43 = vpop.f32.mrf.mxu0 }
 0x436   : > { %v7844_v59 = vpop.f32.mrf.mxu1 }
 0x437   : > { %v8309_v46 = vadd.f32 %v8189_v16, %v7853_v11  ;;  %v7845_v14 = vadd.f32 %v7844_v59, %v7684_v4  ;;  %v7708_v11 = vadd.f32 %v13670_v26, %v13840_v5 }
 0x438   : > { %v9448_v58 = vpop.f32.mrf.mxu1 }
 0x439   : > { %v8341_v31 = vmax.f32 %v8309_v46, 0.0  ;;  %v8307_v21 = vadd.f32 %v8181_v0, %v7845_v14  ;;  %v7856_v9 = vadd.f32 %v9448_v58, %v7695_v13  ;;  %v7700_v0 = vadd.f32 %v13655_v60, %v13840_v5  ;;  %v13881_v58 = vpop.f32.mrf.mxu0 }
 0x43a   : > { %v7847_v16 = vpop.f32.mrf.mxu1  ;;  %v7711_v14 = vadd.f32 %v13678_v47, %v13840_v5  ;;  %v8208_v13 = vadd.f32 %v13795_v36, %v13828_v41  ;;  %v8221_v47 = vadd.f32 %v13801_v57, %v13828_v41  ;;  %v7716_v57 = vadd.f32 %v13715_v55, %v13840_v5 }
 0x43b   : > { %8373 = vst.msk [vmem:[%s13861_s18 + $0x10] sm:$0xff] %vm2821_vm4, %v8341_v31  ;;  %v8339_v3 = vmax.f32 %v8307_v21, 0.0  ;;  %v8310_v51 = vadd.f32 %v8192_v22, %v7856_v9  ;;  %v7848_v49 = vadd.f32 %v7847_v16, %v7687_v15  ;;  %v8197_v21 = vadd.f32 %v13828_v41, %v13793_v50 }
 0x43c   : > { %v9451_v4 = vpop.f32.mrf.mxu1 }
 0x43d   : > { %8371 = vst.msk [vmem:[%s13861_s18] sm:$0xff] %vm2821_vm4, %v8339_v3  ;;  %v8342_v19 = vmax.f32 %v8310_v51, 0.0  ;;  %v8308_v8 = vadd.f32 %v8184_v34, %v7848_v49  ;;  %v7869_v59 = vadd.f32 %v9451_v4, %v7708_v11  ;;  %v7703_v34 = vadd.f32 %v13659_v61, %v13840_v5  ;;  %v13895_v4 = vpop.f32.mrf.mxu0 }
 0x43e   : > { %v7860_v31 = vpop.f32.mrf.mxu1  ;;  %v7724_v49 = vadd.f32 %v13744_v25, %v13840_v5 }
 0x43f   : > { %8374 = vst.msk [vmem:[%s13861_s18 + $0x18] sm:$0xff] %vm2821_vm4, %v8342_v19  ;;  %v8340_v26 = vmax.f32 %v8308_v8, 0.0  ;;  %v8313_v9 = vadd.f32 %v8205_v32, %v7869_v59  ;;  %v7861_v46 = vadd.f32 %v7860_v31, %v7700_v0  ;;  %v8200_v32 = vadd.f32 %v13828_v41, %v13797_v48 }
 0x440   : > { %v9452_v22 = vpop.f32.mrf.mxu1  ;;  %v8213_v8 = vadd.f32 %v13828_v41, %v13805_v17  ;;  %v7727_v31 = vadd.f32 %v13755_v56, %v13840_v5  ;;  %v8237_v56 = vadd.f32 %v13815_v40, %v13828_v41  ;;  %v7732_v40 = vadd.f32 %v13764_v1, %v13840_v5 }
 0x441   : > { %8372 = vst.msk [vmem:[%s13861_s18 + $0x8] sm:$0xff] %vm2821_vm4, %v8340_v26  ;;  %v8345_v60 = vmax.f32 %v8313_v9, 0.0  ;;  %v8311_v50 = vadd.f32 %v8197_v21, %v7861_v46  ;;  %v7872_v15 = vadd.f32 %v9452_v22, %v7711_v14  ;;  %v8224_v26 = vadd.f32 %v13809_v42, %v13828_v41  ;;  %v13909_v46 = vpop.f32.mrf.mxu0 }
 0x442   : > { %v7863_v36 = vpop.f32.mrf.mxu1  ;;  %v8216_v22 = vadd.f32 %v13828_v41, %v13813_v18 }
 0x443   : > { %8377 = vst.msk [vmem:[%s13861_s18 + $0x30] sm:$0xff] %vm2821_vm4, %v8345_v60  ;;  %v8343_v16 = vmax.f32 %v8311_v50, 0.0  ;;  %v8314_v3 = vadd.f32 %v8208_v13, %v7872_v15  ;;  %v7864_v51 = vadd.f32 %v7863_v36, %v7703_v34  ;;  %v7719_v13 = vadd.f32 %v13721_v35, %v13840_v5 }
 0x444   : > { %v9455_v11 = vpop.f32.mrf.mxu1  ;;  %v7740_v34 = vadd.f32 %v13769_v44, %v13840_v5 }
 0x445   : > { %8375 = vst.msk [vmem:[%s13861_s18 + $0x20] sm:$0xff] %vm2821_vm4, %v8343_v16  ;;  %v8346_v61 = vmax.f32 %v8314_v3, 0.0  ;;  %v8312_v48 = vadd.f32 %v8200_v32, %v7864_v51  ;;  %v7885_v19 = vadd.f32 %v9455_v11, %v7724_v49  ;;  %v8229_v16 = vadd.f32 %v13828_v41, %v13817_v28 }
 0x446   : > { %v7876_v59 = vpop.f32.mrf.mxu1  ;;  %v7743_v11 = vadd.f32 %v13771_v6, %v13840_v5  ;;  %v8253_v6 = vadd.f32 %v13845_v33, %v13828_v41  ;;  %v7748_v33 = vadd.f32 %v13773_v23, %v13840_v5 }
 0x447   : > { %8378 = vst.msk [vmem:[%s13861_s18 + $0x38] sm:$0xff] %vm2821_vm4, %v8346_v61  ;;  %v8344_v25 = vmax.f32 %v8312_v48, 0.0  ;;  %v8317_v0 = vadd.f32 %v8221_v47, %v7885_v19  ;;  %v7877_v21 = vadd.f32 %v7876_v59, %v7716_v57  ;;  %v13923_v47 = vpop.f32.mrf.mxu0  ;;  %v8240_v61 = vadd.f32 %v13821_v30, %v13828_v41 }
 0x448   : > { %v9456_v9 = vpop.f32.mrf.mxu1  ;;  %v8232_v59 = vadd.f32 %v13828_v41, %v13832_v45 }
 0x449   : > { %8376 = vst.msk [vmem:[%s13861_s18 + $0x28] sm:$0xff] %vm2821_vm4, %v8344_v25  ;;  %v8349_v55 = vmax.f32 %v8317_v0, 0.0  ;;  %v8315_v17 = vadd.f32 %v8213_v8, %v7877_v21  ;;  %v7888_v14 = vadd.f32 %v9456_v9, %v7727_v31  ;;  %v13937_v19 = vpop.f32.mrf.mxu0  ;;  %v7735_v8 = vadd.f32 %v13767_v27, %v13840_v5 }
 0x44a   : > { %v7879_v42 = vpop.f32.mrf.mxu1  ;;  %v7756_v31 = vadd.f32 %v13777_v20, %v13840_v5 }
 0x44b   : > { %8381 = vst.msk [vmem:[%s13861_s18 + $0x50] sm:$0xff] %vm2821_vm4, %v8349_v55  ;;  %v8347_v60 = vmax.f32 %v8315_v17, 0.0  ;;  %v8318_v50 = vadd.f32 %v8224_v26, %v7888_v14  ;;  %v7880_v15 = vadd.f32 %v7879_v42, %v7719_v13  ;;  %v9505_v9 = vpop.f32.mrf.mxu0  ;;  %v8245_v17 = vadd.f32 %v13828_v41, %v13855_v2 }
 0x44c   : > { %v9459_v32 = vpop.f32.mrf.mxu1  ;;  %v8256_v42 = vadd.f32 %v13867_v43, %v13828_v41 }
 0x44d   : > { %8379 = vst.msk [vmem:[%s13861_s18 + $0x40] sm:$0xff] %vm2821_vm4, %v8347_v60  ;;  %v8350_v35 = vmax.f32 %v8318_v50, 0.0  ;;  %v8316_v18 = vadd.f32 %v8216_v22, %v7880_v15  ;;  %v7901_v36 = vadd.f32 %v9459_v32, %v7740_v34  ;;  %v8276_v50 = vpop.f32.mrf.mxu0  ;;  %v7751_v34 = vadd.f32 %v13775_v63, %v13840_v5 }
 0x44e   : > { %v7892_v3 = vpop.f32.mrf.mxu1  ;;  %v8248_v32 = vadd.f32 %v13828_v41, %v13881_v58 }
 0x44f   : > { %8382 = vst.msk [vmem:[%s13861_s18 + $0x58] sm:$0xff] %vm2821_vm4, %v8350_v35  ;;  %v8348_v44 = vmax.f32 %v8316_v18, 0.0  ;;  %v8321_v51 = vadd.f32 %v8237_v56, %v7901_v36  ;;  %v7893_v49 = vadd.f32 %v7892_v3, %v7732_v40  ;;  %v7759_v56 = vadd.f32 %v13779_v7, %v13840_v5  ;;  %v9506_v3 = vpop.f32.mrf.mxu0 }
 0x450   : > { %v9460_v48 = vpop.f32.mrf.mxu1  ;;  %v8269_v7 = vadd.f32 %v13895_v4, %v13828_v41  ;;  %v7772_v40 = vadd.f32 %v13785_v62, %v13840_v5  ;;  %v7764_v4 = vadd.f32 %v13781_v53, %v13840_v5 }
 0x451   : > { %8380 = vst.msk [vmem:[%s13861_s18 + $0x48] sm:$0xff] %vm2821_vm4, %v8348_v44  ;;  %v8353_v1 = vmax.f32 %v8321_v51, 0.0  ;;  %v8319_v28 = vadd.f32 %v8229_v16, %v7893_v49  ;;  %v7904_v57 = vadd.f32 %v9460_v48, %v7743_v11  ;;  %v8261_v51 = vadd.f32 %v13828_v41, %v13909_v46 }
 0x452   : > { %v7895_v30 = vpop.f32.mrf.mxu1  ;;  %v7775_v48 = vadd.f32 %v13787_v52, %v13840_v5 }
 0x453   : > { %8385 = vst.msk [vmem:[%s13861_s18 + $0x70] sm:$0xff] %vm2821_vm4, %v8353_v1  ;;  %v8351_v25 = vmax.f32 %v8319_v28, 0.0  ;;  %v8322_v0 = vadd.f32 %v8240_v61, %v7904_v57  ;;  %v7896_v21 = vadd.f32 %v7895_v30, %v7735_v8  ;;  %v8272_v1 = vadd.f32 %v13923_v47, %v13828_v41  ;;  %v8279_v57 = vpop.f32.mrf.mxu0 }
 0x454   : > { %v9463_v26 = vpop.f32.mrf.mxu1  ;;  %v8285_v30 = vadd.f32 %v9505_v9, %v13828_v41  ;;  %v7780_v9 = vadd.f32 %v13789_v54, %v13840_v5 }
 0x455   : > { %8383 = vst.msk [vmem:[%s13861_s18 + $0x60] sm:$0xff] %vm2821_vm4, %v8351_v25  ;;  %v8354_v27 = vmax.f32 %v8322_v0, 0.0  ;;  %v8320_v45 = vadd.f32 %v8232_v59, %v7896_v21  ;;  %v7917_v55 = vadd.f32 %v9463_v26, %v7756_v31  ;;  %v7767_v59 = vadd.f32 %v13783_v37, %v13840_v5  ;;  %v9509_v26 = vpop.f32.mrf.mxu0 }
 0x456   : > { %v7908_v14 = vpop.f32.mrf.mxu1  ;;  %v7788_v21 = vadd.f32 %v13799_v24, %v13840_v5 }
 0x457   : > { %8386 = vst.msk [vmem:[%s13861_s18 + $0x78] sm:$0xff] %vm2821_vm4, %v8354_v27  ;;  %v8352_v13 = vmax.f32 %v8320_v45, 0.0  ;;  %v8325_v20 = vadd.f32 %v8253_v6, %v7917_v55  ;;  %v7909_v22 = vadd.f32 %v7908_v14, %v7748_v33  ;;  %v8264_v6 = vadd.f32 %v13828_v41, %v13937_v19 }
 0x458   : > { %v9464_v60 = vpop.f32.mrf.mxu1  ;;  %v9402_v45 = vadd.f32 %v13823_v39, %v13819_v29  ;;  %v8277_v55 = vadd.f32 %v13828_v41, %v8276_v50  ;;  %v8301_v50 = vadd.f32 %v9509_v26, %v13828_v41 }
 0x459   : > { %8384 = vst.msk [vmem:[%s13861_s18 + $0x68] sm:$0xff] %vm2821_vm4, %v8352_v13  ;;  %v8357_v23 = vmax.f32 %v8325_v20, 0.0  ;;  %v8323_v2 = vadd.f32 %v8245_v17, %v7909_v22  ;;  %v7920_v15 = vadd.f32 %v9464_v60, %v7759_v56  ;;  %v7791_v13 = vadd.f32 %v13803_v12, %v13840_v5  ;;  %v8292_v56 = vpop.f32.mrf.mxu0 }
 0x45a   : > { %v7911_v35 = vpop.f32.mrf.mxu1  ;;  %v8288_v20 = vadd.f32 %v9506_v3, %v13828_v41  ;;  %v8280_v60 = vadd.f32 %v13828_v41, %v8279_v57  ;;  %v7804_v12 = vadd.f32 %v9402_v45, %v13840_v5  ;;  %v8293_v3 = vadd.f32 %v13828_v41, %v8292_v56 }
 0x45b   : > { %8389 = vst.msk [vmem:[%s13861_s18 + $0x90] sm:$0xff] %vm2821_vm4, %v8357_v23  ;;  %v8355_v43 = vmax.f32 %v8323_v2, 0.0  ;;  %v8326_v18 = vadd.f32 %v8256_v42, %v7920_v15  ;;  %v7912_v36 = vadd.f32 %v7911_v35, %v7751_v34  ;;  %v7783_v42 = vadd.f32 %v13791_v10, %v13840_v5  ;;  %v14269_v2 = vld [vmem:[#allocation21_spill] sm:$0xff]  ;;  %v9510_v35 = vpop.f32.mrf.mxu0 }
 0x45c   : > { %v9467_v16 = vpop.f32.mrf.mxu1  ;;  %v9405_v15 = vadd.f32 %v14269_v2, %v13830_v38 }
 0x45d   : > { %8387 = vst.msk [vmem:[%s13861_s18 + $0x80] sm:$0xff] %vm2821_vm4, %v8355_v43  ;;  %v8358_v63 = vmax.f32 %v8326_v18, 0.0  ;;  %v8324_v58 = vadd.f32 %v8248_v32, %v7912_v36  ;;  %v7933_v44 = vadd.f32 %v9467_v16, %v7772_v40  ;;  %v14270_v40 = vld [vmem:[#allocation19_spill] sm:$0xff] }
 0x45e   : > { %v7924_v49 = vpop.f32.mrf.mxu1  ;;  %v7796_v16 = vadd.f32 %v14270_v40, %v13840_v5 }
 0x45f   : > { %8390 = vst.msk [vmem:[%s13861_s18 + $0x98] sm:$0xff] %vm2821_vm4, %v8358_v63  ;;  %v8356_v11 = vmax.f32 %v8324_v58, 0.0  ;;  %v8329_v62 = vadd.f32 %v8269_v7, %v7933_v44  ;;  %v7925_v61 = vadd.f32 %v7924_v49, %v7764_v4  ;;  %v7807_v4 = vadd.f32 %v9405_v15, %v13840_v5  ;;  %v8295_v49 = vpop.f32.mrf.mxu0 }
 0x460   : > { %v9468_v28 = vpop.f32.mrf.mxu1 }
 0x461   : > { %8388 = vst.msk [vmem:[%s13861_s18 + $0x88] sm:$0xff] %vm2821_vm4, %v8356_v11  ;;  %v8361_v53 = vmax.f32 %v8329_v62, 0.0  ;;  %v8327_v46 = vadd.f32 %v8261_v51, %v7925_v61  ;;  %v7936_v8 = vadd.f32 %v9468_v28, %v7775_v48  ;;  %v8304_v51 = vadd.f32 %v9510_v35, %v13828_v41 }
 0x462   : > { %v7927_v52 = vpop.f32.mrf.mxu1 }
 0x463   : > { %8393 = vst.msk [vmem:[%s13861_s18 + $0xb0] sm:$0xff] %vm2821_vm4, %v8361_v53  ;;  %v8359_v47 = vmax.f32 %v8327_v46, 0.0  ;;  %v8330_v25 = vadd.f32 %v8272_v1, %v7936_v8  ;;  %v7928_v0 = vadd.f32 %v7927_v52, %v7767_v59  ;;  %v14271_v1 = vld [vmem:[#allocation20_spill] sm:$0xff]  ;;  %v8296_v53 = vadd.f32 %v13828_v41, %v8295_v49 }
 0x464   : > { %v9471_v31 = vpop.f32.mrf.mxu1  ;;  %v7799_v28 = vadd.f32 %v14271_v1, %v13840_v5 }
 0x465   : > { %8391 = vst.msk [vmem:[%s13861_s18 + $0xa0] sm:$0xff] %vm2821_vm4, %v8359_v47  ;;  %v8362_v37 = vmax.f32 %v8330_v25, 0.0  ;;  %v8328_v27 = vadd.f32 %v8264_v6, %v7928_v0  ;;  %v7949_v19 = vadd.f32 %v9471_v31, %v7788_v21 }
 0x466   : > { %v7940_v33 = vpop.f32.mrf.mxu1 }
 0x467   : > { %8394 = vst.msk [vmem:[%s13861_s18 + $0xb8] sm:$0xff] %vm2821_vm4, %v8362_v37  ;;  %v8360_v24 = vmax.f32 %v8328_v27, 0.0  ;;  %v8333_v17 = vadd.f32 %v8285_v30, %v7949_v19  ;;  %v7941_v14 = vadd.f32 %v7940_v33, %v7780_v9 }
 0x468   : > { %v9472_v22 = vpop.f32.mrf.mxu1 }
 0x469   : > { %8392 = vst.msk [vmem:[%s13861_s18 + $0xa8] sm:$0xff] %vm2821_vm4, %v8360_v24  ;;  %v8365_v54 = vmax.f32 %v8333_v17, 0.0  ;;  %v8331_v29 = vadd.f32 %v8277_v55, %v7941_v14  ;;  %v7952_v39 = vadd.f32 %v9472_v22, %v7791_v13 }
 0x46a   : > { %v7943_v23 = vpop.f32.mrf.mxu1 }
 0x46b   : > { %8397 = vst.msk [vmem:[%s13861_s18 + $0xd0] sm:$0xff] %vm2821_vm4, %v8365_v54  ;;  %v8363_v34 = vmax.f32 %v8331_v29, 0.0  ;;  %v8334_v32 = vadd.f32 %v8288_v20, %v7952_v39  ;;  %v7944_v7 = vadd.f32 %v7943_v23, %v7783_v42 }
 0x46c   : > { %v9475_v43 = vpop.f32.mrf.mxu1 }
 0x46d   : > { %8395 = vst.msk [vmem:[%s13861_s18 + $0xc0] sm:$0xff] %vm2821_vm4, %v8363_v34  ;;  %v8366_v10 = vmax.f32 %v8334_v32, 0.0  ;;  %v8332_v18 = vadd.f32 %v8280_v60, %v7944_v7  ;;  %v7965_v36 = vadd.f32 %v9475_v43, %v7804_v12 }
 0x46e   : > { %v7956_v38 = vpop.f32.mrf.mxu1 }
 0x46f   : > { %8398 = vst.msk [vmem:[%s13861_s18 + $0xd8] sm:$0xff] %vm2821_vm4, %v8366_v10  ;;  %v8364_v63 = vmax.f32 %v8332_v18, 0.0  ;;  %v8337_v58 = vadd.f32 %v8301_v50, %v7965_v36  ;;  %v7957_v44 = vadd.f32 %v7956_v38, %v7796_v16 }
 0x470   : > { %v9476_v11 = vpop.f32.mrf.mxu1 }
 0x471   : > { %8396 = vst.msk [vmem:[%s13861_s18 + $0xc8] sm:$0xff] %vm2821_vm4, %v8364_v63  ;;  %v8369_v62 = vmax.f32 %v8337_v58, 0.0  ;;  %v8335_v61 = vadd.f32 %v8293_v3, %v7957_v44  ;;  %v7968_v48 = vadd.f32 %v9476_v11, %v7807_v4 }
 0x472   : > { %v7959_v57 = vpop.f32.mrf.mxu1 }
 0x473   : > { %8401 = vst.msk [vmem:[%s13861_s18 + $0xf0] sm:$0xff] %vm2821_vm4, %v8369_v62  ;;  %v8367_v46 = vmax.f32 %v8335_v61, 0.0  ;;  %v8338_v8 = vadd.f32 %v8304_v51, %v7968_v48  ;;  %v7960_v59 = vadd.f32 %v7959_v57, %v7799_v28 }
 0x475   : > { %8399 = vst.msk [vmem:[%s13861_s18 + $0xe0] sm:$0xff] %vm2821_vm4, %v8367_v46  ;;  %v8370_v6 = vmax.f32 %v8338_v8, 0.0  ;;  %v8336_v30 = vadd.f32 %v8296_v53, %v7960_v59 }
 0x477   : > { %8402 = vst.msk [vmem:[%s13861_s18 + $0xf8] sm:$0xff] %vm2821_vm4, %v8370_v6  ;;  %v8368_v41 = vmax.f32 %v8336_v30, 0.0 }
 0x479   : > { %8400 = vst.msk [vmem:[%s13861_s18 + $0xe8] sm:$0xff] %vm2821_vm4, %v8368_v41 }
 0x47a   : > { %9853 = shalt.err (!%p9850_p3)
}
 0x47b   : > { %s9854_s20 = scalar_lea.hbm %s14044_s21, 4096  ;;  %s9858_s16 = scalar_lea.hbm %s14101_s7, 8192 }
 0x47c   : > { %p9855_p4 = scmp.ne.s32.totalorder %s14044_s21, %s9854_s20  ;;  %p9859_p9 = scmp.lt.s32.totalorder %s14044_s21, %s14101_s7 }
 0x47d   : > { %p9860_p10 = scmp.lt.s32.totalorder %s9858_s16, %s9854_s20 }
 0x47e   : > { %p9856_p7 = pnand %p9855_p4, %p9991_p5 }
 0x47f   : > { %p9861_p11 = por %p9860_p10, %p9859_p9 }
 0x480   : > { %p9857_p8 = pneg %p9856_p7 }
 0x482   : > { %p9862_p12 = pnand %p9861_p11, %p9857_p8 }
 0x484   : > { %9865 = shalt.err (!%p9862_p12)
}
 0x485   : > { %s9911_s13 = smov 128   ;;  %s9912_s14 = smov 8  }
 0x486   : > { %9512 = dma.vmem_to_hbm [thread:$0]  (%p9991_p5), %s14046_s29, 4096, %s14044_s21, %s14054_s28, %s9911_s13, %s9911_s13, %s9912_s14  }
 0x487 PF: > { %p9518_p13 = scmp.ge.s32.totalorder %s9900_s27, 2  ;;  %s8433_s22 = sand.u32 1, %s9888_s24  }
 0x488   : > { %s8434_s8 = scalar_lea.sflag [#allocation4], %s8433_s22 }
 0x489   : > { %p9515_p0 = pnand %p9518_p13, %p9995_p6 }
 0x48b   : > { %p9516_p1 = pneg %p9515_p0 }
 0x48d   : > { %9883 = dma.done.wait (%p9516_p1), %s8434_s8, 4096  }
 0x48e   : > { %9885 = vsyncadd (%p9516_p1), %s8434_s8, 4294963200  ;;  %p17_p2 = scmp.ge.s32.totalorder %s9978_s30, 4   ;;  %s14272_s24 = smov %s9892_s25 }
 0x48f   : > { %s14273_s25 = smov %s9896_s26  ;;  %s14274_s26 = smov %s9989_s10 }
 0x490   : > { %s14275_s27 = smov %s9978_s30  ;;  %19 = sbr.rel (!%p17_p2) target bundleno = 3 (0x3), region = 91 }
 0x495   :  { %8439 = vsyncpa [#allocation4], 1 }
 0x496   :  { %8441 = vsyncpa [#allocation4 + $0x1], 1 }

</bundles_post_ra>
